<compile_context>
chip_gen: v6e
topology: v6e:2x2x1
jax: 0.10.0
libtpu: 0.0.40
codegen_flags: <defaults>
</compile_context>

<pallas_src>
import jax
import jax.numpy as jnp
import numpy as np
from jax.experimental import pallas as pl
from jax.experimental.pallas import tpu as pltpu

BN_EPS = 1e-5


# -- small vector-int helpers (power-of-two fast path: shifts/ands only) -----
def _vdiv(a, n):
    if n & (n - 1) == 0:
        return a >> (n.bit_length() - 1)
    return a // n


def _vmod(a, n):
    if n & (n - 1) == 0:
        return a & (n - 1)
    return a % n


# ---------------------------------------------------------------------------
# Wrapper + kernel (kernel is a closure over the static spatial dims)
# ---------------------------------------------------------------------------
def resnext_bottleneck(x, w1, w2, w3, b1, b2, b3, *,
                       batch_block=None, out_dtype=jnp.float32):
    """x: (N, Cin, D, H, W) float32 (NCDHW, PyTorch-native layout).

    Weights are channels-first with BN scales pre-folded (prepare_kernel_params):
      w1 (M, Cin) bf16, w2 (27, M, M) bf16 (dense block-diag per tap),
      w3 (Cout, M) bf16, biases (*, 1) f32.
    """
    N, Cin, D, H, W = x.shape
    M = w1.shape[0]
    Cout = w3.shape[0]
    assert Cin == Cout, "identity residual requires inplanes == planes*expansion"
    # TODO(synk): stride>1 / downsample residual path not implemented.

    S = D * H * W
    if batch_block is None:
        batch_block = N                 # v5e/v6e: single TensorCore -> one step
    assert N % batch_block == 0
    S_blk = batch_block * S             # lane extent per grid step
    assert S_blk % 128 == 0 and Cin % 8 == 0

    # Layout plumbing only: channels-first slab (Cin, N*S), spatial on lanes.
    x_cf = jnp.transpose(x.reshape(N, Cin, S), (1, 0, 2)).reshape(Cin, N * S)

    taps = [(dd, dh, dw) for dd in (-1, 0, 1)
            for dh in (-1, 0, 1) for dw in (-1, 0, 1)]

    def kernel(x_ref, w1_ref, w2_ref, w3_ref, b1_ref, b2_ref, b3_ref, o_ref):
        xb = x_ref[...].astype(jnp.bfloat16)                    # (Cin, S_blk)

        # ---- conv1 (1x1x1, BN1 folded) + bias + ReLU : (M, S_blk) ----------
        h1 = jnp.dot(w1_ref[...], xb, preferred_element_type=jnp.float32)
        h1 = jnp.maximum(h1 + b1_ref[...], 0.0)                 # f32, lane-dense

        # ---- per-lane spatial coordinates (valid for whole-sample blocks) --
        lane = jax.lax.broadcasted_iota(jnp.int32, (1, S_blk), 1)
        w_i = _vmod(lane, W)
        h_i = _vmod(_vdiv(lane, W), H)
        d_i = _vmod(_vdiv(lane, W * H), D)

        def edge_masks(idx, extent):
            return {-1: idx >= 1, 0: None, 1: idx <= extent - 2}

        dmask = edge_masks(d_i, D)
        hmask = edge_masks(h_i, H)
        wmask = edge_masks(w_i, W)

        # ---- conv2: grouped 3x3x3 as 27 rolled taps x (M,M)@(M,S) dots -----
        # Rolls are circular over the flat batch*spatial axis; every position
        # whose neighbour falls outside its own sample is masked to zero, so
        # cross-boundary / cross-sample wraparound never contributes.
        w2_all = w2_ref[...]                                    # (27, M, M) bf16
        acc = jnp.zeros((M, S_blk), jnp.float32)
        for t, (dd, dh, dw) in enumerate(taps):
            delta = dd * H * W + dh * W + dw
            piece = h1 if delta == 0 else pltpu.roll(h1, (-delta) % S_blk, 1)
            m = None
            for part in (dmask[dd], hmask[dh], wmask[dw]):
                if part is not None:
                    m = part if m is None else (m & part)
            if m is not None:
                piece = jnp.where(m, piece, 0.0)
            acc = acc + jnp.dot(w2_all[t], piece.astype(jnp.bfloat16),
                                preferred_element_type=jnp.float32)
        h2 = jnp.maximum(acc + b2_ref[...], 0.0).astype(jnp.bfloat16)

        # ---- conv3 (1x1x1, BN3 folded) + bias + f32 residual + ReLU --------
        out = jnp.dot(w3_ref[...], h2, preferred_element_type=jnp.float32)
        out = out + b3_ref[...] + x_ref[...]        # residual from f32 input
        o_ref[...] = jnp.maximum(out, 0.0).astype(o_ref.dtype)

    def rep(arr):
        nd = arr.ndim
        return pl.BlockSpec(arr.shape, lambda i, nd=nd: (0,) * nd)

    out_cf = pl.pallas_call(
        kernel,
        out_shape=jax.ShapeDtypeStruct((Cout, N * S), out_dtype),
        grid=(N // batch_block,),
        in_specs=[
            pl.BlockSpec((Cin, S_blk), lambda i: (0, i)),
            rep(w1), rep(w2), rep(w3), rep(b1), rep(b2), rep(b3),
        ],
        out_specs=pl.BlockSpec((Cout, S_blk), lambda i: (0, i)),
        compiler_params=pltpu.CompilerParams(
            dimension_semantics=("parallel",)),
    )(x_cf, w1, w2, w3, b1, b2, b3)

    return jnp.transpose(out_cf.reshape(Cout, N, S),
                         (1, 0, 2)).reshape(N, Cout, D, H, W)


# ---------------------------------------------------------------------------
# Deterministic parameter construction (shapes from the module's __init__)
# ---------------------------------------------------------------------------
def make_params(key, inplanes, planes, cardinality):
    expansion = 2
    mid = cardinality * int(planes / 32)
    cout = planes * expansion
    ks = jax.random.split(key, 6)

    w1 = 0.05 * jax.random.normal(ks[0], (inplanes, mid), jnp.float32)       # (Cin, M)
    w2g = 0.05 * jax.random.normal(
        ks[1], (3, 3, 3, mid // cardinality, mid), jnp.float32)               # grouped DHWIO
    w3 = 0.05 * jax.random.normal(ks[2], (mid, cout), jnp.float32)            # (M, Cout)

    def bn(k, c):
        k1, k2, k3, k4 = jax.random.split(k, 4)
        gamma = 0.5 + jax.random.uniform(k1, (c,), jnp.float32)
        beta = 0.1 * jax.random.normal(k2, (c,), jnp.float32)
        mean = 0.1 * jax.random.normal(k3, (c,), jnp.float32)
        var = 0.5 + jax.random.uniform(k4, (c,), jnp.float32)
        return gamma, beta, mean, var

    return dict(w1=w1, w2g=w2g, w3=w3,
                bn1=bn(ks[3], mid), bn2=bn(ks[4], mid), bn3=bn(ks[5], cout),
                cardinality=cardinality, mid=mid, cout=cout)


def fold_bn(bn):
    gamma, beta, mean, var = bn
    s = gamma / jnp.sqrt(var + BN_EPS)
    return s, beta - mean * s


def build_w2_taps(w2g, cardinality, s2):
    """(3,3,3,M/G,M) grouped DHWIO weight -> (27, M, M) dense block-diagonal,
    channels-first [tap, out, in], BN2 scale folded into output rows.

    NOTE: the dense form multiplies conv2 FLOPs by G; fine for tiny M/G.
    TODO(synk): for large cardinality keep per-group matmuls instead.
    """
    kD, kH, kW, mg, M = w2g.shape
    dense = jnp.zeros((kD * kH * kW, M, M), jnp.float32)
    for g in range(cardinality):
        blk = w2g[:, :, :, :, g * mg:(g + 1) * mg].reshape(kD * kH * kW, mg, mg)
        blk = jnp.transpose(blk, (0, 2, 1))                  # [tap, out_local, in_local]
        dense = dense.at[:, g * mg:(g + 1) * mg, g * mg:(g + 1) * mg].set(blk)
    dense = dense * s2[None, :, None]
    return dense.astype(jnp.bfloat16)


def prepare_kernel_params(p):
    """Host-side, one-time: fold BN scales into conv weights, channels-first, bf16."""
    s1, b1 = fold_bn(p['bn1'])
    s2, b2 = fold_bn(p['bn2'])
    s3, b3 = fold_bn(p['bn3'])
    w1 = (p['w1'] * s1[None, :]).T.astype(jnp.bfloat16)      # (M, Cin)
    w2 = build_w2_taps(p['w2g'], p['cardinality'], s2)        # (27, M, M)
    w3 = (p['w3'] * s3[None, :]).T.astype(jnp.bfloat16)      # (Cout, M)
    return w1, w2, w3, b1[:, None], b2[:, None], b3[:, None]


# ---------------------------------------------------------------------------
# Pure-JAX reference (unfused convs + BN, all f32, NCDHW) for validation
# ---------------------------------------------------------------------------
def ref_forward(x, p):
    dn = ('NCDHW', 'DHWIO', 'NCDHW')

    def bn_apply(y, bn):
        gamma, beta, mean, var = bn
        shp = (1, -1, 1, 1, 1)
        return ((y - mean.reshape(shp)) / jnp.sqrt(var.reshape(shp) + BN_EPS)
                * gamma.reshape(shp) + beta.reshape(shp))

    h = jax.lax.conv_general_dilated(x, p['w1'][None, None, None], (1, 1, 1),
                                     'VALID', dimension_numbers=dn)
    h = jax.nn.relu(bn_apply(h, p['bn1']))
    h = jax.lax.conv_general_dilated(h, p['w2g'], (1, 1, 1),
                                     ((1, 1), (1, 1), (1, 1)),
                                     dimension_numbers=dn,
                                     feature_group_count=p['cardinality'])
    h = jax.nn.relu(bn_apply(h, p['bn2']))
    h = jax.lax.conv_general_dilated(h, p['w3'][None, None, None], (1, 1, 1),
                                     'VALID', dimension_numbers=dn)
    h = bn_apply(h, p['bn3']) + x
    return jax.nn.relu(h)


if __name__ == "__main__":
    key = jax.random.PRNGKey(0)
    kx, kp = jax.random.split(key)

    # inplanes == planes * expansion -> identity residual (stride=1, no downsample)
    inplanes, planes, cardinality = 128, 64, 4   # mid_planes = 4 * int(64/32) = 8
    N, D, H, W = 2, 8, 8, 8

    x = jax.random.normal(kx, (N, inplanes, D, H, W), jnp.float32)   # NCDHW
    p = make_params(kp, inplanes, planes, cardinality)
    w1, w2, w3, b1, b2, b3 = prepare_kernel_params(p)

    out = jax.block_until_ready(resnext_bottleneck(x, w1, w2, w3, b1, b2, b3))
    ref = jax.block_until_ready(ref_forward(x, p))
    assert out.shape == ref.shape == (N, planes * 2, D, H, W)
    # bf16 MXU operands -> ~0.5% relative error budget (residual path is exact f32)
    np.testing.assert_allclose(np.asarray(out), np.asarray(ref),
                               rtol=2e-2, atol=2e-2)
    print("KERNEL_OK")
</pallas_src>

<mosaic_0001>
module attributes {stable_mosaic.version = 11 : i64} {
  func.func @kernel(%arg0: i32, %arg1: memref<128x1024xf32, #tpu.memory_space<vmem>>, %arg2: memref<8x128xbf16, #tpu.memory_space<vmem>>, %arg3: memref<27x8x8xbf16, #tpu.memory_space<vmem>>, %arg4: memref<128x8xbf16, #tpu.memory_space<vmem>>, %arg5: memref<8x1xf32, #tpu.memory_space<vmem>>, %arg6: memref<8x1xf32, #tpu.memory_space<vmem>>, %arg7: memref<128x1xf32, #tpu.memory_space<vmem>>, %arg8: memref<128x1024xf32, #tpu.memory_space<vmem>>) attributes {dimension_semantics = [#tpu.dimension_semantics<parallel>], iteration_bounds = array<i64: 1>, scalar_prefetch = 0 : i64, scratch_operands = 0 : i64, tpu.core_type = #tpu.core_type<tc>, window_params = [{transform_indices = @transform_0, window_bounds = array<i64: 128, 1024>}, {pipeline_mode = #tpu.pipeline_mode<synchronous>, transform_indices = @transform_1, window_bounds = array<i64: 8, 128>}, {pipeline_mode = #tpu.pipeline_mode<synchronous>, transform_indices = @transform_2, window_bounds = array<i64: 27, 8, 8>}, {pipeline_mode = #tpu.pipeline_mode<synchronous>, transform_indices = @transform_3, window_bounds = array<i64: 128, 8>}, {pipeline_mode = #tpu.pipeline_mode<synchronous>, transform_indices = @transform_4, window_bounds = array<i64: 8, 1>}, {pipeline_mode = #tpu.pipeline_mode<synchronous>, transform_indices = @transform_5, window_bounds = array<i64: 8, 1>}, {pipeline_mode = #tpu.pipeline_mode<synchronous>, transform_indices = @transform_6, window_bounds = array<i64: 128, 1>}, {transform_indices = @transform_7, window_bounds = array<i64: 128, 1024>}]} {
    %c0 = arith.constant 0 : index
    %c0_0 = arith.constant 0 : index
    %0 = vector.load %arg1[%c0, %c0_0] : memref<128x1024xf32, #tpu.memory_space<vmem>>, vector<128x1024xf32>
    %1 = arith.truncf %0 : vector<128x1024xf32> to vector<128x1024xbf16>
    %c0_1 = arith.constant 0 : index
    %c0_2 = arith.constant 0 : index
    %2 = vector.load %arg2[%c0_1, %c0_2] : memref<8x128xbf16, #tpu.memory_space<vmem>>, vector<8x128xbf16>
    %cst = arith.constant dense<0.000000e+00> : vector<8x1024xf32>
    %3 = tpu.matmul %2, %1, %cst {dimension_numbers = #tpu.dot_dimension_numbers<[1], [0], [0], [1], [0, 0, 1, 1], [], []>} : vector<8x128xbf16>, vector<128x1024xbf16>, vector<8x1024xf32> -> vector<8x1024xf32>
    %c0_3 = arith.constant 0 : index
    %c0_4 = arith.constant 0 : index
    %4 = vector.load %arg5[%c0_3, %c0_4] : memref<8x1xf32, #tpu.memory_space<vmem>>, vector<8x1xf32>
    %5 = vector.broadcast %4 : vector<8x1xf32> to vector<8x1024xf32>
    %6 = arith.addf %3, %5 : vector<8x1024xf32>
    %cst_5 = arith.constant 0.000000e+00 : f32
    %7 = vector.broadcast %cst_5 : f32 to vector<8x1024xf32>
    %8 = arith.maximumf %6, %7 : vector<8x1024xf32>
    %9 = tpu.iota {dimensions = array<i32: 1>} : vector<1x1024xi32>
    %c7_i32 = arith.constant 7 : i32
    %10 = vector.broadcast %c7_i32 : i32 to vector<1x1024xi32>
    %11 = arith.andi %9, %10 : vector<1x1024xi32>
    %c3_i32 = arith.constant 3 : i32
    %12 = vector.broadcast %c3_i32 : i32 to vector<1x1024xi32>
    %13 = arith.shrsi %9, %12 : vector<1x1024xi32>
    %c7_i32_6 = arith.constant 7 : i32
    %14 = vector.broadcast %c7_i32_6 : i32 to vector<1x1024xi32>
    %15 = arith.andi %13, %14 : vector<1x1024xi32>
    %c6_i32 = arith.constant 6 : i32
    %16 = vector.broadcast %c6_i32 : i32 to vector<1x1024xi32>
    %17 = arith.shrsi %9, %16 : vector<1x1024xi32>
    %c7_i32_7 = arith.constant 7 : i32
    %18 = vector.broadcast %c7_i32_7 : i32 to vector<1x1024xi32>
    %19 = arith.andi %17, %18 : vector<1x1024xi32>
    %c1_i32 = arith.constant 1 : i32
    %20 = vector.broadcast %c1_i32 : i32 to vector<1x1024xi32>
    %21 = arith.cmpi sge, %19, %20 : vector<1x1024xi32>
    %c6_i32_8 = arith.constant 6 : i32
    %22 = vector.broadcast %c6_i32_8 : i32 to vector<1x1024xi32>
    %23 = arith.cmpi sle, %19, %22 : vector<1x1024xi32>
    %c1_i32_9 = arith.constant 1 : i32
    %24 = vector.broadcast %c1_i32_9 : i32 to vector<1x1024xi32>
    %25 = arith.cmpi sge, %15, %24 : vector<1x1024xi32>
    %c6_i32_10 = arith.constant 6 : i32
    %26 = vector.broadcast %c6_i32_10 : i32 to vector<1x1024xi32>
    %27 = arith.cmpi sle, %15, %26 : vector<1x1024xi32>
    %c1_i32_11 = arith.constant 1 : i32
    %28 = vector.broadcast %c1_i32_11 : i32 to vector<1x1024xi32>
    %29 = arith.cmpi sge, %11, %28 : vector<1x1024xi32>
    %c6_i32_12 = arith.constant 6 : i32
    %30 = vector.broadcast %c6_i32_12 : i32 to vector<1x1024xi32>
    %31 = arith.cmpi sle, %11, %30 : vector<1x1024xi32>
    %c0_13 = arith.constant 0 : index
    %c0_14 = arith.constant 0 : index
    %c0_15 = arith.constant 0 : index
    %32 = vector.load %arg3[%c0_13, %c0_14, %c0_15] : memref<27x8x8xbf16, #tpu.memory_space<vmem>>, vector<27x8x8xbf16>
    %cst_16 = arith.constant 0.000000e+00 : f32
    %33 = vector.broadcast %cst_16 : f32 to vector<8x1024xf32>
    %c73_i32 = arith.constant 73 : i32
    %34 = tpu.dynamic_rotate %8 by %c73_i32 dim 1 : vector<8x1024xf32>, i32 -> vector<8x1024xf32>
    %35 = arith.andi %21, %25 : vector<1x1024xi1>
    %36 = arith.andi %35, %29 : vector<1x1024xi1>
    %cst_17 = arith.constant 0.000000e+00 : f32
    %37 = vector.shape_cast %36 : vector<1x1024xi1> to vector<1x1024xi1>
    %38 = vector.broadcast %37 : vector<1x1024xi1> to vector<8x1024xi1>
    %39 = vector.broadcast %cst_17 : f32 to vector<8x1024xf32>
    %40 = arith.select %38, %34, %39 : vector<8x1024xi1>, vector<8x1024xf32>
    %41 = vector.extract_strided_slice %32 {offsets = [0, 0, 0], sizes = [1, 8, 8], strides = [1, 1, 1]} : vector<27x8x8xbf16> to vector<1x8x8xbf16>
    %42 = vector.shape_cast %41 : vector<1x8x8xbf16> to vector<8x8xbf16>
    %43 = arith.truncf %40 : vector<8x1024xf32> to vector<8x1024xbf16>
    %cst_18 = arith.constant dense<0.000000e+00> : vector<8x1024xf32>
    %44 = tpu.matmul %42, %43, %cst_18 {dimension_numbers = #tpu.dot_dimension_numbers<[1], [0], [0], [1], [0, 0, 1, 1], [], []>} : vector<8x8xbf16>, vector<8x1024xbf16>, vector<8x1024xf32> -> vector<8x1024xf32>
    %45 = arith.addf %33, %44 : vector<8x1024xf32>
    %c72_i32 = arith.constant 72 : i32
    %46 = tpu.dynamic_rotate %8 by %c72_i32 dim 1 : vector<8x1024xf32>, i32 -> vector<8x1024xf32>
    %47 = arith.andi %21, %25 : vector<1x1024xi1>
    %cst_19 = arith.constant 0.000000e+00 : f32
    %48 = vector.shape_cast %47 : vector<1x1024xi1> to vector<1x1024xi1>
    %49 = vector.broadcast %48 : vector<1x1024xi1> to vector<8x1024xi1>
    %50 = vector.broadcast %cst_19 : f32 to vector<8x1024xf32>
    %51 = arith.select %49, %46, %50 : vector<8x1024xi1>, vector<8x1024xf32>
    %52 = vector.extract_strided_slice %32 {offsets = [1, 0, 0], sizes = [1, 8, 8], strides = [1, 1, 1]} : vector<27x8x8xbf16> to vector<1x8x8xbf16>
    %53 = vector.shape_cast %52 : vector<1x8x8xbf16> to vector<8x8xbf16>
    %54 = arith.truncf %51 : vector<8x1024xf32> to vector<8x1024xbf16>
    %cst_20 = arith.constant dense<0.000000e+00> : vector<8x1024xf32>
    %55 = tpu.matmul %53, %54, %cst_20 {dimension_numbers = #tpu.dot_dimension_numbers<[1], [0], [0], [1], [0, 0, 1, 1], [], []>} : vector<8x8xbf16>, vector<8x1024xbf16>, vector<8x1024xf32> -> vector<8x1024xf32>
    %56 = arith.addf %45, %55 : vector<8x1024xf32>
    %c71_i32 = arith.constant 71 : i32
    %57 = tpu.dynamic_rotate %8 by %c71_i32 dim 1 : vector<8x1024xf32>, i32 -> vector<8x1024xf32>
    %58 = arith.andi %21, %25 : vector<1x1024xi1>
    %59 = arith.andi %58, %31 : vector<1x1024xi1>
    %cst_21 = arith.constant 0.000000e+00 : f32
    %60 = vector.shape_cast %59 : vector<1x1024xi1> to vector<1x1024xi1>
    %61 = vector.broadcast %60 : vector<1x1024xi1> to vector<8x1024xi1>
    %62 = vector.broadcast %cst_21 : f32 to vector<8x1024xf32>
    %63 = arith.select %61, %57, %62 : vector<8x1024xi1>, vector<8x1024xf32>
    %64 = vector.extract_strided_slice %32 {offsets = [2, 0, 0], sizes = [1, 8, 8], strides = [1, 1, 1]} : vector<27x8x8xbf16> to vector<1x8x8xbf16>
    %65 = vector.shape_cast %64 : vector<1x8x8xbf16> to vector<8x8xbf16>
    %66 = arith.truncf %63 : vector<8x1024xf32> to vector<8x1024xbf16>
    %cst_22 = arith.constant dense<0.000000e+00> : vector<8x1024xf32>
    %67 = tpu.matmul %65, %66, %cst_22 {dimension_numbers = #tpu.dot_dimension_numbers<[1], [0], [0], [1], [0, 0, 1, 1], [], []>} : vector<8x8xbf16>, vector<8x1024xbf16>, vector<8x1024xf32> -> vector<8x1024xf32>
    %68 = arith.addf %56, %67 : vector<8x1024xf32>
    %c65_i32 = arith.constant 65 : i32
    %69 = tpu.dynamic_rotate %8 by %c65_i32 dim 1 : vector<8x1024xf32>, i32 -> vector<8x1024xf32>
    %70 = arith.andi %21, %29 : vector<1x1024xi1>
    %cst_23 = arith.constant 0.000000e+00 : f32
    %71 = vector.shape_cast %70 : vector<1x1024xi1> to vector<1x1024xi1>
    %72 = vector.broadcast %71 : vector<1x1024xi1> to vector<8x1024xi1>
    %73 = vector.broadcast %cst_23 : f32 to vector<8x1024xf32>
    %74 = arith.select %72, %69, %73 : vector<8x1024xi1>, vector<8x1024xf32>
    %75 = vector.extract_strided_slice %32 {offsets = [3, 0, 0], sizes = [1, 8, 8], strides = [1, 1, 1]} : vector<27x8x8xbf16> to vector<1x8x8xbf16>
    %76 = vector.shape_cast %75 : vector<1x8x8xbf16> to vector<8x8xbf16>
    %77 = arith.truncf %74 : vector<8x1024xf32> to vector<8x1024xbf16>
    %cst_24 = arith.constant dense<0.000000e+00> : vector<8x1024xf32>
    %78 = tpu.matmul %76, %77, %cst_24 {dimension_numbers = #tpu.dot_dimension_numbers<[1], [0], [0], [1], [0, 0, 1, 1], [], []>} : vector<8x8xbf16>, vector<8x1024xbf16>, vector<8x1024xf32> -> vector<8x1024xf32>
    %79 = arith.addf %68, %78 : vector<8x1024xf32>
    %c64_i32 = arith.constant 64 : i32
    %80 = tpu.dynamic_rotate %8 by %c64_i32 dim 1 : vector<8x1024xf32>, i32 -> vector<8x1024xf32>
    %cst_25 = arith.constant 0.000000e+00 : f32
    %81 = vector.shape_cast %21 : vector<1x1024xi1> to vector<1x1024xi1>
    %82 = vector.broadcast %81 : vector<1x1024xi1> to vector<8x1024xi1>
    %83 = vector.broadcast %cst_25 : f32 to vector<8x1024xf32>
    %84 = arith.select %82, %80, %83 : vector<8x1024xi1>, vector<8x1024xf32>
    %85 = vector.extract_strided_slice %32 {offsets = [4, 0, 0], sizes = [1, 8, 8], strides = [1, 1, 1]} : vector<27x8x8xbf16> to vector<1x8x8xbf16>
    %86 = vector.shape_cast %85 : vector<1x8x8xbf16> to vector<8x8xbf16>
    %87 = arith.truncf %84 : vector<8x1024xf32> to vector<8x1024xbf16>
    %cst_26 = arith.constant dense<0.000000e+00> : vector<8x1024xf32>
    %88 = tpu.matmul %86, %87, %cst_26 {dimension_numbers = #tpu.dot_dimension_numbers<[1], [0], [0], [1], [0, 0, 1, 1], [], []>} : vector<8x8xbf16>, vector<8x1024xbf16>, vector<8x1024xf32> -> vector<8x1024xf32>
    %89 = arith.addf %79, %88 : vector<8x1024xf32>
    %c63_i32 = arith.constant 63 : i32
    %90 = tpu.dynamic_rotate %8 by %c63_i32 dim 1 : vector<8x1024xf32>, i32 -> vector<8x1024xf32>
    %91 = arith.andi %21, %31 : vector<1x1024xi1>
    %cst_27 = arith.constant 0.000000e+00 : f32
    %92 = vector.shape_cast %91 : vector<1x1024xi1> to vector<1x1024xi1>
    %93 = vector.broadcast %92 : vector<1x1024xi1> to vector<8x1024xi1>
    %94 = vector.broadcast %cst_27 : f32 to vector<8x1024xf32>
    %95 = arith.select %93, %90, %94 : vector<8x1024xi1>, vector<8x1024xf32>
    %96 = vector.extract_strided_slice %32 {offsets = [5, 0, 0], sizes = [1, 8, 8], strides = [1, 1, 1]} : vector<27x8x8xbf16> to vector<1x8x8xbf16>
    %97 = vector.shape_cast %96 : vector<1x8x8xbf16> to vector<8x8xbf16>
    %98 = arith.truncf %95 : vector<8x1024xf32> to vector<8x1024xbf16>
    %cst_28 = arith.constant dense<0.000000e+00> : vector<8x1024xf32>
    %99 = tpu.matmul %97, %98, %cst_28 {dimension_numbers = #tpu.dot_dimension_numbers<[1], [0], [0], [1], [0, 0, 1, 1], [], []>} : vector<8x8xbf16>, vector<8x1024xbf16>, vector<8x1024xf32> -> vector<8x1024xf32>
    %100 = arith.addf %89, %99 : vector<8x1024xf32>
    %c57_i32 = arith.constant 57 : i32
    %101 = tpu.dynamic_rotate %8 by %c57_i32 dim 1 : vector<8x1024xf32>, i32 -> vector<8x1024xf32>
    %102 = arith.andi %21, %27 : vector<1x1024xi1>
    %103 = arith.andi %102, %29 : vector<1x1024xi1>
    %cst_29 = arith.constant 0.000000e+00 : f32
    %104 = vector.shape_cast %103 : vector<1x1024xi1> to vector<1x1024xi1>
    %105 = vector.broadcast %104 : vector<1x1024xi1> to vector<8x1024xi1>
    %106 = vector.broadcast %cst_29 : f32 to vector<8x1024xf32>
    %107 = arith.select %105, %101, %106 : vector<8x1024xi1>, vector<8x1024xf32>
    %108 = vector.extract_strided_slice %32 {offsets = [6, 0, 0], sizes = [1, 8, 8], strides = [1, 1, 1]} : vector<27x8x8xbf16> to vector<1x8x8xbf16>
    %109 = vector.shape_cast %108 : vector<1x8x8xbf16> to vector<8x8xbf16>
    %110 = arith.truncf %107 : vector<8x1024xf32> to vector<8x1024xbf16>
    %cst_30 = arith.constant dense<0.000000e+00> : vector<8x1024xf32>
    %111 = tpu.matmul %109, %110, %cst_30 {dimension_numbers = #tpu.dot_dimension_numbers<[1], [0], [0], [1], [0, 0, 1, 1], [], []>} : vector<8x8xbf16>, vector<8x1024xbf16>, vector<8x1024xf32> -> vector<8x1024xf32>
    %112 = arith.addf %100, %111 : vector<8x1024xf32>
    %c56_i32 = arith.constant 56 : i32
    %113 = tpu.dynamic_rotate %8 by %c56_i32 dim 1 : vector<8x1024xf32>, i32 -> vector<8x1024xf32>
    %114 = arith.andi %21, %27 : vector<1x1024xi1>
    %cst_31 = arith.constant 0.000000e+00 : f32
    %115 = vector.shape_cast %114 : vector<1x1024xi1> to vector<1x1024xi1>
    %116 = vector.broadcast %115 : vector<1x1024xi1> to vector<8x1024xi1>
    %117 = vector.broadcast %cst_31 : f32 to vector<8x1024xf32>
    %118 = arith.select %116, %113, %117 : vector<8x1024xi1>, vector<8x1024xf32>
    %119 = vector.extract_strided_slice %32 {offsets = [7, 0, 0], sizes = [1, 8, 8], strides = [1, 1, 1]} : vector<27x8x8xbf16> to vector<1x8x8xbf16>
    %120 = vector.shape_cast %119 : vector<1x8x8xbf16> to vector<8x8xbf16>
    %121 = arith.truncf %118 : vector<8x1024xf32> to vector<8x1024xbf16>
    %cst_32 = arith.constant dense<0.000000e+00> : vector<8x1024xf32>
    %122 = tpu.matmul %120, %121, %cst_32 {dimension_numbers = #tpu.dot_dimension_numbers<[1], [0], [0], [1], [0, 0, 1, 1], [], []>} : vector<8x8xbf16>, vector<8x1024xbf16>, vector<8x1024xf32> -> vector<8x1024xf32>
    %123 = arith.addf %112, %122 : vector<8x1024xf32>
    %c55_i32 = arith.constant 55 : i32
    %124 = tpu.dynamic_rotate %8 by %c55_i32 dim 1 : vector<8x1024xf32>, i32 -> vector<8x1024xf32>
    %125 = arith.andi %21, %27 : vector<1x1024xi1>
    %126 = arith.andi %125, %31 : vector<1x1024xi1>
    %cst_33 = arith.constant 0.000000e+00 : f32
    %127 = vector.shape_cast %126 : vector<1x1024xi1> to vector<1x1024xi1>
    %128 = vector.broadcast %127 : vector<1x1024xi1> to vector<8x1024xi1>
    %129 = vector.broadcast %cst_33 : f32 to vector<8x1024xf32>
    %130 = arith.select %128, %124, %129 : vector<8x1024xi1>, vector<8x1024xf32>
    %131 = vector.extract_strided_slice %32 {offsets = [8, 0, 0], sizes = [1, 8, 8], strides = [1, 1, 1]} : vector<27x8x8xbf16> to vector<1x8x8xbf16>
    %132 = vector.shape_cast %131 : vector<1x8x8xbf16> to vector<8x8xbf16>
    %133 = arith.truncf %130 : vector<8x1024xf32> to vector<8x1024xbf16>
    %cst_34 = arith.constant dense<0.000000e+00> : vector<8x1024xf32>
    %134 = tpu.matmul %132, %133, %cst_34 {dimension_numbers = #tpu.dot_dimension_numbers<[1], [0], [0], [1], [0, 0, 1, 1], [], []>} : vector<8x8xbf16>, vector<8x1024xbf16>, vector<8x1024xf32> -> vector<8x1024xf32>
    %135 = arith.addf %123, %134 : vector<8x1024xf32>
    %c9_i32 = arith.constant 9 : i32
    %136 = tpu.dynamic_rotate %8 by %c9_i32 dim 1 : vector<8x1024xf32>, i32 -> vector<8x1024xf32>
    %137 = arith.andi %25, %29 : vector<1x1024xi1>
    %cst_35 = arith.constant 0.000000e+00 : f32
    %138 = vector.shape_cast %137 : vector<1x1024xi1> to vector<1x1024xi1>
    %139 = vector.broadcast %138 : vector<1x1024xi1> to vector<8x1024xi1>
    %140 = vector.broadcast %cst_35 : f32 to vector<8x1024xf32>
    %141 = arith.select %139, %136, %140 : vector<8x1024xi1>, vector<8x1024xf32>
    %142 = vector.extract_strided_slice %32 {offsets = [9, 0, 0], sizes = [1, 8, 8], strides = [1, 1, 1]} : vector<27x8x8xbf16> to vector<1x8x8xbf16>
    %143 = vector.shape_cast %142 : vector<1x8x8xbf16> to vector<8x8xbf16>
    %144 = arith.truncf %141 : vector<8x1024xf32> to vector<8x1024xbf16>
    %cst_36 = arith.constant dense<0.000000e+00> : vector<8x1024xf32>
    %145 = tpu.matmul %143, %144, %cst_36 {dimension_numbers = #tpu.dot_dimension_numbers<[1], [0], [0], [1], [0, 0, 1, 1], [], []>} : vector<8x8xbf16>, vector<8x1024xbf16>, vector<8x1024xf32> -> vector<8x1024xf32>
    %146 = arith.addf %135, %145 : vector<8x1024xf32>
    %c8_i32 = arith.constant 8 : i32
    %147 = tpu.dynamic_rotate %8 by %c8_i32 dim 1 : vector<8x1024xf32>, i32 -> vector<8x1024xf32>
    %cst_37 = arith.constant 0.000000e+00 : f32
    %148 = vector.shape_cast %25 : vector<1x1024xi1> to vector<1x1024xi1>
    %149 = vector.broadcast %148 : vector<1x1024xi1> to vector<8x1024xi1>
    %150 = vector.broadcast %cst_37 : f32 to vector<8x1024xf32>
    %151 = arith.select %149, %147, %150 : vector<8x1024xi1>, vector<8x1024xf32>
    %152 = vector.extract_strided_slice %32 {offsets = [10, 0, 0], sizes = [1, 8, 8], strides = [1, 1, 1]} : vector<27x8x8xbf16> to vector<1x8x8xbf16>
    %153 = vector.shape_cast %152 : vector<1x8x8xbf16> to vector<8x8xbf16>
    %154 = arith.truncf %151 : vector<8x1024xf32> to vector<8x1024xbf16>
    %cst_38 = arith.constant dense<0.000000e+00> : vector<8x1024xf32>
    %155 = tpu.matmul %153, %154, %cst_38 {dimension_numbers = #tpu.dot_dimension_numbers<[1], [0], [0], [1], [0, 0, 1, 1], [], []>} : vector<8x8xbf16>, vector<8x1024xbf16>, vector<8x1024xf32> -> vector<8x1024xf32>
    %156 = arith.addf %146, %155 : vector<8x1024xf32>
    %c7_i32_39 = arith.constant 7 : i32
    %157 = tpu.dynamic_rotate %8 by %c7_i32_39 dim 1 : vector<8x1024xf32>, i32 -> vector<8x1024xf32>
    %158 = arith.andi %25, %31 : vector<1x1024xi1>
    %cst_40 = arith.constant 0.000000e+00 : f32
    %159 = vector.shape_cast %158 : vector<1x1024xi1> to vector<1x1024xi1>
    %160 = vector.broadcast %159 : vector<1x1024xi1> to vector<8x1024xi1>
    %161 = vector.broadcast %cst_40 : f32 to vector<8x1024xf32>
    %162 = arith.select %160, %157, %161 : vector<8x1024xi1>, vector<8x1024xf32>
    %163 = vector.extract_strided_slice %32 {offsets = [11, 0, 0], sizes = [1, 8, 8], strides = [1, 1, 1]} : vector<27x8x8xbf16> to vector<1x8x8xbf16>
    %164 = vector.shape_cast %163 : vector<1x8x8xbf16> to vector<8x8xbf16>
    %165 = arith.truncf %162 : vector<8x1024xf32> to vector<8x1024xbf16>
    %cst_41 = arith.constant dense<0.000000e+00> : vector<8x1024xf32>
    %166 = tpu.matmul %164, %165, %cst_41 {dimension_numbers = #tpu.dot_dimension_numbers<[1], [0], [0], [1], [0, 0, 1, 1], [], []>} : vector<8x8xbf16>, vector<8x1024xbf16>, vector<8x1024xf32> -> vector<8x1024xf32>
    %167 = arith.addf %156, %166 : vector<8x1024xf32>
    %c1_i32_42 = arith.constant 1 : i32
    %168 = tpu.dynamic_rotate %8 by %c1_i32_42 dim 1 : vector<8x1024xf32>, i32 -> vector<8x1024xf32>
    %cst_43 = arith.constant 0.000000e+00 : f32
    %169 = vector.shape_cast %29 : vector<1x1024xi1> to vector<1x1024xi1>
    %170 = vector.broadcast %169 : vector<1x1024xi1> to vector<8x1024xi1>
    %171 = vector.broadcast %cst_43 : f32 to vector<8x1024xf32>
    %172 = arith.select %170, %168, %171 : vector<8x1024xi1>, vector<8x1024xf32>
    %173 = vector.extract_strided_slice %32 {offsets = [12, 0, 0], sizes = [1, 8, 8], strides = [1, 1, 1]} : vector<27x8x8xbf16> to vector<1x8x8xbf16>
    %174 = vector.shape_cast %173 : vector<1x8x8xbf16> to vector<8x8xbf16>
    %175 = arith.truncf %172 : vector<8x1024xf32> to vector<8x1024xbf16>
    %cst_44 = arith.constant dense<0.000000e+00> : vector<8x1024xf32>
    %176 = tpu.matmul %174, %175, %cst_44 {dimension_numbers = #tpu.dot_dimension_numbers<[1], [0], [0], [1], [0, 0, 1, 1], [], []>} : vector<8x8xbf16>, vector<8x1024xbf16>, vector<8x1024xf32> -> vector<8x1024xf32>
    %177 = arith.addf %167, %176 : vector<8x1024xf32>
    %178 = vector.extract_strided_slice %32 {offsets = [13, 0, 0], sizes = [1, 8, 8], strides = [1, 1, 1]} : vector<27x8x8xbf16> to vector<1x8x8xbf16>
    %179 = vector.shape_cast %178 : vector<1x8x8xbf16> to vector<8x8xbf16>
    %180 = arith.truncf %8 : vector<8x1024xf32> to vector<8x1024xbf16>
    %cst_45 = arith.constant dense<0.000000e+00> : vector<8x1024xf32>
    %181 = tpu.matmul %179, %180, %cst_45 {dimension_numbers = #tpu.dot_dimension_numbers<[1], [0], [0], [1], [0, 0, 1, 1], [], []>} : vector<8x8xbf16>, vector<8x1024xbf16>, vector<8x1024xf32> -> vector<8x1024xf32>
    %182 = arith.addf %177, %181 : vector<8x1024xf32>
    %c1023_i32 = arith.constant 1023 : i32
    %183 = tpu.dynamic_rotate %8 by %c1023_i32 dim 1 : vector<8x1024xf32>, i32 -> vector<8x1024xf32>
    %cst_46 = arith.constant 0.000000e+00 : f32
    %184 = vector.shape_cast %31 : vector<1x1024xi1> to vector<1x1024xi1>
    %185 = vector.broadcast %184 : vector<1x1024xi1> to vector<8x1024xi1>
    %186 = vector.broadcast %cst_46 : f32 to vector<8x1024xf32>
    %187 = arith.select %185, %183, %186 : vector<8x1024xi1>, vector<8x1024xf32>
    %188 = vector.extract_strided_slice %32 {offsets = [14, 0, 0], sizes = [1, 8, 8], strides = [1, 1, 1]} : vector<27x8x8xbf16> to vector<1x8x8xbf16>
    %189 = vector.shape_cast %188 : vector<1x8x8xbf16> to vector<8x8xbf16>
    %190 = arith.truncf %187 : vector<8x1024xf32> to vector<8x1024xbf16>
    %cst_47 = arith.constant dense<0.000000e+00> : vector<8x1024xf32>
    %191 = tpu.matmul %189, %190, %cst_47 {dimension_numbers = #tpu.dot_dimension_numbers<[1], [0], [0], [1], [0, 0, 1, 1], [], []>} : vector<8x8xbf16>, vector<8x1024xbf16>, vector<8x1024xf32> -> vector<8x1024xf32>
    %192 = arith.addf %182, %191 : vector<8x1024xf32>
    %c1017_i32 = arith.constant 1017 : i32
    %193 = tpu.dynamic_rotate %8 by %c1017_i32 dim 1 : vector<8x1024xf32>, i32 -> vector<8x1024xf32>
    %194 = arith.andi %27, %29 : vector<1x1024xi1>
    %cst_48 = arith.constant 0.000000e+00 : f32
    %195 = vector.shape_cast %194 : vector<1x1024xi1> to vector<1x1024xi1>
    %196 = vector.broadcast %195 : vector<1x1024xi1> to vector<8x1024xi1>
    %197 = vector.broadcast %cst_48 : f32 to vector<8x1024xf32>
    %198 = arith.select %196, %193, %197 : vector<8x1024xi1>, vector<8x1024xf32>
    %199 = vector.extract_strided_slice %32 {offsets = [15, 0, 0], sizes = [1, 8, 8], strides = [1, 1, 1]} : vector<27x8x8xbf16> to vector<1x8x8xbf16>
    %200 = vector.shape_cast %199 : vector<1x8x8xbf16> to vector<8x8xbf16>
    %201 = arith.truncf %198 : vector<8x1024xf32> to vector<8x1024xbf16>
    %cst_49 = arith.constant dense<0.000000e+00> : vector<8x1024xf32>
    %202 = tpu.matmul %200, %201, %cst_49 {dimension_numbers = #tpu.dot_dimension_numbers<[1], [0], [0], [1], [0, 0, 1, 1], [], []>} : vector<8x8xbf16>, vector<8x1024xbf16>, vector<8x1024xf32> -> vector<8x1024xf32>
    %203 = arith.addf %192, %202 : vector<8x1024xf32>
    %c1016_i32 = arith.constant 1016 : i32
    %204 = tpu.dynamic_rotate %8 by %c1016_i32 dim 1 : vector<8x1024xf32>, i32 -> vector<8x1024xf32>
    %cst_50 = arith.constant 0.000000e+00 : f32
    %205 = vector.shape_cast %27 : vector<1x1024xi1> to vector<1x1024xi1>
    %206 = vector.broadcast %205 : vector<1x1024xi1> to vector<8x1024xi1>
    %207 = vector.broadcast %cst_50 : f32 to vector<8x1024xf32>
    %208 = arith.select %206, %204, %207 : vector<8x1024xi1>, vector<8x1024xf32>
    %209 = vector.extract_strided_slice %32 {offsets = [16, 0, 0], sizes = [1, 8, 8], strides = [1, 1, 1]} : vector<27x8x8xbf16> to vector<1x8x8xbf16>
    %210 = vector.shape_cast %209 : vector<1x8x8xbf16> to vector<8x8xbf16>
    %211 = arith.truncf %208 : vector<8x1024xf32> to vector<8x1024xbf16>
    %cst_51 = arith.constant dense<0.000000e+00> : vector<8x1024xf32>
    %212 = tpu.matmul %210, %211, %cst_51 {dimension_numbers = #tpu.dot_dimension_numbers<[1], [0], [0], [1], [0, 0, 1, 1], [], []>} : vector<8x8xbf16>, vector<8x1024xbf16>, vector<8x1024xf32> -> vector<8x1024xf32>
    %213 = arith.addf %203, %212 : vector<8x1024xf32>
    %c1015_i32 = arith.constant 1015 : i32
    %214 = tpu.dynamic_rotate %8 by %c1015_i32 dim 1 : vector<8x1024xf32>, i32 -> vector<8x1024xf32>
    %215 = arith.andi %27, %31 : vector<1x1024xi1>
    %cst_52 = arith.constant 0.000000e+00 : f32
    %216 = vector.shape_cast %215 : vector<1x1024xi1> to vector<1x1024xi1>
    %217 = vector.broadcast %216 : vector<1x1024xi1> to vector<8x1024xi1>
    %218 = vector.broadcast %cst_52 : f32 to vector<8x1024xf32>
    %219 = arith.select %217, %214, %218 : vector<8x1024xi1>, vector<8x1024xf32>
    %220 = vector.extract_strided_slice %32 {offsets = [17, 0, 0], sizes = [1, 8, 8], strides = [1, 1, 1]} : vector<27x8x8xbf16> to vector<1x8x8xbf16>
    %221 = vector.shape_cast %220 : vector<1x8x8xbf16> to vector<8x8xbf16>
    %222 = arith.truncf %219 : vector<8x1024xf32> to vector<8x1024xbf16>
    %cst_53 = arith.constant dense<0.000000e+00> : vector<8x1024xf32>
    %223 = tpu.matmul %221, %222, %cst_53 {dimension_numbers = #tpu.dot_dimension_numbers<[1], [0], [0], [1], [0, 0, 1, 1], [], []>} : vector<8x8xbf16>, vector<8x1024xbf16>, vector<8x1024xf32> -> vector<8x1024xf32>
    %224 = arith.addf %213, %223 : vector<8x1024xf32>
    %c969_i32 = arith.constant 969 : i32
    %225 = tpu.dynamic_rotate %8 by %c969_i32 dim 1 : vector<8x1024xf32>, i32 -> vector<8x1024xf32>
    %226 = arith.andi %23, %25 : vector<1x1024xi1>
    %227 = arith.andi %226, %29 : vector<1x1024xi1>
    %cst_54 = arith.constant 0.000000e+00 : f32
    %228 = vector.shape_cast %227 : vector<1x1024xi1> to vector<1x1024xi1>
    %229 = vector.broadcast %228 : vector<1x1024xi1> to vector<8x1024xi1>
    %230 = vector.broadcast %cst_54 : f32 to vector<8x1024xf32>
    %231 = arith.select %229, %225, %230 : vector<8x1024xi1>, vector<8x1024xf32>
    %232 = vector.extract_strided_slice %32 {offsets = [18, 0, 0], sizes = [1, 8, 8], strides = [1, 1, 1]} : vector<27x8x8xbf16> to vector<1x8x8xbf16>
    %233 = vector.shape_cast %232 : vector<1x8x8xbf16> to vector<8x8xbf16>
    %234 = arith.truncf %231 : vector<8x1024xf32> to vector<8x1024xbf16>
    %cst_55 = arith.constant dense<0.000000e+00> : vector<8x1024xf32>
    %235 = tpu.matmul %233, %234, %cst_55 {dimension_numbers = #tpu.dot_dimension_numbers<[1], [0], [0], [1], [0, 0, 1, 1], [], []>} : vector<8x8xbf16>, vector<8x1024xbf16>, vector<8x1024xf32> -> vector<8x1024xf32>
    %236 = arith.addf %224, %235 : vector<8x1024xf32>
    %c968_i32 = arith.constant 968 : i32
    %237 = tpu.dynamic_rotate %8 by %c968_i32 dim 1 : vector<8x1024xf32>, i32 -> vector<8x1024xf32>
    %238 = arith.andi %23, %25 : vector<1x1024xi1>
    %cst_56 = arith.constant 0.000000e+00 : f32
    %239 = vector.shape_cast %238 : vector<1x1024xi1> to vector<1x1024xi1>
    %240 = vector.broadcast %239 : vector<1x1024xi1> to vector<8x1024xi1>
    %241 = vector.broadcast %cst_56 : f32 to vector<8x1024xf32>
    %242 = arith.select %240, %237, %241 : vector<8x1024xi1>, vector<8x1024xf32>
    %243 = vector.extract_strided_slice %32 {offsets = [19, 0, 0], sizes = [1, 8, 8], strides = [1, 1, 1]} : vector<27x8x8xbf16> to vector<1x8x8xbf16>
    %244 = vector.shape_cast %243 : vector<1x8x8xbf16> to vector<8x8xbf16>
    %245 = arith.truncf %242 : vector<8x1024xf32> to vector<8x1024xbf16>
    %cst_57 = arith.constant dense<0.000000e+00> : vector<8x1024xf32>
    %246 = tpu.matmul %244, %245, %cst_57 {dimension_numbers = #tpu.dot_dimension_numbers<[1], [0], [0], [1], [0, 0, 1, 1], [], []>} : vector<8x8xbf16>, vector<8x1024xbf16>, vector<8x1024xf32> -> vector<8x1024xf32>
    %247 = arith.addf %236, %246 : vector<8x1024xf32>
    %c967_i32 = arith.constant 967 : i32
    %248 = tpu.dynamic_rotate %8 by %c967_i32 dim 1 : vector<8x1024xf32>, i32 -> vector<8x1024xf32>
    %249 = arith.andi %23, %25 : vector<1x1024xi1>
    %250 = arith.andi %249, %31 : vector<1x1024xi1>
    %cst_58 = arith.constant 0.000000e+00 : f32
    %251 = vector.shape_cast %250 : vector<1x1024xi1> to vector<1x1024xi1>
    %252 = vector.broadcast %251 : vector<1x1024xi1> to vector<8x1024xi1>
    %253 = vector.broadcast %cst_58 : f32 to vector<8x1024xf32>
    %254 = arith.select %252, %248, %253 : vector<8x1024xi1>, vector<8x1024xf32>
    %255 = vector.extract_strided_slice %32 {offsets = [20, 0, 0], sizes = [1, 8, 8], strides = [1, 1, 1]} : vector<27x8x8xbf16> to vector<1x8x8xbf16>
    %256 = vector.shape_cast %255 : vector<1x8x8xbf16> to vector<8x8xbf16>
    %257 = arith.truncf %254 : vector<8x1024xf32> to vector<8x1024xbf16>
    %cst_59 = arith.constant dense<0.000000e+00> : vector<8x1024xf32>
    %258 = tpu.matmul %256, %257, %cst_59 {dimension_numbers = #tpu.dot_dimension_numbers<[1], [0], [0], [1], [0, 0, 1, 1], [], []>} : vector<8x8xbf16>, vector<8x1024xbf16>, vector<8x1024xf32> -> vector<8x1024xf32>
    %259 = arith.addf %247, %258 : vector<8x1024xf32>
    %c961_i32 = arith.constant 961 : i32
    %260 = tpu.dynamic_rotate %8 by %c961_i32 dim 1 : vector<8x1024xf32>, i32 -> vector<8x1024xf32>
    %261 = arith.andi %23, %29 : vector<1x1024xi1>
    %cst_60 = arith.constant 0.000000e+00 : f32
    %262 = vector.shape_cast %261 : vector<1x1024xi1> to vector<1x1024xi1>
    %263 = vector.broadcast %262 : vector<1x1024xi1> to vector<8x1024xi1>
    %264 = vector.broadcast %cst_60 : f32 to vector<8x1024xf32>
    %265 = arith.select %263, %260, %264 : vector<8x1024xi1>, vector<8x1024xf32>
    %266 = vector.extract_strided_slice %32 {offsets = [21, 0, 0], sizes = [1, 8, 8], strides = [1, 1, 1]} : vector<27x8x8xbf16> to vector<1x8x8xbf16>
    %267 = vector.shape_cast %266 : vector<1x8x8xbf16> to vector<8x8xbf16>
    %268 = arith.truncf %265 : vector<8x1024xf32> to vector<8x1024xbf16>
    %cst_61 = arith.constant dense<0.000000e+00> : vector<8x1024xf32>
    %269 = tpu.matmul %267, %268, %cst_61 {dimension_numbers = #tpu.dot_dimension_numbers<[1], [0], [0], [1], [0, 0, 1, 1], [], []>} : vector<8x8xbf16>, vector<8x1024xbf16>, vector<8x1024xf32> -> vector<8x1024xf32>
    %270 = arith.addf %259, %269 : vector<8x1024xf32>
    %c960_i32 = arith.constant 960 : i32
    %271 = tpu.dynamic_rotate %8 by %c960_i32 dim 1 : vector<8x1024xf32>, i32 -> vector<8x1024xf32>
    %cst_62 = arith.constant 0.000000e+00 : f32
    %272 = vector.shape_cast %23 : vector<1x1024xi1> to vector<1x1024xi1>
    %273 = vector.broadcast %272 : vector<1x1024xi1> to vector<8x1024xi1>
    %274 = vector.broadcast %cst_62 : f32 to vector<8x1024xf32>
    %275 = arith.select %273, %271, %274 : vector<8x1024xi1>, vector<8x1024xf32>
    %276 = vector.extract_strided_slice %32 {offsets = [22, 0, 0], sizes = [1, 8, 8], strides = [1, 1, 1]} : vector<27x8x8xbf16> to vector<1x8x8xbf16>
    %277 = vector.shape_cast %276 : vector<1x8x8xbf16> to vector<8x8xbf16>
    %278 = arith.truncf %275 : vector<8x1024xf32> to vector<8x1024xbf16>
    %cst_63 = arith.constant dense<0.000000e+00> : vector<8x1024xf32>
    %279 = tpu.matmul %277, %278, %cst_63 {dimension_numbers = #tpu.dot_dimension_numbers<[1], [0], [0], [1], [0, 0, 1, 1], [], []>} : vector<8x8xbf16>, vector<8x1024xbf16>, vector<8x1024xf32> -> vector<8x1024xf32>
    %280 = arith.addf %270, %279 : vector<8x1024xf32>
    %c959_i32 = arith.constant 959 : i32
    %281 = tpu.dynamic_rotate %8 by %c959_i32 dim 1 : vector<8x1024xf32>, i32 -> vector<8x1024xf32>
    %282 = arith.andi %23, %31 : vector<1x1024xi1>
    %cst_64 = arith.constant 0.000000e+00 : f32
    %283 = vector.shape_cast %282 : vector<1x1024xi1> to vector<1x1024xi1>
    %284 = vector.broadcast %283 : vector<1x1024xi1> to vector<8x1024xi1>
    %285 = vector.broadcast %cst_64 : f32 to vector<8x1024xf32>
    %286 = arith.select %284, %281, %285 : vector<8x1024xi1>, vector<8x1024xf32>
    %287 = vector.extract_strided_slice %32 {offsets = [23, 0, 0], sizes = [1, 8, 8], strides = [1, 1, 1]} : vector<27x8x8xbf16> to vector<1x8x8xbf16>
    %288 = vector.shape_cast %287 : vector<1x8x8xbf16> to vector<8x8xbf16>
    %289 = arith.truncf %286 : vector<8x1024xf32> to vector<8x1024xbf16>
    %cst_65 = arith.constant dense<0.000000e+00> : vector<8x1024xf32>
    %290 = tpu.matmul %288, %289, %cst_65 {dimension_numbers = #tpu.dot_dimension_numbers<[1], [0], [0], [1], [0, 0, 1, 1], [], []>} : vector<8x8xbf16>, vector<8x1024xbf16>, vector<8x1024xf32> -> vector<8x1024xf32>
    %291 = arith.addf %280, %290 : vector<8x1024xf32>
    %c953_i32 = arith.constant 953 : i32
    %292 = tpu.dynamic_rotate %8 by %c953_i32 dim 1 : vector<8x1024xf32>, i32 -> vector<8x1024xf32>
    %293 = arith.andi %23, %27 : vector<1x1024xi1>
    %294 = arith.andi %293, %29 : vector<1x1024xi1>
    %cst_66 = arith.constant 0.000000e+00 : f32
    %295 = vector.shape_cast %294 : vector<1x1024xi1> to vector<1x1024xi1>
    %296 = vector.broadcast %295 : vector<1x1024xi1> to vector<8x1024xi1>
    %297 = vector.broadcast %cst_66 : f32 to vector<8x1024xf32>
    %298 = arith.select %296, %292, %297 : vector<8x1024xi1>, vector<8x1024xf32>
    %299 = vector.extract_strided_slice %32 {offsets = [24, 0, 0], sizes = [1, 8, 8], strides = [1, 1, 1]} : vector<27x8x8xbf16> to vector<1x8x8xbf16>
    %300 = vector.shape_cast %299 : vector<1x8x8xbf16> to vector<8x8xbf16>
    %301 = arith.truncf %298 : vector<8x1024xf32> to vector<8x1024xbf16>
    %cst_67 = arith.constant dense<0.000000e+00> : vector<8x1024xf32>
    %302 = tpu.matmul %300, %301, %cst_67 {dimension_numbers = #tpu.dot_dimension_numbers<[1], [0], [0], [1], [0, 0, 1, 1], [], []>} : vector<8x8xbf16>, vector<8x1024xbf16>, vector<8x1024xf32> -> vector<8x1024xf32>
    %303 = arith.addf %291, %302 : vector<8x1024xf32>
    %c952_i32 = arith.constant 952 : i32
    %304 = tpu.dynamic_rotate %8 by %c952_i32 dim 1 : vector<8x1024xf32>, i32 -> vector<8x1024xf32>
    %305 = arith.andi %23, %27 : vector<1x1024xi1>
    %cst_68 = arith.constant 0.000000e+00 : f32
    %306 = vector.shape_cast %305 : vector<1x1024xi1> to vector<1x1024xi1>
    %307 = vector.broadcast %306 : vector<1x1024xi1> to vector<8x1024xi1>
    %308 = vector.broadcast %cst_68 : f32 to vector<8x1024xf32>
    %309 = arith.select %307, %304, %308 : vector<8x1024xi1>, vector<8x1024xf32>
    %310 = vector.extract_strided_slice %32 {offsets = [25, 0, 0], sizes = [1, 8, 8], strides = [1, 1, 1]} : vector<27x8x8xbf16> to vector<1x8x8xbf16>
    %311 = vector.shape_cast %310 : vector<1x8x8xbf16> to vector<8x8xbf16>
    %312 = arith.truncf %309 : vector<8x1024xf32> to vector<8x1024xbf16>
    %cst_69 = arith.constant dense<0.000000e+00> : vector<8x1024xf32>
    %313 = tpu.matmul %311, %312, %cst_69 {dimension_numbers = #tpu.dot_dimension_numbers<[1], [0], [0], [1], [0, 0, 1, 1], [], []>} : vector<8x8xbf16>, vector<8x1024xbf16>, vector<8x1024xf32> -> vector<8x1024xf32>
    %314 = arith.addf %303, %313 : vector<8x1024xf32>
    %c951_i32 = arith.constant 951 : i32
    %315 = tpu.dynamic_rotate %8 by %c951_i32 dim 1 : vector<8x1024xf32>, i32 -> vector<8x1024xf32>
    %316 = arith.andi %23, %27 : vector<1x1024xi1>
    %317 = arith.andi %316, %31 : vector<1x1024xi1>
    %cst_70 = arith.constant 0.000000e+00 : f32
    %318 = vector.shape_cast %317 : vector<1x1024xi1> to vector<1x1024xi1>
    %319 = vector.broadcast %318 : vector<1x1024xi1> to vector<8x1024xi1>
    %320 = vector.broadcast %cst_70 : f32 to vector<8x1024xf32>
    %321 = arith.select %319, %315, %320 : vector<8x1024xi1>, vector<8x1024xf32>
    %322 = vector.extract_strided_slice %32 {offsets = [26, 0, 0], sizes = [1, 8, 8], strides = [1, 1, 1]} : vector<27x8x8xbf16> to vector<1x8x8xbf16>
    %323 = vector.shape_cast %322 : vector<1x8x8xbf16> to vector<8x8xbf16>
    %324 = arith.truncf %321 : vector<8x1024xf32> to vector<8x1024xbf16>
    %cst_71 = arith.constant dense<0.000000e+00> : vector<8x1024xf32>
    %325 = tpu.matmul %323, %324, %cst_71 {dimension_numbers = #tpu.dot_dimension_numbers<[1], [0], [0], [1], [0, 0, 1, 1], [], []>} : vector<8x8xbf16>, vector<8x1024xbf16>, vector<8x1024xf32> -> vector<8x1024xf32>
    %326 = arith.addf %314, %325 : vector<8x1024xf32>
    %c0_72 = arith.constant 0 : index
    %c0_73 = arith.constant 0 : index
    %327 = vector.load %arg6[%c0_72, %c0_73] : memref<8x1xf32, #tpu.memory_space<vmem>>, vector<8x1xf32>
    %328 = vector.broadcast %327 : vector<8x1xf32> to vector<8x1024xf32>
    %329 = arith.addf %326, %328 : vector<8x1024xf32>
    %cst_74 = arith.constant 0.000000e+00 : f32
    %330 = vector.broadcast %cst_74 : f32 to vector<8x1024xf32>
    %331 = arith.maximumf %329, %330 : vector<8x1024xf32>
    %332 = arith.truncf %331 : vector<8x1024xf32> to vector<8x1024xbf16>
    %c0_75 = arith.constant 0 : index
    %c0_76 = arith.constant 0 : index
    %333 = vector.load %arg4[%c0_75, %c0_76] : memref<128x8xbf16, #tpu.memory_space<vmem>>, vector<128x8xbf16>
    %cst_77 = arith.constant dense<0.000000e+00> : vector<128x1024xf32>
    %334 = tpu.matmul %333, %332, %cst_77 {dimension_numbers = #tpu.dot_dimension_numbers<[1], [0], [0], [1], [0, 0, 1, 1], [], []>} : vector<128x8xbf16>, vector<8x1024xbf16>, vector<128x1024xf32> -> vector<128x1024xf32>
    %c0_78 = arith.constant 0 : index
    %c0_79 = arith.constant 0 : index
    %335 = vector.load %arg7[%c0_78, %c0_79] : memref<128x1xf32, #tpu.memory_space<vmem>>, vector<128x1xf32>
    %336 = vector.broadcast %335 : vector<128x1xf32> to vector<128x1024xf32>
    %337 = arith.addf %334, %336 : vector<128x1024xf32>
    %c0_80 = arith.constant 0 : index
    %c0_81 = arith.constant 0 : index
    %338 = vector.load %arg1[%c0_80, %c0_81] : memref<128x1024xf32, #tpu.memory_space<vmem>>, vector<128x1024xf32>
    %339 = arith.addf %337, %338 : vector<128x1024xf32>
    %cst_82 = arith.constant 0.000000e+00 : f32
    %340 = vector.broadcast %cst_82 : f32 to vector<128x1024xf32>
    %341 = arith.maximumf %339, %340 : vector<128x1024xf32>
    %c0_83 = arith.constant 0 : index
    %c0_84 = arith.constant 0 : index
    %342 = vector.load %arg8[%c0_83, %c0_84] : memref<128x1024xf32, #tpu.memory_space<vmem>>, vector<128x1024xf32>
    tpu.vector_store %arg8[%c0_83, %c0_84], %341 {strides = array<i32>} : memref<128x1024xf32, #tpu.memory_space<vmem>>, vector<128x1024xf32>,
    return
  }
  func.func @transform_0(%arg0: i32) -> (i32, i32) {
    %c0_i32 = arith.constant 0 : i32
    %c0_i32_0 = arith.constant 0 : i32
    return %c0_i32, %arg0 : i32, i32
  }
  func.func @transform_1(%arg0: i32) -> (i32, i32) {
    %c0_i32 = arith.constant 0 : i32
    %c0_i32_0 = arith.constant 0 : i32
    %c0_i32_1 = arith.constant 0 : i32
    return %c0_i32, %c0_i32_0 : i32, i32
  }
  func.func @transform_2(%arg0: i32) -> (i32, i32, i32) {
    %c0_i32 = arith.constant 0 : i32
    %c0_i32_0 = arith.constant 0 : i32
    %c0_i32_1 = arith.constant 0 : i32
    %c0_i32_2 = arith.constant 0 : i32
    return %c0_i32, %c0_i32_0, %c0_i32_1 : i32, i32, i32
  }
  func.func @transform_3(%arg0: i32) -> (i32, i32) {
    %c0_i32 = arith.constant 0 : i32
    %c0_i32_0 = arith.constant 0 : i32
    %c0_i32_1 = arith.constant 0 : i32
    return %c0_i32, %c0_i32_0 : i32, i32
  }
  func.func @transform_4(%arg0: i32) -> (i32, i32) {
    %c0_i32 = arith.constant 0 : i32
    %c0_i32_0 = arith.constant 0 : i32
    %c0_i32_1 = arith.constant 0 : i32
    return %c0_i32, %c0_i32_0 : i32, i32
  }
  func.func @transform_5(%arg0: i32) -> (i32, i32) {
    %c0_i32 = arith.constant 0 : i32
    %c0_i32_0 = arith.constant 0 : i32
    %c0_i32_1 = arith.constant 0 : i32
    return %c0_i32, %c0_i32_0 : i32, i32
  }
  func.func @transform_6(%arg0: i32) -> (i32, i32) {
    %c0_i32 = arith.constant 0 : i32
    %c0_i32_0 = arith.constant 0 : i32
    %c0_i32_1 = arith.constant 0 : i32
    return %c0_i32, %c0_i32_0 : i32, i32
  }
  func.func @transform_7(%arg0: i32) -> (i32, i32) {
    %c0_i32 = arith.constant 0 : i32
    %c0_i32_0 = arith.constant 0 : i32
    return %c0_i32, %arg0 : i32, i32
  }
}

</mosaic_0001>

<bundles_post_ra>
// kernel: tpu_custom_call.1
= control target key start
LH: loop header
LB: loop body
LE: loop exit
PB: predicated region body
PF: predicated region fallthrough
CT: control target
= control target key end

     0   :  { %12 = vsyncpa [#allocation3], 0  ;;  %s12782_s0 = inlined_call_operand.hbm [shape: f32[128,1024], index: 0, kind: input, shape index: {}]   ;;  %s12783_s1 = inlined_call_operand.vmem [shape: bf16[8,128], index: 1, kind: input, shape index: {}]   ;;  %s12784_s2 = inlined_call_operand.vmem [shape: bf16[27,8,8], index: 2, kind: input, shape index: {}]   ;;  %s12785_s3 = inlined_call_operand.vmem [shape: bf16[128,8], index: 3, kind: input, shape index: {}]   ;;  %s12786_s4 = inlined_call_operand.vmem [shape: f32[8,1], index: 4, kind: input, shape index: {}]   ;;  %s12787_s5 = inlined_call_operand.vmem [shape: f32[8,1], index: 5, kind: input, shape index: {}]   ;;  %s12788_s6 = inlined_call_operand.vmem [shape: f32[128,1], index: 6, kind: input, shape index: {}]   ;;  %s12789_s7 = inlined_call_operand.hbm [shape: f32[128,1024], index: 7, kind: output, shape index: {}]  }
   0x1   :  { %13 = vsyncpa [#allocation4], 0  ;;  %s9122_s24 = smov [#allocation2]  }
   0x2   :  { %s19_s25 = sshll.u32 %s9122_s24, 4  ;;  %s20_s25 = int_to_ptr.vmem [resolvable:$true] %s19_s25 }
   0x3   :  { %s9086_s26 = scalar_lea.vmem %s20_s25, 16384  ;;  %p9091_p1 = scmp.lt.s32.totalorder %s20_s25, %s20_s25 }
   0x4   :  { %p9087_p0 = scmp.ne.s32.totalorder %s20_s25, %s9086_s26  ;;  %p9092_p2 = scmp.lt.s32.totalorder %s9086_s26, %s9086_s26 }
   0x6   :  { %p9093_p3 = por %p9092_p2, %p9091_p1 }
   0x8   :  { %p9094_p4 = pnand %p9093_p3, %p9087_p0 }
   0xa   :  { %9097 = shalt.err (!%p9094_p4)
}
   0xb   :  { %s9123_s27 = smov 1024   ;;  %s9124_s28 = smov 64  }
   0xc   :  { %25 = dma.hbm_to_vmem [thread:$0]  %s12782_s0, 16384, %s20_s25, [#allocation3], %s9123_s27, %s9123_s27, %s9124_s28  }
   0xd   :  { %9118 = dma.done.wait [#allocation3], 16384  }
   0xe   :  { %9119 = vsyncadd [#allocation3], 4294950912  ;;  %v12804_v0 = vmov 0   ;;  %v155_v1 = vld [vmem:[#allocation2 + $0x388] sm:$0xff]  ;;  %v157_v3 = vld [vmem:[#allocation2 + $0x398] sm:$0xff]  ;;  %s9127_s10 = smov 73  }
   0xf   :  { %273 = vmatprep.mubr.bf16.mxu0 %v12804_v0  ;;  %314 = vmatprep.mubr.bf16.mxu1 %v12804_v0  ;;  %v163_v2 = vld [vmem:[#allocation2 + $0x3c8] sm:$0xff]  ;;  %v165_v5 = vld [vmem:[#allocation2 + $0x3d8] sm:$0xff]  ;;  %v154_v6 = vld [vmem:[#allocation2 + $0x380] sm:$0xff]  ;;  %s9128_s11 = smov 71   ;;  %s9129_s12 = smov 65   ;;  %vm12816_vm10 = vcmask 1043456  }
  0x10   :  { %8685 = vset.pattern.permute.xlu0 %v12804_v0  ;;  %8941 = vset.pattern.permute.xlu1 %v12804_v0  ;;  %v227_v4 = vpack.c.bf16 %v163_v2, %v155_v1  ;;  %v162_v7 = vld [vmem:[#allocation2 + $0x3c0] sm:$0xff]  ;;  %v229_v8 = vpack.c.bf16 %v165_v5, %v157_v3  ;;  %v156_v10 = vld [vmem:[#allocation2 + $0x390] sm:$0xff]  ;;  %v139_v12 = vld [vmem:[#allocation2 + $0x308] sm:$0xff]  ;;  %s9130_s13 = smov 63   ;;  %s9131_s14 = smov 57   ;;  %vm12800_vm11 = vcmask 64512  }
  0x11   :  { %v226_v9 = vpack.c.bf16 %v162_v7, %v154_v6  ;;  %v164_v11 = vld [vmem:[#allocation2 + $0x3d0] sm:$0xff]  ;;  %v147_v14 = vld [vmem:[#allocation2 + $0x348] sm:$0xff]  ;;  %v141_v15 = vld [vmem:[#allocation2 + $0x318] sm:$0xff]  ;;  %s9132_s15 = smov 56   ;;  %s9133_s16 = smov 55  }
  0x12   :  { %241 = vmatprep.subr.bf16.mxu0 %v227_v4  ;;  %v228_v13 = vpack.c.bf16 %v164_v11, %v156_v10  ;;  %v149_v16 = vld [vmem:[#allocation2 + $0x358] sm:$0xff]  ;;  %282 = vmatprep.subr.bf16.mxu1 %v229_v8  ;;  %v219_v17 = vpack.c.bf16 %v147_v14, %v139_v12  ;;  %v138_v19 = vld [vmem:[#allocation2 + $0x300] sm:$0xff]  ;;  %v140_v21 = vld [vmem:[#allocation2 + $0x310] sm:$0xff]  ;;  %s9134_s17 = smov 9   ;;  %s9135_s20 = smov 8  }
  0x13   :  { %242 = vmatpush1.bf16.msra.mxu0 %v226_v9  ;;  %v221_v18 = vpack.c.bf16 %v149_v16, %v141_v15  ;;  %v146_v20 = vld [vmem:[#allocation2 + $0x340] sm:$0xff]  ;;  %v148_v23 = vld [vmem:[#allocation2 + $0x350] sm:$0xff]  ;;  %v123_v24 = vld [vmem:[#allocation2 + $0x288] sm:$0xff]  ;;  %s9136_s21 = smov 7   ;;  %s9137_s22 = smov 1  }
  0x14   :  { %283 = vmatpush1.bf16.msra.mxu1 %v228_v13  ;;  %v218_v22 = vpack.c.bf16 %v146_v20, %v138_v19  ;;  %v131_v25 = vld [vmem:[#allocation2 + $0x2c8] sm:$0xff]  ;;  %243 = vmatprep.subr.bf16.mxu0 %v219_v17  ;;  %v220_v26 = vpack.c.bf16 %v148_v23, %v140_v21  ;;  %v125_v28 = vld [vmem:[#allocation2 + $0x298] sm:$0xff]  ;;  %v122_v30 = vld [vmem:[#allocation2 + $0x280] sm:$0xff]  ;;  %s9138_s23 = smov 127   ;;  %s9139_s26 = smov 121  }
  0x15   :  { %284 = vmatprep.subr.bf16.mxu1 %v221_v18  ;;  %v211_v27 = vpack.c.bf16 %v131_v25, %v123_v24  ;;  %v133_v29 = vld [vmem:[#allocation2 + $0x2d8] sm:$0xff]  ;;  %v130_v32 = vld [vmem:[#allocation2 + $0x2c0] sm:$0xff]  ;;  %v124_v33 = vld [vmem:[#allocation2 + $0x290] sm:$0xff]  ;;  %s9140_s29 = smov 120   ;;  %s9141_s8 = smov 119  }
  0x16   :  { %v213_v31 = vpack.c.bf16 %v133_v29, %v125_v28  ;;  %v132_v34 = vld [vmem:[#allocation2 + $0x2d0] sm:$0xff]  ;;  %v210_v35 = vpack.c.bf16 %v130_v32, %v122_v30  ;;  %v107_v36 = vld [vmem:[#allocation2 + $0x208] sm:$0xff]  ;;  %v109_v38 = vld [vmem:[#allocation2 + $0x218] sm:$0xff] }
  0x17   :  { %244 = vmatpush1.bf16.msra.mxu0 %v218_v22  ;;  %v115_v37 = vld [vmem:[#allocation2 + $0x248] sm:$0xff]  ;;  %v212_v39 = vpack.c.bf16 %v132_v34, %v124_v33  ;;  %v117_v41 = vld [vmem:[#allocation2 + $0x258] sm:$0xff]  ;;  %v106_v42 = vld [vmem:[#allocation2 + $0x200] sm:$0xff] }
  0x18   :  { %285 = vmatpush1.bf16.msra.mxu1 %v220_v26  ;;  %245 = vmatprep.subr.bf16.mxu0 %v211_v27  ;;  %v203_v40 = vpack.c.bf16 %v115_v37, %v107_v36  ;;  %v114_v43 = vld [vmem:[#allocation2 + $0x240] sm:$0xff]  ;;  %v205_v44 = vpack.c.bf16 %v117_v41, %v109_v38  ;;  %v108_v45 = vld [vmem:[#allocation2 + $0x210] sm:$0xff]  ;;  %v91_v47 = vld [vmem:[#allocation2 + $0x188] sm:$0xff] }
  0x19   :  { %286 = vmatprep.subr.bf16.mxu1 %v213_v31  ;;  %v116_v46 = vld [vmem:[#allocation2 + $0x250] sm:$0xff]  ;;  %v99_v48 = vld [vmem:[#allocation2 + $0x1c8] sm:$0xff]  ;;  %v93_v49 = vld [vmem:[#allocation2 + $0x198] sm:$0xff]  ;;  %v202_v51 = vpack.c.bf16 %v114_v43, %v106_v42 }
  0x1a   :  { %v101_v50 = vld [vmem:[#allocation2 + $0x1d8] sm:$0xff]  ;;  %v204_v52 = vpack.c.bf16 %v116_v46, %v108_v45  ;;  %v195_v53 = vpack.c.bf16 %v99_v48, %v91_v47  ;;  %v90_v54 = vld [vmem:[#allocation2 + $0x180] sm:$0xff]  ;;  %v92_v56 = vld [vmem:[#allocation2 + $0x190] sm:$0xff] }
  0x1b   :  { %246 = vmatpush1.bf16.msra.mxu0 %v210_v35  ;;  %v98_v55 = vld [vmem:[#allocation2 + $0x1c0] sm:$0xff]  ;;  %v197_v57 = vpack.c.bf16 %v101_v50, %v93_v49  ;;  %v100_v58 = vld [vmem:[#allocation2 + $0x1d0] sm:$0xff]  ;;  %v75_v59 = vld [vmem:[#allocation2 + $0x108] sm:$0xff] }
  0x1c   :  { %287 = vmatpush1.bf16.msra.mxu1 %v212_v39  ;;  %247 = vmatprep.subr.bf16.mxu0 %v203_v40  ;;  %v83_v60 = vld [vmem:[#allocation2 + $0x148] sm:$0xff]  ;;  %v77_v61 = vld [vmem:[#allocation2 + $0x118] sm:$0xff]  ;;  %v194_v63 = vpack.c.bf16 %v98_v55, %v90_v54  ;;  %v196_v1 = vpack.c.bf16 %v100_v58, %v92_v56  ;;  %v74_v3 = vld [vmem:[#allocation2 + $0x100] sm:$0xff] }
  0x1d   :  { %288 = vmatprep.subr.bf16.mxu1 %v205_v44  ;;  %v85_v62 = vld [vmem:[#allocation2 + $0x158] sm:$0xff]  ;;  %v187_v2 = vpack.c.bf16 %v83_v60, %v75_v59  ;;  %v82_v4 = vld [vmem:[#allocation2 + $0x140] sm:$0xff]  ;;  %v76_v5 = vld [vmem:[#allocation2 + $0x110] sm:$0xff] }
  0x1e   :  { %v189_v6 = vpack.c.bf16 %v85_v62, %v77_v61  ;;  %v84_v7 = vld [vmem:[#allocation2 + $0x150] sm:$0xff]  ;;  %v59_v8 = vld [vmem:[#allocation2 + $0x88] sm:$0xff]  ;;  %v61_v10 = vld [vmem:[#allocation2 + $0x98] sm:$0xff]  ;;  %v186_v12 = vpack.c.bf16 %v82_v4, %v74_v3 }
  0x1f   :  { %248 = vmatpush1.bf16.msra.mxu0 %v202_v51  ;;  %v67_v9 = vld [vmem:[#allocation2 + $0xc8] sm:$0xff]  ;;  %v69_v11 = vld [vmem:[#allocation2 + $0xd8] sm:$0xff]  ;;  %v188_v13 = vpack.c.bf16 %v84_v7, %v76_v5  ;;  %v58_v15 = vld [vmem:[#allocation2 + $0x80] sm:$0xff] }
  0x20   :  { %289 = vmatpush1.bf16.msra.mxu1 %v204_v52  ;;  %249 = vmatprep.subr.bf16.mxu0 %v195_v53  ;;  %v179_v14 = vpack.c.bf16 %v67_v9, %v59_v8  ;;  %v66_v16 = vld [vmem:[#allocation2 + $0xc0] sm:$0xff]  ;;  %v60_v17 = vld [vmem:[#allocation2 + $0x90] sm:$0xff]  ;;  %v181_v18 = vpack.c.bf16 %v69_v11, %v61_v10  ;;  %v43_v20 = vld [vmem:[#allocation2 + $0x8] sm:$0xff] }
  0x21   :  { %290 = vmatprep.subr.bf16.mxu1 %v197_v57  ;;  %v68_v19 = vld [vmem:[#allocation2 + $0xd0] sm:$0xff]  ;;  %v51_v21 = vld [vmem:[#allocation2 + $0x48] sm:$0xff]  ;;  %v45_v22 = vld [vmem:[#allocation2 + $0x18] sm:$0xff]  ;;  %v178_v24 = vpack.c.bf16 %v66_v16, %v58_v15 }
  0x22   :  { %v53_v23 = vld [vmem:[#allocation2 + $0x58] sm:$0xff]  ;;  %v180_v25 = vpack.c.bf16 %v68_v19, %v60_v17  ;;  %v171_v26 = vpack.c.bf16 %v51_v21, %v43_v20  ;;  %v42_v27 = vld [vmem:[#allocation2] sm:$0xff]  ;;  %v44_v29 = vld [vmem:[#allocation2 + $0x10] sm:$0xff] }
  0x23   :  { %250 = vmatpush1.bf16.msra.mxu0 %v194_v63  ;;  %v50_v28 = vld [vmem:[#allocation2 + $0x40] sm:$0xff]  ;;  %v173_v30 = vpack.c.bf16 %v53_v23, %v45_v22  ;;  %v52_v31 = vld [vmem:[#allocation2 + $0x50] sm:$0xff]  ;;  %v159_v32 = vld [vmem:[#allocation2 + $0x3a8] sm:$0xff] }
  0x24   :  { %291 = vmatpush1.bf16.msra.mxu1 %v196_v1  ;;  %251 = vmatprep.subr.bf16.mxu0 %v187_v2  ;;  %v167_v33 = vld [vmem:[#allocation2 + $0x3e8] sm:$0xff]  ;;  %v161_v34 = vld [vmem:[#allocation2 + $0x3b8] sm:$0xff]  ;;  %v170_v36 = vpack.c.bf16 %v50_v28, %v42_v27  ;;  %v172_v37 = vpack.c.bf16 %v52_v31, %v44_v29  ;;  %v158_v39 = vld [vmem:[#allocation2 + $0x3a0] sm:$0xff] }
  0x25   :  { %292 = vmatprep.subr.bf16.mxu1 %v189_v6  ;;  %v169_v35 = vld [vmem:[#allocation2 + $0x3f8] sm:$0xff]  ;;  %v231_v38 = vpack.c.bf16 %v167_v33, %v159_v32  ;;  %v166_v40 = vld [vmem:[#allocation2 + $0x3e0] sm:$0xff]  ;;  %v160_v41 = vld [vmem:[#allocation2 + $0x3b0] sm:$0xff] }
  0x26   :  { %v233_v42 = vpack.c.bf16 %v169_v35, %v161_v34  ;;  %v168_v43 = vld [vmem:[#allocation2 + $0x3f0] sm:$0xff]  ;;  %v143_v44 = vld [vmem:[#allocation2 + $0x328] sm:$0xff]  ;;  %v145_v46 = vld [vmem:[#allocation2 + $0x338] sm:$0xff]  ;;  %v230_v49 = vpack.c.bf16 %v166_v40, %v158_v39 }
  0x27   :  { %252 = vmatpush1.bf16.msra.mxu0 %v186_v12  ;;  %v151_v45 = vld [vmem:[#allocation2 + $0x368] sm:$0xff]  ;;  %v153_v47 = vld [vmem:[#allocation2 + $0x378] sm:$0xff]  ;;  %v9196_v48 = vld [vmem:[%s12783_s1] sm:$0xf]  ;;  %v232_v50 = vpack.c.bf16 %v168_v43, %v160_v41 }
  0x28   :  { %293 = vmatpush1.bf16.msra.mxu1 %v188_v13  ;;  %253 = vmatprep.subr.bf16.mxu0 %v179_v14  ;;  %v223_v51 = vpack.c.bf16 %v151_v45, %v143_v44  ;;  %v142_v52 = vld [vmem:[#allocation2 + $0x320] sm:$0xff]  ;;  %v144_v54 = vld [vmem:[#allocation2 + $0x330] sm:$0xff]  ;;  %v225_v55 = vpack.c.bf16 %v153_v47, %v145_v46  ;;  %v127_v57 = vld [vmem:[#allocation2 + $0x2a8] sm:$0xff] }
  0x29   :  { %294 = vmatprep.subr.bf16.mxu1 %v181_v18  ;;  %v150_v53 = vld [vmem:[#allocation2 + $0x360] sm:$0xff]  ;;  %v152_v56 = vld [vmem:[#allocation2 + $0x370] sm:$0xff]  ;;  %v135_v58 = vld [vmem:[#allocation2 + $0x2e8] sm:$0xff] }
  0x2a   :  { %v129_v59 = vld [vmem:[#allocation2 + $0x2b8] sm:$0xff]  ;;  %v222_v61 = vpack.c.bf16 %v150_v53, %v142_v52  ;;  %v224_v62 = vpack.c.bf16 %v152_v56, %v144_v54  ;;  %v215_v63 = vpack.c.bf16 %v135_v58, %v127_v57  ;;  %v126_v1 = vld [vmem:[#allocation2 + $0x2a0] sm:$0xff]  ;;  %v128_v3 = vld [vmem:[#allocation2 + $0x2b0] sm:$0xff] }
  0x2b   :  { %254 = vmatpush1.bf16.msra.mxu0 %v178_v24  ;;  %v137_v60 = vld [vmem:[#allocation2 + $0x2f8] sm:$0xff]  ;;  %v134_v2 = vld [vmem:[#allocation2 + $0x2e0] sm:$0xff]  ;;  %v136_v5 = vld [vmem:[#allocation2 + $0x2f0] sm:$0xff] }
  0x2c   :  { %295 = vmatpush1.bf16.msra.mxu1 %v180_v25  ;;  %255 = vmatprep.subr.bf16.mxu0 %v171_v26  ;;  %v217_v4 = vpack.c.bf16 %v137_v60, %v129_v59  ;;  %v111_v6 = vld [vmem:[#allocation2 + $0x228] sm:$0xff]  ;;  %v113_v8 = vld [vmem:[#allocation2 + $0x238] sm:$0xff]  ;;  %v214_v10 = vpack.c.bf16 %v134_v2, %v126_v1  ;;  %v110_v11 = vld [vmem:[#allocation2 + $0x220] sm:$0xff]  ;;  %v216_v13 = vpack.c.bf16 %v136_v5, %v128_v3 }
  0x2d   :  { %296 = vmatprep.subr.bf16.mxu1 %v173_v30  ;;  %v119_v7 = vld [vmem:[#allocation2 + $0x268] sm:$0xff]  ;;  %v121_v9 = vld [vmem:[#allocation2 + $0x278] sm:$0xff]  ;;  %v118_v12 = vld [vmem:[#allocation2 + $0x260] sm:$0xff] }
  0x2e   :  { %v207_v14 = vpack.c.bf16 %v119_v7, %v111_v6  ;;  %v112_v15 = vld [vmem:[#allocation2 + $0x230] sm:$0xff]  ;;  %v95_v17 = vld [vmem:[#allocation2 + $0x1a8] sm:$0xff]  ;;  %v209_v18 = vpack.c.bf16 %v121_v9, %v113_v8  ;;  %v97_v20 = vld [vmem:[#allocation2 + $0x1b8] sm:$0xff]  ;;  %v206_v25 = vpack.c.bf16 %v118_v12, %v110_v11 }
  0x2f   :  { %256 = vmatpush1.bf16.msra.mxu0 %v170_v36  ;;  %v120_v16 = vld [vmem:[#allocation2 + $0x270] sm:$0xff]  ;;  %v103_v19 = vld [vmem:[#allocation2 + $0x1e8] sm:$0xff]  ;;  %v105_v21 = vld [vmem:[#allocation2 + $0x1f8] sm:$0xff] }
  0x30   :  { %297 = vmatpush1.bf16.msra.mxu1 %v172_v37  ;;  %323 = vmatprep.subr.bf16.mxu0 %v231_v38  ;;  %v94_v22 = vld [vmem:[#allocation2 + $0x1a0] sm:$0xff]  ;;  %v96_v26 = vld [vmem:[#allocation2 + $0x1b0] sm:$0xff]  ;;  %v79_v28 = vld [vmem:[#allocation2 + $0x128] sm:$0xff]  ;;  %v208_v30 = vpack.c.bf16 %v120_v16, %v112_v15  ;;  %v199_v31 = vpack.c.bf16 %v103_v19, %v95_v17  ;;  %v201_v34 = vpack.c.bf16 %v105_v21, %v97_v20 }
  0x31   :  { %364 = vmatprep.subr.bf16.mxu1 %v233_v42  ;;  %v102_v23 = vld [vmem:[#allocation2 + $0x1e0] sm:$0xff]  ;;  %v104_v27 = vld [vmem:[#allocation2 + $0x1f0] sm:$0xff]  ;;  %v87_v29 = vld [vmem:[#allocation2 + $0x168] sm:$0xff] }
  0x32   :  { %274 = vmatmul.mubr.bf16.vlgmr.msra.gmra.mxu0 %v9196_v48  ;;  %v235_v24 = vld [vmem:[%s12786_s4] sm:$0xff]  ;;  %v81_v32 = vld [vmem:[#allocation2 + $0x138] sm:$0xff]  ;;  %v198_v35 = vpack.c.bf16 %v102_v23, %v94_v22  ;;  %v200_v36 = vpack.c.bf16 %v104_v27, %v96_v26  ;;  %v191_v37 = vpack.c.bf16 %v87_v29, %v79_v28  ;;  %v80_v40 = vld [vmem:[#allocation2 + $0x130] sm:$0xff]  ;;  %s9126_s4 = smov 72  }
  0x33   :  { %315 = vmatmul.mubr.bf16.vlgmr.msra.gmra.mxu1 %v9196_v48  ;;  %324 = vmatpush1.bf16.msra.mxu0 %v230_v49  ;;  %v89_v33 = vld [vmem:[#allocation2 + $0x178] sm:$0xff]  ;;  %v78_v38 = vld [vmem:[#allocation2 + $0x120] sm:$0xff]  ;;  %v88_v42 = vld [vmem:[#allocation2 + $0x170] sm:$0xff] }
  0x34   :  { %365 = vmatpush1.bf16.msra.mxu1 %v232_v50  ;;  %325 = vmatprep.subr.bf16.mxu0 %v223_v51  ;;  %v86_v39 = vld [vmem:[#allocation2 + $0x160] sm:$0xff]  ;;  %v193_v41 = vpack.c.bf16 %v89_v33, %v81_v32  ;;  %v63_v43 = vld [vmem:[#allocation2 + $0xa8] sm:$0xff]  ;;  %v65_v45 = vld [vmem:[#allocation2 + $0xb8] sm:$0xff]  ;;  %v192_v49 = vpack.c.bf16 %v88_v42, %v80_v40  ;;  %v413_v42 = vlaneseq }
  0x35   :  { %366 = vmatprep.subr.bf16.mxu1 %v225_v55  ;;  %355 = vmatprep.mubr.bf16.mxu0 %v12804_v0  ;;  %v71_v44 = vld [vmem:[#allocation2 + $0xe8] sm:$0xff]  ;;  %v73_v46 = vld [vmem:[#allocation2 + $0xf8] sm:$0xff]  ;;  %v190_v47 = vpack.c.bf16 %v86_v39, %v78_v38  ;;  %v62_v51 = vld [vmem:[#allocation2 + $0xa0] sm:$0xff] }
  0x36   :  { %396 = vmatprep.mubr.bf16.mxu1 %v12804_v0  ;;  %238 = vperm.xlu0 %8685, %v235_v24   ;;  %v183_v50 = vpack.c.bf16 %v71_v44, %v63_v43  ;;  %v70_v52 = vld [vmem:[#allocation2 + $0xe0] sm:$0xff]  ;;  %v64_v53 = vld [vmem:[#allocation2 + $0xb0] sm:$0xff]  ;;  %v185_v54 = vpack.c.bf16 %v73_v46, %v65_v45  ;;  %v47_v56 = vld [vmem:[#allocation2 + $0x28] sm:$0xff]  ;;  %v9277_v43 = vand.u32 127, %v413_v42 }
  0x37   :  { %326 = vmatpush1.bf16.msra.mxu0 %v222_v61  ;;  %v72_v55 = vld [vmem:[#allocation2 + $0xf0] sm:$0xff]  ;;  %v55_v57 = vld [vmem:[#allocation2 + $0x68] sm:$0xff]  ;;  %v49_v58 = vld [vmem:[#allocation2 + $0x38] sm:$0xff]  ;;  %v182_v60 = vpack.c.bf16 %v70_v52, %v62_v51 }
  0x38   :  { %367 = vmatpush1.bf16.msra.mxu1 %v224_v62  ;;  %327 = vmatprep.subr.bf16.mxu0 %v215_v63  ;;  %v57_v59 = vld [vmem:[#allocation2 + $0x78] sm:$0xff]  ;;  %v184_v61 = vpack.c.bf16 %v72_v55, %v64_v53  ;;  %v175_v62 = vpack.c.bf16 %v55_v57, %v47_v56  ;;  %v46_v63 = vld [vmem:[#allocation2 + $0x20] sm:$0xff]  ;;  %v48_v3 = vld [vmem:[#allocation2 + $0x30] sm:$0xff]  ;;  %v9282_v44 = vadd.s32 384, %v9277_v43  ;;  %v9286_v45 = vadd.s32 256, %v9277_v43 }
  0x39   :  { %368 = vmatprep.subr.bf16.mxu1 %v217_v4  ;;  %v54_v1 = vld [vmem:[#allocation2 + $0x60] sm:$0xff]  ;;  %v177_v2 = vpack.c.bf16 %v57_v59, %v49_v58  ;;  %v56_v4 = vld [vmem:[#allocation2 + $0x70] sm:$0xff]  ;;  %v9289_v46 = vadd.s32 128, %v9277_v43  ;;  %vm626_vm7 = vcmp.lt.s32.totalorder %v9277_v43, 72 }
  0x3a   :  { %v174_v5 = vpack.c.bf16 %v54_v1, %v46_v63  ;;  %v176_v6 = vpack.c.bf16 %v56_v4, %v48_v3  ;;  %v448_v51 = vshra.s32 %v9286_v45, 6 }
  0x3b   :  { %328 = vmatpush1.bf16.msra.mxu0 %v214_v10  ;;  %v431_v52 = vshra.s32 %v9289_v46, 3  ;;  %v447_v53 = vshra.s32 %v9289_v46, 6 }
  0x3c   :  { %369 = vmatpush1.bf16.msra.mxu1 %v216_v13  ;;  %329 = vmatprep.subr.bf16.mxu0 %v207_v14  ;;  %v9307_v57 = vand.u32 7, %v448_v51 }
  0x3d   :  { %370 = vmatprep.subr.bf16.mxu1 %v209_v18  ;;  %v9309_v58 = vand.u32 7, %v431_v52  ;;  %v9311_v59 = vand.u32 7, %v447_v53 }
  0x3e   :  { %vm12793_vm3 = vcmp.ge.s32.totalorder %v9307_v57, 1 }
  0x3f   :  { %330 = vmatpush1.bf16.msra.mxu0 %v206_v25  ;;  %vm12796_vm2 = vcmp.ge.s32.totalorder %v9311_v59, 1  ;;  %vm12791_vm6 = vcmp.ge.s32.totalorder %v9309_v58, 1 }
  0x40   :  { %371 = vmatpush1.bf16.msra.mxu1 %v208_v30  ;;  %331 = vmatprep.subr.bf16.mxu0 %v199_v31  ;;  %vm9341_vm8 = vmand %vm12796_vm2, %vm12791_vm6 }
  0x41   :  { %372 = vmatprep.subr.bf16.mxu1 %v201_v34 }
  0x43   :  { %332 = vmatpush1.bf16.msra.mxu0 %v198_v35 }
  0x44   :  { %373 = vmatpush1.bf16.msra.mxu1 %v200_v36  ;;  %333 = vmatprep.subr.bf16.mxu0 %v191_v37 }
  0x45   :  { %374 = vmatprep.subr.bf16.mxu1 %v193_v41 }
  0x47   :  { %334 = vmatpush1.bf16.msra.mxu0 %v190_v47  ;;  %v433_v47 = vshra.s32 %v9282_v44, 3 }
  0x48   :  { %375 = vmatpush1.bf16.msra.mxu1 %v192_v49  ;;  %335 = vmatprep.subr.bf16.mxu0 %v183_v50  ;;  %v449_v49 = vshra.s32 %v9282_v44, 6  ;;  %v432_v50 = vshra.s32 %v9286_v45, 3 }
  0x49   :  { %376 = vmatprep.subr.bf16.mxu1 %v185_v54  ;;  %v9300_v54 = vand.u32 7, %v433_v47 }
  0x4a   :  { %v9302_v55 = vand.u32 7, %v449_v49  ;;  %v9305_v56 = vand.u32 7, %v432_v50 }
  0x4b   :  { %336 = vmatpush1.bf16.msra.mxu0 %v182_v60  ;;  %vm12792_vm1 = vcmp.ge.s32.totalorder %v9300_v54, 1 }
  0x4c   :  { %377 = vmatpush1.bf16.msra.mxu1 %v184_v61  ;;  %337 = vmatprep.subr.bf16.mxu0 %v175_v62  ;;  %vm12799_vm0 = vcmp.ge.s32.totalorder %v9302_v55, 1  ;;  %vm12790_vm4 = vcmp.ge.s32.totalorder %v9305_v56, 1  ;;  %v13107_v61 = vmov 0 }
  0x4d   :  { %378 = vmatprep.subr.bf16.mxu1 %v177_v2  ;;  %vm9326_vm5 = vmand %vm12799_vm0, %vm12792_vm1 }
  0x4e   :  { %vm9352_vm9 = vmand %vm12793_vm3, %vm12790_vm4 }
  0x4f   :  { %338 = vmatpush1.bf16.msra.mxu0 %v174_v5  ;;  %v13001_v5 = vmov 0 }
  0x50   :  { %379 = vmatpush1.bf16.msra.mxu1 %v176_v6  ;;  %v13002_v5 = vsel %vm9352_vm9, 4294967295, %v13001_v5 }
  0x52   :  { %356 = vmatmul.mubr.bf16.vlgmr.msra.gmra.mxu0 %v9196_v48 }
  0x53   :  { %397 = vmatmul.mubr.bf16.vlgmr.msra.gmra.mxu1 %v9196_v48  ;;  %728 = vmatprep.mubr.bf16.mxu0 %v12804_v0 }
  0x54   :  { %769 = vmatprep.mubr.bf16.mxu1 %v12804_v0 }
  0xb1   :  { %v239_v7 = vpop.permute.xlu0 %238 }
  0xf2   :  { %v275_v8 = vpop.f32.mrf.mxu0 }
  0xf3   :  { %v316_v9 = vpop.f32.mrf.mxu1  ;;  %v276_v10 = vadd.f32 %v275_v8, %v239_v7 }
  0xf4   :  { %v317_v11 = vadd.f32 %v316_v9, %v239_v7  ;;  %v277_v12 = vpop.f32.mrf.mxu0 }
  0xf5   :  { %v9209_v13 = vmax.f32 %v276_v10, 0.0  ;;  %v278_v14 = vadd.f32 %v277_v12, %v239_v7  ;;  %v318_v15 = vpop.f32.mrf.mxu1 }
  0xf6   :  { %v9211_v16 = vmax.f32 %v317_v11, 0.0  ;;  %v319_v17 = vadd.f32 %v318_v15, %v239_v7  ;;  %v279_v18 = vpop.f32.mrf.mxu0 }
  0xf7   :  { %12992 = vst [vmem:[#allocation8_spill] sm:$0xff] %v9209_v13  ;;  %v9213_v19 = vmax.f32 %v278_v14, 0.0  ;;  %v320_v48 = vpop.f32.mrf.mxu1  ;;  %v9390_v18 = vld [vmem:[%s12784_s2 + $0x4] sm:$0xf] }
  0xf8   :  { %12993 = vst [vmem:[#allocation9_spill] sm:$0xff] %v9211_v16  ;;  %v9215_v20 = vmax.f32 %v319_v17, 0.0  ;;  %v280_v21 = vpop.f32.mrf.mxu0  ;;  %v9401_v48 = vadd.s32 896, %v9277_v43 }
  0xf9   :  { %12994 = vst [vmem:[#allocation10_spill] sm:$0xff] %v9213_v19  ;;  %v321_v22 = vpop.f32.mrf.mxu1  ;;  %v9219_v23 = vpack.i.bf16 %v9213_v19, %v9209_v13  ;;  %v9404_v21 = vadd.s32 640, %v9277_v43 }
  0xfa   :  { %12995 = vst [vmem:[#allocation11_spill] sm:$0xff] %v9215_v20  ;;  %v9223_v24 = vpack.i.bf16 %v9215_v20, %v9211_v16  ;;  %v9407_v22 = vadd.s32 768, %v9277_v43 }
  0xfb   :  { %8687 = vrot.lane.b32.xlu0 %v9219_v23, %s9126_s4 }
  0xfc   :  { %8692 = vrot.lane.b32.xlu1 %v9223_v24, %s9126_s4 }
 0x112   :  { %v357_v25 = vpop.f32.mrf.mxu0 }
 0x113   :  { %v358_v26 = vadd.f32 %v357_v25, %v239_v7  ;;  %v398_v27 = vpop.f32.mrf.mxu1  ;;  %v446_v25 = vshra.s32 %v9277_v43, 6 }
 0x114   :  { %v359_v28 = vpop.f32.mrf.mxu0  ;;  %v399_v36 = vadd.f32 %v398_v27, %v239_v7  ;;  %v430_v27 = vshra.s32 %v9277_v43, 3 }
 0x115   :  { %v360_v29 = vadd.f32 %v359_v28, %v239_v7  ;;  %v400_v30 = vpop.f32.mrf.mxu1  ;;  %v9227_v33 = vmax.f32 %v358_v26, 0.0  ;;  %v9411_v26 = vadd.s32 512, %v9277_v43  ;;  %v437_v28 = vshra.s32 %v9401_v48, 3 }
 0x116   :  { %v401_v31 = vadd.f32 %v400_v30, %v239_v7  ;;  %v361_v32 = vpop.f32.mrf.mxu0  ;;  %v9239_v41 = vmax.f32 %v399_v36, 0.0  ;;  %v451_v30 = vshra.s32 %v9404_v21, 6  ;;  %v9422_v36 = vand.u32 7, %v446_v25 }
 0x117   :  { %v9229_v34 = vmax.f32 %v360_v29, 0.0  ;;  %v402_v35 = vpop.f32.mrf.mxu1  ;;  %v435_v29 = vshra.s32 %v9404_v21, 3  ;;  %v436_v32 = vshra.s32 %v9407_v22, 3  ;;  %v450_v42 = vshra.s32 %v9411_v26, 6 }
 0x118   :  { %v9231_v37 = vmax.f32 %v401_v31, 0.0  ;;  %v362_v38 = vpop.f32.mrf.mxu0  ;;  %12996 = vst [vmem:[#allocation12_spill] sm:$0xff] %v9239_v41  ;;  %v453_v31 = vshra.s32 %v9401_v48, 6  ;;  %v452_v35 = vshra.s32 %v9407_v22, 6  ;;  %v9430_v47 = vand.u32 7, %v437_v28 }
 0x119   :  { %v403_v39 = vpop.f32.mrf.mxu1  ;;  %v9235_v40 = vpack.i.bf16 %v9229_v34, %v9227_v33  ;;  %v434_v38 = vshra.s32 %v9411_v26, 3  ;;  %vm12795_vm12 = vcmp.ge.s32.totalorder %v9422_v36, 1  ;;  %v9433_v49 = vand.u32 7, %v435_v29 }
 0x11a   :  { %624 = vrot.lane.b32.xlu1 %v9231_v37, %s9126_s4  ;;  %v9426_v39 = vand.u32 7, %v430_v27  ;;  %v9435_v50 = vand.u32 7, %v451_v30  ;;  %v9437_v51 = vand.u32 7, %v453_v31  ;;  %v9439_v52 = vand.u32 7, %v436_v32 }
 0x11b   :  { %8697 = vrot.lane.b32.xlu0 %v9235_v40, %s9126_s4  ;;  %v9441_v53 = vand.u32 7, %v452_v35  ;;  %vm12801_vm6 = vcmp.ge.s32.totalorder %v9433_v49, 1  ;;  %vm12797_vm1 = vcmp.ge.s32.totalorder %v9430_v47, 1  ;;  %v13015_v31 = vmov 0 }
 0x11c   :  { %13006 = vst [vmem:[#allocation16_spill] sm:$0xff] %v9439_v52  ;;  %vm12794_vm13 = vcmp.ge.s32.totalorder %v9426_v39, 1  ;;  %vm12798_vm14 = vcmp.ge.s32.totalorder %v9437_v51, 1  ;;  %vm12811_vm4 = vcmp.ge.s32.totalorder %v9435_v50, 1  ;;  %v13017_v35 = vmov 0 }
 0x11d   :  { %13007 = vst [vmem:[#allocation17_spill] sm:$0xff] %v9441_v53  ;;  %vm9456_vm15 = vmand %vm12795_vm12, %vm12794_vm13  ;;  %vm12807_vm3 = vcmp.ge.s32.totalorder %v9441_v53, 1  ;;  %vm12803_vm13 = vcmp.ge.s32.totalorder %v9439_v52, 1 }
 0x11e   :  { %622 = vrot.lane.b32.xlu1 %v9239_v41, %s9126_s4  ;;  %vm9480_vm12 = vmand %vm12798_vm14, %vm12797_vm1 }
 0x11f   :  { %8702 = vrot.lane.b32.xlu0 %v9219_v23, %s9127_s10  ;;  %vm9494_vm1 = vmand %vm12811_vm4, %vm12801_vm6 }
 0x120   :  { %v13016_v31 = vsel %vm9494_vm1, 4294967295, %v13015_v31 }
 0x122   :  { %8707 = vrot.lane.b32.xlu1 %v9223_v24, %s9127_s10 }
 0x123   :  { %551 = vrot.lane.b32.xlu0 %v9231_v37, %s9127_s10 }
 0x126   :  { %8712 = vrot.lane.b32.xlu1 %v9235_v40, %s9127_s10 }
 0x127   :  { %549 = vrot.lane.b32.xlu0 %v9239_v41, %s9127_s10 }
 0x12a   :  { %8717 = vrot.lane.b32.xlu1 %v9219_v23, %s9128_s11 }
 0x12b   :  { %8722 = vrot.lane.b32.xlu0 %v9223_v24, %s9128_s11 }
 0x12e   :  { %1065 = vrot.lane.b32.xlu1 %v9231_v37, %s9128_s11 }
 0x12f   :  { %8727 = vrot.lane.b32.xlu0 %v9235_v40, %s9128_s11 }
 0x132   :  { %1063 = vrot.lane.b32.xlu1 %v9239_v41, %s9128_s11 }
 0x133   :  { %8732 = vrot.lane.b32.xlu0 %v9219_v23, %s9129_s12 }
 0x136   :  { %8737 = vrot.lane.b32.xlu1 %v9223_v24, %s9129_s12 }
 0x137   :  { %1329 = vrot.lane.b32.xlu0 %v9231_v37, %s9129_s12 }
 0x13a   :  { %8742 = vrot.lane.b32.xlu1 %v9235_v40, %s9129_s12 }
 0x13b   :  { %1327 = vrot.lane.b32.xlu0 %v9239_v41, %s9129_s12 }
 0x13e   :  { %8747 = vrot.lane.b32.xlu1 %v9219_v23, %s9124_s28 }
 0x13f   :  { %8752 = vrot.lane.b32.xlu0 %v9223_v24, %s9124_s28 }
 0x142   :  { %1593 = vrot.lane.b32.xlu1 %v9231_v37, %s9124_s28 }
 0x143   :  { %8757 = vrot.lane.b32.xlu0 %v9235_v40, %s9124_s28 }
 0x146   :  { %1591 = vrot.lane.b32.xlu1 %v9239_v41, %s9124_s28 }
 0x147   :  { %8762 = vrot.lane.b32.xlu0 %v9219_v23, %s9130_s13 }
 0x14a   :  { %8767 = vrot.lane.b32.xlu1 %v9223_v24, %s9130_s13 }
 0x14b   :  { %1849 = vrot.lane.b32.xlu0 %v9231_v37, %s9130_s13 }
 0x14e   :  { %8772 = vrot.lane.b32.xlu1 %v9235_v40, %s9130_s13 }
 0x14f   :  { %1847 = vrot.lane.b32.xlu0 %v9239_v41, %s9130_s13 }
 0x152   :  { %8777 = vrot.lane.b32.xlu1 %v9219_v23, %s9131_s14 }
 0x153   :  { %8782 = vrot.lane.b32.xlu0 %v9223_v24, %s9131_s14 }
 0x156   :  { %2113 = vrot.lane.b32.xlu1 %v9231_v37, %s9131_s14 }
 0x157   :  { %8787 = vrot.lane.b32.xlu0 %v9235_v40, %s9131_s14 }
 0x15a   :  { %2111 = vrot.lane.b32.xlu1 %v9239_v41, %s9131_s14 }
 0x15b   :  { %8792 = vrot.lane.b32.xlu0 %v9219_v23, %s9132_s15 }
 0x15e   :  { %8797 = vrot.lane.b32.xlu1 %v9223_v24, %s9132_s15 }
 0x15f   :  { %2385 = vrot.lane.b32.xlu0 %v9231_v37, %s9132_s15 }
 0x162   :  { %8802 = vrot.lane.b32.xlu1 %v9235_v40, %s9132_s15 }
 0x163   :  { %2383 = vrot.lane.b32.xlu0 %v9239_v41, %s9132_s15 }
 0x166   :  { %8807 = vrot.lane.b32.xlu1 %v9219_v23, %s9133_s16 }
 0x167   :  { %8812 = vrot.lane.b32.xlu0 %v9223_v24, %s9133_s16 }
 0x16a   :  { %2641 = vrot.lane.b32.xlu1 %v9231_v37, %s9133_s16 }
 0x16b   :  { %8817 = vrot.lane.b32.xlu0 %v9235_v40, %s9133_s16 }
 0x16d   :  { %v9320_v60 = vpop.permute.xlu0 %8687 }
 0x16e   :  { %v9332_v62 = vpop.permute.xlu1 %8692  ;;  %2639 = vrot.lane.b32.xlu1 %v9239_v41, %s9133_s16  ;;  %v8690_v63 = vunpack.i.h.bf16 %v9320_v60  ;;  %v8689_v1 = vunpack.i.l.bf16 %v9320_v60 }
 0x16f   :  { %v8695_v3 = vunpack.i.h.bf16 %v9332_v62  ;;  %v8694_v4 = vunpack.i.l.bf16 %v9332_v62  ;;  %8822 = vrot.lane.b32.xlu0 %v9219_v23, %s9134_s17  ;;  %v13027_v62 = vmov 0 }
 0x170   :  { %v9360_v6 = vsel %vm626_vm7, %v8689_v1, %v8690_v63 }
 0x171   :  { %13003 = vst [vmem:[#allocation13_spill] sm:$0xff] %v9360_v6  ;;  %v9366_v7 = vsel %vm626_vm7, %v8694_v4, %v8695_v3  ;;  %v9370_v8 = vsel %vm626_vm7, %v8690_v63, %v8694_v4  ;;  %v652_v9 = vsel %vm9341_vm8, %v9360_v6, 0.0  ;;  %v9443_v63 = vand.u32 7, %v434_v38 }
 0x172   :  { %13004 = vst [vmem:[#allocation14_spill] sm:$0xff] %v9366_v7  ;;  %13005 = vst [vmem:[#allocation15_spill] sm:$0xff] %v9370_v8  ;;  %8827 = vrot.lane.b32.xlu1 %v9223_v24, %s9134_s17  ;;  %v654_v10 = vsel %vm9326_vm5, %v9366_v7, 0.0  ;;  %v653_v11 = vsel %vm9352_vm9, %v9370_v8, 0.0  ;;  %v660_v12 = vpack.c.bf16 %v652_v9, %v652_v9  ;;  %v12812_v4 = vand.u32 7, %v9282_v44 }
 0x173   :  { %2905 = vrot.lane.b32.xlu0 %v9231_v37, %s9134_s17  ;;  %v662_v14 = vpack.c.bf16 %v654_v10, %v654_v10  ;;  %v661_v15 = vpack.c.bf16 %v653_v11, %v653_v11  ;;  %13008 = vst [vmem:[#allocation18_spill] sm:$0xff] %v9443_v63  ;;  %v9449_v9 = vand.u32 7, %v450_v42  ;;  %v12806_v10 = vand.u32 7, %v9289_v46 }
 0x174   :  { %8404 = vmatprep.subr.msk.bf16.mxu0 %vm12816_vm10, %v660_v12  ;;  %v12802_v12 = vand.u32 7, %v9404_v21  ;;  %vm12808_vm2 = vcmp.ge.s32.totalorder %v9443_v63, 1  ;;  %v13019_v38 = vmov 0  ;;  %v13021_v42 = vmov 0 }
 0x175   :  { %8406 = vmatprep.subr.msk.bf16.mxu1 %vm12816_vm10, %v662_v14  ;;  %v679_v17 = vsel %vm12816_vm10, %v661_v15, 0  ;;  %13009 = vst [vmem:[#allocation19_spill] sm:$0xff] %v9449_v9  ;;  %vm12810_vm14 = vcmp.ge.s32.totalorder %v9449_v9, 1  ;;  %vm9517_vm6 = vcmp.ge.s32.totalorder %v12806_v10, 1  ;;  %vm13041_vm9 = vcmask 1043456  }
 0x176   :  { %8832 = vrot.lane.b32.xlu1 %v9235_v40, %s9134_s17  ;;  %752 = vmatpush1.bf16.msra.mxu1 %v679_v17  ;;  %vm9501_vm0 = vcmp.ge.s32.totalorder %v12802_v12, 1  ;;  %v13022_v42 = vsel %vm9517_vm6, 4294967295, %v13021_v42 }
 0x177   :  { %2903 = vrot.lane.b32.xlu0 %v9239_v41, %s9134_s17  ;;  %v13018_v35 = vsel %vm9501_vm0, 4294967295, %v13017_v35 }
 0x179   :  { %8407 = vmatmul.mubr.msk.bf16.vlgmr.msra.gmra.mxu1 %vm12800_vm11, %v9390_v18  ;;  %vm9509_vm11 = vmand %vm12807_vm3, %vm12803_vm13 }
 0x17a   :  { %8837 = vrot.lane.b32.xlu1 %v9219_v23, %s9135_s20  ;;  %851 = vmatprep.mubr.bf16.mxu1 %v12804_v0  ;;  %v13020_v38 = vsel %vm9509_vm11, 4294967295, %v13019_v38  ;;  %vm9549_vm3 = vmand %vm12810_vm14, %vm12808_vm2  ;;  %vm13043_vm14 = vcmp.lt.s32.totalorder %v9277_v43, 73 }
 0x17b   :  { %8842 = vrot.lane.b32.xlu0 %v9223_v24, %s9135_s20  ;;  %v13028_v62 = vsel %vm9549_vm3, 4294967295, %v13027_v62 }
 0x17e   :  { %3169 = vrot.lane.b32.xlu1 %v9231_v37, %s9135_s20 }
 0x17f   :  { %8847 = vrot.lane.b32.xlu0 %v9235_v40, %s9135_s20 }
 0x182   :  { %3167 = vrot.lane.b32.xlu1 %v9239_v41, %s9135_s20 }
 0x183   :  { %8852 = vrot.lane.b32.xlu0 %v9219_v23, %s9136_s21 }
 0x186   :  { %8857 = vrot.lane.b32.xlu1 %v9223_v24, %s9136_s21 }
 0x187   :  { %3425 = vrot.lane.b32.xlu0 %v9231_v37, %s9136_s21 }
 0x18a   :  { %8862 = vrot.lane.b32.xlu1 %v9235_v40, %s9136_s21 }
 0x18b   :  { %3423 = vrot.lane.b32.xlu0 %v9239_v41, %s9136_s21 }
 0x18c   :  { %v625_v15 = vpop.permute.xlu1 %624 }
 0x18d   :  { %v9473_v25 = vsel %vm626_vm7, %v625_v15, %v8689_v1  ;;  %v8698_v27 = vpop.permute.xlu0 %8697 }
 0x18e   :  { %13012 = vst [vmem:[#allocation20_spill] sm:$0xff] %v9473_v25  ;;  %v651_v60 = vsel %vm9456_vm15, %v9473_v25, 0.0  ;;  %8867 = vrot.lane.b32.xlu1 %v9219_v23, %s9137_s22  ;;  %v8700_v1 = vunpack.i.h.bf16 %v8698_v27  ;;  %v8699_v30 = vunpack.i.l.bf16 %v8698_v27 }
 0x18f   :  { %v659_v32 = vpack.c.bf16 %v651_v60, %v651_v60  ;;  %8872 = vrot.lane.b32.xlu0 %v9223_v24, %s9137_s22 }
 0x190   :  { %v9524_v60 = vsel %vm626_vm7, %v8699_v30, %v8700_v1  ;;  %v623_v12 = vpop.permute.xlu1 %622  ;;  %v9531_v0 = vsel %vm626_vm7, %v8695_v3, %v8699_v30  ;;  %v13032_v30 = vmov 0 }
 0x191   :  { %13023 = vst [vmem:[#allocation21_spill] sm:$0xff] %v9524_v60  ;;  %13024 = vst [vmem:[#allocation22_spill] sm:$0xff] %v9531_v0  ;;  %v9535_v10 = vsel %vm626_vm7, %v623_v12, %v625_v15  ;;  %v9539_v28 = vsel %vm626_vm7, %v8700_v1, %v623_v12  ;;  %v8703_v14 = vpop.permute.xlu0 %8702  ;;  %v673_v27 = vsel %vm12816_vm10, %v659_v32, 0  ;;  %v656_v17 = vsel %vm9494_vm1, %v9524_v60, 0.0 }
 0x192   :  { %13025 = vst [vmem:[#allocation23_spill] sm:$0xff] %v9535_v10  ;;  %13026 = vst [vmem:[#allocation24_spill] sm:$0xff] %v9539_v28  ;;  %v657_v3 = vsel %vm9509_vm11, %v9539_v28, 0.0  ;;  %v658_v12 = vsel %vm9480_vm12, %v9535_v10, 0.0  ;;  %3689 = vrot.lane.b32.xlu1 %v9231_v37, %s9137_s22  ;;  %711 = vmatpush1.bf16.msra.mxu0 %v673_v27  ;;  %vm9563_vm7 = vcmp.ge.s32.totalorder %v12812_v4, 1  ;;  %v13029_v15 = vmov 0 }
 0x193   :  { %v13030_v15 = vsel %vm9563_vm7, 4294967295, %v13029_v15  ;;  %v13031_v1 = vand.u32 7, %v9401_v48  ;;  %v665_v32 = vpack.c.bf16 %v657_v3, %v657_v3  ;;  %v666_v60 = vpack.c.bf16 %v658_v12, %v658_v12  ;;  %8877 = vrot.lane.b32.xlu0 %v9235_v40, %s9137_s22  ;;  %vm13046_vm10 = vmmov %vm13043_vm14 }
 0x194   :  { %v13034_v27 = vand.u32 7, %v9277_v43  ;;  %v13035_v4 = vmov 0  ;;  %v13038_v10 = vmov 0  ;;  %v8705_v3 = vunpack.i.h.bf16 %v8703_v14  ;;  %v8708_v28 = vpop.permute.xlu1 %8707 }
 0x195   :  { %vm9569_vm2 = vcmp.ge.s32.totalorder %v13031_v1, 1  ;;  %v13037_v1 = vand.u32 7, %v9286_v45  ;;  %v8704_v12 = vunpack.i.l.bf16 %v8703_v14  ;;  %v664_v25 = vpack.c.bf16 %v656_v17, %v656_v17  ;;  %8410 = vmatprep.subr.msk.bf16.mxu1 %vm13041_vm9, %v666_v60  ;;  %v552_v14 = vpop.permute.xlu0 %551 }
 0x196   :  { %v13033_v30 = vsel %vm9569_vm2, 4294967295, %v13032_v30  ;;  %vm9581_vm4 = vcmp.ge.s32.totalorder %v13034_v27, 1  ;;  %v655_v40 = vsel %vm9549_vm3, %v9531_v0, 0.0  ;;  %v8710_v27 = vunpack.i.h.bf16 %v8708_v28  ;;  %vm13045_vm3 = vmmov %vm13041_vm9  ;;  %3687 = vrot.lane.b32.xlu1 %v9239_v41, %s9137_s22 }
 0x197   :  { %v13036_v4 = vsel %vm9581_vm4, 4294967295, %v13035_v4  ;;  %vm9587_vm13 = vcmp.ge.s32.totalorder %v13037_v1, 1  ;;  %v8709_v1 = vunpack.i.l.bf16 %v8708_v28  ;;  %vm13040_vm11 = vcmask 64512   ;;  %8408 = vmatprep.subr.msk.bf16.mxu0 %vm13045_vm3, %v664_v25  ;;  %vm13051_vm3 = vmand %vm9341_vm8, %vm9517_vm6  ;;  %8882 = vrot.lane.b32.xlu0 %v9219_v23, %s9138_s23 }
 0x198   :  { %v13039_v10 = vsel %vm9587_vm13, 4294967295, %v13038_v10  ;;  %8405 = vmatmul.mubr.msk.bf16.vlgmr.msra.gmra.mxu0 %vm13040_vm11, %v9390_v18  ;;  %v663_v17 = vpack.c.bf16 %v655_v40, %v655_v40  ;;  %vm13042_vm13 = vmmov %vm13041_vm9  ;;  %v9608_v7 = vsel %vm13043_vm14, %v8704_v12, %v8705_v3  ;;  %v9615_v28 = vsel %vm13046_vm10, %v552_v14, %v8704_v12  ;;  %v8713_v8 = vpop.permute.xlu1 %8712 }
 0x199   :  { %v691_v6 = vsel %vm13042_vm13, %v665_v32, 0  ;;  %13044 = vst [vmem:[#allocation25_spill] sm:$0xff] %v9608_v7  ;;  %13047 = vst [vmem:[#allocation26_spill] sm:$0xff] %v9615_v28  ;;  %v13048_v60 = vand.u32 7, %v9407_v22  ;;  %v13049_v32 = vmov 0  ;;  %v595_v25 = vsel %vm13051_vm3, %v9608_v7, 0.0  ;;  %v550_v13 = vpop.permute.xlu0 %549 }
 0x19a   :  { %v9636_v12 = vsel %vm13046_vm10, %v8709_v1, %v8710_v27  ;;  %vm13053_vm13 = vmand %vm9456_vm15, %vm9581_vm4  ;;  %834 = vmatpush1.bf16.msra.mxu1 %v691_v6  ;;  %v13057_v0 = vmov 0   ;;  %vm13059_vm9 = vnez %v13002_v5  ;;  %vm13060_vm14 = vcmask 1043456   ;;  %8887 = vrot.lane.b32.xlu1 %v9223_v24, %s9138_s23 }
 0x19b   :  { %vm9624_vm11 = vcmp.ge.s32.totalorder %v13048_v60, 1  ;;  %13052 = vst [vmem:[#allocation27_spill] sm:$0xff] %v9636_v12  ;;  %v594_v40 = vsel %vm13053_vm13, %v9615_v28, 0.0  ;;  %vm13054_vm3 = vmmov %vm13046_vm10  ;;  %810 = vmatprep.mubr.bf16.mxu0 %v13057_v0  ;;  %vm13058_vm13 = vnez %v13039_v10  ;;  %v685_v7 = vsel %vm13060_vm14, %v663_v17, 0  ;;  %4146 = vrot.lane.b32.xlu0 %v9227_v33, %s9138_s23 }
 0x19c   :  { %v13050_v32 = vsel %vm9624_vm11, 4294967295, %v13049_v32  ;;  %v9652_v60 = vsel %vm13054_vm3, %v8705_v3, %v8709_v1  ;;  %vm13056_vm10 = vmand %vm9326_vm5, %vm9563_vm7  ;;  %v602_v28 = vpack.c.bf16 %v594_v40, %v594_v40  ;;  %v8715_v3 = vunpack.i.h.bf16 %v8713_v8  ;;  %793 = vmatpush1.bf16.msra.mxu0 %v685_v7 }
 0x19d   :  { %13055 = vst [vmem:[#allocation28_spill] sm:$0xff] %v9652_v60  ;;  %v597_v6 = vsel %vm13056_vm10, %v9636_v12, 0.0  ;;  %v8714_v1 = vunpack.i.l.bf16 %v8713_v8  ;;  %vm13061_vm3 = vnez %v13020_v38  ;;  %vm13062_vm10 = vcmask 64512  }
 0x19e   :  { %8411 = vmatmul.mubr.msk.bf16.vlgmr.msra.gmra.mxu1 %vm13062_vm10, %v9390_v18  ;;  %v603_v12 = vpack.c.bf16 %v595_v25, %v595_v25  ;;  %vm13063_vm7 = vcmp.lt.s32.totalorder %v9277_v43, 73  ;;  %v605_v40 = vpack.c.bf16 %v597_v6, %v597_v6  ;;  %v13065_v17 = vand.u32 7, %v9411_v26 }
 0x19f   :  { %v9674_v16 = vsel %vm13063_vm7, %v550_v13, %v552_v14  ;;  %v13066_v8 = vmov 0  ;;  %vm13068_vm4 = vmmov %vm13063_vm7  ;;  %vm13075_vm6 = vcmask 1043456   ;;  %960 = vmatprep.mubr.bf16.mxu1 %v13057_v0  ;;  %4152 = vrot.lane.b32.xlu0 %v9231_v37, %s9138_s23 }
 0x1a0   :  { %13064 = vst [vmem:[#allocation29_spill] sm:$0xff] %v9674_v16  ;;  %vm9678_vm14 = vcmp.ge.s32.totalorder %v13065_v17, 1  ;;  %v9684_v19 = vsel %vm13068_vm4, %v8714_v1, %v8715_v3  ;;  %vm13070_vm10 = vmmov %vm13068_vm4  ;;  %8412 = vmatprep.subr.msk.bf16.mxu0 %vm13075_vm6, %v603_v12  ;;  %v13079_v17 = vmov 0  ;;  %v13082_v12 = vmov 0 }
 0x1a1   :  { %v13067_v8 = vsel %vm9678_vm14, 4294967295, %v13066_v8  ;;  %13069 = vst [vmem:[#allocation30_spill] sm:$0xff] %v9684_v19  ;;  %v9690_v7 = vsel %vm13070_vm10, %v8715_v3, %v550_v13  ;;  %vm13072_vm7 = vmand %vm9480_vm12, %vm9569_vm2  ;;  %v13078_v3 = vand.u32 7, %v9289_v46  ;;  %v9741_v46 = vpack.i.bf16 %v9239_v41, %v9229_v34 }
 0x1a2   :  { %13071 = vst [vmem:[#allocation31_spill] sm:$0xff] %v9690_v7  ;;  %v601_v14 = vsel %vm13072_vm7, %v9674_v16, 0.0  ;;  %vm13073_vm4 = vmand %vm13059_vm9, %vm13058_vm13  ;;  %v8718_v16 = vpop.permute.xlu1 %8717  ;;  %v13106_v41 = vand.u32 7, %v9401_v48 }
 0x1a3   :  { %v596_v25 = vsel %vm13073_vm4, %v9652_v60, 0.0  ;;  %vm13074_vm10 = vmand %vm9494_vm1, %vm9501_vm0  ;;  %vm9722_vm4 = vcmp.le.s32.totalorder %v13078_v3, 6  ;;  %v8719_v3 = vunpack.i.l.bf16 %v8718_v16  ;;  %8892 = vrot.lane.b32.xlu1 %v9741_v46, %s9138_s23  ;;  %8902 = vrot.lane.b32.xlu0 %v9223_v24, %s9139_s26  ;;  %vm13121_vm1 = vcmask 64512  }
 0x1a4   :  { %v599_v13 = vsel %vm13074_vm10, %v9684_v19, 0.0  ;;  %vm13076_vm7 = vmand %vm13061_vm3, %vm9624_vm11  ;;  %v13080_v17 = vsel %vm9722_vm4, 4294967295, %v13079_v17  ;;  %v13081_v19 = vand.u32 7, %v9282_v44  ;;  %v8720_v44 = vunpack.i.h.bf16 %v8718_v16 }
 0x1a5   :  { %v600_v6 = vsel %vm13076_vm7, %v9690_v7, 0.0  ;;  %vm13077_vm2 = vmmov %vm13075_vm6  ;;  %vm13084_vm6 = vcmp.lt.s32.totalorder %v9277_v43, 73  ;;  %v609_v7 = vpack.c.bf16 %v601_v14, %v601_v14  ;;  %vm13086_vm7 = vcmask 64512  }
 0x1a6   :  { %8414 = vmatprep.subr.msk.bf16.mxu1 %vm13077_vm2, %v605_v40  ;;  %vm9728_vm10 = vcmp.le.s32.totalorder %v13081_v19, 6  ;;  %v9734_v60 = vsel %vm13084_vm6, %v8710_v27, %v8714_v1  ;;  %8409 = vmatmul.mubr.msk.bf16.vlgmr.msra.gmra.mxu0 %vm13086_vm7, %v9390_v18  ;;  %v9743_v40 = vpop.permute.xlu0 %8722  ;;  %v608_v19 = vpack.c.bf16 %v600_v6, %v600_v6  ;;  %v604_v20 = vpack.c.bf16 %v596_v25, %v596_v25  ;;  %vm13088_vm7 = vmmov %vm13077_vm2 }
 0x1a7   :  { %v13083_v12 = vsel %vm9728_vm10, 4294967295, %v13082_v12  ;;  %13085 = vst [vmem:[#allocation32_spill] sm:$0xff] %v9734_v60  ;;  %919 = vmatprep.mubr.bf16.mxu0 %v13057_v0  ;;  %vm13087_vm6 = vnez %v13028_v62  ;;  %v864_v18 = vsel %vm13088_vm7, %v602_v28, 0  ;;  %v12857_v16 = vunpack.i.h.bf16 %v9743_v40  ;;  %vm13089_vm0 = vmmov %vm13077_vm2  ;;  %v1066_v28 = vpop.permute.xlu1 %1065  ;;  %8897 = vrot.lane.b32.xlu1 %v9219_v23, %s9139_s26 }
 0x1a8   :  { %v8724_v27 = vunpack.i.l.bf16 %v9743_v40  ;;  %v607_v1 = vpack.c.bf16 %v599_v13, %v599_v13  ;;  %v870_v14 = vsel %vm13089_vm0, %v604_v20, 0  ;;  %902 = vmatpush1.bf16.msra.mxu0 %v864_v18  ;;  %v13090_v25 = vand.u32 7, %v9286_v45  ;;  %v9789_v18 = vld [vmem:[%s12784_s2] sm:$0xf]  ;;  %vm13101_vm11 = vmand %vm9326_vm5, %vm9728_vm10  ;;  %8907 = vrot.lane.b32.xlu0 %v9741_v46, %s9139_s26 }
 0x1a9   :  { %v13091_v6 = vmov 0  ;;  %943 = vmatpush1.bf16.msra.mxu1 %v870_v14  ;;  %vm13093_vm2 = vcmp.lt.s32.totalorder %v9277_v43, 71  ;;  %v13095_v20 = vand.u32 7, %v9277_v43  ;;  %v13096_v45 = vmov 0 }
 0x1aa   :  { %vm9765_vm7 = vcmp.le.s32.totalorder %v13090_v25, 6  ;;  %v9777_v13 = vsel %vm13093_vm2, %v8724_v27, %v12857_v16  ;;  %8416 = vmatprep.subr.msk.bf16.mxu0 %vm13089_vm0, %v607_v1  ;;  %v9791_v14 = vpop.permute.xlu0 %8727  ;;  %vm13098_vm2 = vmand %vm13087_vm6, %vm9678_vm14  ;;  %vm13099_vm0 = vcmp.lt.s32.totalorder %v9277_v43, 71  ;;  %vm13102_vm3 = vcmask 1043456  }
 0x1ab   :  { %v13092_v6 = vsel %vm9765_vm7, 4294967295, %v13091_v6  ;;  %13094 = vst [vmem:[#allocation33_spill] sm:$0xff] %v9777_v13  ;;  %vm9782_vm13 = vcmp.le.s32.totalorder %v13095_v20, 6  ;;  %v598_v1 = vsel %vm13098_vm2, %v9734_v60, 0.0  ;;  %v9801_v25 = vsel %vm13099_vm0, %v8719_v3, %v8720_v44  ;;  %8418 = vmatprep.subr.msk.bf16.mxu1 %vm13102_vm3, %v609_v7  ;;  %vm13103_vm14 = vmmov %vm13102_vm3  ;;  %4402 = vrot.lane.b32.xlu1 %v9227_v33, %s9139_s26 }
 0x1ac   :  { %v13097_v45 = vsel %vm9782_vm13, 4294967295, %v13096_v45  ;;  %13100 = vst [vmem:[#allocation34_spill] sm:$0xff] %v9801_v25  ;;  %v1103_v20 = vsel %vm13101_vm11, %v9777_v13, 0.0  ;;  %v882_v16 = vsel %vm13103_vm14, %v608_v19, 0  ;;  %vm13104_vm2 = vmmov %vm13099_vm0  ;;  %vm9821_vm0 = vcmp.le.s32.totalorder %v13106_v41, 6  ;;  %v1064_v19 = vpop.permute.xlu1 %1063  ;;  %8912 = vrot.lane.b32.xlu0 %v9219_v23, %s9140_s29 }
 0x1ad   :  { %v9817_v60 = vsel %vm13104_vm2, %v8720_v44, %v8724_v27  ;;  %v13108_v61 = vsel %vm9821_vm0, 4294967295, %v13107_v61  ;;  %vm13109_vm5 = vmmov %vm13104_vm2  ;;  %vm13111_vm3 = vcmask 64512   ;;  %v8730_v41 = vunpack.i.h.bf16 %v9791_v14 }
 0x1ae   :  { %13105 = vst [vmem:[#allocation35_spill] sm:$0xff] %v9817_v60  ;;  %v9827_v7 = vsel %vm13109_vm5, %v1066_v28, %v8719_v3  ;;  %8415 = vmatmul.mubr.msk.bf16.vlgmr.msra.gmra.mxu1 %vm13111_vm3, %v9789_v18  ;;  %v8729_v48 = vunpack.i.l.bf16 %v9791_v14  ;;  %vm1083_vm14 = vmand %vm9480_vm12, %vm9821_vm0  ;;  %v606_v44 = vpack.c.bf16 %v598_v1, %v598_v1  ;;  %v1111_v3 = vpack.c.bf16 %v1103_v20, %v1103_v20  ;;  %v9861_v1 = vpop.permute.xlu0 %8732 }
 0x1af   :  { %13110 = vst [vmem:[#allocation36_spill] sm:$0xff] %v9827_v7  ;;  %v13112_v27 = vand.u32 7, %v9404_v21  ;;  %v13113_v13 = vmov 0  ;;  %vm13115_vm5 = vmand %vm9341_vm8, %vm9722_vm4  ;;  %1025 = vmatpush1.bf16.msra.mxu1 %v882_v16  ;;  %vm13116_vm3 = vcmp.lt.s32.totalorder %v9277_v43, 71  ;;  %v13118_v21 = vand.u32 7, %v9407_v22  ;;  %8413 = vmatmul.mubr.msk.bf16.vlgmr.msra.gmra.mxu0 %vm13121_vm1, %v9789_v18 }
 0x1b0   :  { %v1101_v14 = vsel %vm13115_vm5, %v9801_v25, 0.0  ;;  %v9859_v29 = vsel %vm13116_vm3, %v1064_v19, %v1066_v28  ;;  %v13119_v20 = vmov 0  ;;  %vm13122_vm11 = vcmask 1043456   ;;  %vm13123_vm8 = vmand %vm13059_vm9, %vm9765_vm7  ;;  %1042 = vmatprep.mubr.bf16.mxu1 %v13057_v0  ;;  %1001 = vmatprep.mubr.bf16.mxu0 %v13057_v0 }
 0x1b1   :  { %vm9847_vm2 = vcmp.le.s32.totalorder %v13112_v27, 6  ;;  %13117 = vst [vmem:[#allocation37_spill] sm:$0xff] %v9859_v29  ;;  %vm9865_vm12 = vcmp.le.s32.totalorder %v13118_v21, 6  ;;  %8422 = vmatprep.subr.msk.bf16.mxu1 %vm13122_vm11, %v1111_v3  ;;  %v1102_v2 = vsel %vm13123_vm8, %v9817_v60, 0.0  ;;  %vm13124_vm5 = vmand %vm9456_vm15, %vm9782_vm13  ;;  %v1107_v16 = vsel %vm1083_vm14, %v9859_v29, 0.0  ;;  %v9898_v3 = vpop.permute.xlu1 %8737  ;;  %4408 = vrot.lane.b32.xlu1 %v9231_v37, %s9139_s26 }
 0x1b2   :  { %v13114_v13 = vsel %vm9847_vm2, 4294967295, %v13113_v13  ;;  %v13120_v20 = vsel %vm9865_vm12, 4294967295, %v13119_v20  ;;  %v1100_v22 = vsel %vm13124_vm5, %v9827_v7, 0.0  ;;  %vm13125_vm1 = vnez %v13016_v31  ;;  %vm13126_vm11 = vmmov %vm13116_vm3  ;;  %4666 = vrot.lane.b32.xlu0 %v9227_v33, %s9140_s29 }
 0x1b3   :  { %vm1081_vm9 = vmand %vm13125_vm1, %vm9847_vm2  ;;  %v9895_v5 = vsel %vm13126_vm11, %v8729_v48, %v8730_v41  ;;  %vm13128_vm3 = vcmask 1043456   ;;  %v1109_v28 = vpack.c.bf16 %v1101_v14, %v1101_v14  ;;  %vm13129_vm15 = vnez %v13020_v38 }
 0x1b4   :  { %13127 = vst [vmem:[#allocation38_spill] sm:$0xff] %v9895_v5  ;;  %v876_v11 = vsel %vm13128_vm3, %v606_v44, 0  ;;  %vm1082_vm14 = vmand %vm13129_vm15, %vm9865_vm12  ;;  %v1110_v21 = vpack.c.bf16 %v1102_v2, %v1102_v2  ;;  %v13132_v44 = vand.u32 7, %v9411_v26  ;;  %v13133_v14 = vmov 0  ;;  %v1330_v26 = vpop.permute.xlu0 %1329 }
 0x1b5   :  { %vm13130_vm8 = vmmov %vm13126_vm11  ;;  %984 = vmatpush1.bf16.msra.mxu0 %v876_v11  ;;  %v1108_v29 = vpack.c.bf16 %v1100_v22, %v1100_v22  ;;  %v1115_v7 = vpack.c.bf16 %v1107_v16, %v1107_v16  ;;  %v12867_v25 = vunpack.i.h.bf16 %v9898_v3  ;;  %v8739_v38 = vunpack.i.l.bf16 %v9898_v3  ;;  %8917 = vrot.lane.b32.xlu1 %v9223_v24, %s9140_s29 }
 0x1b6   :  { %v9908_v27 = vsel %vm13130_vm8, %v8730_v41, %v1064_v19  ;;  %vm9912_vm5 = vcmp.le.s32.totalorder %v13132_v44, 6  ;;  %vm13135_vm11 = vmmov %vm13128_vm3  ;;  %v1105_v41 = vsel %vm1081_vm9, %v9895_v5, 0.0  ;;  %v8735_v2 = vunpack.i.h.bf16 %v9861_v1  ;;  %v512_v44 = vld [vmem:[%s12784_s2 + $0x8] sm:$0xf]  ;;  %4672 = vrot.lane.b32.xlu0 %v9231_v37, %s9140_s29 }
 0x1b7   :  { %13131 = vst [vmem:[#allocation39_spill] sm:$0xff] %v9908_v27  ;;  %v13134_v14 = vsel %vm9912_vm5, 4294967295, %v13133_v14  ;;  %8420 = vmatprep.subr.msk.bf16.mxu0 %vm13135_vm11, %v1109_v28  ;;  %v1106_v19 = vsel %vm1082_vm14, %v9908_v27, 0.0  ;;  %v8734_v22 = vunpack.i.l.bf16 %v9861_v1  ;;  %vm13136_vm3 = vcmask 64512   ;;  %vm13137_vm15 = vmmov %vm13135_vm11  ;;  %v8743_v28 = vpop.permute.xlu1 %8742 }
 0x1b8   :  { %8419 = vmatmul.mubr.msk.bf16.vlgmr.msra.gmra.mxu1 %vm13136_vm3, %v9789_v18  ;;  %v1126_v31 = vsel %vm13137_vm15, %v1110_v21, 0  ;;  %v13138_v16 = vunpack.i.h.bf16 %v9743_v40  ;;  %vm13139_vm1 = vmmov %vm13130_vm8  ;;  %vm12866_vm9 = vcmp.lt.s32.totalorder %v9277_v43, 65  ;;  %vm13141_vm8 = vnez %v13030_v15  ;;  %v1328_v21 = vpop.permute.xlu0 %1327 }
 0x1b9   :  { %1199 = vmatpush1.bf16.msra.mxu1 %v1126_v31  ;;  %1216 = vmatprep.mubr.bf16.mxu1 %v13057_v0  ;;  %vm1080_vm14 = vmand %vm13087_vm6, %vm9912_vm5  ;;  %vm13142_vm11 = vcmp.ge.s32.totalorder %v9302_v55, 1  ;;  %v9955_v40 = vsel %vm12866_vm9, %v8739_v38, %v12867_v25  ;;  %v1113_v62 = vpack.c.bf16 %v1105_v41, %v1105_v41  ;;  %v1114_v1 = vpack.c.bf16 %v1106_v19, %v1106_v19 }
 0x1ba   :  { %v9939_v11 = vsel %vm13139_vm1, %v13138_v16, %v8729_v48  ;;  %vm1343_vm3 = vmand %vm13142_vm11, %vm13141_vm8  ;;  %13143 = vst [vmem:[#allocation41_spill] sm:$0xff] %v9955_v40  ;;  %8426 = vmatprep.subr.msk.bf16.mxu1 %vm13137_vm15, %v1115_v7  ;;  %vm13144_vm1 = vcmask 64512   ;;  %vm13146_vm6 = vnez %v13022_v42  ;;  %vm13147_vm11 = vcmp.ge.s32.totalorder %v9311_v59, 1  ;;  %8922 = vrot.lane.b32.xlu1 %v9741_v46, %s9140_s29 }
 0x1bb   :  { %13140 = vst [vmem:[#allocation40_spill] sm:$0xff] %v9939_v11  ;;  %8417 = vmatmul.mubr.msk.bf16.vlgmr.msra.gmra.mxu0 %vm13144_vm1, %v9789_v18  ;;  %vm13145_vm12 = vmmov %vm13137_vm15  ;;  %vm13148_vm8 = vcmp.lt.s32.totalorder %v9277_v43, 65  ;;  %v1104_v18 = vsel %vm1080_vm14, %v9939_v11, 0.0  ;;  %vm13154_vm1 = vcmp.ge.s32.totalorder %v9307_v57, 1  ;;  %8932 = vrot.lane.b32.xlu0 %v9223_v24, %s9141_s8 }
 0x1bc   :  { %v1120_v48 = vsel %vm13145_vm12, %v1108_v29, 0  ;;  %vm1341_vm9 = vmand %vm13147_vm11, %vm13146_vm6  ;;  %v9969_v7 = vsel %vm13148_vm8, %v8734_v22, %v8735_v2  ;;  %v1367_v29 = vsel %vm1343_vm3, %v9955_v40, 0.0  ;;  %1175 = vmatprep.mubr.bf16.mxu0 %v13057_v0  ;;  %v1112_v16 = vpack.c.bf16 %v1104_v18, %v1104_v18 }
 0x1bd   :  { %1158 = vmatpush1.bf16.msra.mxu0 %v1120_v48  ;;  %13149 = vst [vmem:[#allocation42_spill] sm:$0xff] %v9969_v7  ;;  %vm13150_vm15 = vmmov %vm13145_vm12  ;;  %v1365_v19 = vsel %vm1341_vm9, %v9969_v7, 0.0  ;;  %vm13156_vm3 = vnez %v13036_v4  ;;  %v8744_v48 = vunpack.i.l.bf16 %v8743_v28  ;;  %vm13160_vm9 = vnez %v13033_v30 }
 0x1be   :  { %8424 = vmatprep.subr.msk.bf16.mxu0 %vm13150_vm15, %v1113_v62  ;;  %vm13151_vm12 = vmmov %vm13148_vm8  ;;  %vm13153_vm8 = vnez %v13039_v10  ;;  %v1375_v62 = vpack.c.bf16 %v1367_v29, %v1367_v29  ;;  %8927 = vrot.lane.b32.xlu1 %v9219_v23, %s9141_s8  ;;  %v1373_v7 = vpack.c.bf16 %v1365_v19, %v1365_v19 }
 0x1bf   :  { %v9982_v41 = vsel %vm13151_vm12, %v8735_v2, %v8739_v38  ;;  %vm1342_vm11 = vmand %vm13154_vm1, %vm13153_vm8  ;;  %v9998_v38 = vsel %vm13151_vm12, %v1330_v26, %v8734_v22  ;;  %v8745_v2 = vunpack.i.h.bf16 %v8743_v28  ;;  %vm13159_vm1 = vcmask 64512   ;;  %8937 = vrot.lane.b32.xlu0 %v9741_v46, %s9141_s8 }
 0x1c0   :  { %13152 = vst [vmem:[#allocation43_spill] sm:$0xff] %v9982_v41  ;;  %vm13155_vm14 = vmmov %vm13150_vm15  ;;  %vm13157_vm15 = vcmp.ge.s32.totalorder %v9422_v36, 1  ;;  %8423 = vmatmul.mubr.msk.bf16.vlgmr.msra.gmra.mxu1 %vm13159_vm1, %v512_v44  ;;  %v1366_v18 = vsel %vm1342_vm11, %v9982_v41, 0.0  ;;  %v10017_v28 = vsel %vm13151_vm12, %v1328_v21, %v1330_v26  ;;  %vm13165_vm1 = vcmask 1043456  }
 0x1c1   :  { %v1138_v31 = vsel %vm13155_vm14, %v1114_v1, 0  ;;  %vm1340_vm6 = vmand %vm13157_vm15, %vm13156_vm3  ;;  %13158 = vst [vmem:[#allocation44_spill] sm:$0xff] %v9998_v38  ;;  %v10003_v1 = vpop.permute.xlu1 %8747  ;;  %1298 = vmatprep.mubr.bf16.mxu1 %v13057_v0  ;;  %vm13161_vm14 = vcmp.ge.s32.totalorder %v9437_v51, 1  ;;  %vm13166_vm3 = vcmask 64512   ;;  %vm13169_vm12 = vcmp.ge.s32.totalorder %v9435_v50, 1 }
 0x1c2   :  { %1281 = vmatpush1.bf16.msra.mxu1 %v1138_v31  ;;  %vm10011_vm15 = vmand %vm13161_vm14, %vm13160_vm9  ;;  %13164 = vst [vmem:[#allocation45_spill] sm:$0xff] %v10017_v28  ;;  %v1364_v29 = vsel %vm1340_vm6, %v9998_v38, 0.0  ;;  %v10022_v31 = vpop.permute.xlu0 %8752  ;;  %vm13168_vm14 = vnez %v13018_v35  ;;  %v13178_v22 = vunpack.i.h.bf16 %v9898_v3  ;;  %4922 = vrot.lane.b32.xlu1 %v9227_v33, %s9141_s8 }
 0x1c3   :  { %8430 = vmatprep.subr.msk.bf16.mxu1 %vm13165_vm1, %v1375_v62  ;;  %8421 = vmatmul.mubr.msk.bf16.vlgmr.msra.gmra.mxu0 %vm13166_vm3, %v512_v44  ;;  %vm13167_vm11 = vmmov %vm13165_vm1  ;;  %vm13170_vm3 = vcmp.lt.s32.totalorder %v9277_v43, 65  ;;  %v1371_v23 = vsel %vm10011_vm15, %v10017_v28, 0.0  ;;  %v1372_v19 = vpack.c.bf16 %v1364_v29, %v1364_v29  ;;  %v13185_v46 = vunpack.i.h.bf16 %v10022_v31 }
 0x1c4   :  { %v1132_v25 = vsel %vm13167_vm11, %v1112_v16, 0  ;;  %1257 = vmatprep.mubr.bf16.mxu0 %v13057_v0  ;;  %vm1345_vm1 = vmand %vm13169_vm12, %vm13168_vm14  ;;  %v10034_v26 = vsel %vm13170_vm3, %v8744_v48, %v8745_v2  ;;  %v1374_v16 = vpack.c.bf16 %v1366_v18, %v1366_v18  ;;  %vm13174_vm12 = vcmp.ge.s32.totalorder %v9441_v53, 1 }
 0x1c5   :  { %13171 = vst [vmem:[#allocation46_spill] sm:$0xff] %v10034_v26  ;;  %1240 = vmatpush1.bf16.msra.mxu0 %v1132_v25  ;;  %vm13172_vm6 = vmmov %vm13167_vm11  ;;  %vm13173_vm11 = vnez %v13050_v32  ;;  %v10052_v25 = vsel %vm13170_vm3, %v8745_v2, %v1328_v21  ;;  %v8754_v18 = vunpack.i.l.bf16 %v10022_v31  ;;  %v1369_v29 = vsel %vm1345_vm1, %v10034_v26, 0.0  ;;  %v1594_v28 = vpop.permute.xlu1 %1593 }
 0x1c6   :  { %8428 = vmatprep.subr.msk.bf16.mxu0 %vm13172_vm6, %v1373_v7  ;;  %vm10046_vm14 = vmand %vm13174_vm12, %vm13173_vm11  ;;  %13177 = vst [vmem:[#allocation47_spill] sm:$0xff] %v10052_v25  ;;  %v1379_v38 = vpack.c.bf16 %v1371_v23, %v1371_v23  ;;  %v8750_v21 = vunpack.i.h.bf16 %v10003_v1  ;;  %v8749_v2 = vunpack.i.l.bf16 %v10003_v1  ;;  %vm13181_vm6 = vcmask 64512   ;;  %v8758_v62 = vpop.permute.xlu0 %8757  ;;  %4928 = vrot.lane.b32.xlu1 %v9231_v37, %s9141_s8 }
 0x1c7   :  { %vm13179_vm15 = vmmov %vm13170_vm3  ;;  %vm13182_vm12 = vcmask 1043456   ;;  %vm13183_vm3 = vnez %v13067_v8  ;;  %vm13184_vm1 = vcmp.ge.s32.totalorder %v9449_v9, 1  ;;  %v1370_v3 = vsel %vm10046_vm14, %v10052_v25, 0.0 }
 0x1c8   :  { %v10060_v7 = vsel %vm13179_vm15, %v13178_v22, %v8744_v48  ;;  %8427 = vmatmul.mubr.msk.bf16.vlgmr.msra.gmra.mxu1 %vm13181_vm6, %v512_v44  ;;  %v1390_v24 = vsel %vm13182_vm12, %v1374_v16, 0  ;;  %vm1344_vm15 = vmand %vm13184_vm1, %vm13183_vm3  ;;  %vm1595_vm11 = vcmp.lt.s32.totalorder %v9277_v43, 64  ;;  %v7321_v48 = vld [vmem:[%s12787_s5] sm:$0xff]  ;;  %v1377_v23 = vpack.c.bf16 %v1369_v29, %v1369_v29  ;;  %v7368_v29 = vld [vmem:[%s12788_s6 + $0x8] sm:$0xff] }
 0x1c9   :  { %13180 = vst [vmem:[#allocation48_spill] sm:$0xff] %v10060_v7  ;;  %1463 = vmatpush1.bf16.msra.mxu1 %v1390_v24  ;;  %1480 = vmatprep.mubr.bf16.mxu1 %v13057_v0  ;;  %v10087_v1 = vsel %vm1595_vm11, %v8754_v18, %v13185_v46  ;;  %vm13187_vm6 = vmmov %vm13182_vm12  ;;  %vm13188_vm12 = vcmask 64512   ;;  %v1368_v24 = vsel %vm1344_vm15, %v10060_v7, 0.0  ;;  %v1378_v22 = vpack.c.bf16 %v1370_v3, %v1370_v3 }
 0x1ca   :  { %13186 = vst [vmem:[#allocation49_spill] sm:$0xff] %v10087_v1  ;;  %8434 = vmatprep.subr.msk.bf16.mxu1 %vm13187_vm6, %v1379_v38  ;;  %vm13189_vm14 = vmmov %vm13187_vm6  ;;  %v10097_v26 = vsel %vm1595_vm11, %v8749_v2, %v8750_v21  ;;  %7324 = vperm.xlu0 %8685, %v7321_v48   ;;  %v1592_v38 = vpop.permute.xlu1 %1591  ;;  %v10112_v3 = vsel %vm1595_vm11, %v8750_v21, %v8754_v18  ;;  %vm13194_vm15 = vcmp.ge.s32.totalorder %v9311_v59, 1  ;;  %v10123_v41 = vpop.permute.xlu0 %8762  ;;  %v7370_v18 = vld [vmem:[%s12788_s6 + $0x18] sm:$0xff] }
 0x1cb   :  { %8425 = vmatmul.mubr.msk.bf16.vlgmr.msra.gmra.mxu0 %vm13188_vm12, %v512_v44  ;;  %v1384_v16 = vsel %vm13189_vm14, %v1372_v19, 0  ;;  %13190 = vst [vmem:[#allocation50_spill] sm:$0xff] %v10097_v26  ;;  %vm13191_vm1 = vmmov %vm13187_vm6  ;;  %vm13192_vm6 = vcmp.ge.s32.totalorder %v9302_v55, 1  ;;  %v513_v19 = vld [vmem:[%s12784_s2 + $0xc] sm:$0xf]  ;;  %v1376_v48 = vpack.c.bf16 %v1368_v24, %v1368_v24  ;;  %v1621_v46 = vsel %vm13194_vm15, %v10097_v26, 0.0 }
 0x1cc   :  { %1422 = vmatpush1.bf16.msra.mxu0 %v1384_v16  ;;  %v1623_v44 = vsel %vm13192_vm6, %v10087_v1, 0.0  ;;  %1439 = vmatprep.mubr.bf16.mxu0 %v13057_v0  ;;  %13193 = vst [vmem:[#allocation51_spill] sm:$0xff] %v10112_v3  ;;  %v10119_v16 = vsel %vm1595_vm11, %v1594_v28, %v8749_v2  ;;  %v8759_v1 = vunpack.i.l.bf16 %v8758_v62  ;;  %vm13196_vm14 = vmmov %vm13191_vm1  ;;  %v10134_v2 = vsel %vm1595_vm11, %v1592_v38, %v1594_v28 }
 0x1cd   :  { %8432 = vmatprep.subr.msk.bf16.mxu0 %vm13191_vm1, %v1377_v23  ;;  %13195 = vst [vmem:[#allocation52_spill] sm:$0xff] %v10119_v16  ;;  %v8760_v23 = vunpack.i.h.bf16 %v8758_v62  ;;  %v1402_v25 = vsel %vm13196_vm14, %v1378_v22, 0  ;;  %v1631_v40 = vpack.c.bf16 %v1623_v44, %v1623_v44  ;;  %vm13197_vm1 = vcmp.ge.s32.totalorder %v9307_v57, 1  ;;  %13198 = vst [vmem:[#allocation53_spill] sm:$0xff] %v10134_v2 }
 0x1ce   :  { %7390 = vperm.xlu0 %8685, %v7368_v29   ;;  %v1622_v21 = vsel %vm13197_vm1, %v10112_v3, 0.0  ;;  %vm13199_vm6 = vmmov %vm13196_vm14  ;;  %v1629_v62 = vpack.c.bf16 %v1621_v46, %v1621_v46  ;;  %vm13202_vm14 = vcmp.ge.s32.totalorder %v9422_v36, 1  ;;  %v10142_v22 = vpop.permute.xlu1 %8767  ;;  %v7372_v29 = vld [vmem:[%s12788_s6 + $0x28] sm:$0xff]  ;;  %v8765_v26 = vunpack.i.h.bf16 %v10123_v41 }
 0x1cf   :  { %vm13200_vm15 = vmmov %vm13188_vm12  ;;  %v1620_v24 = vsel %vm13202_vm14, %v10119_v16, 0.0  ;;  %v10147_v28 = vsel %vm1595_vm11, %v8759_v1, %v8760_v23  ;;  %v10158_v46 = vsel %vm1595_vm11, %v8760_v23, %v1592_v38  ;;  %v8769_v16 = vunpack.i.l.bf16 %v10142_v22 }
 0x1d0   :  { %8431 = vmatmul.mubr.msk.bf16.vlgmr.msra.gmra.mxu1 %vm13188_vm12, %v513_v19  ;;  %vm13201_vm12 = vmmov %vm13199_vm6  ;;  %13203 = vst [vmem:[#allocation54_spill] sm:$0xff] %v10147_v28  ;;  %v8764_v38 = vunpack.i.l.bf16 %v10123_v41 }
 0x1d1   :  { %1545 = vmatpush1.bf16.msra.mxu1 %v1402_v25  ;;  %1562 = vmatprep.mubr.bf16.mxu1 %v13057_v0  ;;  %v1396_v25 = vsel %vm13201_vm12, %v1376_v48, 0  ;;  %vm13204_vm1 = vmmov %vm13199_vm6  ;;  %v1628_v48 = vpack.c.bf16 %v1620_v24, %v1620_v24  ;;  %13206 = vst [vmem:[#allocation55_spill] sm:$0xff] %v10158_v46  ;;  %vm13210_vm12 = vcmask 64512  }
 0x1d2   :  { %8438 = vmatprep.subr.msk.bf16.mxu1 %vm13199_vm6, %v1631_v40  ;;  %7400 = vperm.xlu0 %8685, %v7370_v18   ;;  %v1630_v40 = vpack.c.bf16 %v1622_v21, %v1622_v21  ;;  %vm13205_vm6 = vcmp.ge.s32.totalorder %v9437_v51, 1  ;;  %v13207_v18 = vunpack.i.h.bf16 %v10022_v31  ;;  %vm13211_vm14 = vmmov %vm13204_vm1 }
 0x1d3   :  { %8429 = vmatmul.mubr.msk.bf16.vlgmr.msra.gmra.mxu0 %vm13200_vm15, %v513_v19  ;;  %v1627_v44 = vsel %vm13205_vm6, %v10134_v2, 0.0  ;;  %vm13209_vm15 = vcmp.ge.s32.totalorder %v9435_v50, 1  ;;  %v1850_v2 = vpop.permute.xlu0 %1849  ;;  %vm13213_vm6 = vcmp.ge.s32.totalorder %v9302_v55, 1 }
 0x1d4   :  { %1504 = vmatpush1.bf16.msra.mxu0 %v1396_v25  ;;  %1521 = vmatprep.mubr.bf16.mxu0 %v13057_v0  ;;  %v12882_v25 = vunpack.i.h.bf16 %v10142_v22  ;;  %v10166_v21 = vsel %vm1595_vm11, %v13207_v18, %v8759_v1  ;;  %v1635_v24 = vpack.c.bf16 %v1627_v44, %v1627_v44  ;;  %v1646_v23 = vsel %vm13211_vm14, %v1630_v40, 0  ;;  %v7374_v1 = vld [vmem:[%s12788_s6 + $0x38] sm:$0xff] }
 0x1d5   :  { %8436 = vmatprep.subr.msk.bf16.mxu0 %vm13204_vm1, %v1629_v62  ;;  %13208 = vst [vmem:[#allocation56_spill] sm:$0xff] %v10166_v21  ;;  %v1625_v62 = vsel %vm13209_vm15, %v10147_v28, 0.0  ;;  %vm13212_vm1 = vcmp.ge.s32.totalorder %v9441_v53, 1  ;;  %vm12879_vm11 = vcmp.lt.s32.totalorder %v9277_v43, 63  ;;  %vm1863_vm15 = vmand %vm13213_vm6, %vm9728_vm10  ;;  %vm13218_vm6 = vcmp.ge.s32.totalorder %v9449_v9, 1 }
 0x1d6   :  { %7410 = vperm.xlu0 %8685, %v7372_v29   ;;  %v1626_v31 = vsel %vm13212_vm1, %v10158_v46, 0.0  ;;  %v10190_v41 = vsel %vm12879_vm11, %v8769_v16, %v12882_v25  ;;  %v1633_v44 = vpack.c.bf16 %v1625_v62, %v1625_v62  ;;  %v8773_v29 = vpop.permute.xlu1 %8772  ;;  %v1624_v18 = vsel %vm13218_vm6, %v10166_v21, 0.0 }
 0x1d7   :  { %13214 = vst [vmem:[#allocation57_spill] sm:$0xff] %v10190_v41  ;;  %vm13219_vm11 = vcmp.ge.s32.totalorder %v9311_v59, 1  ;;  %v1848_v62 = vpop.permute.xlu0 %1847 }
 0x1d8   :  { %8435 = vmatmul.mubr.msk.bf16.vlgmr.msra.gmra.mxu1 %vm13210_vm12, %v513_v19  ;;  %vm13215_vm12 = vmmov %vm13211_vm14  ;;  %vm13216_vm14 = vcmask 64512  }
 0x1d9   :  { %1719 = vmatpush1.bf16.msra.mxu1 %v1646_v23  ;;  %vm13217_vm1 = vmmov %vm13215_vm12  ;;  %1736 = vmatprep.mubr.bf16.mxu1 %v13057_v0  ;;  %v1634_v23 = vpack.c.bf16 %v1626_v31, %v1626_v31  ;;  %v7376_v31 = vld [vmem:[%s12788_s6 + $0x48] sm:$0xff] }
 0x1da   :  { %8442 = vmatprep.subr.msk.bf16.mxu1 %vm13215_vm12, %v1635_v24  ;;  %v1640_v40 = vsel %vm13217_vm1, %v1628_v48, 0  ;;  %vm1861_vm10 = vmand %vm13219_vm11, %vm9722_vm4  ;;  %vm13220_vm12 = vcmp.lt.s32.totalorder %v9277_v43, 63  ;;  %7420 = vperm.xlu0 %8685, %v7374_v1   ;;  %v1887_v48 = vsel %vm1863_vm15, %v10190_v41, 0.0  ;;  %v10212_v24 = vld [vmem:[%s12784_s2 + $0x10] sm:$0xf]  ;;  %vm13225_vm15 = vcmp.ge.s32.totalorder %v9307_v57, 1  ;;  %v10242_v28 = vpop.permute.xlu1 %8777 }
 0x1db   :  { %8433 = vmatmul.mubr.msk.bf16.vlgmr.msra.gmra.mxu0 %vm13216_vm14, %v513_v19  ;;  %v10205_v19 = vsel %vm13220_vm12, %v8764_v38, %v8765_v26  ;;  %vm13222_vm14 = vmmov %vm13217_vm1  ;;  %vm13293_vm4 = vcmp.ge.s32.totalorder %v9435_v50, 1 }
 0x1dc   :  { %1678 = vmatpush1.bf16.msra.mxu0 %v1640_v40  ;;  %13221 = vst [vmem:[#allocation58_spill] sm:$0xff] %v10205_v19  ;;  %1695 = vmatprep.mubr.bf16.mxu0 %v13057_v0  ;;  %vm13223_vm11 = vmmov %vm13220_vm12  ;;  %v1885_v1 = vsel %vm1861_vm10, %v10205_v19, 0.0  ;;  %vm13228_vm12 = vcmp.ge.s32.totalorder %v9422_v36, 1  ;;  %v1895_v19 = vpack.c.bf16 %v1887_v48, %v1887_v48  ;;  %vm13233_vm10 = vcmp.ge.s32.totalorder %v9437_v51, 1 }
 0x1dd   :  { %8440 = vmatprep.subr.msk.bf16.mxu0 %vm13222_vm14, %v1633_v44  ;;  %v10220_v40 = vsel %vm13223_vm11, %v8765_v26, %v8769_v16  ;;  %v1632_v44 = vpack.c.bf16 %v1624_v18, %v1624_v18  ;;  %vm1862_vm1 = vmand %vm13225_vm15, %vm9765_vm7  ;;  %v8775_v26 = vunpack.i.h.bf16 %v8773_v29  ;;  %v8774_v16 = vunpack.i.l.bf16 %v8773_v29 }
 0x1de   :  { %13224 = vst [vmem:[#allocation59_spill] sm:$0xff] %v10220_v40  ;;  %vm13226_vm6 = vmmov %vm13223_vm11  ;;  %vm13231_vm11 = vcmask 64512   ;;  %vm13232_vm15 = vcmask 1043456   ;;  %7430 = vperm.xlu0 %8685, %v7376_v31   ;;  %v1886_v46 = vsel %vm1862_vm1, %v10220_v40, 0.0  ;;  %v1893_v31 = vpack.c.bf16 %v1885_v1, %v1885_v1  ;;  %v10268_v40 = vpop.permute.xlu0 %8782 }
 0x1df   :  { %v10229_v25 = vsel %vm13226_vm6, %v1850_v2, %v8764_v38  ;;  %vm10235_vm14 = vmand %vm13228_vm12, %vm9782_vm13  ;;  %v1658_v18 = vsel %vm13232_vm15, %v1634_v23, 0  ;;  %v7378_v38 = vld [vmem:[%s12788_s6 + $0x58] sm:$0xff]  ;;  %vm13236_vm12 = vcmp.lt.s32.totalorder %v9277_v43, 63  ;;  %vm13241_vm1 = vcmp.ge.s32.totalorder %v9435_v50, 1 }
 0x1e0   :  { %13227 = vst [vmem:[#allocation60_spill] sm:$0xff] %v10229_v25  ;;  %8439 = vmatmul.mubr.msk.bf16.vlgmr.msra.gmra.mxu1 %vm13231_vm11, %v10212_v24  ;;  %vm10253_vm6 = vmand %vm13233_vm10, %vm9821_vm0  ;;  %v10259_v23 = vsel %vm13236_vm12, %v1848_v62, %v1850_v2  ;;  %v10277_v2 = vsel %vm13236_vm12, %v8774_v16, %v8775_v26  ;;  %v1894_v41 = vpack.c.bf16 %v1886_v46, %v1886_v46  ;;  %v8784_v29 = vunpack.i.l.bf16 %v10268_v40 }
 0x1e1   :  { %1801 = vmatpush1.bf16.msra.mxu1 %v1658_v18  ;;  %1818 = vmatprep.mubr.bf16.mxu1 %v13057_v0  ;;  %13237 = vst [vmem:[#allocation61_spill] sm:$0xff] %v10259_v23  ;;  %vm13238_vm11 = vmmov %vm13232_vm15  ;;  %vm13239_vm15 = vcmask 64512   ;;  %v1884_v18 = vsel %vm10235_vm14, %v10229_v25, 0.0  ;;  %vm13277_vm0 = vcmask 1043456   ;;  %v13317_v5 = vunpack.i.h.bf16 %v10268_v40 }
 0x1e2   :  { %8446 = vmatprep.subr.msk.bf16.mxu1 %vm13238_vm11, %v1895_v19  ;;  %vm13240_vm13 = vmmov %vm13238_vm11  ;;  %13242 = vst [vmem:[#allocation62_spill] sm:$0xff] %v10277_v2  ;;  %7440 = vperm.xlu0 %8685, %v7378_v38   ;;  %v1891_v19 = vsel %vm10253_vm6, %v10259_v23, 0.0  ;;  %v1892_v1 = vpack.c.bf16 %v1884_v18, %v1884_v18  ;;  %v8779_v38 = vunpack.i.l.bf16 %v10242_v28 }
 0x1e3   :  { %8437 = vmatmul.mubr.msk.bf16.vlgmr.msra.gmra.mxu0 %vm13239_vm15, %v10212_v24  ;;  %v1652_v48 = vsel %vm13240_vm13, %v1632_v44, 0  ;;  %vm1865_vm10 = vmand %vm13241_vm1, %vm9847_vm2  ;;  %vm12892_vm13 = vcmp.le.s32.totalorder %v9300_v54, 6  ;;  %v7380_v44 = vld [vmem:[%s12788_s6 + $0x68] sm:$0xff]  ;;  %vm13243_vm15 = vnez %v13120_v20  ;;  %vm13244_vm1 = vcmp.ge.s32.totalorder %v9441_v53, 1 }
 0x1e4   :  { %1760 = vmatpush1.bf16.msra.mxu0 %v1652_v48  ;;  %1777 = vmatprep.mubr.bf16.mxu0 %v13057_v0  ;;  %vm10292_vm12 = vmand %vm13244_vm1, %vm13243_vm15  ;;  %v1889_v23 = vsel %vm1865_vm10, %v10277_v2, 0.0  ;;  %vm13252_vm1 = vcmp.ge.s32.totalorder %v9302_v55, 1  ;;  %vm13256_vm10 = vcmask 1043456   ;;  %vm13260_vm15 = vcmp.le.s32.totalorder %v9309_v58, 6 }
 0x1e5   :  { %8444 = vmatprep.subr.msk.bf16.mxu0 %vm13238_vm11, %v1893_v31  ;;  %vm13247_vm11 = vcmp.lt.s32.totalorder %v9277_v43, 63  ;;  %v13249_v31 = vunpack.i.h.bf16 %v10142_v22  ;;  %vm10313_vm14 = vmand %vm13252_vm1, %vm12892_vm13  ;;  %v8780_v22 = vunpack.i.h.bf16 %v10242_v28  ;;  %vm13257_vm1 = vcmp.ge.s32.totalorder %v9449_v9, 1 }
 0x1e6   :  { %v10298_v46 = vsel %vm13247_vm11, %v8775_v26, %v1848_v62  ;;  %vm13250_vm6 = vmmov %vm13247_vm11  ;;  %v2114_v62 = vpop.permute.xlu1 %2113  ;;  %v1899_v26 = vpack.c.bf16 %v1891_v19, %v1891_v19  ;;  %7450 = vperm.xlu0 %8685, %v7380_v44   ;;  %vm12898_vm11 = vcmp.lt.s32.totalorder %v9277_v43, 57  ;;  %v13265_v44 = vunpack.i.h.bf16 %v10268_v40 }
 0x1e7   :  { %13248 = vst [vmem:[#allocation63_spill] sm:$0xff] %v10298_v46  ;;  %v10306_v18 = vsel %vm13250_vm6, %v13249_v31, %v8774_v16  ;;  %vm13255_vm6 = vcmask 64512   ;;  %v1910_v16 = vsel %vm13256_vm10, %v1894_v41, 0  ;;  %vm10327_vm13 = vmand %vm13257_vm1, %vm9912_vm5  ;;  %v1890_v19 = vsel %vm10292_vm12, %v10298_v46, 0.0  ;;  %v7382_v41 = vld [vmem:[%s12788_s6 + $0x78] sm:$0xff]  ;;  %v8788_v46 = vpop.permute.xlu0 %8787 }
 0x1e8   :  { %13251 = vst [vmem:[#allocation64_spill] sm:$0xff] %v10306_v18  ;;  %8443 = vmatmul.mubr.msk.bf16.vlgmr.msra.gmra.mxu1 %vm13255_vm6, %v10212_v24  ;;  %vm13261_vm6 = vcmp.ge.s32.totalorder %v9311_v59, 1  ;;  %vm13264_vm1 = vnez %v13030_v15  ;;  %v10355_v48 = vsel %vm12898_vm11, %v8784_v29, %v13265_v44  ;;  %v1897_v2 = vpack.c.bf16 %v1889_v23, %v1889_v23 }
 0x1e9   :  { %vm10339_vm10 = vmand %vm13261_vm6, %vm13260_vm15  ;;  %1983 = vmatpush1.bf16.msra.mxu1 %v1910_v16  ;;  %2000 = vmatprep.mubr.bf16.mxu1 %v13057_v0  ;;  %13266 = vst [vmem:[#allocation65_spill] sm:$0xff] %v10355_v48  ;;  %vm13267_vm15 = vcmask 1043456   ;;  %vm13268_vm6 = vcmask 64512   ;;  %v1888_v3 = vsel %vm10327_vm13, %v10306_v18, 0.0  ;;  %vm13270_vm12 = vcmp.le.s32.totalorder %v9305_v56, 6 }
 0x1ea   :  { %8450 = vmatprep.subr.msk.bf16.mxu1 %vm13267_vm15, %v1899_v26  ;;  %vm13269_vm5 = vmmov %vm13267_vm15  ;;  %vm13271_vm11 = vcmp.ge.s32.totalorder %v9307_v57, 1  ;;  %v13272_v26 = vmov 0  ;;  %vm12903_vm13 = vcmp.le.s32.totalorder %v9426_v39, 6  ;;  %7460 = vperm.xlu0 %8685, %v7382_v41   ;;  %v1896_v44 = vpack.c.bf16 %v1888_v3, %v1888_v3 }
 0x1eb   :  { %8441 = vmatmul.mubr.msk.bf16.vlgmr.msra.gmra.mxu0 %vm13268_vm6, %v10212_v24  ;;  %v1904_v16 = vsel %vm13269_vm5, %v1892_v1, 0  ;;  %vm10369_vm2 = vmand %vm13271_vm11, %vm13270_vm12  ;;  %v1898_v24 = vpack.c.bf16 %v1890_v19, %v1890_v19  ;;  %vm13274_vm5 = vnez %v13022_v42  ;;  %vm13275_vm6 = vcmp.lt.s32.totalorder %v9277_v43, 57  ;;  %v2112_v19 = vpop.permute.xlu1 %2111  ;;  %v8793_v21 = vpop.permute.xlu0 %8792 }
 0x1ec   :  { %1942 = vmatpush1.bf16.msra.mxu0 %v1904_v16  ;;  %1959 = vmatprep.mubr.bf16.mxu0 %v13057_v0  ;;  %v13273_v26 = vsel %vm10369_vm2, 4294967295, %v13272_v26  ;;  %vm2133_vm15 = vmand %vm10339_vm10, %vm13274_vm5  ;;  %v10379_v23 = vsel %vm13275_vm6, %v8779_v38, %v8780_v22  ;;  %vm13279_vm12 = vcmp.ge.s32.totalorder %v9422_v36, 1  ;;  %v8790_v3 = vunpack.i.h.bf16 %v8788_v46 }
 0x1ed   :  { %13276 = vst [vmem:[#allocation66_spill] sm:$0xff] %v10379_v23  ;;  %8448 = vmatprep.subr.msk.bf16.mxu0 %vm13277_vm0, %v1897_v2  ;;  %vm13278_vm11 = vmand %vm10313_vm14, %vm13264_vm1  ;;  %v515_v2 = vld [vmem:[%s12784_s2 + $0x14] sm:$0xf]  ;;  %v2157_v16 = vsel %vm2133_vm15, %v10379_v23, 0.0  ;;  %vm13290_vm15 = vcmask 64512   ;;  %vm13292_vm1 = vcmp.le.s32.totalorder %v9433_v49, 6 }
 0x1ee   :  { %v2159_v1 = vsel %vm13278_vm11, %v10355_v48, 0.0  ;;  %vm10393_vm5 = vmand %vm13279_vm12, %vm12903_vm13  ;;  %vm13289_vm11 = vnez %v13036_v4 }
 0x1ef   :  { %vm13282_vm0 = vmmov %vm13275_vm6  ;;  %vm12915_vm6 = vcmp.le.s32.totalorder %v9430_v47, 6  ;;  %v2167_v23 = vpack.c.bf16 %v2159_v1, %v2159_v1  ;;  %v2165_v1 = vpack.c.bf16 %v2157_v16, %v2157_v16  ;;  %v2386_v60 = vpop.permute.xlu0 %2385 }
 0x1f0   :  { %v10402_v41 = vsel %vm13282_vm0, %v8780_v22, %v8784_v29  ;;  %vm2134_vm12 = vmand %vm10369_vm2, %vm13153_vm8  ;;  %v8789_v22 = vunpack.i.l.bf16 %v8788_v46  ;;  %8447 = vmatmul.mubr.msk.bf16.vlgmr.msra.gmra.mxu1 %vm13290_vm15, %v515_v2  ;;  %vm12930_vm8 = vcmp.le.s32.totalorder %v9443_v63, 6 }
 0x1f1   :  { %13283 = vst [vmem:[#allocation67_spill] sm:$0xff] %v10402_v41  ;;  %vm13284_vm13 = vmmov %vm13282_vm0  ;;  %vm13286_vm0 = vcmp.ge.s32.totalorder %v9437_v51, 1  ;;  %2082 = vmatprep.mubr.bf16.mxu1 %v13057_v0  ;;  %v2158_v7 = vsel %vm2134_vm12, %v10402_v41, 0.0 }
 0x1f2   :  { %v10413_v48 = vsel %vm13284_vm13, %v2114_v62, %v8779_v38  ;;  %vm10420_vm7 = vmand %vm13286_vm0, %vm12915_vm6  ;;  %vm13291_vm13 = vcmask 1043456   ;;  %vm13298_vm6 = vcmask 1043456   ;;  %v2166_v16 = vpack.c.bf16 %v2158_v7, %v2158_v7 }
 0x1f3   :  { %13285 = vst [vmem:[#allocation68_spill] sm:$0xff] %v10413_v48  ;;  %v1922_v38 = vsel %vm13291_vm13, %v1898_v24, 0  ;;  %vm10434_vm0 = vmand %vm13293_vm4, %vm13292_vm1  ;;  %vm13296_vm13 = vcmp.lt.s32.totalorder %v9277_v43, 57 }
 0x1f4   :  { %2065 = vmatpush1.bf16.msra.mxu1 %v1922_v38  ;;  %v10446_v46 = vsel %vm13296_vm13, %v2112_v19, %v2114_v62  ;;  %vm13299_vm4 = vmmov %vm13290_vm15  ;;  %vm13302_vm15 = vcmp.le.s32.totalorder %v9439_v52, 6  ;;  %vm13303_vm13 = vcmp.ge.s32.totalorder %v9441_v53, 1  ;;  %v8794_v53 = vunpack.i.l.bf16 %v8793_v21 }
 0x1f5   :  { %13297 = vst [vmem:[#allocation69_spill] sm:$0xff] %v10446_v46  ;;  %8454 = vmatprep.subr.msk.bf16.mxu1 %vm13298_vm6, %v2167_v23  ;;  %8445 = vmatmul.mubr.msk.bf16.vlgmr.msra.gmra.mxu0 %vm13299_vm4, %v515_v2  ;;  %vm13300_vm1 = vmmov %vm13298_vm6  ;;  %v10466_v23 = vpop.permute.xlu1 %8797  ;;  %vm13306_vm6 = vnez %v13018_v35 }
 0x1f6   :  { %v1916_v24 = vsel %vm13300_vm1, %v1896_v44, 0  ;;  %vm13301_vm12 = vmand %vm10393_vm5, %vm13289_vm11  ;;  %2041 = vmatprep.mubr.bf16.mxu0 %v13057_v0  ;;  %vm13307_vm1 = vcmp.lt.s32.totalorder %v9277_v43, 57 }
 0x1f7   :  { %v2156_v38 = vsel %vm13301_vm12, %v10413_v48, 0.0  ;;  %vm10462_vm2 = vmand %vm13303_vm13, %vm13302_vm15  ;;  %2024 = vmatpush1.bf16.msra.mxu0 %v1916_v24  ;;  %v10475_v44 = vsel %vm13307_vm1, %v8789_v22, %v8790_v3  ;;  %vm13309_vm12 = vcmask 1043456   ;;  %vm13311_vm13 = vcmp.ge.s32.totalorder %v9449_v9, 1 }
 0x1f8   :  { %vm2137_vm4 = vmand %vm10434_vm0, %vm13306_vm6  ;;  %13308 = vst [vmem:[#allocation70_spill] sm:$0xff] %v10475_v44  ;;  %8452 = vmatprep.subr.msk.bf16.mxu0 %vm13309_vm12, %v2165_v1  ;;  %v2164_v41 = vpack.c.bf16 %v2156_v38, %v2156_v38  ;;  %vm13314_vm1 = vnez %v13050_v32  ;;  %vm13315_vm6 = vcmp.lt.s32.totalorder %v9277_v43, 57  ;;  %v8800_v1 = vunpack.i.h.bf16 %v10466_v23 }
 0x1f9   :  { %vm13310_vm15 = vmand %vm10420_vm7, %vm13160_vm9  ;;  %v10498_v7 = vsel %vm13315_vm6, %v8790_v3, %v2112_v19  ;;  %v2161_v38 = vsel %vm2137_vm4, %v10475_v44, 0.0  ;;  %v8795_v9 = vunpack.i.h.bf16 %v8793_v21 }
 0x1fa   :  { %v2163_v24 = vsel %vm13310_vm15, %v10446_v46, 0.0  ;;  %vm10488_vm11 = vmand %vm13311_vm13, %vm12930_vm8  ;;  %13316 = vst [vmem:[#allocation71_spill] sm:$0xff] %v10498_v7  ;;  %v8799_v46 = vunpack.i.l.bf16 %v10466_v23  ;;  %vm13320_vm13 = vcmask 64512   ;;  %v2169_v3 = vpack.c.bf16 %v2161_v38, %v2161_v38 }
 0x1fb   :  { %vm2138_vm12 = vmand %vm10462_vm2, %vm13314_vm1  ;;  %v2171_v11 = vpack.c.bf16 %v2163_v24, %v2163_v24  ;;  %8451 = vmatmul.mubr.msk.bf16.vlgmr.msra.gmra.mxu1 %vm13320_vm13, %v515_v2 }
 0x1fc   :  { %vm13318_vm15 = vmmov %vm13315_vm6  ;;  %vm13321_vm6 = vcmask 1043456   ;;  %v2162_v40 = vsel %vm2138_vm12, %v10498_v7, 0.0  ;;  %2272 = vmatprep.mubr.bf16.mxu1 %v13057_v0 }
 0x1fd   :  { %v10506_v27 = vsel %vm13318_vm15, %v13317_v5, %v8789_v22  ;;  %v2182_v19 = vsel %vm13321_vm6, %v2166_v16, 0  ;;  %vm2136_vm8 = vmand %vm10488_vm11, %vm13183_vm3  ;;  %vm2387_vm15 = vcmp.lt.s32.totalorder %v9277_v43, 56  ;;  %8449 = vmatmul.mubr.msk.bf16.vlgmr.msra.gmra.mxu0 %vm13320_vm13, %v515_v2  ;;  %v8803_v22 = vpop.permute.xlu1 %8802  ;;  %v2170_v16 = vpack.c.bf16 %v2162_v40, %v2162_v40  ;;  %v2384_v2 = vpop.permute.xlu0 %2383 }
 0x1fe   :  { %13319 = vst [vmem:[#allocation72_spill] sm:$0xff] %v10506_v27  ;;  %2255 = vmatpush1.bf16.msra.mxu1 %v2182_v19  ;;  %v10520_v5 = vsel %vm2387_vm15, %v8799_v46, %v8800_v1  ;;  %vm13323_vm4 = vmmov %vm13321_vm6  ;;  %2231 = vmatprep.mubr.bf16.mxu0 %v13057_v0  ;;  %v2160_v23 = vsel %vm2136_vm8, %v10506_v27, 0.0  ;;  %v10529_v24 = vsel %vm2387_vm15, %v8794_v53, %v8795_v9 }
 0x1ff   :  { %13322 = vst [vmem:[#allocation73_spill] sm:$0xff] %v10520_v5  ;;  %8458 = vmatprep.subr.msk.bf16.mxu1 %vm13323_vm4, %v2171_v11  ;;  %vm13324_vm6 = vmmov %vm13323_vm4  ;;  %v2415_v11 = vsel %vm10313_vm14, %v10520_v5, 0.0  ;;  %v10540_v38 = vsel %vm2387_vm15, %v8795_v9, %v8799_v46  ;;  %v2168_v19 = vpack.c.bf16 %v2160_v23, %v2160_v23  ;;  %v2413_v40 = vsel %vm10339_vm10, %v10529_v24, 0.0 }
 0x200   :  { %v2176_v21 = vsel %vm13324_vm6, %v2164_v41, 0  ;;  %13325 = vst [vmem:[#allocation74_spill] sm:$0xff] %v10529_v24  ;;  %vm13326_vm12 = vmmov %vm13323_vm4  ;;  %v516_v41 = vld [vmem:[%s12784_s2 + $0x18] sm:$0xf]  ;;  %v8804_v5 = vunpack.i.l.bf16 %v8803_v22  ;;  %v2194_v44 = vsel %vm13323_vm4, %v2170_v16, 0  ;;  %v2423_v7 = vpack.c.bf16 %v2415_v11, %v2415_v11 }
 0x201   :  { %2214 = vmatpush1.bf16.msra.mxu0 %v2176_v21  ;;  %13327 = vst [vmem:[#allocation75_spill] sm:$0xff] %v10540_v38  ;;  %v10547_v21 = vsel %vm2387_vm15, %v2386_v60, %v8794_v53  ;;  %vm13329_vm8 = vmmov %vm13320_vm13  ;;  %v8808_v27 = vpop.permute.xlu1 %8807  ;;  %vm13330_vm13 = vnez %v13273_v26  ;;  %v10557_v46 = vsel %vm2387_vm15, %v2384_v2, %v2386_v60  ;;  %v10565_v23 = vpop.permute.xlu0 %8812 }
 0x202   :  { %8456 = vmatprep.subr.msk.bf16.mxu0 %vm13326_vm12, %v2169_v3  ;;  %13328 = vst [vmem:[#allocation76_spill] sm:$0xff] %v10547_v21  ;;  %v8805_v3 = vunpack.i.h.bf16 %v8803_v22  ;;  %v2414_v9 = vsel %vm13330_vm13, %v10540_v38, 0.0  ;;  %13331 = vst [vmem:[#allocation77_spill] sm:$0xff] %v10557_v46  ;;  %v2421_v22 = vpack.c.bf16 %v2413_v40, %v2413_v40  ;;  %v2419_v16 = vsel %vm10420_vm7, %v10557_v46, 0.0 }
 0x203   :  { %8455 = vmatmul.mubr.msk.bf16.vlgmr.msra.gmra.mxu1 %vm13329_vm8, %v516_v41  ;;  %vm13332_vm6 = vmmov %vm13323_vm4  ;;  %v12940_v40 = vunpack.i.h.bf16 %v10565_v23  ;;  %v2427_v24 = vpack.c.bf16 %v2419_v16, %v2419_v16  ;;  %v8810_v46 = vunpack.i.h.bf16 %v8808_v27 }
 0x204   :  { %2337 = vmatpush1.bf16.msra.mxu1 %v2194_v44  ;;  %2354 = vmatprep.mubr.bf16.mxu1 %v13057_v0  ;;  %vm13333_vm12 = vmmov %vm13329_vm8  ;;  %v2412_v44 = vsel %vm10393_vm5, %v10547_v21, 0.0  ;;  %v10570_v60 = vsel %vm2387_vm15, %v8804_v5, %v8805_v3  ;;  %v10584_v21 = vsel %vm2387_vm15, %v8800_v1, %v8804_v5 }
 0x205   :  { %8462 = vmatprep.subr.msk.bf16.mxu1 %vm13332_vm6, %v2423_v7  ;;  %8453 = vmatmul.mubr.msk.bf16.vlgmr.msra.gmra.mxu0 %vm13333_vm12, %v516_v41  ;;  %vm13334_vm8 = vmmov %vm13323_vm4  ;;  %13335 = vst [vmem:[#allocation78_spill] sm:$0xff] %v10570_v60  ;;  %v2422_v7 = vpack.c.bf16 %v2414_v9, %v2414_v9  ;;  %v2420_v11 = vpack.c.bf16 %v2412_v44, %v2412_v44  ;;  %v2417_v9 = vsel %vm10434_vm0, %v10570_v60, 0.0  ;;  %v8809_v44 = vunpack.i.l.bf16 %v8808_v27 }
 0x206   :  { %v2188_v53 = vsel %vm13334_vm8, %v2168_v19, 0  ;;  %2313 = vmatprep.mubr.bf16.mxu0 %v13057_v0  ;;  %v10578_v19 = vsel %vm2387_vm15, %v8805_v3, %v2384_v2  ;;  %13337 = vst [vmem:[#allocation80_spill] sm:$0xff] %v10584_v21  ;;  %vm13338_vm6 = vmmov %vm13333_vm12  ;;  %vm12939_vm8 = vcmp.lt.s32.totalorder %v9277_v43, 55  ;;  %vm13340_vm15 = vnez %v13083_v12 }
 0x207   :  { %2296 = vmatpush1.bf16.msra.mxu0 %v2188_v53  ;;  %13336 = vst [vmem:[#allocation79_spill] sm:$0xff] %v10578_v19  ;;  %v8814_v53 = vunpack.i.l.bf16 %v10565_v23  ;;  %vm13339_vm12 = vmmov %vm13323_vm4  ;;  %v2418_v3 = vsel %vm10462_vm2, %v10578_v19, 0.0  ;;  %v2425_v5 = vpack.c.bf16 %v2417_v9, %v2417_v9  ;;  %v2416_v25 = vsel %vm10488_vm11, %v10584_v21, 0.0  ;;  %v517_v9 = vld [vmem:[%s12784_s2 + $0x1c] sm:$0xf] }
 0x208   :  { %8460 = vmatprep.subr.msk.bf16.mxu0 %vm13323_vm4, %v2421_v22  ;;  %v2642_v22 = vpop.permute.xlu1 %2641  ;;  %v2438_v2 = vsel %vm13339_vm12, %v2422_v7, 0  ;;  %vm2655_vm4 = vmand %vm10313_vm14, %vm13340_vm15  ;;  %v8818_v7 = vpop.permute.xlu0 %8817  ;;  %v2426_v16 = vpack.c.bf16 %v2418_v3, %v2418_v3  ;;  %vm13345_vm14 = vnez %v13080_v17  ;;  %v2424_v3 = vpack.c.bf16 %v2416_v25, %v2416_v25 }
 0x209   :  { %v10604_v27 = vsel %vm12939_vm8, %v8814_v53, %v12940_v40  ;;  %vm2653_vm8 = vmand %vm10339_vm10, %vm13345_vm14  ;;  %vm13350_vm10 = vnez %v13092_v6  ;;  %vm13355_vm15 = vcmask 1043456  }
 0x20a   :  { %13341 = vst [vmem:[#allocation81_spill] sm:$0xff] %v10604_v27  ;;  %vm13358_vm14 = vmmov %vm13355_vm15 }
 0x20b   :  { %8459 = vmatmul.mubr.msk.bf16.vlgmr.msra.gmra.mxu1 %vm13338_vm6, %v516_v41  ;;  %vm13342_vm6 = vmmov %vm13339_vm12  ;;  %vm13343_vm12 = vcmask 64512  }
 0x20c   :  { %2511 = vmatpush1.bf16.msra.mxu1 %v2438_v2  ;;  %2528 = vmatprep.mubr.bf16.mxu1 %v13057_v0  ;;  %vm13344_vm3 = vmmov %vm13342_vm6  ;;  %v8823_v26 = vpop.permute.xlu0 %8822 }
 0x20d   :  { %8466 = vmatprep.subr.msk.bf16.mxu1 %vm13342_vm6, %v2427_v24  ;;  %8457 = vmatmul.mubr.msk.bf16.vlgmr.msra.gmra.mxu0 %vm13343_vm12, %v516_v41  ;;  %v2432_v1 = vsel %vm13344_vm3, %v2420_v11, 0  ;;  %vm13346_vm6 = vcmp.lt.s32.totalorder %v9277_v43, 55  ;;  %v2679_v41 = vsel %vm2655_vm4, %v10604_v27, 0.0  ;;  %v2640_v11 = vpop.permute.xlu1 %2639  ;;  %vm13353_vm4 = vnez %v13097_v45 }
 0x20e   :  { %2470 = vmatpush1.bf16.msra.mxu0 %v2432_v1  ;;  %2487 = vmatprep.mubr.bf16.mxu0 %v13057_v0  ;;  %v10619_v24 = vsel %vm13346_vm6, %v8809_v44, %v8810_v46  ;;  %vm13348_vm12 = vmmov %vm13346_vm6  ;;  %v2687_v25 = vpack.c.bf16 %v2679_v41, %v2679_v41  ;;  %v8825_v62 = vunpack.i.h.bf16 %v8823_v26 }
 0x20f   :  { %13347 = vst [vmem:[#allocation82_spill] sm:$0xff] %v10619_v24  ;;  %8464 = vmatprep.subr.msk.bf16.mxu0 %vm13344_vm3, %v2425_v5  ;;  %v10628_v2 = vsel %vm13348_vm12, %v8810_v46, %v8814_v53  ;;  %vm2654_vm6 = vmand %vm13330_vm13, %vm13350_vm10  ;;  %v2677_v28 = vsel %vm2653_vm8, %v10619_v24, 0.0  ;;  %v8820_v5 = vunpack.i.h.bf16 %v8818_v7  ;;  %v8819_v46 = vunpack.i.l.bf16 %v8818_v7 }
 0x210   :  { %13349 = vst [vmem:[#allocation83_spill] sm:$0xff] %v10628_v2  ;;  %vm13351_vm3 = vmmov %vm13348_vm12  ;;  %vm13354_vm12 = vcmask 64512   ;;  %v2450_v53 = vsel %vm13355_vm15, %v2426_v16, 0  ;;  %v2678_v40 = vsel %vm2654_vm6, %v10628_v2, 0.0  ;;  %vm13356_vm13 = vnez %v13108_v61 }
 0x211   :  { %v10637_v1 = vsel %vm13351_vm3, %v2642_v22, %v8809_v44  ;;  %vm2659_vm8 = vmand %vm10420_vm7, %vm13356_vm13  ;;  %v10653_v44 = vsel %vm13351_vm3, %v2640_v11, %v2642_v22  ;;  %v2685_v16 = vpack.c.bf16 %v2677_v28, %v2677_v28  ;;  %v10664_v29 = vpop.permute.xlu1 %8827  ;;  %vm13361_vm7 = vnez %v13114_v13 }
 0x212   :  { %13352 = vst [vmem:[#allocation84_spill] sm:$0xff] %v10637_v1  ;;  %13357 = vst [vmem:[#allocation85_spill] sm:$0xff] %v10653_v44  ;;  %v10673_v22 = vsel %vm13351_vm3, %v8819_v46, %v8820_v5  ;;  %v2686_v31 = vpack.c.bf16 %v2678_v40, %v2678_v40  ;;  %v12943_v18 = vunpack.i.h.bf16 %v10664_v29 }
 0x213   :  { %8463 = vmatmul.mubr.msk.bf16.vlgmr.msra.gmra.mxu1 %vm13354_vm12, %v517_v9  ;;  %vm13359_vm15 = vmmov %vm13358_vm14  ;;  %13362 = vst [vmem:[#allocation86_spill] sm:$0xff] %v10673_v22 }
 0x214   :  { %2593 = vmatpush1.bf16.msra.mxu1 %v2450_v53  ;;  %2610 = vmatprep.mubr.bf16.mxu1 %v13057_v0  ;;  %v2444_v7 = vsel %vm13359_vm15, %v2424_v3, 0  ;;  %vm13360_vm6 = vmand %vm10393_vm5, %vm13353_vm4  ;;  %v2683_v3 = vsel %vm2659_vm8, %v10653_v44, 0.0  ;;  %vm13364_vm5 = vnez %v13120_v20 }
 0x215   :  { %8470 = vmatprep.subr.msk.bf16.mxu1 %vm13358_vm14, %v2687_v25  ;;  %8461 = vmatmul.mubr.msk.bf16.vlgmr.msra.gmra.mxu0 %vm13354_vm12, %v517_v9  ;;  %v2676_v41 = vsel %vm13360_vm6, %v10637_v1, 0.0  ;;  %vm2657_vm14 = vmand %vm10434_vm0, %vm13361_vm7  ;;  %v8829_v25 = vunpack.i.l.bf16 %v10664_v29  ;;  %v2691_v44 = vpack.c.bf16 %v2683_v3, %v2683_v3  ;;  %v8824_v1 = vunpack.i.l.bf16 %v8823_v26  ;;  %v8833_v26 = vpop.permute.xlu1 %8832 }
 0x216   :  { %2552 = vmatpush1.bf16.msra.mxu0 %v2444_v7  ;;  %2569 = vmatprep.mubr.bf16.mxu0 %v13057_v0  ;;  %vm13363_vm12 = vmmov %vm13359_vm15  ;;  %v2684_v28 = vpack.c.bf16 %v2676_v41, %v2676_v41  ;;  %v13367_v7 = vunpack.i.h.bf16 %v10565_v23  ;;  %v2906_v41 = vpop.permute.xlu0 %2905 }
 0x217   :  { %8468 = vmatprep.subr.msk.bf16.mxu0 %vm13363_vm12, %v2685_v16  ;;  %vm2658_vm15 = vmand %vm10462_vm2, %vm13364_vm5  ;;  %v2681_v16 = vsel %vm2657_vm14, %v10673_v22, 0.0  ;;  %vm13370_vm2 = vcmask 64512   ;;  %vm13373_vm14 = vnez %v13030_v15 }
 0x218   :  { %vm13365_vm6 = vmmov %vm13351_vm3 }
 0x219   :  { %v10683_v53 = vsel %vm13365_vm6, %v8820_v5, %v2640_v11  ;;  %vm13368_vm0 = vmmov %vm13351_vm3  ;;  %vm13372_vm3 = vnez %v13134_v14  ;;  %vm2907_vm6 = vcmp.lt.s32.totalorder %v9277_v43, 9 }
 0x21a   :  { %13366 = vst [vmem:[#allocation87_spill] sm:$0xff] %v10683_v53  ;;  %v10691_v40 = vsel %vm13368_vm0, %v13367_v7, %v8819_v46  ;;  %vm13371_vm8 = vmmov %vm13363_vm12  ;;  %v2682_v23 = vsel %vm2658_vm15, %v10683_v53, 0.0  ;;  %vm13374_vm0 = vcmp.ge.s32.totalorder %v9300_v54, 1  ;;  %v2912_v5 = vsel %vm2907_vm6, %v8829_v25, %v12943_v18  ;;  %v518_v7 = vld [vmem:[%s12784_s2 + $0x20] sm:$0xf]  ;;  %v8838_v18 = vpop.permute.xlu1 %8837 }
 0x21b   :  { %13369 = vst [vmem:[#allocation88_spill] sm:$0xff] %v10691_v40  ;;  %8467 = vmatmul.mubr.msk.bf16.vlgmr.msra.gmra.mxu1 %vm13370_vm2, %v517_v9  ;;  %v2702_v11 = vsel %vm13371_vm8, %v2686_v31, 0  ;;  %vm2656_vm12 = vmand %vm10488_vm11, %vm13372_vm3  ;;  %vm13376_vm11 = vcmask 64512   ;;  %v2689_v46 = vpack.c.bf16 %v2681_v16, %v2681_v16  ;;  %v2690_v3 = vpack.c.bf16 %v2682_v23, %v2682_v23 }
 0x21c   :  { %2775 = vmatpush1.bf16.msra.mxu1 %v2702_v11  ;;  %2792 = vmatprep.mubr.bf16.mxu1 %v13057_v0  ;;  %vm2919_vm5 = vmand %vm13374_vm0, %vm13373_vm14  ;;  %v2680_v31 = vsel %vm2656_vm12, %v10691_v40, 0.0  ;;  %vm13379_vm0 = vcmp.ge.s32.totalorder %v9309_v58, 1  ;;  %v2913_v16 = vsel %vm2907_vm6, %v8825_v62, %v8829_v25  ;;  %vm13380_vm12 = vnez %v13039_v10 }
 0x21d   :  { %vm13375_vm2 = vmmov %vm13371_vm8  ;;  %8465 = vmatmul.mubr.msk.bf16.vlgmr.msra.gmra.mxu0 %vm13376_vm11, %v517_v9  ;;  %vm13378_vm8 = vnez %v13022_v42  ;;  %v2943_v9 = vsel %vm2919_vm5, %v2912_v5, 0.0  ;;  %v2688_v11 = vpack.c.bf16 %v2680_v31, %v2680_v31  ;;  %vm13381_vm11 = vcmp.ge.s32.totalorder %v9305_v56, 1 }
 0x21e   :  { %8474 = vmatprep.subr.msk.bf16.mxu1 %vm13375_vm2, %v2691_v44  ;;  %vm13377_vm15 = vmmov %vm13375_vm2  ;;  %2751 = vmatprep.mubr.bf16.mxu0 %v13057_v0  ;;  %v2914_v44 = vsel %vm2907_vm6, %v8824_v1, %v8825_v62  ;;  %vm13382_vm5 = vnez %v13036_v4  ;;  %v8834_v25 = vunpack.i.l.bf16 %v8833_v26  ;;  %vm13387_vm3 = vcmask 1043456  }
 0x21f   :  { %v2696_v48 = vsel %vm13377_vm15, %v2684_v28, 0  ;;  %vm2917_vm14 = vmand %vm13379_vm0, %vm13378_vm8  ;;  %v2904_v28 = vpop.permute.xlu0 %2903  ;;  %vm13383_vm0 = vcmp.ge.s32.totalorder %v9426_v39, 1  ;;  %vm13386_vm8 = vcmask 64512   ;;  %v2714_v62 = vsel %vm13387_vm3, %v2690_v3, 0 }
 0x220   :  { %2734 = vmatpush1.bf16.msra.mxu0 %v2696_v48  ;;  %vm2918_vm15 = vmand %vm13381_vm11, %vm13380_vm12  ;;  %v2941_v23 = vsel %vm2917_vm14, %v2914_v44, 0.0  ;;  %v2915_v48 = vsel %vm2907_vm6, %v2906_v41, %v8824_v1  ;;  %v2951_v31 = vpack.c.bf16 %v2943_v9, %v2943_v9  ;;  %vm13388_vm14 = vcmp.ge.s32.totalorder %v9430_v47, 1 }
 0x221   :  { %8472 = vmatprep.subr.msk.bf16.mxu0 %vm13375_vm2, %v2689_v46  ;;  %vm10738_vm2 = vmand %vm13383_vm0, %vm13382_vm5  ;;  %v8835_v46 = vunpack.i.h.bf16 %v8833_v26  ;;  %v2942_v1 = vsel %vm2918_vm15, %v2913_v16, 0.0  ;;  %v2908_v44 = vsel %vm2907_vm6, %v2904_v28, %v2906_v41  ;;  %v2949_v3 = vpack.c.bf16 %v2941_v23, %v2941_v23 }
 0x222   :  { %vm2923_vm11 = vmand %vm13388_vm14, %vm13160_vm9  ;;  %v2940_v9 = vsel %vm10738_vm2, %v2915_v48, 0.0  ;;  %vm13393_vm15 = vcmp.ge.s32.totalorder %v9433_v49, 1  ;;  %v2950_v16 = vpack.c.bf16 %v2942_v1, %v2942_v1  ;;  %vm13395_vm2 = vcmp.ge.s32.totalorder %v9439_v52, 1 }
 0x223   :  { %8471 = vmatmul.mubr.msk.bf16.vlgmr.msra.gmra.mxu1 %vm13386_vm8, %v518_v7  ;;  %vm13389_vm0 = vmmov %vm13387_vm3  ;;  %vm13392_vm3 = vnez %v13018_v35  ;;  %v2910_v41 = vsel %vm2907_vm6, %v8834_v25, %v8835_v46  ;;  %v2948_v23 = vpack.c.bf16 %v2940_v9, %v2940_v9  ;;  %v2909_v48 = vsel %vm2907_vm6, %v8835_v46, %v2904_v28 }
 0x224   :  { %2857 = vmatpush1.bf16.msra.mxu1 %v2714_v62  ;;  %2874 = vmatprep.mubr.bf16.mxu1 %v13057_v0  ;;  %vm13390_vm5 = vmmov %vm13386_vm8  ;;  %v10756_v62 = vpop.permute.xlu0 %8842  ;;  %v8840_v22 = vunpack.i.h.bf16 %v8838_v18  ;;  %v8839_v53 = vunpack.i.l.bf16 %v8838_v18 }
 0x225   :  { %8478 = vmatprep.subr.msk.bf16.mxu1 %vm13389_vm0, %v2951_v31  ;;  %8469 = vmatmul.mubr.msk.bf16.vlgmr.msra.gmra.mxu0 %vm13390_vm5, %v518_v7  ;;  %vm13391_vm8 = vmmov %vm13389_vm0  ;;  %v8845_v5 = vunpack.i.h.bf16 %v10756_v62  ;;  %v8844_v31 = vunpack.i.l.bf16 %v10756_v62 }
 0x226   :  { %v2708_v26 = vsel %vm13391_vm8, %v2688_v11, 0  ;;  %2833 = vmatprep.mubr.bf16.mxu0 %v13057_v0  ;;  %vm2921_vm14 = vmand %vm13393_vm15, %vm13392_vm3  ;;  %v2947_v11 = vsel %vm2923_vm11, %v2908_v44, 0.0  ;;  %v3170_v44 = vpop.permute.xlu1 %3169  ;;  %vm13397_vm11 = vcmask 64512   ;;  %vm13399_vm15 = vnez %v13067_v8 }
 0x227   :  { %2816 = vmatpush1.bf16.msra.mxu0 %v2708_v26  ;;  %vm13394_vm5 = vmmov %vm13389_vm0  ;;  %v13396_v26 = vunpack.i.h.bf16 %v10664_v29  ;;  %v2945_v1 = vsel %vm2921_vm14, %v2910_v41, 0.0  ;;  %v2955_v9 = vpack.c.bf16 %v2947_v11, %v2947_v11 }
 0x228   :  { %8476 = vmatprep.subr.msk.bf16.mxu0 %vm13394_vm5, %v2949_v3  ;;  %vm2922_vm0 = vmand %vm13395_vm2, %vm13314_vm1  ;;  %vm3171_vm1 = vcmp.lt.s32.totalorder %v9277_v43, 8  ;;  %v2953_v46 = vpack.c.bf16 %v2945_v1, %v2945_v1 }
 0x229   :  { %v2911_v3 = vsel %vm2907_vm6, %v13396_v26, %v8834_v25  ;;  %vm13398_vm8 = vmmov %vm13394_vm5  ;;  %vm13400_vm5 = vcmp.ge.s32.totalorder %v9443_v63, 1  ;;  %v2946_v28 = vsel %vm2922_vm0, %v2909_v48, 0.0  ;;  %v3176_v29 = vsel %vm3171_vm1, %v8844_v31, %v8845_v5  ;;  %v8848_v25 = vpop.permute.xlu0 %8847 }
 0x22a   :  { %v2966_v24 = vsel %vm13398_vm8, %v2950_v16, 0  ;;  %vm2920_vm2 = vmand %vm13400_vm5, %vm13399_vm15  ;;  %v2954_v41 = vpack.c.bf16 %v2946_v28, %v2946_v28  ;;  %v3168_v11 = vpop.permute.xlu1 %3167  ;;  %vm13406_vm5 = vcmp.ge.s32.totalorder %v9309_v58, 1  ;;  %v8850_v1 = vunpack.i.h.bf16 %v8848_v25 }
 0x22b   :  { %8475 = vmatmul.mubr.msk.bf16.vlgmr.msra.gmra.mxu1 %vm13397_vm11, %v518_v7  ;;  %vm13401_vm6 = vmmov %vm13398_vm8  ;;  %v2944_v62 = vsel %vm2920_vm2, %v2911_v3, 0.0  ;;  %vm13405_vm8 = vcmp.ge.s32.totalorder %v9300_v54, 1  ;;  %v3179_v3 = vsel %vm3171_vm1, %v3170_v44, %v8839_v53 }
 0x22c   :  { %3039 = vmatpush1.bf16.msra.mxu1 %v2966_v24  ;;  %3056 = vmatprep.mubr.bf16.mxu1 %v13057_v0  ;;  %vm13402_vm14 = vmmov %vm13397_vm11  ;;  %v3178_v24 = vsel %vm3171_vm1, %v8839_v53, %v8840_v22  ;;  %v3199_v16 = vsel %vm13405_vm8, %v3176_v29, 0.0  ;;  %v2952_v48 = vpack.c.bf16 %v2944_v62, %v2944_v62 }
 0x22d   :  { %8482 = vmatprep.subr.msk.bf16.mxu1 %vm13401_vm6, %v2955_v9  ;;  %8473 = vmatmul.mubr.msk.bf16.vlgmr.msra.gmra.mxu0 %vm13402_vm14, %v518_v7  ;;  %vm13403_vm11 = vmmov %vm13401_vm6  ;;  %v519_v7 = vld [vmem:[%s12784_s2 + $0x24] sm:$0xf]  ;;  %v3197_v26 = vsel %vm13406_vm5, %v3178_v24, 0.0  ;;  %v8849_v9 = vunpack.i.l.bf16 %v8848_v25  ;;  %v3207_v29 = vpack.c.bf16 %v3199_v16, %v3199_v16  ;;  %vm13413_vm5 = vcmp.ge.s32.totalorder %v9426_v39, 1 }
 0x22e   :  { %v2960_v18 = vsel %vm13403_vm11, %v2948_v23, 0  ;;  %3015 = vmatprep.mubr.bf16.mxu0 %v13057_v0  ;;  %vm13404_vm0 = vmmov %vm13401_vm6  ;;  %v3177_v23 = vsel %vm3171_vm1, %v8840_v22, %v8844_v31  ;;  %v3172_v31 = vsel %vm3171_vm1, %v3168_v11, %v3170_v44  ;;  %v3196_v25 = vsel %vm13413_vm5, %v3179_v3, 0.0  ;;  %v10818_v62 = vpop.permute.xlu1 %8857 }
 0x22f   :  { %2998 = vmatpush1.bf16.msra.mxu0 %v2960_v18  ;;  %vm13407_vm2 = vmmov %vm13402_vm14  ;;  %v8853_v18 = vpop.permute.xlu0 %8852  ;;  %vm13409_vm14 = vcmp.ge.s32.totalorder %v9305_v56, 1  ;;  %v3204_v16 = vpack.c.bf16 %v3196_v25, %v3196_v25  ;;  %v3175_v3 = vsel %vm3171_vm1, %v8845_v5, %v8849_v9  ;;  %vm3427_vm5 = vcmp.lt.s32.totalorder %v9277_v43, 7 }
 0x230   :  { %8480 = vmatprep.subr.msk.bf16.mxu0 %vm13404_vm0, %v2953_v46  ;;  %vm13408_vm6 = vmmov %vm13404_vm0  ;;  %v3198_v22 = vsel %vm13409_vm14, %v3177_v23, 0.0  ;;  %v3205_v46 = vpack.c.bf16 %v3197_v26, %v3197_v26  ;;  %v3173_v23 = vsel %vm3171_vm1, %v8850_v1, %v3168_v11  ;;  %v8859_v26 = vunpack.i.l.bf16 %v10818_v62 }
 0x231   :  { %v2978_v28 = vsel %vm13408_vm6, %v2954_v41, 0  ;;  %vm13410_vm11 = vmmov %vm13404_vm0  ;;  %v3174_v41 = vsel %vm3171_vm1, %v8849_v9, %v8850_v1  ;;  %v3206_v44 = vpack.c.bf16 %v3198_v22, %v3198_v22  ;;  %vm13416_vm14 = vcmp.ge.s32.totalorder %v9433_v49, 1 }
 0x232   :  { %vm13411_vm0 = vmmov %vm13407_vm2  ;;  %v8855_v22 = vunpack.i.h.bf16 %v8853_v18  ;;  %vm13420_vm1 = vnez %v13083_v12 }
 0x233   :  { %8479 = vmatmul.mubr.msk.bf16.vlgmr.msra.gmra.mxu1 %vm13407_vm2, %v519_v7  ;;  %vm13412_vm8 = vmmov %vm13408_vm6 }
 0x234   :  { %3121 = vmatpush1.bf16.msra.mxu1 %v2978_v28  ;;  %3138 = vmatprep.mubr.bf16.mxu1 %v13057_v0  ;;  %v2972_v53 = vsel %vm13412_vm8, %v2952_v48, 0  ;;  %vm13414_vm2 = vmmov %vm13408_vm6  ;;  %vm13415_vm6 = vcmp.ge.s32.totalorder %v9430_v47, 1  ;;  %v8860_v48 = vunpack.i.h.bf16 %v10818_v62  ;;  %v3201_v28 = vsel %vm13416_vm14, %v3174_v41, 0.0 }
 0x235   :  { %8486 = vmatprep.subr.msk.bf16.mxu1 %vm13410_vm11, %v3207_v29  ;;  %8477 = vmatmul.mubr.msk.bf16.vlgmr.msra.gmra.mxu0 %vm13411_vm0, %v519_v7  ;;  %v3203_v24 = vsel %vm13415_vm6, %v3172_v31, 0.0  ;;  %v3426_v29 = vpop.permute.xlu0 %3425  ;;  %vm13417_vm11 = vmmov %vm13411_vm0  ;;  %vm13419_vm8 = vcmp.ge.s32.totalorder %v9439_v52, 1  ;;  %v3209_v9 = vpack.c.bf16 %v3201_v28, %v3201_v28 }
 0x236   :  { %3080 = vmatpush1.bf16.msra.mxu0 %v2972_v53  ;;  %3097 = vmatprep.mubr.bf16.mxu0 %v13057_v0  ;;  %v3211_v53 = vpack.c.bf16 %v3203_v24, %v3203_v24  ;;  %vm13418_vm0 = vmmov %vm13414_vm2  ;;  %v3202_v11 = vsel %vm13419_vm8, %v3173_v23, 0.0  ;;  %v3432_v5 = vsel %vm3427_vm5, %v8859_v26, %v8860_v48  ;;  %vm13423_vm8 = vcmp.ge.s32.totalorder %v9443_v63, 1 }
 0x237   :  { %8484 = vmatprep.subr.msk.bf16.mxu0 %vm13414_vm2, %v3205_v46  ;;  %v8854_v46 = vunpack.i.l.bf16 %v8853_v18  ;;  %v3222_v31 = vsel %vm13418_vm0, %v3206_v44, 0  ;;  %vm13421_vm2 = vcmp.ge.s32.totalorder %v9300_v54, 1  ;;  %vm13422_vm14 = vmmov %vm13418_vm0  ;;  %v3216_v1 = vsel %vm13418_vm0, %v3204_v16, 0  ;;  %v8863_v44 = vpop.permute.xlu1 %8862  ;;  %v520_v16 = vld [vmem:[%s12784_s2 + $0x28] sm:$0xf] }
 0x238   :  { %vm3439_vm6 = vmand %vm13421_vm2, %vm13420_vm1  ;;  %v3200_v18 = vsel %vm13423_vm8, %v3175_v3, 0.0  ;;  %v3210_v25 = vpack.c.bf16 %v3202_v11, %v3202_v11  ;;  %vm13424_vm2 = vnez %v13080_v17  ;;  %vm13425_vm1 = vcmp.ge.s32.totalorder %v9309_v58, 1 }
 0x239   :  { %vm3437_vm15 = vmand %vm13425_vm1, %vm13424_vm2  ;;  %v3434_v41 = vsel %vm3427_vm5, %v8854_v46, %v8855_v22  ;;  %v3424_v24 = vpop.permute.xlu0 %3423  ;;  %v3433_v23 = vsel %vm3427_vm5, %v8855_v22, %v8859_v26  ;;  %v3208_v3 = vpack.c.bf16 %v3200_v18, %v3200_v18  ;;  %vm13427_vm1 = vcmp.ge.s32.totalorder %v9305_v56, 1 }
 0x23a   :  { %v3461_v28 = vsel %vm3437_vm15, %v3434_v41, 0.0  ;;  %v8864_v11 = vunpack.i.l.bf16 %v8863_v44  ;;  %vm13429_vm8 = vcmask 64512   ;;  %vm13430_vm15 = vcmp.ge.s32.totalorder %v9430_v47, 1 }
 0x23b   :  { %8483 = vmatmul.mubr.msk.bf16.vlgmr.msra.gmra.mxu1 %vm13417_vm11, %v519_v7  ;;  %v3469_v18 = vpack.c.bf16 %v3461_v28, %v3461_v28 }
 0x23c   :  { %3295 = vmatpush1.bf16.msra.mxu1 %v3222_v31  ;;  %3312 = vmatprep.mubr.bf16.mxu1 %v13057_v0  ;;  %v8865_v31 = vunpack.i.h.bf16 %v8863_v44  ;;  %v3431_v27 = vsel %vm3427_vm5, %v8860_v48, %v8864_v11 }
 0x23d   :  { %8490 = vmatprep.subr.msk.bf16.mxu1 %vm13422_vm14, %v3211_v53  ;;  %8481 = vmatmul.mubr.msk.bf16.vlgmr.msra.gmra.mxu0 %vm13417_vm11, %v519_v7  ;;  %vm13426_vm14 = vmmov %vm13418_vm0  ;;  %v3463_v7 = vsel %vm3439_vm6, %v3432_v5, 0.0  ;;  %v3435_v53 = vsel %vm3427_vm5, %v3426_v29, %v8854_v46  ;;  %vm13428_vm6 = vcmp.ge.s32.totalorder %v9426_v39, 1  ;;  %v10900_v44 = vpop.permute.xlu0 %8872 }
 0x23e   :  { %3254 = vmatpush1.bf16.msra.mxu0 %v3216_v1  ;;  %3271 = vmatprep.mubr.bf16.mxu0 %v13057_v0  ;;  %vm3438_vm11 = vmand %vm13427_vm1, %vm13350_vm10  ;;  %v3234_v26 = vsel %vm13426_vm14, %v3210_v25, 0  ;;  %v3471_v22 = vpack.c.bf16 %v3463_v7, %v3463_v7  ;;  %v3428_v1 = vsel %vm3427_vm5, %v3424_v24, %v3426_v29  ;;  %v8868_v7 = vpop.permute.xlu1 %8867  ;;  %v3430_v29 = vsel %vm3427_vm5, %v8864_v11, %v8865_v31 }
 0x23f   :  { %8488 = vmatprep.subr.msk.bf16.mxu0 %vm13426_vm14, %v3209_v9  ;;  %vm3436_vm0 = vmand %vm13428_vm6, %vm13353_vm4  ;;  %v3462_v5 = vsel %vm3438_vm11, %v3433_v23, 0.0  ;;  %vm13435_vm11 = vcmp.ge.s32.totalorder %v9433_v49, 1  ;;  %v3429_v23 = vsel %vm3427_vm5, %v8865_v31, %v3424_v24  ;;  %vm3691_vm5 = vcmp.lt.s32.totalorder %v9277_v43, 1 }
 0x240   :  { %vm10883_vm1 = vmand %vm13430_vm15, %vm13356_vm13  ;;  %v3460_v25 = vsel %vm3436_vm0, %v3435_v53, 0.0  ;;  %vm13438_vm15 = vnez %v13120_v20  ;;  %vm13439_vm0 = vcmp.ge.s32.totalorder %v9439_v52, 1  ;;  %v10914_v53 = vpop.f32.mrf.mxu1 }
 0x241   :  { %vm13433_vm6 = vmmov %vm13426_vm14  ;;  %v3467_v28 = vsel %vm10883_vm1, %v3428_v1, 0.0  ;;  %v8870_v1 = vunpack.i.h.bf16 %v8868_v7  ;;  %vm13441_vm1 = vcmask 64512  }
 0x242   :  { %vm13434_vm14 = vmmov %vm13433_vm6  ;;  %v3475_v46 = vpack.c.bf16 %v3467_v28, %v3467_v28  ;;  %v3690_v62 = vpop.permute.xlu1 %3689 }
 0x243   :  { %8487 = vmatmul.mubr.msk.bf16.vlgmr.msra.gmra.mxu1 %vm13429_vm8, %v520_v16  ;;  %v3228_v9 = vsel %vm13434_vm14, %v3208_v3, 0  ;;  %vm10896_vm4 = vmand %vm13435_vm11, %vm13361_vm7  ;;  %v3470_v3 = vpack.c.bf16 %v3462_v5, %v3462_v5  ;;  %v10924_v5 = vpop.f32.mrf.mxu1  ;;  %vm13443_vm11 = vnez %v13134_v14 }
 0x244   :  { %3377 = vmatpush1.bf16.msra.mxu1 %v3234_v26  ;;  %3394 = vmatprep.mubr.bf16.mxu1 %v13057_v0  ;;  %v3468_v26 = vpack.c.bf16 %v3460_v25, %v3460_v25  ;;  %v3465_v24 = vsel %vm10896_vm4, %v3430_v29, 0.0 }
 0x245   :  { %8494 = vmatprep.subr.msk.bf16.mxu1 %vm13433_vm6, %v3471_v22  ;;  %8485 = vmatmul.mubr.msk.bf16.vlgmr.msra.gmra.mxu0 %vm13429_vm8, %v520_v16  ;;  %vm3442_vm6 = vmand %vm13439_vm0, %vm13438_vm15  ;;  %v8875_v22 = vunpack.i.h.bf16 %v10900_v44  ;;  %vm13444_vm0 = vcmp.ge.s32.totalorder %v9443_v63, 1  ;;  %v775_v48 = vpop.f32.mrf.mxu1 }
 0x246   :  { %3336 = vmatpush1.bf16.msra.mxu0 %v3228_v9  ;;  %3353 = vmatprep.mubr.bf16.mxu0 %v13057_v0  ;;  %vm13440_vm8 = vmmov %vm13434_vm14  ;;  %v8874_v9 = vunpack.i.l.bf16 %v10900_v44  ;;  %v3466_v31 = vsel %vm3442_vm6, %v3429_v23, 0.0 }
 0x247   :  { %8492 = vmatprep.subr.msk.bf16.mxu0 %vm13440_vm8, %v3469_v18  ;;  %v8869_v18 = vunpack.i.l.bf16 %v8868_v7  ;;  %vm13442_vm14 = vmmov %vm13440_vm8  ;;  %v3473_v7 = vpack.c.bf16 %v3465_v24, %v3465_v24  ;;  %v3474_v44 = vpack.c.bf16 %v3466_v31, %v3466_v31  ;;  %v776_v23 = vpop.f32.mrf.mxu1  ;;  %v3688_v31 = vpop.permute.xlu1 %3687 }
 0x248   :  { %v3486_v25 = vsel %vm13442_vm14, %v3470_v3, 0  ;;  %vm3440_vm8 = vmand %vm13444_vm0, %vm13443_vm11  ;;  %v3696_v11 = vsel %vm3691_vm5, %v8874_v9, %v8875_v22  ;;  %vm13449_vm0 = vnez %v13030_v15 }
 0x249   :  { %vm13445_vm4 = vmmov %vm13442_vm14  ;;  %v3464_v29 = vsel %vm3440_vm8, %v3431_v27, 0.0  ;;  %v3698_v3 = vsel %vm3691_vm5, %v8869_v18, %v8870_v1  ;;  %v3719_v28 = vsel %vm13449_vm0, %v3696_v11, 0.0  ;;  %vm13450_vm8 = vnez %v13022_v42 }
 0x24a   :  { %vm13446_vm6 = vmmov %vm13441_vm1  ;;  %v3472_v24 = vpack.c.bf16 %v3464_v29, %v3464_v29  ;;  %v3717_v27 = vsel %vm13450_vm8, %v3698_v3, 0.0  ;;  %v3699_v48 = vsel %vm3691_vm5, %v3690_v62, %v8869_v18  ;;  %vm13454_vm8 = vnez %v13036_v4 }
 0x24b   :  { %8491 = vmatmul.mubr.msk.bf16.vlgmr.msra.gmra.mxu1 %vm13441_vm1, %v520_v16  ;;  %vm13447_vm1 = vmmov %vm13445_vm4  ;;  %v3716_v29 = vsel %vm13454_vm8, %v3699_v48, 0.0 }
 0x24c   :  { %3559 = vmatpush1.bf16.msra.mxu1 %v3486_v25  ;;  %3576 = vmatprep.mubr.bf16.mxu1 %v13057_v0  ;;  %v3480_v41 = vsel %vm13447_vm1, %v3468_v26, 0  ;;  %vm13448_vm14 = vmmov %vm13447_vm1  ;;  %v3697_v26 = vsel %vm3691_vm5, %v8870_v1, %v8874_v9  ;;  %v3692_v1 = vsel %vm3691_vm5, %v3688_v31, %v3690_v62 }
 0x24d   :  { %8498 = vmatprep.subr.msk.bf16.mxu1 %vm13445_vm4, %v3475_v46  ;;  %8489 = vmatmul.mubr.msk.bf16.vlgmr.msra.gmra.mxu0 %vm13446_vm6, %v520_v16  ;;  %v8878_v46 = vpop.permute.xlu0 %8877  ;;  %v521_v16 = vld [vmem:[%s12784_s2 + $0x2c] sm:$0xf]  ;;  %vm13451_vm4 = vmmov %vm13447_vm1  ;;  %v3718_v9 = vsel %vm13380_vm12, %v3697_v26, 0.0  ;;  %v3723_v62 = vsel %vm13160_vm9, %v3692_v1, 0.0  ;;  %v13465_v1 = vld [vmem:[#allocation11_spill] sm:$0xff] }
 0x24e   :  { %3518 = vmatpush1.bf16.msra.mxu0 %v3480_v41  ;;  %3535 = vmatprep.mubr.bf16.mxu0 %v13057_v0  ;;  %v3498_v25 = vsel %vm13451_vm4, %v3474_v44, 0  ;;  %v8880_v41 = vunpack.i.h.bf16 %v8878_v46  ;;  %v8879_v11 = vunpack.i.l.bf16 %v8878_v46  ;;  %vm13453_vm4 = vmmov %vm13447_vm1  ;;  %v3725_v44 = vpack.c.bf16 %v3717_v27, %v3717_v27 }
 0x24f   :  { %8496 = vmatprep.subr.msk.bf16.mxu0 %vm13448_vm14, %v3473_v7  ;;  %v3727_v7 = vpack.c.bf16 %v3719_v28, %v3719_v28  ;;  %vm13452_vm14 = vmmov %vm13446_vm6  ;;  %v3492_v18 = vsel %vm13453_vm4, %v3472_v24, 0  ;;  %v3726_v3 = vpack.c.bf16 %v3718_v9, %v3718_v9  ;;  %v3724_v28 = vpack.c.bf16 %v3716_v29, %v3716_v29 }
 0x250   :  { %v3694_v23 = vsel %vm3691_vm5, %v8879_v11, %v8880_v41  ;;  %v3693_v46 = vsel %vm3691_vm5, %v8880_v41, %v3688_v31  ;;  %v3695_v24 = vsel %vm3691_vm5, %v8875_v22, %v8879_v11  ;;  %v3731_v27 = vpack.c.bf16 %v3723_v62, %v3723_v62 }
 0x251   :  { %v3721_v26 = vsel %vm13392_vm3, %v3694_v23, 0.0  ;;  %vm13461_vm5 = vnez %v13067_v8 }
 0x252   :  { %v3729_v41 = vpack.c.bf16 %v3721_v26, %v3721_v26  ;;  %v3720_v22 = vsel %vm13461_vm5, %v3695_v24, 0.0  ;;  %v13470_v26 = vld [vmem:[#allocation9_spill] sm:$0xff] }
 0x253   :  { %8495 = vmatmul.mubr.msk.bf16.vlgmr.msra.gmra.mxu1 %vm13446_vm6, %v521_v16  ;;  %vm13455_vm6 = vmmov %vm13447_vm1  ;;  %v3728_v9 = vpack.c.bf16 %v3720_v22, %v3720_v22  ;;  %v3933_v24 = vpack.c.bf16 %v13470_v26, %v13470_v26  ;;  %v3936_v26 = vpack.c.bf16 %v9229_v34, %v9229_v34 }
 0x254   :  { %3641 = vmatpush1.bf16.msra.mxu1 %v3498_v25  ;;  %3658 = vmatprep.mubr.bf16.mxu1 %v13057_v0  ;;  %vm13460_vm8 = vmmov %vm13455_vm6 }
 0x255   :  { %8502 = vmatprep.subr.msk.bf16.mxu1 %vm13447_vm1, %v3727_v7  ;;  %8493 = vmatmul.mubr.msk.bf16.vlgmr.msra.gmra.mxu0 %vm13452_vm14, %v521_v16  ;;  %vm13456_vm1 = vmmov %vm13452_vm14  ;;  %v3736_v31 = vsel %vm13460_vm8, %v3724_v28, 0  ;;  %v522_v7 = vld [vmem:[%s12784_s2 + $0x30] sm:$0xf]  ;;  %v8888_v28 = vpop.permute.xlu1 %8887 }
 0x256   :  { %3600 = vmatpush1.bf16.msra.mxu0 %v3492_v18  ;;  %3617 = vmatprep.mubr.bf16.mxu0 %v13057_v0  ;;  %vm13457_vm14 = vmmov %vm13453_vm4  ;;  %vm13458_vm4 = vnez %v13050_v32  ;;  %v3934_v18 = vpack.c.bf16 %v13465_v1, %v13465_v1  ;;  %v3938_v1 = vpack.c.bf16 %v9231_v37, %v9231_v37  ;;  %v13830_v32 = vld [vmem:[#allocation69_spill] sm:$0xff] }
 0x257   :  { %8500 = vmatprep.subr.msk.bf16.mxu0 %vm13455_vm6, %v3725_v44  ;;  %v3742_v25 = vsel %vm13457_vm14, %v3726_v3, 0  ;;  %v3722_v48 = vsel %vm13458_vm4, %v3693_v46, 0.0  ;;  %vm13459_vm9 = vmmov %vm13456_vm1  ;;  %v10997_v44 = vpop.permute.xlu0 %8882  ;;  %v13468_v3 = vld [vmem:[#allocation10_spill] sm:$0xff] }
 0x258   :  { %v3730_v11 = vpack.c.bf16 %v3722_v48, %v3722_v48  ;;  %vm13463_vm14 = vmmov %vm13459_vm9  ;;  %v10999_v29 = vpop.f32.mrf.mxu0  ;;  %v3932_v62 = vpack.c.bf16 %v13468_v3, %v13468_v3  ;;  %v8885_v3 = vunpack.i.h.bf16 %v10997_v44 }
 0x25a   :  { %v11007_v46 = vpop.f32.mrf.mxu0 }
 0x25b   :  { %8499 = vmatmul.mubr.msk.bf16.vlgmr.msra.gmra.mxu1 %vm13456_vm1, %v521_v16  ;;  %vm13462_vm1 = vmmov %vm13455_vm6  ;;  %v11017_v22 = vpop.permute.xlu0 %4146 }
 0x25c   :  { %3815 = vmatpush1.bf16.msra.mxu1 %v3742_v25  ;;  %3832 = vmatprep.mubr.bf16.mxu1 %v13057_v0  ;;  %vm13466_vm8 = vmmov %vm13462_vm1  ;;  %v3748_v23 = vsel %vm13462_vm1, %v3728_v9, 0  ;;  %v8890_v25 = vunpack.i.h.bf16 %v8888_v28  ;;  %v8889_v9 = vunpack.i.l.bf16 %v8888_v28 }
 0x25d   :  { %8506 = vmatprep.subr.msk.bf16.mxu1 %vm13455_vm6, %v3731_v27  ;;  %8497 = vmatmul.mubr.msk.bf16.vlgmr.msra.gmra.mxu0 %vm13459_vm9, %v521_v16  ;;  %vm13464_vm9 = vmmov %vm13462_vm1  ;;  %v734_v27 = vpop.f32.mrf.mxu0 }
 0x25e   :  { %3774 = vmatpush1.bf16.msra.mxu0 %v3736_v31  ;;  %3791 = vmatprep.mubr.bf16.mxu0 %v13057_v0  ;;  %v3754_v16 = vsel %vm13464_vm9, %v3730_v11, 0  ;;  %vm13467_vm6 = vmmov %vm13463_vm14  ;;  %v11013_v48 = vpop.f32.mrf.mxu1  ;;  %v13471_v31 = vld [vmem:[#allocation8_spill] sm:$0xff] }
 0x25f   :  { %8504 = vmatprep.subr.msk.bf16.mxu0 %vm13462_vm1, %v3729_v41  ;;  %v3931_v41 = vpack.c.bf16 %v13471_v31, %v13471_v31  ;;  %v735_v11 = vpop.f32.mrf.mxu0  ;;  %vm13472_vm9 = vmmov %vm13467_vm6  ;;  %v13476_v31 = vld [vmem:[#allocation12_spill] sm:$0xff] }
 0x260   :  { %v3937_v11 = vpack.c.bf16 %v13476_v31, %v13476_v31 }
 0x263   :  { %8503 = vmatmul.mubr.msk.bf16.vlgmr.msra.gmra.mxu1 %vm13463_vm14, %v522_v7  ;;  %vm13469_vm14 = vmmov %vm13462_vm1 }
 0x264   :  { %3897 = vmatpush1.bf16.msra.mxu1 %v3754_v16  ;;  %3914 = vmatprep.mubr.bf16.mxu1 %v13057_v0 }
 0x265   :  { %8510 = vmatprep.subr.msk.bf16.mxu1 %vm13466_vm8, %v3934_v18  ;;  %8501 = vmatmul.mubr.msk.bf16.vlgmr.msra.gmra.mxu0 %vm13467_vm6, %v522_v7  ;;  %vm13473_vm8 = vmmov %vm13462_vm1  ;;  %v11023_v18 = vpop.f32.mrf.mxu1  ;;  %vm12956_vm6 = vcmp.lt.s32.totalorder %v9277_v43, 127 }
 0x266   :  { %3856 = vmatpush1.bf16.msra.mxu0 %v3748_v23  ;;  %3873 = vmatprep.mubr.bf16.mxu0 %v13057_v0  ;;  %v3949_v16 = vsel %vm13473_vm8, %v3933_v24, 0  ;;  %v11026_v23 = vpop.f32.mrf.mxu0  ;;  %v8893_v24 = vpop.permute.xlu1 %8892  ;;  %vm13477_vm8 = vmmov %vm13462_vm1  ;;  %v4159_v31 = vsel %vm12956_vm6, %v8889_v9, %v8890_v25 }
 0x267   :  { %8508 = vmatprep.subr.msk.bf16.mxu0 %vm13469_vm14, %v3932_v62  ;;  %v4158_v62 = vsel %vm12956_vm6, %v8890_v25, %v11017_v22  ;;  %v857_v28 = vpop.f32.mrf.mxu1  ;;  %vm13474_vm14 = vmmov %vm13472_vm9  ;;  %v8895_v40 = vunpack.i.h.bf16 %v8893_v24  ;;  %v8894_v60 = vunpack.i.l.bf16 %v8893_v24 }
 0x268   :  { %v11038_v27 = vpop.f32.mrf.mxu0 }
 0x26a   :  { %v816_v28 = vpop.f32.mrf.mxu0  ;;  %v11062_v38 = vpop.permute.xlu1 %8897 }
 0x26b   :  { %8507 = vmatmul.mubr.msk.bf16.vlgmr.msra.gmra.mxu1 %vm13472_vm9, %v522_v7  ;;  %vm13475_vm9 = vmmov %vm13462_vm1 }
 0x26c   :  { %4022 = vmatpush1.bf16.msra.mxu1 %v3949_v16  ;;  %4039 = vmatprep.mubr.bf16.mxu1 %v13057_v0  ;;  %v3943_v37 = vsel %vm13475_vm9, %v3931_v41, 0  ;;  %v8884_v16 = vunpack.i.l.bf16 %v10997_v44  ;;  %v4153_v41 = vpop.permute.xlu0 %4152  ;;  %v3935_v44 = vpack.c.bf16 %v9227_v33, %v9227_v33  ;;  %vm13480_vm9 = vcmask 64512  }
 0x26d   :  { %8514 = vmatprep.subr.msk.bf16.mxu1 %vm13462_vm1, %v3938_v1  ;;  %8505 = vmatmul.mubr.msk.bf16.vlgmr.msra.gmra.mxu0 %vm13474_vm14, %v522_v7  ;;  %v4160_v1 = vsel %vm12956_vm6, %v8885_v3, %v8889_v9  ;;  %v858_v7 = vpop.f32.mrf.mxu1  ;;  %vm13478_vm1 = vnez %v13083_v12  ;;  %vm13479_vm14 = vmmov %vm13477_vm8  ;;  %v4181_v33 = vsel %vm13350_vm10, %v4159_v31, 0.0 }
 0x26e   :  { %3981 = vmatpush1.bf16.msra.mxu0 %v3943_v37  ;;  %3998 = vmatprep.mubr.bf16.mxu0 %v13057_v0  ;;  %v4182_v34 = vsel %vm13478_vm1, %v4158_v62, 0.0  ;;  %v523_v37 = vld [vmem:[%s12784_s2 + $0x34] sm:$0xf]  ;;  %v4180_v2 = vsel %vm13424_vm2, %v4160_v1, 0.0  ;;  %v817_v7 = vpop.f32.mrf.mxu0  ;;  %v4161_v62 = vsel %vm12956_vm6, %v8884_v16, %v8885_v3  ;;  %v4162_v9 = vsel %vm12956_vm6, %v4153_v41, %v8884_v16 }
 0x26f   :  { %8512 = vmatprep.subr.msk.bf16.mxu0 %vm13477_vm8, %v3936_v26  ;;  %v3961_v26 = vsel %vm13479_vm14, %v3937_v11, 0  ;;  %v4190_v28 = vpack.c.bf16 %v4182_v34, %v4182_v34  ;;  %v962_v19 = vpop.f32.mrf.mxu1  ;;  %vm13481_vm14 = vmmov %vm13480_vm9  ;;  %v4188_v1 = vpack.c.bf16 %v4180_v2, %v4180_v2  ;;  %vm13483_vm6 = vnez %v13097_v45 }
 0x270   :  { %v11065_v25 = vadd.f32 %v962_v19, %v10914_v53  ;;  %v921_v24 = vpop.f32.mrf.mxu0  ;;  %v8903_v19 = vpop.permute.xlu0 %8902  ;;  %v4179_v16 = vsel %vm13483_vm6, %v4161_v62, 0.0 }
 0x271   :  { %v964_v3 = vpop.f32.mrf.mxu1  ;;  %v11079_v34 = vadd.f32 %v921_v24, %v10999_v29  ;;  %v4187_v24 = vpack.c.bf16 %v4179_v16, %v4179_v16 }
 0x272   :  { %v11076_v53 = vadd.f32 %v964_v3, %v10924_v5  ;;  %v923_v2 = vpop.f32.mrf.mxu0  ;;  %v4186_v5 = vsel %vm13356_vm13, %v4162_v9, 0.0  ;;  %vm13488_vm13 = vcmask 1043456  }
 0x273   :  { %8511 = vmatmul.mubr.msk.bf16.vlgmr.msra.gmra.mxu1 %vm13480_vm9, %v523_v37  ;;  %vm13482_vm9 = vmmov %vm13477_vm8  ;;  %v11090_v29 = vadd.f32 %v923_v2, %v11007_v46  ;;  %v4194_v9 = vpack.c.bf16 %v4186_v5, %v4186_v5 }
 0x274   :  { %4104 = vmatpush1.bf16.msra.mxu1 %v3961_v26  ;;  %4121 = vmatprep.mubr.bf16.mxu1 %v13057_v0  ;;  %v3955_v11 = vsel %vm13482_vm9, %v3935_v44, 0  ;;  %v966_v26 = vpop.f32.mrf.mxu1  ;;  %v4189_v44 = vpack.c.bf16 %v4181_v33, %v4181_v33  ;;  %v925_v62 = vpop.f32.mrf.mxu0 }
 0x275   :  { %8518 = vmatprep.subr.msk.bf16.mxu1 %vm13477_vm8, %v4190_v28  ;;  %8509 = vmatmul.mubr.msk.bf16.vlgmr.msra.gmra.mxu0 %vm13481_vm14, %v523_v37  ;;  %vm13484_vm8 = vcmp.lt.s32.totalorder %v9277_v43, 127  ;;  %vm13485_vm14 = vmmov %vm13482_vm9  ;;  %v8905_v28 = vunpack.i.h.bf16 %v8903_v19  ;;  %v11096_v26 = vpop.permute.xlu1 %4402 }
 0x276   :  { %4063 = vmatpush1.bf16.msra.mxu0 %v3955_v11  ;;  %4080 = vmatprep.mubr.bf16.mxu0 %v13057_v0  ;;  %v4156_v31 = vsel %vm13484_vm8, %v8894_v60, %v8895_v40  ;;  %vm13486_vm9 = vmmov %vm13484_vm8  ;;  %v967_v3 = vpop.f32.mrf.mxu1  ;;  %v4157_v33 = vsel %vm13484_vm8, %v11017_v22, %v8894_v60  ;;  %v8900_v60 = vunpack.i.h.bf16 %v11062_v38  ;;  %vm13489_vm8 = vcmp.le.s32.totalorder %v9300_v54, 6 }
 0x277   :  { %8516 = vmatprep.subr.msk.bf16.mxu0 %vm13485_vm14, %v4188_v1  ;;  %v4155_v7 = vsel %vm13486_vm9, %v8895_v40, %v4153_v41  ;;  %v4184_v11 = vsel %vm13361_vm7, %v4156_v31, 0.0  ;;  %v8904_v1 = vunpack.i.l.bf16 %v8903_v19  ;;  %vm13487_vm14 = vcmask 64512   ;;  %v926_v41 = vpop.f32.mrf.mxu0  ;;  %vm13493_vm7 = vmmov %vm13488_vm13  ;;  %v11126_v3 = vpop.permute.xlu0 %8907 }
 0x278   :  { %v1044_v46 = vpop.f32.mrf.mxu1  ;;  %v4205_v40 = vsel %vm13488_vm13, %v4189_v44, 0  ;;  %v4185_v16 = vsel %vm13438_vm15, %v4155_v7, 0.0  ;;  %vm4410_vm9 = vcmp.lt.s32.totalorder %v9277_v43, 121  ;;  %vm13492_vm15 = vcmask 64512  }
 0x279   :  { %v11107_v31 = vadd.f32 %v1044_v46, %v11013_v48  ;;  %v4414_v19 = vsel %vm4410_vm9, %v8905_v28, %v11096_v26  ;;  %v4199_v44 = vsel %vm13493_vm7, %v4187_v24, 0  ;;  %v4192_v5 = vpack.c.bf16 %v4184_v11, %v4184_v11  ;;  %v4409_v11 = vpop.permute.xlu1 %4408 }
 0x27a   :  { %v1046_v48 = vpop.f32.mrf.mxu1  ;;  %v8899_v7 = vunpack.i.l.bf16 %v11062_v38  ;;  %vm13494_vm7 = vnez %v13022_v42  ;;  %v4416_v38 = vsel %vm4410_vm9, %v8900_v60, %v8904_v1  ;;  %v4415_v41 = vsel %vm4410_vm9, %v8904_v1, %v8905_v28 }
 0x27b   :  { %8515 = vmatmul.mubr.msk.bf16.vlgmr.msra.gmra.mxu1 %vm13487_vm14, %v523_v37  ;;  %vm11115_vm14 = vmand %vm13489_vm8, %vm13449_vm0  ;;  %v1003_v2 = vpop.f32.mrf.mxu0  ;;  %v11129_v62 = vadd.f32 %v1046_v48, %v11023_v18  ;;  %vm13499_vm0 = vnez %v13036_v4 }
 0x27c   :  { %4278 = vmatpush1.bf16.msra.mxu1 %v4205_v40  ;;  %4295 = vmatprep.mubr.bf16.mxu1 %v13057_v0  ;;  %v11132_v46 = vadd.f32 %v1003_v2, %v11026_v23  ;;  %v1048_v18 = vpop.f32.mrf.mxu1  ;;  %v4446_v24 = vsel %vm11115_vm14, %v4414_v19, 0.0 }
 0x27d   :  { %8522 = vmatprep.subr.msk.bf16.mxu1 %vm13488_vm13, %v4194_v9  ;;  %8513 = vmatmul.mubr.msk.bf16.vlgmr.msra.gmra.mxu0 %vm13492_vm15, %v523_v37  ;;  %v4183_v9 = vsel %vm13443_vm11, %v4157_v33, 0.0  ;;  %v4193_v37 = vpack.c.bf16 %v4185_v16, %v4185_v16  ;;  %vm13495_vm15 = vcmp.le.s32.totalorder %v9309_v58, 6  ;;  %v1005_v23 = vpop.f32.mrf.mxu0  ;;  %v11152_v33 = vld [vmem:[%s12784_s2 + $0x38] sm:$0xf]  ;;  %v4454_v19 = vpack.c.bf16 %v4446_v24, %v4446_v24 }
 0x27e   :  { %4237 = vmatpush1.bf16.msra.mxu0 %v4199_v44  ;;  %4254 = vmatprep.mubr.bf16.mxu0 %v13057_v0  ;;  %vm4420_vm8 = vmand %vm13495_vm15, %vm13494_vm7  ;;  %v11147_v40 = vadd.f32 %v1005_v23, %v11038_v27  ;;  %v1049_v16 = vpop.f32.mrf.mxu1  ;;  %v4191_v2 = vpack.c.bf16 %v4183_v9, %v4183_v9  ;;  %vm13496_vm15 = vcmp.le.s32.totalorder %v9305_v56, 6  ;;  %v4417_v27 = vsel %vm4410_vm9, %v8899_v7, %v8900_v60  ;;  %v11175_v60 = vpop.permute.xlu0 %8912 }
 0x27f   :  { %8520 = vmatprep.subr.msk.bf16.mxu0 %vm13488_vm13, %v4192_v5  ;;  %v1007_v48 = vpop.f32.mrf.mxu0  ;;  %vm4421_vm14 = vmand %vm13496_vm15, %vm13380_vm12  ;;  %v4444_v22 = vsel %vm4420_vm8, %v4416_v38, 0.0  ;;  %v8910_v44 = vunpack.i.h.bf16 %v11126_v3  ;;  %v8909_v5 = vunpack.i.l.bf16 %v11126_v3  ;;  %vm13497_vm13 = vcmask 64512  }
 0x280   :  { %v1218_v18 = vpop.f32.mrf.mxu1  ;;  %vm13498_vm7 = vcmask 1043456   ;;  %vm13500_vm15 = vcmp.le.s32.totalorder %v9426_v39, 6  ;;  %v4445_v3 = vsel %vm4421_vm14, %v4415_v41, 0.0  ;;  %vm13504_vm8 = vcmp.le.s32.totalorder %v9430_v47, 6  ;;  %v8918_v48 = vpop.permute.xlu1 %8917 }
 0x281   :  { %v4217_v28 = vsel %vm13498_vm7, %v4193_v37, 0  ;;  %v1008_v1 = vpop.f32.mrf.mxu0  ;;  %vm11171_vm12 = vmand %vm13500_vm15, %vm13499_vm0  ;;  %v11178_v38 = vadd.f32 %v1218_v18, %v11065_v25  ;;  %vm13503_vm7 = vnez %v13033_v30  ;;  %v4418_v23 = vsel %vm4410_vm9, %v4409_v11, %v8899_v7 }
 0x282   :  { %vm13507_vm15 = vcmask 1043456   ;;  %v1220_v24 = vpop.f32.mrf.mxu1  ;;  %vm13508_vm0 = vcmask 64512   ;;  %v4452_v16 = vpack.c.bf16 %v4444_v22, %v4444_v22  ;;  %v4443_v7 = vsel %vm11171_vm12, %v4417_v27, 0.0 }
 0x283   :  { %8519 = vmatmul.mubr.msk.bf16.vlgmr.msra.gmra.mxu1 %vm13497_vm13, %v11152_v33  ;;  %vm11185_vm13 = vmand %vm13504_vm8, %vm13503_vm7  ;;  %v1177_v25 = vpop.f32.mrf.mxu0  ;;  %v11196_v18 = vadd.f32 %v1220_v24, %v11076_v53  ;;  %vm13511_vm12 = vcmp.le.s32.totalorder %v9439_v52, 6  ;;  %v4411_v9 = vsel %vm4410_vm9, %v8910_v44, %v4409_v11  ;;  %v8920_v24 = vunpack.i.h.bf16 %v8918_v48 }
 0x284   :  { %4360 = vmatpush1.bf16.msra.mxu1 %v4217_v28  ;;  %4377 = vmatprep.mubr.bf16.mxu1 %v13057_v0  ;;  %vm13509_vm11 = vmmov %vm13507_vm15  ;;  %v11199_v28 = vadd.f32 %v1177_v25, %v11079_v34  ;;  %v1222_v22 = vpop.f32.mrf.mxu1  ;;  %v4453_v34 = vpack.c.bf16 %v4445_v3, %v4445_v3  ;;  %v8923_v27 = vpop.permute.xlu1 %8922 }
 0x285   :  { %8526 = vmatprep.subr.msk.bf16.mxu1 %vm13507_vm15, %v4454_v19  ;;  %8517 = vmatmul.mubr.msk.bf16.vlgmr.msra.gmra.mxu0 %vm13508_vm0, %v11152_v33  ;;  %v4211_v41 = vsel %vm13509_vm11, %v4191_v2, 0  ;;  %vm13510_vm0 = vcmp.le.s32.totalorder %v9433_v49, 6  ;;  %v4412_v2 = vsel %vm4410_vm9, %v8909_v5, %v8910_v44  ;;  %v1179_v53 = vpop.f32.mrf.mxu0  ;;  %v4450_v19 = vsel %vm11185_vm13, %v4418_v23, 0.0  ;;  %vm11220_vm8 = vmand %vm13511_vm12, %vm13458_vm4  ;;  %v11226_v23 = vpop.permute.xlu0 %4666 }
 0x286   :  { %4319 = vmatpush1.bf16.msra.mxu0 %v4211_v41  ;;  %4336 = vmatprep.mubr.bf16.mxu0 %v13057_v0  ;;  %vm4424_vm14 = vmand %vm13510_vm0, %vm13392_vm3  ;;  %v11214_v1 = vadd.f32 %v1179_v53, %v11090_v29  ;;  %v1223_v25 = vpop.f32.mrf.mxu1  ;;  %v4451_v41 = vpack.c.bf16 %v4443_v7, %v4443_v7  ;;  %v4413_v29 = vsel %vm4410_vm9, %v11096_v26, %v8909_v5  ;;  %v8919_v22 = vunpack.i.l.bf16 %v8918_v48 }
 0x287   :  { %8524 = vmatprep.subr.msk.bf16.mxu0 %vm13509_vm11, %v4452_v16  ;;  %v1181_v3 = vpop.f32.mrf.mxu0  ;;  %v4448_v37 = vsel %vm4424_vm14, %v4412_v2, 0.0  ;;  %v4458_v16 = vpack.c.bf16 %v4450_v19, %v4450_v19  ;;  %vm13514_vm13 = vcmask 64512   ;;  %vm13515_vm15 = vmmov %vm13509_vm11  ;;  %vm13516_vm0 = vcmp.le.s32.totalorder %v9443_v63, 6 }
 0x288   :  { %v1300_v53 = vpop.f32.mrf.mxu1  ;;  %v4469_v21 = vsel %vm13515_vm15, %v4453_v34, 0  ;;  %vm11238_vm14 = vmand %vm13516_vm0, %vm13461_vm5  ;;  %v4449_v26 = vsel %vm11220_vm8, %v4411_v9, 0.0  ;;  %vm4674_vm9 = vcmp.lt.s32.totalorder %v9277_v43, 120  ;;  %v8915_v48 = vunpack.i.h.bf16 %v11175_v60 }
 0x289   :  { %v1182_v11 = vpop.f32.mrf.mxu0  ;;  %v11246_v5 = vadd.f32 %v1300_v53, %v11107_v31  ;;  %v4678_v7 = vsel %vm4674_vm9, %v8920_v24, %v11226_v23  ;;  %vm13519_vm12 = vmmov %vm13514_vm13  ;;  %v4456_v31 = vpack.c.bf16 %v4448_v37, %v4448_v37  ;;  %v4447_v3 = vsel %vm11238_vm14, %v4413_v29, 0.0  ;;  %v4673_v37 = vpop.permute.xlu0 %4672  ;;  %v11278_v53 = vld [vmem:[%s12784_s2 + $0x3c] sm:$0xf] }
 0x28a   :  { %v1302_v2 = vpop.f32.mrf.mxu1  ;;  %vm13520_vm8 = vmmov %vm13509_vm11  ;;  %vm13522_vm15 = vcmp.le.s32.totalorder %v9300_v54, 6  ;;  %v4679_v29 = vsel %vm4674_vm9, %v8919_v22, %v8920_v24  ;;  %vm13523_vm0 = vcmp.le.s32.totalorder %v9309_v58, 6  ;;  %v11289_v24 = vpop.permute.xlu1 %8927 }
 0x28b   :  { %8523 = vmatmul.mubr.msk.bf16.vlgmr.msra.gmra.mxu1 %vm13514_vm13, %v11152_v33  ;;  %v1259_v34 = vpop.f32.mrf.mxu0  ;;  %v4463_v19 = vsel %vm13520_vm8, %v4451_v41, 0  ;;  %v11259_v9 = vadd.f32 %v1302_v2, %v11129_v62  ;;  %vm13521_vm13 = vmmov %vm13520_vm8  ;;  %v4702_v62 = vsel %vm13522_vm15, %v4678_v7, 0.0 }
 0x28c   :  { %4542 = vmatpush1.bf16.msra.mxu1 %v4469_v21  ;;  %4559 = vmatprep.mubr.bf16.mxu1 %v13057_v0  ;;  %v8914_v21 = vunpack.i.l.bf16 %v11175_v60  ;;  %v11262_v25 = vadd.f32 %v1259_v34, %v11132_v46  ;;  %v1304_v41 = vpop.f32.mrf.mxu1  ;;  %v4710_v34 = vpack.c.bf16 %v4702_v62, %v4702_v62  ;;  %vm13524_vm14 = vmmov %vm13519_vm12 }
 0x28d   :  { %8530 = vmatprep.subr.msk.bf16.mxu1 %vm13509_vm11, %v4458_v16  ;;  %8521 = vmatmul.mubr.msk.bf16.vlgmr.msra.gmra.mxu0 %vm13519_vm12, %v11152_v33  ;;  %v4457_v16 = vpack.c.bf16 %v4449_v26, %v4449_v26  ;;  %v4680_v33 = vsel %vm4674_vm9, %v8915_v48, %v8919_v22  ;;  %v1261_v60 = vpop.f32.mrf.mxu0  ;;  %v4455_v26 = vpack.c.bf16 %v4447_v3, %v4447_v3  ;;  %vm13525_vm11 = vmmov %vm13520_vm8  ;;  %vm13526_vm12 = vcmp.le.s32.totalorder %v9305_v56, 6  ;;  %v8933_v62 = vpop.permute.xlu0 %8932 }
 0x28e   :  { %4501 = vmatpush1.bf16.msra.mxu0 %v4463_v19  ;;  %4518 = vmatprep.mubr.bf16.mxu0 %v13057_v0  ;;  %v11273_v46 = vadd.f32 %v1261_v60, %v11147_v40  ;;  %v1305_v11 = vpop.f32.mrf.mxu1  ;;  %v4681_v2 = vsel %vm4674_vm9, %v8914_v21, %v8915_v48  ;;  %v4700_v7 = vsel %vm13523_vm0, %v4680_v33, 0.0  ;;  %v8925_v40 = vunpack.i.h.bf16 %v8923_v27  ;;  %vm13528_vm15 = vmmov %vm13520_vm8 }
 0x28f   :  { %8528 = vmatprep.subr.msk.bf16.mxu0 %vm13521_vm13, %v4456_v31  ;;  %v1263_v44 = vpop.f32.mrf.mxu0  ;;  %v8924_v19 = vunpack.i.l.bf16 %v8923_v27  ;;  %v4481_v41 = vsel %vm13525_vm11, %v4457_v16, 0  ;;  %v4701_v48 = vsel %vm13526_vm12, %v4679_v29, 0.0  ;;  %v4682_v27 = vsel %vm4674_vm9, %v4673_v37, %v8914_v21  ;;  %vm13527_vm13 = vmmov %vm13524_vm14 }
 0x290   :  { %v1482_v31 = vpop.f32.mrf.mxu1  ;;  %v4475_v16 = vsel %vm13528_vm15, %v4455_v26, 0  ;;  %vm13529_vm0 = vcmp.le.s32.totalorder %v9426_v39, 6  ;;  %vm13531_vm11 = vcmp.le.s32.totalorder %v9430_v47, 6  ;;  %vm13532_vm12 = vcmp.le.s32.totalorder %v9433_v49, 6 }
 0x291   :  { %v1264_v60 = vpop.f32.mrf.mxu0  ;;  %v11292_v22 = vadd.f32 %v1482_v31, %v11178_v38  ;;  %v4708_v38 = vpack.c.bf16 %v4700_v7, %v4700_v7  ;;  %v4699_v21 = vsel %vm13529_vm0, %v4681_v2, 0.0  ;;  %v4676_v29 = vsel %vm4674_vm9, %v8924_v19, %v8925_v40 }
 0x292   :  { %v1484_v3 = vpop.f32.mrf.mxu1  ;;  %v4709_v7 = vpack.c.bf16 %v4701_v48, %v4701_v48  ;;  %v4675_v31 = vsel %vm4674_vm9, %v8925_v40, %v4673_v37  ;;  %v4677_v48 = vsel %vm4674_vm9, %v11226_v23, %v8924_v19  ;;  %vm13535_vm15 = vcmp.le.s32.totalorder %v9439_v52, 6 }
 0x293   :  { %8527 = vmatmul.mubr.msk.bf16.vlgmr.msra.gmra.mxu1 %vm13524_vm14, %v11278_v53  ;;  %v1441_v33 = vpop.f32.mrf.mxu0  ;;  %v11304_v11 = vadd.f32 %v1484_v3, %v11196_v18  ;;  %vm13530_vm14 = vmmov %vm13520_vm8  ;;  %v4706_v18 = vsel %vm13531_vm11, %v4682_v27, 0.0  ;;  %v4707_v3 = vpack.c.bf16 %v4699_v21, %v4699_v21  ;;  %v4705_v21 = vsel %vm13535_vm15, %v4675_v31, 0.0 }
 0x294   :  { %4624 = vmatpush1.bf16.msra.mxu1 %v4481_v41  ;;  %4641 = vmatprep.mubr.bf16.mxu1 %v13057_v0  ;;  %v11307_v44 = vadd.f32 %v1441_v33, %v11199_v28  ;;  %v8935_v41 = vunpack.i.h.bf16 %v8933_v62  ;;  %v4704_v33 = vsel %vm13532_vm12, %v4676_v29, 0.0  ;;  %v4714_v27 = vpack.c.bf16 %v4706_v18, %v4706_v18 }
 0x295   :  { %8534 = vmatprep.subr.msk.bf16.mxu1 %vm13520_vm8, %v4710_v34  ;;  %8525 = vmatmul.mubr.msk.bf16.vlgmr.msra.gmra.mxu0 %vm13527_vm13, %v11278_v53  ;;  %v1486_v34 = vpop.f32.mrf.mxu1  ;;  %v1443_v26 = vpop.f32.mrf.mxu0  ;;  %vm13533_vm8 = vmmov %vm13527_vm13  ;;  %vm4930_vm0 = vcmp.lt.s32.totalorder %v9277_v43, 119  ;;  %v8930_v23 = vunpack.i.h.bf16 %v11289_v24  ;;  %vm13536_vm9 = vcmp.le.s32.totalorder %v9300_v54, 6  ;;  %v8929_v18 = vunpack.i.l.bf16 %v11289_v24  ;;  %v13654_v43 = vld [vmem:[#allocation35_spill] sm:$0xff] }
 0x296   :  { %4583 = vmatpush1.bf16.msra.mxu0 %v4475_v16  ;;  %4600 = vmatprep.mubr.bf16.mxu0 %v13057_v0  ;;  %v11318_v28 = vadd.f32 %v1443_v26, %v11214_v1  ;;  %v11324_v16 = vpop.permute.xlu1 %4922  ;;  %vm13534_vm13 = vmmov %vm13530_vm14  ;;  %vm13543_vm15 = vcmp.le.s32.totalorder %v9309_v58, 6 }
 0x297   :  { %8532 = vmatprep.subr.msk.bf16.mxu0 %vm13530_vm14, %v4708_v38  ;;  %v1487_v60 = vpop.f32.mrf.mxu1  ;;  %v1445_v2 = vpop.f32.mrf.mxu0  ;;  %v8934_v38 = vunpack.i.l.bf16 %v8933_v62  ;;  %v4725_v37 = vsel %vm13534_vm13, %v4709_v7, 0  ;;  %vm11344_vm14 = vmand %vm13536_vm9, %vm13478_vm1  ;;  %v4934_v62 = vsel %vm4930_vm0, %v8935_v41, %v11324_v16  ;;  %v4712_v7 = vpack.c.bf16 %v4704_v33, %v4704_v33 }
 0x298   :  { %vm13539_vm11 = vmmov %vm13534_vm13  ;;  %vm13542_vm13 = vcmp.le.s32.totalorder %v9443_v63, 6  ;;  %v4966_v24 = vsel %vm11344_vm14, %v4934_v62, 0.0  ;;  %vm13593_vm1 = vcmask 1043456  }
 0x299   :  { %v1564_v1 = vpop.f32.mrf.mxu1  ;;  %v1446_v40 = vpop.f32.mrf.mxu0  ;;  %vm13540_vm12 = vmmov %vm13533_vm8  ;;  %v4703_v2 = vsel %vm13542_vm13, %v4677_v48, 0.0  ;;  %v11380_v48 = vld [vmem:[%s12784_s2 + $0x40] sm:$0xf] }
 0x29a   :  { %v11336_v29 = vadd.f32 %v1564_v1, %v11246_v5  ;;  %vm4940_vm9 = vmand %vm13543_vm15, %vm13424_vm2  ;;  %v4935_v1 = vsel %vm4930_vm0, %v8934_v38, %v8935_v41  ;;  %v4929_v62 = vpop.permute.xlu1 %4928  ;;  %vm13548_vm15 = vcmp.le.s32.totalorder %v9426_v39, 6 }
 0x29b   :  { %8531 = vmatmul.mubr.msk.bf16.vlgmr.msra.gmra.mxu1 %vm13533_vm8, %v11278_v53  ;;  %v1566_v5 = vpop.f32.mrf.mxu1  ;;  %v1523_v34 = vpop.f32.mrf.mxu0  ;;  %vm13541_vm8 = vmmov %vm13539_vm11 }
 0x29c   :  { %4798 = vmatpush1.bf16.msra.mxu1 %v4725_v37  ;;  %4815 = vmatprep.mubr.bf16.mxu1 %v13057_v0  ;;  %v4719_v26 = vsel %vm13541_vm8, %v4707_v3, 0  ;;  %v11357_v31 = vadd.f32 %v1566_v5, %v11259_v9  ;;  %v11360_v60 = vadd.f32 %v1523_v34, %v11262_v25  ;;  %v8938_v3 = vpop.permute.xlu0 %8937  ;;  %v4974_v5 = vpack.c.bf16 %v4966_v24, %v4966_v24 }
 0x29d   :  { %8538 = vmatprep.subr.msk.bf16.mxu1 %vm13539_vm11, %v4714_v27  ;;  %8529 = vmatmul.mubr.msk.bf16.vlgmr.msra.gmra.mxu0 %vm13540_vm12, %v11278_v53  ;;  %v4713_v27 = vpack.c.bf16 %v4705_v21, %v4705_v21  ;;  %v4936_v53 = vsel %vm4930_vm0, %v8930_v23, %v8934_v38  ;;  %v1568_v9 = vpop.f32.mrf.mxu1  ;;  %vm13544_vm11 = vmmov %vm13541_vm8  ;;  %v1525_v25 = vpop.f32.mrf.mxu0  ;;  %v4711_v21 = vpack.c.bf16 %v4703_v2, %v4703_v2  ;;  %vm13545_vm12 = vcmp.le.s32.totalorder %v9305_v56, 6 }
 0x29e   :  { %4757 = vmatpush1.bf16.msra.mxu0 %v4719_v26  ;;  %4774 = vmatprep.mubr.bf16.mxu0 %v13057_v0  ;;  %v11375_v33 = vadd.f32 %v1525_v25, %v11273_v46  ;;  %vm4941_vm14 = vmand %vm13545_vm12, %vm13350_vm10  ;;  %v4937_v46 = vsel %vm4930_vm0, %v8929_v18, %v8930_v23  ;;  %v4964_v19 = vsel %vm4940_vm9, %v4936_v53, 0.0  ;;  %v8940_v34 = vunpack.i.h.bf16 %v8938_v3 }
 0x29f   :  { %8536 = vmatprep.subr.msk.bf16.mxu0 %vm13544_vm11, %v4712_v7  ;;  %v1569_v37 = vpop.f32.mrf.mxu1  ;;  %v1527_v40 = vpop.f32.mrf.mxu0  ;;  %v8939_v26 = vunpack.i.l.bf16 %v8938_v3  ;;  %vm13546_vm8 = vcmask 64512   ;;  %vm13547_vm13 = vmmov %vm13544_vm11  ;;  %v4965_v53 = vsel %vm4941_vm14, %v4935_v1, 0.0  ;;  %vm13551_vm9 = vnez %v13108_v61 }
 0x2a0   :  { %v4737_v41 = vsel %vm13547_vm13, %v4713_v27, 0  ;;  %vm11397_vm11 = vmand %vm13548_vm15, %vm13483_vm6  ;;  %vm13552_vm12 = vcmp.le.s32.totalorder %v9430_v47, 6  ;;  %v4938_v9 = vsel %vm4930_vm0, %v4929_v62, %v8929_v18  ;;  %vm13555_vm15 = vcmask 64512  }
 0x2a1   :  { %v1738_v7 = vpop.f32.mrf.mxu1  ;;  %v1528_v38 = vpop.f32.mrf.mxu0  ;;  %vm13556_vm6 = vmmov %vm13547_vm13  ;;  %v4972_v3 = vpack.c.bf16 %v4964_v19, %v4964_v19  ;;  %v4963_v18 = vsel %vm11397_vm11, %v4937_v46, 0.0  ;;  %vm13557_vm14 = vnez %v13114_v13  ;;  %v4932_v40 = vsel %vm4930_vm0, %v8939_v26, %v8940_v34 }
 0x2a2   :  { %v11402_v23 = vadd.f32 %v1738_v7, %v11292_v22  ;;  %v4731_v24 = vsel %vm13556_vm6, %v4711_v21, 0  ;;  %v4931_v7 = vsel %vm4930_vm0, %v8940_v34, %v4929_v62  ;;  %v4971_v2 = vpack.c.bf16 %v4963_v18, %v4963_v18 }
 0x2a3   :  { %8535 = vmatmul.mubr.msk.bf16.vlgmr.msra.gmra.mxu1 %vm13546_vm8, %v11380_v48  ;;  %vm11409_vm8 = vmand %vm13552_vm12, %vm13551_vm9  ;;  %v1740_v25 = vpop.f32.mrf.mxu1  ;;  %v1697_v22 = vpop.f32.mrf.mxu0  ;;  %vm13558_vm12 = vcmp.le.s32.totalorder %v9433_v49, 6  ;;  %vm13565_vm11 = vnez %v13134_v14  ;;  %vm13577_vm10 = vcmp.le.s32.totalorder %v9311_v59, 6 }
 0x2a4   :  { %4880 = vmatpush1.bf16.msra.mxu1 %v4737_v41  ;;  %4897 = vmatprep.mubr.bf16.mxu1 %v13057_v0  ;;  %v11420_v1 = vadd.f32 %v1740_v25, %v11304_v11  ;;  %v11423_v37 = vadd.f32 %v1697_v22, %v11307_v44  ;;  %v4973_v44 = vpack.c.bf16 %v4965_v53, %v4965_v53  ;;  %v4970_v19 = vsel %vm11409_vm8, %v4938_v9, 0.0 }
 0x2a5   :  { %8542 = vmatprep.subr.msk.bf16.mxu1 %vm13547_vm13, %v4974_v5  ;;  %8533 = vmatmul.mubr.msk.bf16.vlgmr.msra.gmra.mxu0 %vm13555_vm15, %v11380_v48  ;;  %vm4944_vm13 = vmand %vm13558_vm12, %vm13557_vm14  ;;  %v1742_v21 = vpop.f32.mrf.mxu1  ;;  %v1699_v11 = vpop.f32.mrf.mxu0  ;;  %vm13559_vm15 = vnez %v13120_v20  ;;  %vm13560_vm12 = vcmp.le.s32.totalorder %v9439_v52, 6  ;;  %v4978_v27 = vpack.c.bf16 %v4970_v19, %v4970_v19 }
 0x2a6   :  { %4839 = vmatpush1.bf16.msra.mxu0 %v4731_v24  ;;  %4856 = vmatprep.mubr.bf16.mxu0 %v13057_v0  ;;  %v11438_v5 = vadd.f32 %v1699_v11, %v11318_v28  ;;  %vm11445_vm14 = vmand %vm13560_vm12, %vm13559_vm15  ;;  %v4968_v53 = vsel %vm4944_vm13, %v4932_v40, 0.0  ;;  %v4933_v28 = vsel %vm4930_vm0, %v11324_v16, %v8939_v26  ;;  %vm13564_vm12 = vcmask 1043456  }
 0x2a7   :  { %8540 = vmatprep.subr.msk.bf16.mxu0 %vm13556_vm6, %v4972_v3  ;;  %v1743_v41 = vpop.f32.mrf.mxu1  ;;  %v1701_v38 = vpop.f32.mrf.mxu0  ;;  %vm13563_vm6 = vcmask 64512   ;;  %v4989_v25 = vsel %vm13564_vm12, %v4973_v44, 0  ;;  %vm13566_vm15 = vcmp.le.s32.totalorder %v9443_v63, 6  ;;  %vm13569_vm13 = vcmp.ge.s32.totalorder %v9300_v54, 1 }
 0x2a8   :  { %vm11462_vm9 = vmand %vm13566_vm15, %vm13565_vm11  ;;  %vm13570_vm0 = vcmp.le.s32.totalorder %v9302_v55, 6  ;;  %v4969_v16 = vsel %vm11445_vm14, %v4931_v7, 0.0  ;;  %vm13573_vm15 = vnez %v13030_v15  ;;  %v4976_v18 = vpack.c.bf16 %v4968_v53, %v4968_v53  ;;  %v11524_v7 = vld [vmem:[%s12784_s2 + $0x44] sm:$0xf] }
 0x2a9   :  { %v1820_v9 = vpop.f32.mrf.mxu1  ;;  %v1702_v22 = vpop.f32.mrf.mxu0  ;;  %vm11470_vm8 = vmand %vm13570_vm0, %vm13569_vm13  ;;  %vm13574_vm13 = vcmask 64512   ;;  %vm12967_vm14 = vcmp.le.s32.totalorder %v9307_v57, 6  ;;  %vm13576_vm11 = vcmp.ge.s32.totalorder %v9309_v58, 1  ;;  %v4977_v11 = vpack.c.bf16 %v4969_v16, %v4969_v16 }
 0x2aa   :  { %v11477_v34 = vadd.f32 %v1820_v9, %v11336_v29  ;;  %vm13575_vm0 = vmmov %vm13564_vm12  ;;  %v13578_v29 = vmov 0  ;;  %v13584_v41 = vmov 0 }
 0x2ab   :  { %8539 = vmatmul.mubr.msk.bf16.vlgmr.msra.gmra.mxu1 %vm13563_vm6, %v11380_v48  ;;  %vm5189_vm6 = vmand %vm11470_vm8, %vm13573_vm15  ;;  %v1822_v26 = vpop.f32.mrf.mxu1  ;;  %v1779_v24 = vpop.f32.mrf.mxu0  ;;  %v4983_v3 = vsel %vm13575_vm0, %v4971_v2, 0  ;;  %vm13604_vm15 = vcmp.ge.s32.totalorder %v9433_v49, 1 }
 0x2ac   :  { %5062 = vmatpush1.bf16.msra.mxu1 %v4989_v25  ;;  %5079 = vmatprep.mubr.bf16.mxu1 %v13057_v0  ;;  %vm11493_vm2 = vmand %vm13577_vm10, %vm13576_vm11  ;;  %v11498_v40 = vadd.f32 %v1822_v26, %v11357_v31  ;;  %v11501_v21 = vadd.f32 %v1779_v24, %v11360_v60  ;;  %v13582_v60 = vld [vmem:[#allocation32_spill] sm:$0xff]  ;;  %v5001_v25 = vsel %vm13593_vm1, %v4977_v11, 0  ;;  %v13599_v24 = vld [vmem:[#allocation27_spill] sm:$0xff] }
 0x2ad   :  { %8546 = vmatprep.subr.msk.bf16.mxu1 %vm13564_vm12, %v4978_v27  ;;  %8537 = vmatmul.mubr.msk.bf16.vlgmr.msra.gmra.mxu0 %vm13574_vm13, %v11380_v48  ;;  %v13579_v29 = vsel %vm11493_vm2, 4294967295, %v13578_v29  ;;  %v4967_v48 = vsel %vm11462_vm9, %v4933_v28, 0.0  ;;  %vm13580_vm12 = vnez %v13022_v42  ;;  %v1824_v44 = vpop.f32.mrf.mxu1  ;;  %vm13581_vm11 = vmmov %vm13575_vm0  ;;  %v1781_v31 = vpop.f32.mrf.mxu0  ;;  %v5213_v19 = vsel %vm5189_vm6, %v13582_v60, 0.0 }
 0x2ae   :  { %5021 = vmatpush1.bf16.msra.mxu0 %v4983_v3  ;;  %5038 = vmatprep.mubr.bf16.mxu0 %v13057_v0  ;;  %vm5187_vm10 = vmand %vm11493_vm2, %vm13580_vm12  ;;  %v11519_v46 = vadd.f32 %v1781_v31, %v11375_v33  ;;  %vm13583_vm9 = vcmp.ge.s32.totalorder %v9305_v56, 1  ;;  %v4975_v53 = vpack.c.bf16 %v4967_v48, %v4967_v48  ;;  %vm13586_vm6 = vnez %v13039_v10  ;;  %v13587_v33 = vld [vmem:[#allocation28_spill] sm:$0xff] }
 0x2af   :  { %8544 = vmatprep.subr.msk.bf16.mxu0 %vm13581_vm11, %v4976_v18  ;;  %vm11530_vm0 = vmand %vm12967_vm14, %vm13583_vm9  ;;  %v1825_v38 = vpop.f32.mrf.mxu1  ;;  %v1783_v2 = vpop.f32.mrf.mxu0  ;;  %v5211_v28 = vsel %vm5187_vm10, %v13587_v33, 0.0  ;;  %vm13588_vm9 = vcmp.ge.s32.totalorder %v9426_v39, 1  ;;  %vm13589_vm14 = vcmp.le.s32.totalorder %v9422_v36, 6  ;;  %v5221_v22 = vpack.c.bf16 %v5213_v19, %v5213_v19  ;;  %v13600_v18 = vld [vmem:[#allocation17_spill] sm:$0xff]  ;;  %v13611_v33 = vld [vmem:[#allocation19_spill] sm:$0xff] }
 0x2b0   :  { %v13585_v41 = vsel %vm11530_vm0, 4294967295, %v13584_v41  ;;  %vm5188_vm13 = vmand %vm11530_vm0, %vm13586_vm6  ;;  %vm13592_vm6 = vcmask 64512   ;;  %vm13594_vm10 = vnez %v13036_v4  ;;  %v5219_v44 = vpack.c.bf16 %v5211_v28, %v5211_v28  ;;  %v13608_v38 = vld [vmem:[#allocation25_spill] sm:$0xff] }
 0x2b1   :  { %vm11549_vm11 = vmand %vm13589_vm14, %vm13588_vm9  ;;  %v2002_v9 = vpop.f32.mrf.mxu1  ;;  %v1784_v62 = vpop.f32.mrf.mxu0  ;;  %vm13595_vm14 = vcmp.ge.s32.totalorder %v9430_v47, 1  ;;  %vm13596_vm9 = vcmp.le.s32.totalorder %v9437_v51, 6  ;;  %v5212_v3 = vsel %vm5188_vm13, %v13599_v24, 0.0  ;;  %vm13605_vm13 = vcmp.le.s32.totalorder %v9435_v50, 6 }
 0x2b2   :  { %vm11565_vm0 = vmand %vm13596_vm9, %vm13595_vm14  ;;  %v11570_v26 = vadd.f32 %v2002_v9, %v11402_v23  ;;  %v13616_v9 = vld [vmem:[#allocation26_spill] sm:$0xff] }
 0x2b3   :  { %8543 = vmatmul.mubr.msk.bf16.vlgmr.msra.gmra.mxu1 %vm13592_vm6, %v11524_v7  ;;  %vm13601_vm12 = vmmov %vm13593_vm1  ;;  %v2004_v48 = vpop.f32.mrf.mxu1 }
 0x2b4   :  { %5144 = vmatpush1.bf16.msra.mxu1 %v5001_v25  ;;  %5161 = vmatprep.mubr.bf16.mxu1 %v13057_v0  ;;  %vm13602_vm14 = vmmov %vm13592_vm6  ;;  %v11592_v60 = vadd.f32 %v2004_v48, %v11420_v1  ;;  %vm13613_vm6 = vcmp.le.s32.totalorder %v13600_v18, 6  ;;  %v13618_v48 = vld [vmem:[#allocation31_spill] sm:$0xff] }
 0x2b5   :  { %8550 = vmatprep.subr.msk.bf16.mxu1 %vm13601_vm12, %v5221_v22  ;;  %v1961_v11 = vpop.f32.mrf.mxu0  ;;  %8541 = vmatmul.mubr.msk.bf16.vlgmr.msra.gmra.mxu0 %vm13602_vm14, %v11524_v7  ;;  %vm13603_vm9 = vmmov %vm13593_vm1  ;;  %v2006_v1 = vpop.f32.mrf.mxu1 }
 0x2b6   :  { %v4995_v23 = vsel %vm13603_vm9, %v4975_v53, 0  ;;  %vm11587_vm1 = vmand %vm13605_vm13, %vm13604_vm15  ;;  %v11595_v19 = vadd.f32 %v1961_v11, %v11423_v37  ;;  %5120 = vmatprep.mubr.bf16.mxu0 %v13057_v0  ;;  %v5220_v53 = vpack.c.bf16 %v5212_v3, %v5212_v3  ;;  %vm13612_vm13 = vcmp.ge.s32.totalorder %v9439_v52, 1  ;;  %v13644_v52 = vld [vmem:[#allocation23_spill] sm:$0xff] }
 0x2b7   :  { %5103 = vmatpush1.bf16.msra.mxu0 %v4995_v23  ;;  %vm13609_vm12 = vmand %vm11549_vm11, %vm13594_vm10  ;;  %v1963_v37 = vpop.f32.mrf.mxu0  ;;  %v2007_v62 = vpop.f32.mrf.mxu1 }
 0x2b8   :  { %v5210_v2 = vsel %vm13609_vm12, %v13608_v38, 0.0  ;;  %vm5191_vm15 = vmand %vm11587_vm1, %vm13392_vm3  ;;  %v11625_v22 = vadd.f32 %v1963_v37, %v11438_v5  ;;  %vm13623_vm3 = vcmask 1043456  }
 0x2b9   :  { %vm13610_vm14 = vmmov %vm13603_vm9  ;;  %vm12976_vm9 = vcmp.le.s32.totalorder %v13611_v33, 6  ;;  %v1965_v24 = vpop.f32.mrf.mxu0  ;;  %v5218_v3 = vpack.c.bf16 %v5210_v2, %v5210_v2  ;;  %v5215_v11 = vsel %vm5191_vm15, %v13618_v48, 0.0  ;;  %v5236_v38 = vsel %vm13623_vm3, %v5220_v53, 0  ;;  %v13624_v2 = vld [vmem:[#allocation29_spill] sm:$0xff] }
 0x2ba   :  { %8548 = vmatprep.subr.msk.bf16.mxu0 %vm13610_vm14, %v5219_v44  ;;  %vm11614_vm2 = vmand %vm13613_vm6, %vm13612_vm13  ;;  %vm13619_vm6 = vcmp.ge.s32.totalorder %v9443_v63, 1 }
 0x2bb   :  { %vm13617_vm12 = vmand %vm11565_vm0, %vm13503_vm7  ;;  %v2084_v44 = vpop.f32.mrf.mxu1  ;;  %v1966_v1 = vpop.f32.mrf.mxu0 }
 0x2bc   :  { %v5217_v25 = vsel %vm13617_vm12, %v13616_v9, 0.0  ;;  %vm5192_vm14 = vmand %vm11614_vm2, %vm13458_vm4  ;;  %vm13622_vm12 = vcmask 64512   ;;  %v2097_v9 = vadd.f32 %v2084_v44, %v11477_v34  ;;  %v13628_v34 = vld [vmem:[#allocation30_spill] sm:$0xff] }
 0x2bd   :  { %vm11636_vm13 = vmand %vm12976_vm9, %vm13619_vm6  ;;  %v5225_v5 = vpack.c.bf16 %v5217_v25, %v5217_v25  ;;  %8547 = vmatmul.mubr.msk.bf16.vlgmr.msra.gmra.mxu1 %vm13622_vm12, %v11524_v7  ;;  %v5216_v37 = vsel %vm5192_vm14, %v13624_v2, 0.0  ;;  %v5223_v25 = vpack.c.bf16 %v5215_v11, %v5215_v11  ;;  %v2086_v62 = vpop.f32.mrf.mxu1  ;;  %v2043_v24 = vpop.f32.mrf.mxu0 }
 0x2be   :  { %vm5190_vm15 = vmand %vm11636_vm13, %vm13461_vm5  ;;  %5309 = vmatpush1.bf16.msra.mxu1 %v5236_v38  ;;  %5326 = vmatprep.mubr.bf16.mxu1 %v13057_v0  ;;  %v2098_v48 = vadd.f32 %v2086_v62, %v11498_v40  ;;  %v2095_v1 = vadd.f32 %v2043_v24, %v11501_v21  ;;  %v5224_v38 = vpack.c.bf16 %v5216_v37, %v5216_v37  ;;  %v13630_v40 = vld [vmem:[#allocation22_spill] sm:$0xff] }
 0x2bf   :  { %vm13625_vm6 = vmmov %vm13623_vm3  ;;  %v5214_v44 = vsel %vm5190_vm15, %v13628_v34, 0.0  ;;  %v2088_v11 = vpop.f32.mrf.mxu1  ;;  %v5444_v21 = vsel %vm11470_vm8, %v13630_v40, 0.0  ;;  %vm13632_vm15 = vnez %v13579_v29  ;;  %v13635_v40 = vld [vmem:[#allocation14_spill] sm:$0xff] }
 0x2c0   :  { %8554 = vmatprep.subr.msk.bf16.mxu1 %vm13625_vm6, %v5225_v5  ;;  %vm13626_vm3 = vmmov %vm13622_vm12  ;;  %v2045_v5 = vpop.f32.mrf.mxu0  ;;  %v5222_v24 = vpack.c.bf16 %v5214_v44, %v5214_v44  ;;  %v5452_v34 = vpack.c.bf16 %v5444_v21, %v5444_v21 }
 0x2c1   :  { %8545 = vmatmul.mubr.msk.bf16.vlgmr.msra.gmra.mxu0 %vm13626_vm3, %v11524_v7  ;;  %vm13627_vm12 = vmmov %vm13625_vm6  ;;  %v11660_v2 = vadd.f32 %v2045_v5, %v11519_v46  ;;  %v528_v7 = vld [vmem:[%s12784_s2 + $0x48] sm:$0xf] }
 0x2c2   :  { %v5230_v53 = vsel %vm13627_vm12, %v5218_v3, 0  ;;  %5285 = vmatprep.mubr.bf16.mxu0 %v13057_v0  ;;  %vm13629_vm14 = vmmov %vm13625_vm6  ;;  %v2089_v3 = vpop.f32.mrf.mxu1  ;;  %v2047_v62 = vpop.f32.mrf.mxu0 }
 0x2c3   :  { %5268 = vmatpush1.bf16.msra.mxu0 %v5230_v53  ;;  %v13631_v53 = vld [vmem:[#allocation15_spill] sm:$0xff]  ;;  %vm13633_vm6 = vmmov %vm13626_vm3 }
 0x2c4   :  { %8552 = vmatprep.subr.msk.bf16.mxu0 %vm13629_vm14, %v5223_v25  ;;  %v5442_v37 = vsel %vm13632_vm15, %v13631_v53, 0.0  ;;  %v2274_v25 = vpop.f32.mrf.mxu1  ;;  %vm13634_vm3 = vmmov %vm13627_vm12  ;;  %v2048_v11 = vpop.f32.mrf.mxu0  ;;  %vm13636_vm12 = vnez %v13585_v41  ;;  %v13658_v41 = vld [vmem:[#allocation33_spill] sm:$0xff] }
 0x2c5   :  { %8551 = vmatmul.mubr.msk.bf16.vlgmr.msra.gmra.mxu1 %vm13633_vm6, %v528_v7  ;;  %v5248_v46 = vsel %vm13634_vm3, %v5224_v38, 0  ;;  %v11674_v5 = vadd.f32 %v2274_v25, %v11570_v26  ;;  %v5443_v44 = vsel %vm13636_vm12, %v13635_v40, 0.0  ;;  %vm13637_vm14 = vmmov %vm13634_vm3  ;;  %v5450_v21 = vpack.c.bf16 %v5442_v37, %v5442_v37  ;;  %v13640_v25 = vld [vmem:[#allocation13_spill] sm:$0xff] }
 0x2c6   :  { %5391 = vmatpush1.bf16.msra.mxu1 %v5248_v46  ;;  %5408 = vmatprep.mubr.bf16.mxu1 %v13057_v0  ;;  %v2276_v3 = vpop.f32.mrf.mxu1  ;;  %v2233_v62 = vpop.f32.mrf.mxu0  ;;  %vm13638_vm9 = vmmov %vm13633_vm6  ;;  %v5441_v46 = vsel %vm11549_vm11, %v13640_v25, 0.0  ;;  %v5451_v40 = vpack.c.bf16 %v5443_v44, %v5443_v44 }
 0x2c7   :  { %8558 = vmatprep.subr.msk.bf16.mxu1 %vm13637_vm14, %v5452_v34  ;;  %vm13639_vm6 = vmmov %vm13634_vm3  ;;  %v11684_v53 = vadd.f32 %v2276_v3, %v11592_v60  ;;  %v11687_v26 = vadd.f32 %v2233_v62, %v11595_v19  ;;  %v5449_v62 = vpack.c.bf16 %v5441_v46, %v5441_v46 }
 0x2c8   :  { %v5242_v38 = vsel %vm13639_vm6, %v5222_v24, 0  ;;  %v2278_v34 = vpop.f32.mrf.mxu1  ;;  %v2235_v11 = vpop.f32.mrf.mxu0  ;;  %v13641_v24 = vld [vmem:[#allocation20_spill] sm:$0xff]  ;;  %vm13643_vm14 = vmmov %vm13634_vm3  ;;  %vm13645_vm6 = vnez %v13083_v12 }
 0x2c9   :  { %8549 = vmatmul.mubr.msk.bf16.vlgmr.msra.gmra.mxu0 %vm13638_vm9, %v528_v7  ;;  %v5448_v60 = vsel %vm11565_vm0, %v13641_v24, 0.0  ;;  %v11698_v37 = vadd.f32 %v2235_v11, %v11625_v22  ;;  %v5467_v44 = vsel %vm13643_vm14, %v5451_v40, 0  ;;  %v5447_v24 = vsel %vm11614_vm2, %v13644_v52, 0.0  ;;  %vm13646_vm5 = vmmov %vm13634_vm3 }
 0x2ca   :  { %5350 = vmatpush1.bf16.msra.mxu0 %v5242_v38  ;;  %5367 = vmatprep.mubr.bf16.mxu0 %v13057_v0  ;;  %v2279_v19 = vpop.f32.mrf.mxu1  ;;  %v2237_v3 = vpop.f32.mrf.mxu0  ;;  %v13642_v38 = vld [vmem:[#allocation24_spill] sm:$0xff]  ;;  %v5456_v25 = vpack.c.bf16 %v5448_v60, %v5448_v60  ;;  %vm13647_vm14 = vmmov %vm13634_vm3 }
 0x2cb   :  { %8556 = vmatprep.subr.msk.bf16.mxu0 %vm13634_vm3, %v5450_v21  ;;  %v5446_v63 = vsel %vm11587_vm1, %v13642_v38, 0.0  ;;  %v5461_v60 = vsel %vm13647_vm14, %v5449_v62, 0  ;;  %v5455_v3 = vpack.c.bf16 %v5447_v24, %v5447_v24  ;;  %v13651_v62 = vld [vmem:[#allocation40_spill] sm:$0xff] }
 0x2cc   :  { %v2356_v34 = vpop.f32.mrf.mxu1  ;;  %v2238_v21 = vpop.f32.mrf.mxu0  ;;  %v5454_v46 = vpack.c.bf16 %v5446_v63, %v5446_v63  ;;  %v13648_v63 = vld [vmem:[#allocation21_spill] sm:$0xff] }
 0x2cd   :  { %8555 = vmatmul.mubr.msk.bf16.vlgmr.msra.gmra.mxu1 %vm13638_vm9, %v528_v7  ;;  %v11708_v22 = vadd.f32 %v2356_v34, %v2097_v9  ;;  %v5445_v19 = vsel %vm11636_vm13, %v13648_v63, 0.0 }
 0x2ce   :  { %5540 = vmatpush1.bf16.msra.mxu1 %v5467_v44  ;;  %5557 = vmatprep.mubr.bf16.mxu1 %v13057_v0  ;;  %v2358_v11 = vpop.f32.mrf.mxu1  ;;  %v2315_v40 = vpop.f32.mrf.mxu0  ;;  %v5453_v44 = vpack.c.bf16 %v5445_v19, %v5445_v19 }
 0x2cf   :  { %8562 = vmatprep.subr.msk.bf16.mxu1 %vm13646_vm5, %v5456_v25  ;;  %v11718_v52 = vadd.f32 %v2358_v11, %v2098_v48  ;;  %v11720_v9 = vadd.f32 %v2315_v40, %v2095_v1  ;;  %vm13649_vm5 = vnez %v13080_v17  ;;  %v529_v25 = vld [vmem:[%s12784_s2 + $0x4c] sm:$0xf] }
 0x2d0   :  { %vm5657_vm3 = vmand %vm13632_vm15, %vm13649_vm5  ;;  %v2317_v48 = vpop.f32.mrf.mxu0  ;;  %vm13653_vm15 = vnez %v13092_v6  ;;  %vm13657_vm5 = vnez %v13097_v45 }
 0x2d1   :  { %8553 = vmatmul.mubr.msk.bf16.vlgmr.msra.gmra.mxu0 %vm13638_vm9, %v528_v7  ;;  %v2360_v7 = vpop.f32.mrf.mxu1  ;;  %vm13650_vm9 = vmmov %vm13647_vm14  ;;  %v11738_v38 = vadd.f32 %v2317_v48, %v11660_v2  ;;  %v5681_v21 = vsel %vm5657_vm3, %v13654_v43, 0.0 }
 0x2d2   :  { %5499 = vmatpush1.bf16.msra.mxu0 %v5461_v60  ;;  %5516 = vmatprep.mubr.bf16.mxu0 %v13057_v0  ;;  %vm13652_vm14 = vmand %vm11470_vm8, %vm13645_vm6  ;;  %v2319_v34 = vpop.f32.mrf.mxu0  ;;  %vm13655_vm8 = vcmask 64512  }
 0x2d3   :  { %8560 = vmatprep.subr.msk.bf16.mxu0 %vm13650_vm9, %v5454_v46  ;;  %v5683_v1 = vsel %vm13652_vm14, %v13651_v62, 0.0  ;;  %v2361_v29 = vpop.f32.mrf.mxu1  ;;  %vm5658_vm9 = vmand %vm13636_vm12, %vm13653_vm15  ;;  %vm13656_vm14 = vcmask 1043456   ;;  %vm13659_vm12 = vnez %v13108_v61  ;;  %v13663_v62 = vld [vmem:[#allocation34_spill] sm:$0xff]  ;;  %v13667_v34 = vld [vmem:[#allocation36_spill] sm:$0xff] }
 0x2d4   :  { %v5479_v2 = vsel %vm13656_vm14, %v5455_v3, 0  ;;  %v5691_v46 = vpack.c.bf16 %v5683_v1, %v5683_v1  ;;  %v2320_v11 = vpop.f32.mrf.mxu0  ;;  %v5682_v60 = vsel %vm5658_vm9, %v13658_v41, 0.0  ;;  %vm5663_vm3 = vmand %vm11565_vm0, %vm13659_vm12  ;;  %vm13671_vm0 = vnez %v13134_v14 }
 0x2d5   :  { %v2530_v24 = vpop.f32.mrf.mxu1  ;;  %8559 = vmatmul.mubr.msk.bf16.vlgmr.msra.gmra.mxu1 %vm13655_vm8, %v529_v25  ;;  %vm13660_vm8 = vmmov %vm13656_vm14  ;;  %vm13661_vm14 = vcmask 64512   ;;  %v5690_v29 = vpack.c.bf16 %v5682_v60, %v5682_v60  ;;  %v5687_v27 = vsel %vm5663_vm3, %v13667_v34, 0.0 }
 0x2d6   :  { %v11755_v40 = vadd.f32 %v2530_v24, %v11674_v5  ;;  %5622 = vmatpush1.bf16.msra.mxu1 %v5479_v2  ;;  %5639 = vmatprep.mubr.bf16.mxu1 %v13057_v0  ;;  %v2489_v19 = vpop.f32.mrf.mxu0  ;;  %vm13662_vm6 = vmmov %vm13660_vm8  ;;  %v5689_v5 = vpack.c.bf16 %v5681_v21, %v5681_v21  ;;  %v13669_v24 = vld [vmem:[#allocation39_spill] sm:$0xff] }
 0x2d7   :  { %8566 = vmatprep.subr.msk.bf16.mxu1 %vm13660_vm8, %v5691_v46  ;;  %v2532_v63 = vpop.f32.mrf.mxu1  ;;  %v5473_v3 = vsel %vm13662_vm6, %v5453_v44, 0  ;;  %v11770_v48 = vadd.f32 %v2489_v19, %v11687_v26  ;;  %vm13664_vm9 = vmand %vm11549_vm11, %vm13657_vm5  ;;  %vm13665_vm8 = vnez %v13114_v13  ;;  %vm13668_vm11 = vnez %v13120_v20 }
 0x2d8   :  { %v11767_v7 = vadd.f32 %v2532_v63, %v11684_v53  ;;  %v5680_v1 = vsel %vm13664_vm9, %v13663_v62, 0.0  ;;  %vm5661_vm6 = vmand %vm11587_vm1, %vm13665_vm8  ;;  %v2491_v26 = vpop.f32.mrf.mxu0  ;;  %v5695_v46 = vpack.c.bf16 %v5687_v27, %v5687_v27  ;;  %vm13670_vm9 = vcmask 64512   ;;  %v530_v27 = vld [vmem:[%s12784_s2 + $0x50] sm:$0xf] }
 0x2d9   :  { %8557 = vmatmul.mubr.msk.bf16.vlgmr.msra.gmra.mxu0 %vm13661_vm14, %v529_v25  ;;  %v2534_v53 = vpop.f32.mrf.mxu1  ;;  %vm13666_vm14 = vcmask 1043456   ;;  %v11791_v44 = vadd.f32 %v2491_v26, %v11698_v37  ;;  %vm5662_vm1 = vmand %vm11614_vm2, %vm13668_vm11  ;;  %v5688_v21 = vpack.c.bf16 %v5680_v1, %v5680_v1  ;;  %v5685_v2 = vsel %vm5661_vm6, %v13669_v24, 0.0  ;;  %v13672_v37 = vld [vmem:[#allocation37_spill] sm:$0xff]  ;;  %v13687_v24 = vld [vmem:[#allocation43_spill] sm:$0xff] }
 0x2da   :  { %5581 = vmatpush1.bf16.msra.mxu0 %v5473_v3  ;;  %5598 = vmatprep.mubr.bf16.mxu0 %v13057_v0  ;;  %v2493_v43 = vpop.f32.mrf.mxu0  ;;  %v5706_v16 = vsel %vm13666_vm14, %v5690_v29, 0  ;;  %v5686_v28 = vsel %vm5662_vm1, %v13672_v37, 0.0  ;;  %v5693_v63 = vpack.c.bf16 %v5685_v2, %v5685_v2  ;;  %vm13673_vm2 = vnez %v13030_v15  ;;  %vm13678_vm3 = vmmov %vm13666_vm14  ;;  %v13679_v53 = vld [vmem:[#allocation38_spill] sm:$0xff] }
 0x2db   :  { %8564 = vmatprep.subr.msk.bf16.mxu0 %vm13666_vm14, %v5689_v5  ;;  %v2535_v31 = vpop.f32.mrf.mxu1  ;;  %vm13674_vm6 = vcmp.le.s32.totalorder %v9302_v55, 6  ;;  %vm13677_vm1 = vcmask 64512   ;;  %v5694_v29 = vpack.c.bf16 %v5686_v28, %v5686_v28  ;;  %v13693_v28 = vld [vmem:[#allocation41_spill] sm:$0xff] }
 0x2dc   :  { %v2494_v41 = vpop.f32.mrf.mxu0 }
 0x2dd   :  { %v2612_v11 = vpop.f32.mrf.mxu1  ;;  %8563 = vmatmul.mubr.msk.bf16.vlgmr.msra.gmra.mxu1 %vm13670_vm9, %v529_v25  ;;  %vm11813_vm9 = vmand %vm13674_vm6, %vm13673_vm2  ;;  %vm13683_vm2 = vcmask 1043456  }
 0x2de   :  { %v11806_v60 = vadd.f32 %v2612_v11, %v11708_v22  ;;  %5779 = vmatpush1.bf16.msra.mxu1 %v5706_v16  ;;  %5796 = vmatprep.mubr.bf16.mxu1 %v13057_v0  ;;  %v2571_v5 = vpop.f32.mrf.mxu0  ;;  %v5700_v22 = vsel %vm13678_vm3, %v5688_v21, 0  ;;  %vm13680_vm6 = vmand %vm11636_vm13, %vm13671_vm0  ;;  %vm13682_vm3 = vcmp.le.s32.totalorder %v9311_v59, 6  ;;  %vm13685_vm13 = vnez %v13039_v10 }
 0x2df   :  { %8570 = vmatprep.subr.msk.bf16.mxu1 %vm13666_vm14, %v5695_v46  ;;  %v2614_v3 = vpop.f32.mrf.mxu1  ;;  %v11824_v1 = vadd.f32 %v2571_v5, %v11720_v9  ;;  %v5684_v26 = vsel %vm13680_vm6, %v13679_v53, 0.0  ;;  %vm13681_vm14 = vnez %v13022_v42  ;;  %vm13686_vm6 = vcmp.le.s32.totalorder %v9307_v57, 6 }
 0x2e0   :  { %v11821_v62 = vadd.f32 %v2614_v3, %v11718_v52  ;;  %v2573_v9 = vpop.f32.mrf.mxu0  ;;  %v5692_v21 = vpack.c.bf16 %v5684_v26, %v5684_v26 }
 0x2e1   :  { %8561 = vmatmul.mubr.msk.bf16.vlgmr.msra.gmra.mxu0 %vm13677_vm1, %v529_v25  ;;  %vm5896_vm1 = vmand %vm13682_vm3, %vm13681_vm14  ;;  %v2616_v52 = vpop.f32.mrf.mxu1  ;;  %v13684_v25 = vld [vmem:[#allocation48_spill] sm:$0xff]  ;;  %v11842_v23 = vadd.f32 %v2573_v9, %v11738_v38  ;;  %vm13688_vm3 = vcmask 64512   ;;  %vm13690_vm14 = vcmp.le.s32.totalorder %v9422_v36, 6 }
 0x2e2   :  { %5738 = vmatpush1.bf16.msra.mxu0 %v5700_v22  ;;  %5755 = vmatprep.mubr.bf16.mxu0 %v13057_v0  ;;  %v5922_v34 = vsel %vm11813_vm9, %v13684_v25, 0.0  ;;  %v2575_v43 = vpop.f32.mrf.mxu0  ;;  %v5920_v2 = vsel %vm5896_vm1, %v13687_v24, 0.0  ;;  %vm13689_vm9 = vcmask 1043456   ;;  %vm11858_vm0 = vmand %vm13690_vm14, %vm13594_vm10  ;;  %vm13694_vm1 = vcmp.le.s32.totalorder %v9437_v51, 6 }
 0x2e3   :  { %8568 = vmatprep.subr.msk.bf16.mxu0 %vm13683_vm2, %v5693_v63  ;;  %v2617_v31 = vpop.f32.mrf.mxu1  ;;  %vm5897_vm2 = vmand %vm13686_vm6, %vm13685_vm13  ;;  %v5718_v38 = vsel %vm13689_vm9, %v5694_v29, 0  ;;  %v5930_v11 = vpack.c.bf16 %v5922_v34, %v5922_v34  ;;  %v5928_v22 = vpack.c.bf16 %v5920_v2, %v5920_v2  ;;  %v13698_v29 = vld [vmem:[#allocation42_spill] sm:$0xff]  ;;  %v13702_v34 = vld [vmem:[#allocation44_spill] sm:$0xff] }
 0x2e4   :  { %v2576_v16 = vpop.f32.mrf.mxu0  ;;  %v5921_v63 = vsel %vm5897_vm2, %v13693_v28, 0.0  ;;  %vm11871_vm6 = vmand %vm13694_vm1, %vm13503_vm7  ;;  %v5919_v52 = vsel %vm11858_vm0, %v13698_v29, 0.0  ;;  %vm13699_vm2 = vnez %v13018_v35  ;;  %vm13700_vm1 = vcmp.le.s32.totalorder %v9435_v50, 6  ;;  %v13704_v2 = vld [vmem:[#allocation47_spill] sm:$0xff] }
 0x2e5   :  { %v2794_v46 = vpop.f32.mrf.mxu1  ;;  %8567 = vmatmul.mubr.msk.bf16.vlgmr.msra.gmra.mxu1 %vm13688_vm3, %v530_v27  ;;  %vm13697_vm14 = vmmov %vm13689_vm9  ;;  %v5929_v25 = vpack.c.bf16 %v5921_v63, %v5921_v63  ;;  %vm13703_vm0 = vcmp.le.s32.totalorder %v13600_v18, 6  ;;  %v5927_v24 = vpack.c.bf16 %v5919_v52, %v5919_v52 }
 0x2e6   :  { %v11863_v37 = vadd.f32 %v2794_v46, %v11755_v40  ;;  %5861 = vmatpush1.bf16.msra.mxu1 %v5718_v38  ;;  %5878 = vmatprep.mubr.bf16.mxu1 %v13057_v0  ;;  %v2753_v5 = vpop.f32.mrf.mxu0  ;;  %v5712_v40 = vsel %vm13689_vm9, %v5692_v21, 0 }
 0x2e7   :  { %8574 = vmatprep.subr.msk.bf16.mxu1 %vm13697_vm14, %v5930_v11  ;;  %v2796_v3 = vpop.f32.mrf.mxu1  ;;  %v11882_v26 = vadd.f32 %v2753_v5, %v11770_v48  ;;  %vm5900_vm14 = vmand %vm13700_vm1, %vm13699_vm2  ;;  %v5926_v48 = vsel %vm11871_vm6, %v13702_v34, 0.0  ;;  %vm13705_vm1 = vcmask 64512   ;;  %vm13706_vm6 = vnez %v13067_v8  ;;  %v13714_v34 = vld [vmem:[#allocation56_spill] sm:$0xff] }
 0x2e8   :  { %v11879_v53 = vadd.f32 %v2796_v3, %v11767_v7  ;;  %v2755_v7 = vpop.f32.mrf.mxu0  ;;  %v5924_v46 = vsel %vm5900_vm14, %v13704_v2, 0.0  ;;  %v5934_v38 = vpack.c.bf16 %v5926_v48, %v5926_v48  ;;  %vm13707_vm2 = vcmp.le.s32.totalorder %v13611_v33, 6 }
 0x2e9   :  { %8565 = vmatmul.mubr.msk.bf16.vlgmr.msra.gmra.mxu0 %vm13688_vm3, %v530_v27  ;;  %v2798_v9 = vpop.f32.mrf.mxu1  ;;  %vm13701_vm3 = vmmov %vm13689_vm9  ;;  %v11897_v31 = vadd.f32 %v2755_v7, %v11791_v44  ;;  %v13708_v44 = vld [vmem:[#allocation45_spill] sm:$0xff]  ;;  %v5932_v19 = vpack.c.bf16 %v5924_v46, %v5924_v46 }
 0x2ea   :  { %5820 = vmatpush1.bf16.msra.mxu0 %v5712_v40  ;;  %5837 = vmatprep.mubr.bf16.mxu0 %v13057_v0  ;;  %vm5901_vm9 = vmand %vm13703_vm0, %vm13458_vm4  ;;  %v2757_v21 = vpop.f32.mrf.mxu0  ;;  %v5945_v16 = vsel %vm13701_vm3, %v5929_v25, 0 }
 0x2eb   :  { %8572 = vmatprep.subr.msk.bf16.mxu0 %vm13701_vm3, %v5928_v22  ;;  %v2799_v43 = vpop.f32.mrf.mxu1  ;;  %vm5899_vm7 = vmand %vm13707_vm2, %vm13706_vm6  ;;  %v5925_v28 = vsel %vm5901_vm9, %v13708_v44, 0.0  ;;  %vm13715_vm9 = vcmp.le.s32.totalorder %v9302_v55, 6 }
 0x2ec   :  { %v2758_v41 = vpop.f32.mrf.mxu0  ;;  %vm13709_vm14 = vmmov %vm13701_vm3  ;;  %v5933_v9 = vpack.c.bf16 %v5925_v28, %v5925_v28 }
 0x2ed   :  { %v2876_v11 = vpop.f32.mrf.mxu1  ;;  %8571 = vmatmul.mubr.msk.bf16.vlgmr.msra.gmra.mxu1 %vm13705_vm1, %v530_v27  ;;  %vm13710_vm0 = vmmov %vm13705_vm1  ;;  %v13720_v41 = vld [vmem:[#allocation49_spill] sm:$0xff] }
 0x2ee   :  { %v2889_v63 = vadd.f32 %v2876_v11, %v11806_v60  ;;  %6018 = vmatpush1.bf16.msra.mxu1 %v5945_v16  ;;  %6035 = vmatprep.mubr.bf16.mxu1 %v13057_v0  ;;  %v2835_v5 = vpop.f32.mrf.mxu0  ;;  %vm13711_vm1 = vmmov %vm13701_vm3  ;;  %v13712_v60 = vld [vmem:[#allocation46_spill] sm:$0xff] }
 0x2ef   :  { %8578 = vmatprep.subr.msk.bf16.mxu1 %vm13709_vm14, %v5934_v38  ;;  %v2878_v3 = vpop.f32.mrf.mxu1  ;;  %v5939_v40 = vsel %vm13711_vm1, %v5927_v24, 0  ;;  %v2887_v29 = vadd.f32 %v2835_v5, %v11824_v1  ;;  %v5923_v52 = vsel %vm5899_vm7, %v13712_v60, 0.0  ;;  %vm13713_vm2 = vmmov %vm13711_vm1  ;;  %v13716_v24 = vld [vmem:[#allocation51_spill] sm:$0xff]  ;;  %vm13717_vm7 = vcmp.le.s32.totalorder %v9311_v59, 6  ;;  %v13724_v60 = vld [vmem:[#allocation50_spill] sm:$0xff] }
 0x2f0   :  { %v2890_v22 = vadd.f32 %v2878_v3, %v11821_v62  ;;  %v2837_v25 = vpop.f32.mrf.mxu0  ;;  %v531_v62 = vld [vmem:[%s12784_s2 + $0x54] sm:$0xf]  ;;  %v5931_v21 = vpack.c.bf16 %v5923_v52, %v5923_v52  ;;  %v6151_v2 = vsel %vm13717_vm7, %v13716_v24, 0.0  ;;  %vm13718_vm3 = vmmov %vm13710_vm0  ;;  %vm13725_vm7 = vcmp.le.s32.totalorder %v9422_v36, 6 }
 0x2f1   :  { %8569 = vmatmul.mubr.msk.bf16.vlgmr.msra.gmra.mxu0 %vm13710_vm0, %v530_v27  ;;  %v2880_v7 = vpop.f32.mrf.mxu1  ;;  %v6153_v27 = vsel %vm13715_vm9, %v13714_v34, 0.0  ;;  %v11925_v48 = vadd.f32 %v2837_v25, %v11842_v23  ;;  %vm13719_vm14 = vmmov %vm13711_vm1  ;;  %vm13721_vm0 = vcmp.le.s32.totalorder %v9307_v57, 6  ;;  %v6159_v5 = vpack.c.bf16 %v6151_v2, %v6151_v2  ;;  %v13727_v34 = vld [vmem:[#allocation52_spill] sm:$0xff] }
 0x2f2   :  { %5977 = vmatpush1.bf16.msra.mxu0 %v5939_v40  ;;  %5994 = vmatprep.mubr.bf16.mxu0 %v13057_v0  ;;  %v2839_v43 = vpop.f32.mrf.mxu0  ;;  %v5957_v38 = vsel %vm13719_vm14, %v5933_v9, 0  ;;  %v6161_v11 = vpack.c.bf16 %v6153_v27, %v6153_v27  ;;  %v6152_v44 = vsel %vm13721_vm0, %v13720_v41, 0.0  ;;  %vm13723_vm9 = vmmov %vm13711_vm1  ;;  %v6150_v52 = vsel %vm13725_vm7, %v13724_v60, 0.0 }
 0x2f3   :  { %8576 = vmatprep.subr.msk.bf16.mxu0 %vm13713_vm2, %v5932_v19  ;;  %v2881_v1 = vpop.f32.mrf.mxu1  ;;  %vm13722_vm2 = vmmov %vm13718_vm3  ;;  %v5951_v3 = vsel %vm13723_vm9, %v5931_v21, 0  ;;  %v6160_v25 = vpack.c.bf16 %v6152_v44, %v6152_v44  ;;  %vm13728_vm14 = vcmp.le.s32.totalorder %v9437_v51, 6  ;;  %v6158_v43 = vpack.c.bf16 %v6150_v52, %v6150_v52  ;;  %v13729_v21 = vld [vmem:[#allocation55_spill] sm:$0xff]  ;;  %v13741_v52 = vld [vmem:[#allocation54_spill] sm:$0xff] }
 0x2f4   :  { %v2840_v16 = vpop.f32.mrf.mxu0  ;;  %vm13730_vm0 = vcmp.le.s32.totalorder %v9435_v50, 6  ;;  %vm13734_vm9 = vcmp.le.s32.totalorder %v13600_v18, 6  ;;  %vm13735_vm7 = vnez %v13083_v12 }
 0x2f5   :  { %v3058_v46 = vpop.f32.mrf.mxu1  ;;  %8575 = vmatmul.mubr.msk.bf16.vlgmr.msra.gmra.mxu1 %vm13718_vm3, %v531_v62  ;;  %vm13726_vm3 = vmmov %vm13711_vm1  ;;  %v6155_v24 = vsel %vm13730_vm0, %v13729_v21, 0.0  ;;  %v13733_v16 = vld [vmem:[#allocation53_spill] sm:$0xff]  ;;  %v13748_v21 = vld [vmem:[#allocation59_spill] sm:$0xff] }
 0x2f6   :  { %v11936_v23 = vadd.f32 %v3058_v46, %v11863_v37  ;;  %6100 = vmatpush1.bf16.msra.mxu1 %v5957_v38  ;;  %6117 = vmatprep.mubr.bf16.mxu1 %v13057_v0  ;;  %v3017_v19 = vpop.f32.mrf.mxu0  ;;  %v6156_v41 = vsel %vm13734_vm9, %v13733_v16, 0.0  ;;  %v6163_v44 = vpack.c.bf16 %v6155_v24, %v6155_v24  ;;  %vm13742_vm9 = vcmp.le.s32.totalorder %v13611_v33, 6 }
 0x2f7   :  { %8582 = vmatprep.subr.msk.bf16.mxu1 %vm13711_vm1, %v6161_v11  ;;  %v3060_v28 = vpop.f32.mrf.mxu1  ;;  %v11949_v37 = vadd.f32 %v3017_v19, %v11882_v26  ;;  %vm13731_vm1 = vmmov %vm13722_vm2 }
 0x2f8   :  { %v11946_v40 = vadd.f32 %v3060_v28, %v11879_v53  ;;  %v3019_v7 = vpop.f32.mrf.mxu0  ;;  %v6157_v53 = vsel %vm13728_vm14, %v13727_v34, 0.0 }
 0x2f9   :  { %8573 = vmatmul.mubr.msk.bf16.vlgmr.msra.gmra.mxu0 %vm13722_vm2, %v531_v62  ;;  %v3062_v9 = vpop.f32.mrf.mxu1  ;;  %v11960_v27 = vadd.f32 %v3019_v7, %v11897_v31  ;;  %v6165_v2 = vpack.c.bf16 %v6157_v53, %v6157_v53  ;;  %vm13732_vm2 = vmmov %vm13726_vm3  ;;  %v6164_v7 = vpack.c.bf16 %v6156_v41, %v6156_v41  ;;  %v532_v53 = vld [vmem:[%s12784_s2 + $0x58] sm:$0xf]  ;;  %v13754_v41 = vld [vmem:[#allocation57_spill] sm:$0xff] }
 0x2fa   :  { %6059 = vmatpush1.bf16.msra.mxu0 %v5951_v3  ;;  %6076 = vmatprep.mubr.bf16.mxu0 %v13057_v0  ;;  %v3021_v1 = vpop.f32.mrf.mxu0  ;;  %v6176_v38 = vsel %vm13732_vm2, %v6160_v25, 0  ;;  %vm13739_vm0 = vmmov %vm13732_vm2  ;;  %v6154_v9 = vsel %vm13742_vm9, %v13741_v52, 0.0  ;;  %v13746_v25 = vld [vmem:[#allocation64_spill] sm:$0xff] }
 0x2fb   :  { %8580 = vmatprep.subr.msk.bf16.mxu0 %vm13726_vm3, %v6159_v5  ;;  %v3063_v26 = vpop.f32.mrf.mxu1  ;;  %vm13736_vm3 = vcmp.le.s32.totalorder %v9302_v55, 6  ;;  %vm13740_vm2 = vmmov %vm13739_vm0 }
 0x2fc   :  { %v3022_v11 = vpop.f32.mrf.mxu0  ;;  %vm11977_vm14 = vmand %vm13736_vm3, %vm13735_vm7  ;;  %vm13743_vm3 = vnez %v13080_v17 }
 0x2fd   :  { %v3140_v46 = vpop.f32.mrf.mxu1  ;;  %8579 = vmatmul.mubr.msk.bf16.vlgmr.msra.gmra.mxu1 %vm13731_vm1, %v531_v62 }
 0x2fe   :  { %v11970_v31 = vadd.f32 %v3140_v46, %v2889_v63  ;;  %6249 = vmatpush1.bf16.msra.mxu1 %v6176_v38  ;;  %6266 = vmatprep.mubr.bf16.mxu1 %v13057_v0  ;;  %v3099_v3 = vpop.f32.mrf.mxu0  ;;  %v6170_v63 = vsel %vm13740_vm2, %v6158_v43, 0  ;;  %v6162_v43 = vpack.c.bf16 %v6154_v9, %v6154_v9 }
 0x2ff   :  { %8586 = vmatprep.subr.msk.bf16.mxu1 %vm13739_vm0, %v6165_v2  ;;  %v3142_v19 = vpop.f32.mrf.mxu1  ;;  %v11986_v60 = vadd.f32 %v3099_v3, %v2887_v29  ;;  %vm13744_vm0 = vcmp.le.s32.totalorder %v9311_v59, 6  ;;  %v6392_v29 = vsel %vm11977_vm14, %v13746_v25, 0.0 }
 0x300   :  { %v11984_v5 = vadd.f32 %v3142_v19, %v2890_v22  ;;  %vm6366_vm7 = vmand %vm13744_vm0, %vm13743_vm3  ;;  %v3101_v22 = vpop.f32.mrf.mxu0  ;;  %vm13749_vm0 = vcmask 64512   ;;  %v6400_v46 = vpack.c.bf16 %v6392_v29, %v6392_v29  ;;  %v13763_v29 = vld [vmem:[#allocation60_spill] sm:$0xff] }
 0x301   :  { %8577 = vmatmul.mubr.msk.bf16.vlgmr.msra.gmra.mxu0 %vm13731_vm1, %v531_v62  ;;  %v3144_v62 = vpop.f32.mrf.mxu1  ;;  %vm13745_vm1 = vmmov %vm13740_vm2  ;;  %v12001_v34 = vadd.f32 %v3101_v22, %v11925_v48  ;;  %vm13747_vm2 = vcmp.le.s32.totalorder %v9307_v57, 6  ;;  %v6390_v24 = vsel %vm6366_vm7, %v13748_v21, 0.0  ;;  %vm13755_vm7 = vcmp.le.s32.totalorder %v9437_v51, 6 }
 0x302   :  { %6208 = vmatpush1.bf16.msra.mxu0 %v6170_v63  ;;  %6225 = vmatprep.mubr.bf16.mxu0 %v13057_v0  ;;  %v3103_v1 = vpop.f32.mrf.mxu0  ;;  %vm6367_vm9 = vmand %vm13747_vm2, %vm13653_vm15  ;;  %v6398_v63 = vpack.c.bf16 %v6390_v24, %v6390_v24  ;;  %v13765_v24 = vld [vmem:[#allocation63_spill] sm:$0xff]  ;;  %vm13805_vm15 = vcmp.le.s32.totalorder %v9435_v50, 6 }
 0x303   :  { %8584 = vmatprep.subr.msk.bf16.mxu0 %vm13745_vm1, %v6163_v44  ;;  %v3145_v26 = vpop.f32.mrf.mxu1  ;;  %vm13750_vm14 = vmmov %vm13745_vm1  ;;  %vm13751_vm1 = vcmp.le.s32.totalorder %v9422_v36, 6  ;;  %v6391_v44 = vsel %vm6367_vm9, %v13754_v41, 0.0  ;;  %vm13762_vm9 = vcmp.le.s32.totalorder %v9435_v50, 6  ;;  %v13817_v41 = vld [vmem:[#allocation66_spill] sm:$0xff] }
 0x304   :  { %v6188_v48 = vsel %vm13750_vm14, %v6164_v7, 0  ;;  %v3104_v38 = vpop.f32.mrf.mxu0  ;;  %vm12017_vm3 = vmand %vm13751_vm1, %vm13657_vm5  ;;  %v13761_v7 = vld [vmem:[#allocation58_spill] sm:$0xff]  ;;  %v6399_v25 = vpack.c.bf16 %v6391_v44, %v6391_v44  ;;  %v13779_v44 = vmov 0 }
 0x305   :  { %v3314_v2 = vpop.f32.mrf.mxu1  ;;  %8583 = vmatmul.mubr.msk.bf16.vlgmr.msra.gmra.mxu1 %vm13749_vm0, %v532_v53  ;;  %vm12030_vm2 = vmand %vm13755_vm7, %vm13659_vm12  ;;  %v6389_v62 = vsel %vm12017_vm3, %v13761_v7, 0.0  ;;  %vm13764_vm3 = vcmp.le.s32.totalorder %v13600_v18, 6 }
 0x306   :  { %v12022_v16 = vadd.f32 %v3314_v2, %v11936_v23  ;;  %6331 = vmatpush1.bf16.msra.mxu1 %v6188_v48  ;;  %6348 = vmatprep.mubr.bf16.mxu1 %v13057_v0  ;;  %vm13758_vm0 = vmmov %vm13750_vm14  ;;  %v3273_v3 = vpop.f32.mrf.mxu0  ;;  %vm13759_vm14 = vcmask 64512   ;;  %v6397_v21 = vpack.c.bf16 %v6389_v62, %v6389_v62  ;;  %v13859_v48 = vld [vmem:[#allocation83_spill] sm:$0xff] }
 0x307   :  { %8590 = vmatprep.subr.msk.bf16.mxu1 %vm13758_vm0, %v6400_v46  ;;  %v3316_v19 = vpop.f32.mrf.mxu1  ;;  %vm13760_vm1 = vmmov %vm13758_vm0  ;;  %v12041_v9 = vadd.f32 %v3273_v3, %v11949_v37  ;;  %v6396_v37 = vsel %vm12030_vm2, %v13763_v29, 0.0  ;;  %vm13770_vm2 = vcmask 64512  }
 0x308   :  { %v6182_v23 = vsel %vm13760_vm1, %v6162_v43, 0  ;;  %v12038_v52 = vadd.f32 %v3316_v19, %v11946_v40  ;;  %vm6370_vm7 = vmand %vm13762_vm9, %vm13665_vm8  ;;  %v3275_v40 = vpop.f32.mrf.mxu0  ;;  %vm13766_vm1 = vcmp.le.s32.totalorder %v9300_v54, 6  ;;  %vm13767_vm9 = vcmp.le.s32.totalorder %v9302_v55, 6  ;;  %v13776_v54 = vld [vmem:[#allocation61_spill] sm:$0xff] }
 0x309   :  { %8581 = vmatmul.mubr.msk.bf16.vlgmr.msra.gmra.mxu0 %vm13759_vm14, %v532_v53  ;;  %v3318_v22 = vpop.f32.mrf.mxu1  ;;  %v12056_v26 = vadd.f32 %v3275_v40, %v11960_v27  ;;  %vm6371_vm14 = vmand %vm13764_vm3, %vm13668_vm11  ;;  %v6394_v2 = vsel %vm6370_vm7, %v13765_v24, 0.0  ;;  %v6404_v27 = vpack.c.bf16 %v6396_v37, %v6396_v37  ;;  %vm13771_vm8 = vcmask 1043456  }
 0x30a   :  { %6290 = vmatpush1.bf16.msra.mxu0 %v6182_v23  ;;  %6307 = vmatprep.mubr.bf16.mxu0 %v13057_v0  ;;  %v3277_v43 = vpop.f32.mrf.mxu0  ;;  %v6415_v38 = vsel %vm13771_vm8, %v6399_v25, 0  ;;  %vm13772_vm3 = vnez %v13134_v14  ;;  %vm13773_vm11 = vcmp.le.s32.totalorder %v13611_v33, 6  ;;  %v6395_v55 = vsel %vm6371_vm14, %v13776_v54, 0.0  ;;  %v13791_v22 = vld [vmem:[#allocation72_spill] sm:$0xff] }
 0x30b   :  { %8588 = vmatprep.subr.msk.bf16.mxu0 %vm13758_vm0, %v6398_v63  ;;  %v3319_v1 = vpop.f32.mrf.mxu1  ;;  %vm12067_vm0 = vmand %vm13767_vm9, %vm13766_vm1  ;;  %vm13777_vm1 = vcmp.le.s32.totalorder %v9309_v58, 6  ;;  %vm13778_vm9 = vcmp.le.s32.totalorder %v9311_v59, 6  ;;  %v6402_v19 = vpack.c.bf16 %v6394_v2, %v6394_v2  ;;  %vm13781_vm8 = vnez %v13030_v15  ;;  %v13784_v63 = vld [vmem:[#allocation62_spill] sm:$0xff] }
 0x30c   :  { %v3278_v11 = vpop.f32.mrf.mxu0  ;;  %vm12077_vm7 = vmand %vm13773_vm11, %vm13772_vm3  ;;  %vm13782_vm14 = vcmask 1043456   ;;  %vm13790_vm3 = vcmask 1043456  }
 0x30d   :  { %v3396_v46 = vpop.f32.mrf.mxu1  ;;  %8587 = vmatmul.mubr.msk.bf16.vlgmr.msra.gmra.mxu1 %vm13770_vm2, %v532_v53  ;;  %vm12086_vm12 = vmand %vm13778_vm9, %vm13777_vm1  ;;  %v6393_v7 = vsel %vm12077_vm7, %v13784_v63, 0.0  ;;  %vm13785_vm9 = vcmp.le.s32.totalorder %v9305_v56, 6  ;;  %v13827_v63 = vld [vmem:[#allocation71_spill] sm:$0xff] }
 0x30e   :  { %v13780_v44 = vsel %vm12086_vm12, 4294967295, %v13779_v44  ;;  %v12091_v28 = vadd.f32 %v3396_v46, %v11970_v31  ;;  %6488 = vmatpush1.bf16.msra.mxu1 %v6415_v38  ;;  %6505 = vmatprep.mubr.bf16.mxu1 %v13057_v0  ;;  %v3355_v59 = vpop.f32.mrf.mxu0  ;;  %vm13783_vm1 = vmmov %vm13782_vm14  ;;  %v6401_v15 = vpack.c.bf16 %v6393_v7, %v6393_v7 }
 0x30f   :  { %8594 = vmatprep.subr.msk.bf16.mxu1 %vm13782_vm14, %v6404_v27  ;;  %v3398_v58 = vpop.f32.mrf.mxu1  ;;  %v6409_v3 = vsel %vm13783_vm1, %v6397_v21, 0  ;;  %v12105_v23 = vadd.f32 %v3355_v59, %v11986_v60  ;;  %vm13786_vm14 = vcmp.le.s32.totalorder %v9307_v57, 6  ;;  %vm13789_vm1 = vnez %v13022_v42  ;;  %vm13792_vm7 = vmand %vm12067_vm0, %vm13781_vm8  ;;  %v533_v42 = vld [vmem:[%s12784_s2 + $0x5c] sm:$0xf]  ;;  %v13808_v21 = vld [vmem:[#allocation65_spill] sm:$0xff] }
 0x310   :  { %v12102_v31 = vadd.f32 %v3398_v58, %v11984_v5  ;;  %v6403_v5 = vpack.c.bf16 %v6395_v55, %v6395_v55  ;;  %vm6613_vm11 = vmand %vm12086_vm12, %vm13789_vm1  ;;  %v3357_v62 = vpop.f32.mrf.mxu0  ;;  %v6639_v56 = vsel %vm13792_vm7, %v13791_v22, 0.0  ;;  %vm13798_vm1 = vcmp.le.s32.totalorder %v9430_v47, 6  ;;  %v13812_v27 = vld [vmem:[#allocation16_spill] sm:$0xff]  ;;  %v13822_v58 = vld [vmem:[#allocation18_spill] sm:$0xff] }
 0x311   :  { %8585 = vmatmul.mubr.msk.bf16.vlgmr.msra.gmra.mxu0 %vm13770_vm2, %v532_v53  ;;  %vm12115_vm2 = vmand %vm13786_vm14, %vm13785_vm9  ;;  %v13787_v53 = vmov 0  ;;  %v3400_v60 = vpop.f32.mrf.mxu1  ;;  %v12131_v57 = vadd.f32 %v3357_v62, %v12001_v34  ;;  %vm13793_vm9 = vcmp.le.s32.totalorder %v9426_v39, 6  ;;  %vm13794_vm14 = vcmp.le.s32.totalorder %v9422_v36, 6  ;;  %v13797_v34 = vld [vmem:[#allocation67_spill] sm:$0xff]  ;;  %v13821_v55 = vld [vmem:[#allocation68_spill] sm:$0xff] }
 0x312   :  { %6447 = vmatpush1.bf16.msra.mxu0 %v6409_v3  ;;  %6464 = vmatprep.mubr.bf16.mxu0 %v13057_v0  ;;  %v13788_v53 = vsel %vm12115_vm2, 4294967295, %v13787_v53  ;;  %v3359_v29 = vpop.f32.mrf.mxu0  ;;  %vm6614_vm8 = vmand %vm12115_vm2, %vm13685_vm13  ;;  %v6637_v37 = vsel %vm6613_vm11, %v13797_v34, 0.0  ;;  %vm13799_vm7 = vcmp.le.s32.totalorder %v9437_v51, 6  ;;  %v6647_v43 = vpack.c.bf16 %v6639_v56, %v6639_v56 }
 0x313   :  { %8592 = vmatprep.subr.msk.bf16.mxu0 %vm13790_vm3, %v6402_v19  ;;  %vm12140_vm3 = vmand %vm13794_vm14, %vm13793_vm9  ;;  %v3401_v25 = vpop.f32.mrf.mxu1  ;;  %vm13802_vm9 = vcmask 64512   ;;  %vm13803_vm14 = vcmask 1043456   ;;  %vm13804_vm11 = vcmp.le.s32.totalorder %v9433_v49, 6  ;;  %v6638_v24 = vsel %vm6614_vm8, %v13808_v21, 0.0 }
 0x314   :  { %vm12153_vm5 = vmand %vm13799_vm7, %vm13798_vm1  ;;  %v6427_v1 = vsel %vm13803_vm14, %v6403_v5, 0  ;;  %v3360_v10 = vpop.f32.mrf.mxu0  ;;  %vm13809_vm7 = vnez %v13033_v30  ;;  %vm13813_vm13 = vcmp.le.s32.totalorder %v13812_v27, 6  ;;  %vm13814_vm2 = vcmp.le.s32.totalorder %v13600_v18, 6 }
 0x315   :  { %v3578_v39 = vpop.f32.mrf.mxu1  ;;  %8591 = vmatmul.mubr.msk.bf16.vlgmr.msra.gmra.mxu1 %vm13802_vm9, %v533_v42  ;;  %vm12167_vm1 = vmand %vm13805_vm15, %vm13804_vm11  ;;  %vm13810_vm15 = vcmask 64512   ;;  %v6646_v54 = vpack.c.bf16 %v6638_v24, %v6638_v24  ;;  %v13836_v10 = vld [vmem:[#allocation80_spill] sm:$0xff] }
 0x316   :  { %v12172_v51 = vadd.f32 %v3578_v39, %v12022_v16  ;;  %6570 = vmatpush1.bf16.msra.mxu1 %v6427_v1  ;;  %6587 = vmatprep.mubr.bf16.mxu1 %v13057_v0  ;;  %vm6619_vm9 = vmand %vm12153_vm5, %vm13809_vm7  ;;  %v3537_v50 = vpop.f32.mrf.mxu0  ;;  %v6645_v16 = vpack.c.bf16 %v6637_v37, %v6637_v37  ;;  %vm13828_vm7 = vcmask 64512  }
 0x317   :  { %8598 = vmatprep.subr.msk.bf16.mxu1 %vm13803_vm14, %v6647_v43  ;;  %v3580_v49 = vpop.f32.mrf.mxu1  ;;  %vm13811_vm11 = vmmov %vm13803_vm14  ;;  %v12195_v11 = vadd.f32 %v3537_v50, %v12041_v9  ;;  %v6643_v19 = vsel %vm6619_vm9, %v13821_v55, 0.0  ;;  %v13837_v50 = vld [vmem:[#allocation75_spill] sm:$0xff] }
 0x318   :  { %v6421_v2 = vsel %vm13811_vm11, %v6401_v15, 0  ;;  %vm12187_vm12 = vmand %vm13814_vm2, %vm13813_vm13  ;;  %v12192_v38 = vadd.f32 %v3580_v49, %v12038_v52  ;;  %vm13819_vm2 = vnez %v13018_v35  ;;  %v3539_v9 = vpop.f32.mrf.mxu0 }
 0x319   :  { %8589 = vmatmul.mubr.msk.bf16.vlgmr.msra.gmra.mxu0 %vm13810_vm15, %v533_v42  ;;  %vm13818_vm8 = vmand %vm12140_vm3, %vm13594_vm10  ;;  %v3582_v52 = vpop.f32.mrf.mxu1  ;;  %v12216_v4 = vadd.f32 %v3539_v9, %v12056_v26  ;;  %vm13823_vm10 = vcmp.le.s32.totalorder %v13822_v58, 6  ;;  %vm13824_vm15 = vcmp.le.s32.totalorder %v13611_v33, 6  ;;  %v6651_v26 = vpack.c.bf16 %v6643_v19, %v6643_v19 }
 0x31a   :  { %6529 = vmatpush1.bf16.msra.mxu0 %v6421_v2  ;;  %6546 = vmatprep.mubr.bf16.mxu0 %v13057_v0  ;;  %v6636_v18 = vsel %vm13818_vm8, %v13817_v41, 0.0  ;;  %vm6617_vm13 = vmand %vm12167_vm1, %vm13819_vm2  ;;  %v3541_v30 = vpop.f32.mrf.mxu0  ;;  %v13841_v52 = vld [vmem:[#allocation73_spill] sm:$0xff] }
 0x31b   :  { %vm13820_vm14 = vmmov %vm13811_vm11  ;;  %v3583_v59 = vpop.f32.mrf.mxu1  ;;  %v6644_v3 = vpack.c.bf16 %v6636_v18, %v6636_v18  ;;  %v6641_v7 = vsel %vm6617_vm13, %v13827_v63, 0.0  ;;  %v13845_v30 = vld [vmem:[#allocation74_spill] sm:$0xff] }
 0x31c   :  { %8596 = vmatprep.subr.msk.bf16.mxu0 %vm13820_vm14, %v6645_v16  ;;  %vm12222_vm11 = vmand %vm13824_vm15, %vm13823_vm10  ;;  %v3542_v60 = vpop.f32.mrf.mxu0  ;;  %v6649_v56 = vpack.c.bf16 %v6641_v7, %v6641_v7  ;;  %vm13838_vm10 = vnez %v13780_v44 }
 0x31d   :  { %vm6618_vm8 = vmand %vm12187_vm12, %vm13458_vm4  ;;  %v3660_v5 = vpop.f32.mrf.mxu1  ;;  %8595 = vmatmul.mubr.msk.bf16.vlgmr.msra.gmra.mxu1 %vm13828_vm7, %v533_v42  ;;  %v6868_v2 = vsel %vm13838_vm10, %v13837_v50, 0.0 }
 0x31e   :  { %vm13829_vm9 = vmmov %vm13820_vm14  ;;  %v6642_v62 = vsel %vm6618_vm8, %v13830_v32, 0.0  ;;  %v3673_v22 = vadd.f32 %v3660_v5, %v12091_v28  ;;  %6752 = vmatprep.mubr.bf16.mxu1 %v13057_v0  ;;  %v3619_v29 = vpop.f32.mrf.mxu0  ;;  %v13834_v28 = vld [vmem:[#allocation70_spill] sm:$0xff]  ;;  %v6876_v58 = vpack.c.bf16 %v6868_v2, %v6868_v2  ;;  %v13847_v5 = vld [vmem:[#allocation76_spill] sm:$0xff] }
 0x31f   :  { %v6662_v33 = vsel %vm13829_vm9, %v6646_v54, 0  ;;  %vm6616_vm2 = vmand %vm12222_vm11, %vm13706_vm6  ;;  %v3662_v25 = vpop.f32.mrf.mxu1  ;;  %v3671_v34 = vadd.f32 %v3619_v29, %v12105_v23  ;;  %v6650_v39 = vpack.c.bf16 %v6642_v62, %v6642_v62  ;;  %v13848_v62 = vld [vmem:[#allocation79_spill] sm:$0xff]  ;;  %v13857_v2 = vld [vmem:[#allocation88_spill] sm:$0xff] }
 0x320   :  { %6735 = vmatpush1.bf16.msra.mxu1 %v6662_v33  ;;  %vm13831_vm4 = vmmov %vm13829_vm9  ;;  %v3674_v8 = vadd.f32 %v3662_v25, %v12102_v31  ;;  %v6640_v37 = vsel %vm6616_vm2, %v13834_v28, 0.0  ;;  %v3621_v43 = vpop.f32.mrf.mxu0  ;;  %v534_v31 = vld [vmem:[%s12784_s2 + $0x60] sm:$0xf] }
 0x321   :  { %8602 = vmatprep.subr.msk.bf16.mxu1 %vm13831_vm4, %v6651_v26  ;;  %vm13832_vm13 = vmmov %vm13828_vm7  ;;  %v3664_v1 = vpop.f32.mrf.mxu1  ;;  %v12252_v21 = vadd.f32 %v3621_v43, %v12131_v57  ;;  %v6648_v49 = vpack.c.bf16 %v6640_v37, %v6640_v37  ;;  %v13851_v37 = vld [vmem:[#allocation77_spill] sm:$0xff] }
 0x322   :  { %8593 = vmatmul.mubr.msk.bf16.vlgmr.msra.gmra.mxu0 %vm13832_vm13, %v533_v42  ;;  %vm13833_vm14 = vmmov %vm13831_vm4  ;;  %v6870_v42 = vsel %vm12067_vm0, %v13836_v10, 0.0  ;;  %v3623_v24 = vpop.f32.mrf.mxu0 }
 0x323   :  { %v6656_v15 = vsel %vm13833_vm14, %v6644_v3, 0  ;;  %6711 = vmatprep.mubr.bf16.mxu0 %v13057_v0  ;;  %vm13835_vm6 = vmmov %vm13831_vm4  ;;  %v3665_v23 = vpop.f32.mrf.mxu1  ;;  %v6878_v41 = vpack.c.bf16 %v6870_v42, %v6870_v42  ;;  %v6668_v19 = vsel %vm13831_vm4, %v6648_v49, 0  ;;  %v6867_v3 = vsel %vm12140_vm3, %v13845_v30, 0.0  ;;  %v13854_v24 = vld [vmem:[#allocation78_spill] sm:$0xff] }
 0x324   :  { %6694 = vmatpush1.bf16.msra.mxu0 %v6656_v15  ;;  %vm13839_vm15 = vmmov %vm13828_vm7  ;;  %v3624_v18 = vpop.f32.mrf.mxu0  ;;  %vm13842_vm7 = vnez %v13788_v53  ;;  %v6875_v32 = vpack.c.bf16 %v6867_v3, %v6867_v3  ;;  %v6871_v49 = vsel %vm12222_vm11, %v13854_v24, 0.0 }
 0x325   :  { %8600 = vmatprep.subr.msk.bf16.mxu0 %vm13835_vm6, %v6649_v56  ;;  %v3834_v16 = vpop.f32.mrf.mxu1  ;;  %8599 = vmatmul.mubr.msk.bf16.vlgmr.msra.gmra.mxu1 %vm13839_vm15, %v534_v31  ;;  %vm13840_vm8 = vmmov %vm13831_vm4  ;;  %v6869_v9 = vsel %vm13842_vm7, %v13841_v52, 0.0  ;;  %v6872_v56 = vsel %vm12167_vm1, %v13848_v62, 0.0  ;;  %vm13852_vm15 = vnez %v13083_v12 }
 0x326   :  { %v6674_v27 = vsel %vm13840_vm8, %v6650_v39, 0  ;;  %v12263_v57 = vadd.f32 %v3834_v16, %v12172_v51  ;;  %6834 = vmatprep.mubr.bf16.mxu1 %v13057_v0  ;;  %vm13843_vm9 = vmmov %vm13831_vm4  ;;  %v3793_v55 = vpop.f32.mrf.mxu0  ;;  %v6877_v26 = vpack.c.bf16 %v6869_v9, %v6869_v9  ;;  %v6873_v39 = vsel %vm12187_vm12, %v13851_v37, 0.0 }
 0x327   :  { %6817 = vmatpush1.bf16.msra.mxu1 %v6674_v27  ;;  %v3836_v54 = vpop.f32.mrf.mxu1  ;;  %vm13844_vm2 = vmmov %vm13832_vm13  ;;  %v12276_v51 = vadd.f32 %v3793_v55, %v12195_v11  ;;  %v6880_v1 = vpack.c.bf16 %v6872_v56, %v6872_v56  ;;  %v6887_v42 = vsel %vm13831_vm4, %v6875_v32, 0  ;;  %v6881_v50 = vpack.c.bf16 %v6873_v39, %v6873_v39 }
 0x328   :  { %8606 = vmatprep.subr.msk.bf16.mxu1 %vm13843_vm9, %v6878_v41  ;;  %v12273_v59 = vadd.f32 %v3836_v54, %v12192_v38  ;;  %vm13846_vm13 = vmmov %vm13831_vm4  ;;  %v3795_v7 = vpop.f32.mrf.mxu0  ;;  %v6874_v38 = vsel %vm12153_vm5, %v13847_v5, 0.0  ;;  %v6879_v41 = vpack.c.bf16 %v6871_v49, %v6871_v49  ;;  %v13870_v5 = vld [vmem:[#allocation84_spill] sm:$0xff] }
 0x329   :  { %v3838_v63 = vpop.f32.mrf.mxu1  ;;  %v12287_v33 = vadd.f32 %v3795_v7, %v12216_v4  ;;  %v6882_v25 = vpack.c.bf16 %v6874_v38, %v6874_v38  ;;  %vm13849_vm14 = vmmov %vm13844_vm2 }
 0x32a   :  { %8597 = vmatmul.mubr.msk.bf16.vlgmr.msra.gmra.mxu0 %vm13844_vm2, %v534_v31  ;;  %v3797_v60 = vpop.f32.mrf.mxu0  ;;  %vm13850_vm6 = vmmov %vm13831_vm4  ;;  %v13867_v63 = vld [vmem:[#allocation82_spill] sm:$0xff] }
 0x32b   :  { %6776 = vmatpush1.bf16.msra.mxu0 %v6668_v19  ;;  %6793 = vmatprep.mubr.bf16.mxu0 %v13057_v0  ;;  %v3839_v11 = vpop.f32.mrf.mxu1  ;;  %v6893_v15 = vsel %vm13850_vm6, %v6877_v26, 0  ;;  %vm7085_vm8 = vmand %vm12067_vm0, %vm13852_vm15 }
 0x32c   :  { %8604 = vmatprep.subr.msk.bf16.mxu0 %vm13846_vm13, %v6876_v58  ;;  %v3798_v28 = vpop.f32.mrf.mxu0  ;;  %vm13853_vm9 = vmmov %vm13831_vm4  ;;  %vm13855_vm13 = vnez %v13080_v17  ;;  %v535_v17 = vld [vmem:[%s12784_s2 + $0x64] sm:$0xf]  ;;  %v13872_v11 = vld [vmem:[#allocation87_spill] sm:$0xff] }
 0x32d   :  { %v3916_v29 = vpop.f32.mrf.mxu1  ;;  %8603 = vmatmul.mubr.msk.bf16.vlgmr.msra.gmra.mxu1 %vm13849_vm14, %v534_v31  ;;  %vm7083_vm14 = vmand %vm13838_vm10, %vm13855_vm13  ;;  %vm13858_vm10 = vnez %v13092_v6  ;;  %v13863_v6 = vld [vmem:[#allocation81_spill] sm:$0xff]  ;;  %v13880_v28 = vld [vmem:[#allocation86_spill] sm:$0xff] }
 0x32e   :  { %v12297_v4 = vadd.f32 %v3916_v29, %v3673_v22  ;;  %6966 = vmatpush1.bf16.msra.mxu1 %v6893_v15  ;;  %6983 = vmatprep.mubr.bf16.mxu1 %v13057_v0  ;;  %v3875_v10 = vpop.f32.mrf.mxu0  ;;  %vm13856_vm6 = vmmov %vm13831_vm4  ;;  %v7107_v18 = vsel %vm7083_vm14, %v13859_v48, 0.0 }
 0x32f   :  { %8610 = vmatprep.subr.msk.bf16.mxu1 %vm13853_vm9, %v6882_v25  ;;  %v3918_v43 = vpop.f32.mrf.mxu1  ;;  %v12309_v22 = vadd.f32 %v3875_v10, %v3671_v34  ;;  %v7109_v34 = vsel %vm7085_vm8, %v13857_v2, 0.0  ;;  %vm7084_vm9 = vmand %vm13842_vm7, %vm13858_vm10  ;;  %vm13862_vm8 = vnez %v13097_v45  ;;  %vm13864_vm7 = vnez %v13108_v61  ;;  %v536_v10 = vld [vmem:[%s12784_s2 + $0x68] sm:$0xf] }
 0x330   :  { %v12307_v23 = vadd.f32 %v3918_v43, %v3674_v8  ;;  %v3877_v8 = vpop.f32.mrf.mxu0  ;;  %vm13860_vm0 = vmmov %vm13844_vm2  ;;  %v7117_v52 = vpack.c.bf16 %v7109_v34, %v7109_v34  ;;  %v7108_v53 = vsel %vm7084_vm9, %v13863_v6, 0.0  ;;  %v6899_v58 = vsel %vm13856_vm6, %v6879_v41, 0 }
 0x331   :  { %v12327_v16 = vadd.f32 %v3877_v8, %v12252_v21  ;;  %vm13861_vm15 = vmmov %vm13831_vm4  ;;  %v7115_v30 = vpack.c.bf16 %v7107_v18, %v7107_v18  ;;  %vm13868_vm10 = vnez %v13114_v13 }
 0x332   :  { %8601 = vmatmul.mubr.msk.bf16.vlgmr.msra.gmra.mxu0 %vm13844_vm2, %v534_v31  ;;  %v3920_v31 = vpop.f32.mrf.mxu1  ;;  %v3879_v27 = vpop.f32.mrf.mxu0  ;;  %v6905_v21 = vsel %vm13861_vm15, %v6881_v50, 0  ;;  %vm7082_vm2 = vmand %vm12140_vm3, %vm13862_vm8  ;;  %vm13871_vm3 = vnez %v13120_v20  ;;  %v13876_v20 = vld [vmem:[#allocation85_spill] sm:$0xff] }
 0x333   :  { %6925 = vmatpush1.bf16.msra.mxu0 %v6887_v42  ;;  %6942 = vmatprep.mubr.bf16.mxu0 %v13057_v0  ;;  %vm7089_vm4 = vmand %vm12153_vm5, %vm13864_vm7  ;;  %v7106_v7 = vsel %vm7082_vm2, %v13867_v63, 0.0  ;;  %vm13875_vm5 = vnez %v13134_v14 }
 0x334   :  { %8608 = vmatprep.subr.msk.bf16.mxu0 %vm13856_vm6, %v6880_v1  ;;  %v3921_v44 = vpop.f32.mrf.mxu1  ;;  %v3880_v9 = vpop.f32.mrf.mxu0  ;;  %vm13865_vm13 = vmmov %vm13856_vm6  ;;  %v7113_v40 = vsel %vm7089_vm4, %v13870_v5, 0.0  ;;  %v7114_v38 = vpack.c.bf16 %v7106_v7, %v7106_v7 }
 0x335   :  { %8607 = vmatmul.mubr.msk.bf16.vlgmr.msra.gmra.mxu1 %vm13860_vm0, %v535_v17  ;;  %vm13866_vm14 = vmmov %vm13860_vm0  ;;  %v7121_v32 = vpack.c.bf16 %v7113_v40, %v7113_v40 }
 0x336   :  { %v4041_v12 = vpop.f32.mrf.mxu1  ;;  %7048 = vmatpush1.bf16.msra.mxu1 %v6905_v21  ;;  %7065 = vmatprep.mubr.bf16.mxu1 %v13057_v0  ;;  %v4000_v19 = vpop.f32.mrf.mxu0  ;;  %vm7087_vm9 = vmand %vm12167_vm1, %vm13868_vm10 }
 0x337   :  { %v4132_v54 = vadd.f32 %v4041_v12, %v12263_v57  ;;  %8614 = vmatprep.subr.msk.bf16.mxu1 %vm13865_vm13, %v7117_v52  ;;  %v4130_v3 = vadd.f32 %v4000_v19, %v12276_v51  ;;  %vm13869_vm0 = vmmov %vm13856_vm6  ;;  %v7116_v51 = vpack.c.bf16 %v7108_v53, %v7108_v53  ;;  %v7111_v60 = vsel %vm7087_vm9, %v13872_v11, 0.0 }
 0x338   :  { %v4043_v55 = vpop.f32.mrf.mxu1  ;;  %vm7088_vm15 = vmand %vm12187_vm12, %vm13871_vm3  ;;  %v7119_v56 = vpack.c.bf16 %v7111_v60, %v7111_v60 }
 0x339   :  { %v4133_v57 = vadd.f32 %v4043_v55, %v12273_v59  ;;  %v4002_v59 = vpop.f32.mrf.mxu0  ;;  %vm13873_vm1 = vmmov %vm13866_vm14  ;;  %v7112_v46 = vsel %vm7088_vm15, %v13876_v20, 0.0 }
 0x33a   :  { %8605 = vmatmul.mubr.msk.bf16.vlgmr.msra.gmra.mxu0 %vm13866_vm14, %v535_v17  ;;  %v4045_v26 = vpop.f32.mrf.mxu1  ;;  %v4131_v45 = vadd.f32 %v4002_v59, %v12287_v33  ;;  %vm13874_vm8 = vmmov %vm13869_vm0  ;;  %v7120_v39 = vpack.c.bf16 %v7112_v46, %v7112_v46 }
 0x33b   :  { %7007 = vmatpush1.bf16.msra.mxu0 %v6899_v58  ;;  %7024 = vmatprep.mubr.bf16.mxu0 %v13057_v0  ;;  %v4004_v47 = vpop.f32.mrf.mxu0  ;;  %v7132_v61 = vsel %vm13874_vm8, %v7116_v51, 0  ;;  %vm7086_vm2 = vmand %vm12222_vm11, %vm13875_vm5 }
 0x33c   :  { %8612 = vmatprep.subr.msk.bf16.mxu0 %vm13869_vm0, %v7115_v30  ;;  %v4046_v13 = vpop.f32.mrf.mxu1  ;;  %vm13877_vm12 = vmmov %vm13869_vm0  ;;  %v7110_v37 = vsel %vm7086_vm2, %v13880_v28, 0.0 }
 0x33d   :  { %8611 = vmatmul.mubr.msk.bf16.vlgmr.msra.gmra.mxu1 %vm13873_vm1, %v535_v17  ;;  %v4005_v36 = vpop.f32.mrf.mxu0  ;;  %vm13878_vm7 = vmmov %vm13873_vm1  ;;  %v7118_v24 = vpack.c.bf16 %v7110_v37, %v7110_v37 }
 0x33e   :  { %v4123_v62 = vpop.f32.mrf.mxu1  ;;  %7205 = vmatpush1.bf16.msra.mxu1 %v7132_v61  ;;  %7222 = vmatprep.mubr.bf16.mxu1 %v13057_v0  ;;  %vm13879_vm4 = vmmov %vm13869_vm0 }
 0x33f   :  { %v4136_v33 = vadd.f32 %v4123_v62, %v12297_v4  ;;  %8618 = vmatprep.subr.msk.bf16.mxu1 %vm13877_vm12, %v7121_v32  ;;  %v4082_v29 = vpop.f32.mrf.mxu0  ;;  %v7126_v15 = vsel %vm13879_vm4, %v7114_v38, 0  ;;  %vm13881_vm11 = vmmov %vm13869_vm0 }
 0x340   :  { %v4125_v25 = vpop.f32.mrf.mxu1  ;;  %v4134_v35 = vadd.f32 %v4082_v29, %v12309_v22  ;;  %vm13882_vm13 = vmmov %vm13873_vm1 }
 0x341   :  { %v4137_v14 = vadd.f32 %v4125_v25, %v12307_v23  ;;  %v4084_v1 = vpop.f32.mrf.mxu0  ;;  %vm13883_vm14 = vmmov %vm13869_vm0 }
 0x342   :  { %8609 = vmatmul.mubr.msk.bf16.vlgmr.msra.gmra.mxu0 %vm13878_vm7, %v535_v17  ;;  %v4127_v4 = vpop.f32.mrf.mxu1  ;;  %v4135_v43 = vadd.f32 %v4084_v1, %v12327_v16  ;;  %v7144_v49 = vsel %vm13883_vm14, %v7120_v39, 0  ;;  %vm13884_vm6 = vmmov %vm13873_vm1 }
 0x343   :  { %7164 = vmatpush1.bf16.msra.mxu0 %v7126_v15  ;;  %7181 = vmatprep.mubr.bf16.mxu0 %v13057_v0  ;;  %v4086_v23 = vpop.f32.mrf.mxu0  ;;  %vm13885_vm10 = vmmov %vm13869_vm0 }
 0x344   :  { %8616 = vmatprep.subr.msk.bf16.mxu0 %vm13881_vm11, %v7119_v56  ;;  %v4128_v42 = vpop.f32.mrf.mxu1  ;;  %v7138_v34 = vsel %vm13885_vm10, %v7118_v24, 0  ;;  %vm13886_vm9 = vmmov %vm13873_vm1 }
 0x345   :  { %8615 = vmatmul.mubr.msk.bf16.vlgmr.msra.gmra.mxu1 %vm13882_vm13, %v536_v10  ;;  %v4087_v50 = vpop.f32.mrf.mxu0  ;;  %vm13887_vm0 = vmmov %vm13873_vm1 }
 0x346   :  { %v4297_v22 = vpop.f32.mrf.mxu1  ;;  %7287 = vmatpush1.bf16.msra.mxu1 %v7144_v49  ;;  %7304 = vmatprep.mubr.bf16.mxu1 %v13057_v0  ;;  %vm13888_vm3 = vmmov %vm13879_vm4 }
 0x347   :  { %v4388_v31 = vadd.f32 %v4297_v22, %v4132_v54  ;;  %v4256_v2 = vpop.f32.mrf.mxu0  ;;  %vm13889_vm15 = vmmov %vm13888_vm3 }
 0x348   :  { %v4299_v8 = vpop.f32.mrf.mxu1  ;;  %v4386_v17 = vadd.f32 %v4256_v2, %v4130_v3  ;;  %vm13890_vm1 = vmmov %vm13888_vm3 }
 0x349   :  { %v4389_v16 = vadd.f32 %v4299_v8, %v4133_v57  ;;  %v4258_v27 = vpop.f32.mrf.mxu0  ;;  %vm13891_vm8 = vmmov %vm13890_vm1 }
 0x34a   :  { %8613 = vmatmul.mubr.msk.bf16.vlgmr.msra.gmra.mxu0 %vm13884_vm6, %v536_v10  ;;  %v4301_v44 = vpop.f32.mrf.mxu1  ;;  %v4387_v41 = vadd.f32 %v4258_v27, %v4131_v45  ;;  %vm13892_vm5 = vmmov %vm13887_vm0 }
 0x34b   :  { %7246 = vmatpush1.bf16.msra.mxu0 %v7138_v34  ;;  %7263 = vmatprep.mubr.bf16.mxu0 %v13057_v0  ;;  %v4260_v18 = vpop.f32.mrf.mxu0  ;;  %vm13893_vm2 = vmmov %vm13887_vm0 }
 0x34c   :  { %v4302_v48 = vpop.f32.mrf.mxu1  ;;  %vm13894_vm12 = vmmov %vm13890_vm1 }
 0x34d   :  { %8619 = vmatmul.mubr.msk.bf16.vlgmr.msra.gmra.mxu1 %vm13886_vm9, %v536_v10  ;;  %v4261_v21 = vpop.f32.mrf.mxu0  ;;  %vm13895_vm7 = vmmov %vm13890_vm1 }
 0x34e   :  { %v4379_v12 = vpop.f32.mrf.mxu1  ;;  %7696 = vmatprep.mubr.bf16.mxu1 %v13057_v0  ;;  %vm13896_vm4 = vmmov %vm13890_vm1 }
 0x34f   :  { %v4392_v52 = vadd.f32 %v4379_v12, %v4136_v33  ;;  %v4338_v54 = vpop.f32.mrf.mxu0  ;;  %vm13897_vm11 = vmmov %vm13890_vm1 }
 0x350   :  { %v4381_v9 = vpop.f32.mrf.mxu1  ;;  %v4390_v53 = vadd.f32 %v4338_v54, %v4134_v35  ;;  %vm13898_vm13 = vmmov %vm13887_vm0 }
 0x351   :  { %v4393_v6 = vadd.f32 %v4381_v9, %v4137_v14  ;;  %v4340_v19 = vpop.f32.mrf.mxu0  ;;  %vm13899_vm14 = vmmov %vm13887_vm0 }
 0x352   :  { %8617 = vmatmul.mubr.msk.bf16.vlgmr.msra.gmra.mxu0 %vm13887_vm0, %v536_v10  ;;  %v4383_v55 = vpop.f32.mrf.mxu1  ;;  %v4391_v58 = vadd.f32 %v4340_v19, %v4135_v43  ;;  %vm13900_vm6 = vmmov %vm13887_vm0 }
 0x353   :  { %7583 = vmatprep.mubr.bf16.mxu0 %v13057_v0  ;;  %v4342_v57 = vpop.f32.mrf.mxu0  ;;  %vm13901_vm10 = vmmov %vm13887_vm0 }
 0x354   :  { %v4384_v30 = vpop.f32.mrf.mxu1  ;;  %vm13902_vm9 = vmmov %vm13887_vm0 }
 0x355   :  { %v4343_v63 = vpop.f32.mrf.mxu0 }
 0x356   :  { %v4561_v3 = vpop.f32.mrf.mxu1 }
 0x357   :  { %v4652_v7 = vadd.f32 %v4561_v3, %v4388_v31  ;;  %v4520_v59 = vpop.f32.mrf.mxu0 }
 0x358   :  { %v4563_v26 = vpop.f32.mrf.mxu1  ;;  %v4650_v5 = vadd.f32 %v4520_v59, %v4386_v17 }
 0x359   :  { %v4653_v51 = vadd.f32 %v4563_v26, %v4389_v16  ;;  %v4522_v45 = vpop.f32.mrf.mxu0 }
 0x35a   :  { %v4565_v40 = vpop.f32.mrf.mxu1  ;;  %v4651_v13 = vadd.f32 %v4522_v45, %v4387_v41 }
 0x35b   :  { %v4524_v38 = vpop.f32.mrf.mxu0 }
 0x35c   :  { %v4566_v47 = vpop.f32.mrf.mxu1 }
 0x35d   :  { %v4525_v60 = vpop.f32.mrf.mxu0 }
 0x35e   :  { %v4643_v11 = vpop.f32.mrf.mxu1 }
 0x35f   :  { %v4656_v32 = vadd.f32 %v4643_v11, %v4392_v52  ;;  %v4602_v61 = vpop.f32.mrf.mxu0 }
 0x360   :  { %v4645_v62 = vpop.f32.mrf.mxu1  ;;  %v4654_v20 = vadd.f32 %v4602_v61, %v4390_v53 }
 0x361   :  { %v4657_v36 = vadd.f32 %v4645_v62, %v4393_v6  ;;  %v4604_v33 = vpop.f32.mrf.mxu0 }
 0x362   :  { %v4647_v46 = vpop.f32.mrf.mxu1  ;;  %v4655_v56 = vadd.f32 %v4604_v33, %v4391_v58 }
 0x363   :  { %v4606_v29 = vpop.f32.mrf.mxu0 }
 0x364   :  { %v4648_v25 = vpop.f32.mrf.mxu1 }
 0x365   :  { %v4607_v14 = vpop.f32.mrf.mxu0 }
 0x366   :  { %v4817_v15 = vpop.f32.mrf.mxu1 }
 0x367   :  { %v4908_v35 = vadd.f32 %v4817_v15, %v4652_v7  ;;  %v4776_v37 = vpop.f32.mrf.mxu0 }
 0x368   :  { %v4819_v28 = vpop.f32.mrf.mxu1  ;;  %v4906_v4 = vadd.f32 %v4776_v37, %v4650_v5 }
 0x369   :  { %v4909_v39 = vadd.f32 %v4819_v28, %v4653_v51  ;;  %v4778_v43 = vpop.f32.mrf.mxu0 }
 0x36a   :  { %v4821_v1 = vpop.f32.mrf.mxu1  ;;  %v4907_v10 = vadd.f32 %v4778_v43, %v4651_v13 }
 0x36b   :  { %v4780_v23 = vpop.f32.mrf.mxu0 }
 0x36c   :  { %v4822_v42 = vpop.f32.mrf.mxu1 }
 0x36d   :  { %v4781_v22 = vpop.f32.mrf.mxu0 }
 0x36e   :  { %v4899_v24 = vpop.f32.mrf.mxu1 }
 0x36f   :  { %v4912_v49 = vadd.f32 %v4899_v24, %v4656_v32  ;;  %v4858_v31 = vpop.f32.mrf.mxu0 }
 0x370   :  { %v4901_v50 = vpop.f32.mrf.mxu1  ;;  %v4910_v2 = vadd.f32 %v4858_v31, %v4654_v20 }
 0x371   :  { %v4913_v8 = vadd.f32 %v4901_v50, %v4657_v36  ;;  %v4860_v16 = vpop.f32.mrf.mxu0 }
 0x372   :  { %v4903_v34 = vpop.f32.mrf.mxu1  ;;  %v4911_v17 = vadd.f32 %v4860_v16, %v4655_v56 }
 0x373   :  { %v4862_v27 = vpop.f32.mrf.mxu0 }
 0x374   :  { %v4904_v44 = vpop.f32.mrf.mxu1 }
 0x375   :  { %v4863_v48 = vpop.f32.mrf.mxu0 }
 0x376   :  { %v5081_v41 = vpop.f32.mrf.mxu1 }
 0x377   :  { %v5172_v18 = vadd.f32 %v5081_v41, %v4908_v35  ;;  %v5040_v21 = vpop.f32.mrf.mxu0 }
 0x378   :  { %v5083_v12 = vpop.f32.mrf.mxu1  ;;  %v5170_v9 = vadd.f32 %v5040_v21, %v4906_v4 }
 0x379   :  { %v5173_v52 = vadd.f32 %v5083_v12, %v4909_v39  ;;  %v5042_v6 = vpop.f32.mrf.mxu0 }
 0x37a   :  { %v5085_v54 = vpop.f32.mrf.mxu1  ;;  %v5171_v53 = vadd.f32 %v5042_v6, %v4907_v10 }
 0x37b   :  { %v5044_v19 = vpop.f32.mrf.mxu0 }
 0x37c   :  { %v5086_v55 = vpop.f32.mrf.mxu1 }
 0x37d   :  { %v5045_v30 = vpop.f32.mrf.mxu0 }
 0x37e   :  { %v5163_v58 = vpop.f32.mrf.mxu1 }
 0x37f   :  { %v5176_v57 = vadd.f32 %v5163_v58, %v4912_v49 }
 0x380   :  { %v5165_v3 = vpop.f32.mrf.mxu1 }
 0x381   :  { %v5122_v63 = vpop.f32.mrf.mxu0  ;;  %v5177_v7 = vadd.f32 %v5165_v3, %v4913_v8 }
 0x382   :  { %v5174_v26 = vadd.f32 %v5122_v63, %v4910_v2  ;;  %v5167_v59 = vpop.f32.mrf.mxu1 }
 0x383   :  { %v5124_v51 = vpop.f32.mrf.mxu0 }
 0x384   :  { %v5175_v5 = vadd.f32 %v5124_v51, %v4911_v17  ;;  %v5168_v40 = vpop.f32.mrf.mxu1 }
 0x385   :  { %v5126_v45 = vpop.f32.mrf.mxu0 }
 0x386   :  { %v5328_v13 = vpop.f32.mrf.mxu1 }
 0x387   :  { %v5127_v47 = vpop.f32.mrf.mxu0  ;;  %v5419_v38 = vadd.f32 %v5328_v13, %v5172_v18 }
 0x388   :  { %v5330_v11 = vpop.f32.mrf.mxu1 }
 0x389   :  { %v5287_v60 = vpop.f32.mrf.mxu0  ;;  %v5420_v32 = vadd.f32 %v5330_v11, %v5173_v52 }
 0x38a   :  { %v5417_v62 = vadd.f32 %v5287_v60, %v5170_v9  ;;  %v5332_v61 = vpop.f32.mrf.mxu1 }
 0x38b   :  { %v5289_v36 = vpop.f32.mrf.mxu0 }
 0x38c   :  { %v5418_v20 = vadd.f32 %v5289_v36, %v5171_v53  ;;  %v5333_v46 = vpop.f32.mrf.mxu1 }
 0x38d   :  { %v5291_v33 = vpop.f32.mrf.mxu0 }
 0x38e   :  { %v5410_v56 = vpop.f32.mrf.mxu1 }
 0x38f   :  { %v5292_v25 = vpop.f32.mrf.mxu0  ;;  %v5423_v29 = vadd.f32 %v5410_v56, %v5176_v57 }
 0x390   :  { %v5412_v15 = vpop.f32.mrf.mxu1 }
 0x391   :  { %v5369_v14 = vpop.f32.mrf.mxu0  ;;  %v5424_v35 = vadd.f32 %v5412_v15, %v5177_v7 }
 0x392   :  { %v5421_v28 = vadd.f32 %v5369_v14, %v5174_v26  ;;  %v5414_v37 = vpop.f32.mrf.mxu1 }
 0x393   :  { %v5371_v39 = vpop.f32.mrf.mxu0 }
 0x394   :  { %v5422_v4 = vadd.f32 %v5371_v39, %v5175_v5  ;;  %v5415_v1 = vpop.f32.mrf.mxu1 }
 0x395   :  { %v5373_v43 = vpop.f32.mrf.mxu0 }
 0x396   :  { %v5559_v10 = vpop.f32.mrf.mxu1 }
 0x397   :  { %v5374_v42 = vpop.f32.mrf.mxu0  ;;  %v5650_v23 = vadd.f32 %v5559_v10, %v5419_v38 }
 0x398   :  { %v5561_v24 = vpop.f32.mrf.mxu1 }
 0x399   :  { %v5518_v22 = vpop.f32.mrf.mxu0  ;;  %v5651_v49 = vadd.f32 %v5561_v24, %v5420_v32 }
 0x39a   :  { %v5648_v50 = vadd.f32 %v5518_v22, %v5417_v62  ;;  %v5563_v31 = vpop.f32.mrf.mxu1 }
 0x39b   :  { %v5520_v8 = vpop.f32.mrf.mxu0 }
 0x39c   :  { %v5649_v2 = vadd.f32 %v5520_v8, %v5418_v20  ;;  %v5564_v34 = vpop.f32.mrf.mxu1 }
 0x39d   :  { %v5522_v16 = vpop.f32.mrf.mxu0 }
 0x39e   :  { %v5641_v17 = vpop.f32.mrf.mxu1 }
 0x39f   :  { %v5523_v44 = vpop.f32.mrf.mxu0  ;;  %v5654_v27 = vadd.f32 %v5641_v17, %v5423_v29 }
 0x3a0   :  { %v5643_v41 = vpop.f32.mrf.mxu1 }
 0x3a1   :  { %v5600_v48 = vpop.f32.mrf.mxu0  ;;  %v5655_v18 = vadd.f32 %v5643_v41, %v5424_v35 }
 0x3a2   :  { %v5652_v12 = vadd.f32 %v5600_v48, %v5421_v28  ;;  %v5645_v21 = vpop.f32.mrf.mxu1 }
 0x3a3   :  { %v5602_v52 = vpop.f32.mrf.mxu0 }
 0x3a4   :  { %v5653_v9 = vadd.f32 %v5602_v52, %v5422_v4  ;;  %v5646_v54 = vpop.f32.mrf.mxu1 }
 0x3a5   :  { %v5604_v6 = vpop.f32.mrf.mxu0 }
 0x3a6   :  { %v5798_v53 = vpop.f32.mrf.mxu1 }
 0x3a7   :  { %v5605_v55 = vpop.f32.mrf.mxu0  ;;  %v5889_v19 = vadd.f32 %v5798_v53, %v5650_v23 }
 0x3a8   :  { %v5800_v58 = vpop.f32.mrf.mxu1 }
 0x3a9   :  { %v5757_v30 = vpop.f32.mrf.mxu0  ;;  %v5890_v57 = vadd.f32 %v5800_v58, %v5651_v49 }
 0x3aa   :  { %v5887_v3 = vadd.f32 %v5757_v30, %v5648_v50  ;;  %v5802_v63 = vpop.f32.mrf.mxu1 }
 0x3ab   :  { %v5759_v7 = vpop.f32.mrf.mxu0 }
 0x3ac   :  { %v5888_v26 = vadd.f32 %v5759_v7, %v5649_v2  ;;  %v5803_v59 = vpop.f32.mrf.mxu1 }
 0x3ad   :  { %v5761_v51 = vpop.f32.mrf.mxu0 }
 0x3ae   :  { %v5880_v5 = vpop.f32.mrf.mxu1  ;;  %v7367_v51 = vld [vmem:[%s12788_s6] sm:$0xff] }
 0x3af   :  { %v5762_v40 = vpop.f32.mrf.mxu0  ;;  %v5893_v45 = vadd.f32 %v5880_v5, %v5654_v27  ;;  %7385 = vperm.xlu1 %8941, %v7367_v51  }
 0x3b0   :  { %v5882_v13 = vpop.f32.mrf.mxu1 }
 0x3b1   :  { %v5839_v47 = vpop.f32.mrf.mxu0  ;;  %v5894_v38 = vadd.f32 %v5882_v13, %v5655_v18 }
 0x3b2   :  { %v5891_v11 = vadd.f32 %v5839_v47, %v5652_v12  ;;  %v5884_v60 = vpop.f32.mrf.mxu1 }
 0x3b3   :  { %v5841_v32 = vpop.f32.mrf.mxu0 }
 0x3b4   :  { %v5892_v62 = vadd.f32 %v5841_v32, %v5653_v9  ;;  %v5885_v61 = vpop.f32.mrf.mxu1  ;;  %v7369_v32 = vld [vmem:[%s12788_s6 + $0x10] sm:$0xff] }
 0x3b5   :  { %v5843_v36 = vpop.f32.mrf.mxu0  ;;  %7395 = vperm.xlu1 %8941, %v7369_v32  }
 0x3b6   :  { %v6037_v20 = vpop.f32.mrf.mxu1 }
 0x3b7   :  { %v5844_v46 = vpop.f32.mrf.mxu0  ;;  %v12410_v33 = vadd.f32 %v6037_v20, %v5889_v19 }
 0x3b8   :  { %v6039_v56 = vpop.f32.mrf.mxu1 }
 0x3b9   :  { %v5996_v25 = vpop.f32.mrf.mxu0  ;;  %v12412_v29 = vadd.f32 %v6039_v56, %v5890_v57 }
 0x3ba   :  { %v12414_v15 = vadd.f32 %v5996_v25, %v5887_v3  ;;  %v6041_v14 = vpop.f32.mrf.mxu1 }
 0x3bb   :  { %v5998_v35 = vpop.f32.mrf.mxu0 }
 0x3bc   :  { %v12416_v28 = vadd.f32 %v5998_v35, %v5888_v26  ;;  %v6042_v37 = vpop.f32.mrf.mxu1  ;;  %v7371_v35 = vld [vmem:[%s12788_s6 + $0x20] sm:$0xff] }
 0x3bd   :  { %v6000_v39 = vpop.f32.mrf.mxu0  ;;  %7405 = vperm.xlu1 %8941, %v7371_v35  }
 0x3be   :  { %v6119_v4 = vpop.f32.mrf.mxu1 }
 0x3bf   :  { %v6001_v1 = vpop.f32.mrf.mxu0  ;;  %v12418_v43 = vadd.f32 %v6119_v4, %v5893_v45 }
 0x3c0   :  { %v6121_v10 = vpop.f32.mrf.mxu1 }
 0x3c1   :  { %v6078_v42 = vpop.f32.mrf.mxu0  ;;  %v12420_v23 = vadd.f32 %v6121_v10, %v5894_v38 }
 0x3c2   :  { %v12422_v24 = vadd.f32 %v6078_v42, %v5891_v11  ;;  %v6123_v22 = vpop.f32.mrf.mxu1 }
 0x3c3   :  { %v6080_v49 = vpop.f32.mrf.mxu0 }
 0x3c4   :  { %v12424_v50 = vadd.f32 %v6080_v49, %v5892_v62  ;;  %v6124_v31 = vpop.f32.mrf.mxu1 }
 0x3c5   :  { %v6082_v8 = vpop.f32.mrf.mxu0  ;;  %v7373_v31 = vld [vmem:[%s12788_s6 + $0x30] sm:$0xff] }
 0x3c6   :  { %v12426_v2 = vpop.f32.mrf.mxu1  ;;  %7415 = vperm.xlu1 %8941, %v7373_v31  }
 0x3c7   :  { %v6083_v34 = vpop.f32.mrf.mxu0 }
 0x3c8   :  { %v12428_v16 = vpop.f32.mrf.mxu1 }
 0x3c9   :  { %v12430_v17 = vpop.f32.mrf.mxu0 }
 0x3ca   :  { %v6272_v44 = vpop.f32.mrf.mxu1 }
 0x3cb   :  { %v12432_v27 = vpop.f32.mrf.mxu0 }
 0x3cc   :  { %v6273_v41 = vpop.f32.mrf.mxu1 }
 0x3cd   :  { %v6231_v48 = vpop.f32.mrf.mxu0 }
 0x3ce   :  { %v12434_v18 = vpop.f32.mrf.mxu1 }
 0x3cf   :  { %v6232_v12 = vpop.f32.mrf.mxu0 }
 0x3d0   :  { %v12436_v21 = vpop.f32.mrf.mxu1 }
 0x3d1   :  { %v12438_v52 = vpop.f32.mrf.mxu0 }
 0x3d2   :  { %v6354_v9 = vpop.f32.mrf.mxu1 }
 0x3d3   :  { %v12440_v54 = vpop.f32.mrf.mxu0 }
 0x3d4   :  { %v6355_v6 = vpop.f32.mrf.mxu1 }
 0x3d5   :  { %v6313_v53 = vpop.f32.mrf.mxu0 }
 0x3d6   :  { %v6507_v55 = vpop.f32.mrf.mxu1  ;;  %v6359_v53 = vadd.f32 %v12426_v2, %v12410_v33 }
 0x3d7   :  { %v6314_v19 = vpop.f32.mrf.mxu0 }
 0x3d8   :  { %v6509_v58 = vpop.f32.mrf.mxu1  ;;  %v7375_v19 = vld [vmem:[%s12788_s6 + $0x40] sm:$0xff]  ;;  %v6598_v51 = vadd.f32 %v6507_v55, %v6359_v53 }
 0x3d9   :  { %v6466_v30 = vpop.f32.mrf.mxu0  ;;  %7425 = vperm.xlu1 %8941, %v7375_v19  }
 0x3da   :  { %v6511_v57 = vpop.f32.mrf.mxu1 }
 0x3db   :  { %v6468_v3 = vpop.f32.mrf.mxu0 }
 0x3dc   :  { %v6512_v63 = vpop.f32.mrf.mxu1 }
 0x3dd   :  { %v6470_v7 = vpop.f32.mrf.mxu0 }
 0x3de   :  { %v12442_v26 = vpop.f32.mrf.mxu1  ;;  %v6360_v7 = vadd.f32 %v12428_v16, %v12412_v29  ;;  %v6363_v29 = vadd.f32 %v12434_v18, %v12418_v43 }
 0x3df   :  { %v6471_v59 = vpop.f32.mrf.mxu0 }
 0x3e0   :  { %v12447_v5 = vpop.f32.mrf.mxu1  ;;  %v6357_v59 = vadd.f32 %v12430_v17, %v12414_v15  ;;  %v6599_v33 = vadd.f32 %v6509_v58, %v6360_v7  ;;  %v12483_v17 = vpop.permute.xlu0 %7324  ;;  %v6364_v58 = vadd.f32 %v12436_v21, %v12420_v23  ;;  %v6602_v43 = vadd.f32 %v12442_v26, %v6363_v29 }
 0x3e2   :  { %v12449_v40 = vpop.f32.mrf.mxu0  ;;  %v6593_v45 = vpop.f32.mrf.mxu1  ;;  %v6596_v2 = vadd.f32 %v6466_v30, %v6357_v59  ;;  %v6361_v30 = vadd.f32 %v12438_v52, %v12422_v24 }
 0x3e4   :  { %v12451_v13 = vpop.f32.mrf.mxu0  ;;  %v6594_v47 = vpop.f32.mrf.mxu1  ;;  %v6600_v23 = vadd.f32 %v12449_v40, %v6361_v30 }
 0x3e6   :  { %v6552_v38 = vpop.f32.mrf.mxu0  ;;  %v6754_v11 = vpop.f32.mrf.mxu1 }
 0x3e7   :  { %v6358_v38 = vadd.f32 %v12432_v27, %v12416_v28  ;;  %v7377_v27 = vld [vmem:[%s12788_s6 + $0x50] sm:$0xff] }
 0x3e8   :  { %v6553_v60 = vpop.f32.mrf.mxu0  ;;  %v6756_v62 = vpop.f32.mrf.mxu1  ;;  %7435 = vperm.xlu1 %8941, %v7377_v27  }
 0x3e9   :  { %v6845_v60 = vadd.f32 %v6754_v11, %v6598_v51 }
 0x3ea   :  { %v6713_v61 = vpop.f32.mrf.mxu0  ;;  %v6758_v36 = vpop.f32.mrf.mxu1 }
 0x3ec   :  { %v6715_v20 = vpop.f32.mrf.mxu0  ;;  %v6759_v46 = vpop.f32.mrf.mxu1 }
 0x3ed   :  { %v6597_v46 = vadd.f32 %v6468_v3, %v6358_v38 }
 0x3ee   :  { %v6717_v56 = vpop.f32.mrf.mxu0  ;;  %v12456_v25 = vpop.f32.mrf.mxu1 }
 0x3ef   :  { %v6846_v56 = vadd.f32 %v6756_v62, %v6599_v33  ;;  %v6844_v55 = vadd.f32 %v6715_v20, %v6597_v46  ;;  %v6849_v21 = vadd.f32 %v12456_v25, %v6602_v43 }
 0x3f0   :  { %v6718_v14 = vpop.f32.mrf.mxu0  ;;  %v12461_v37 = vpop.f32.mrf.mxu1 }
 0x3f1   :  { %v6843_v14 = vadd.f32 %v6713_v61, %v6596_v2 }
 0x3f2   :  { %v12463_v39 = vpop.f32.mrf.mxu0  ;;  %v6840_v4 = vpop.f32.mrf.mxu1 }
 0x3f4   :  { %v12465_v1 = vpop.f32.mrf.mxu0  ;;  %v6841_v10 = vpop.f32.mrf.mxu1 }
 0x3f6   :  { %v6799_v42 = vpop.f32.mrf.mxu0  ;;  %v6985_v22 = vpop.f32.mrf.mxu1 }
 0x3f7   :  { %v7076_v35 = vadd.f32 %v6985_v22, %v6845_v60  ;;  %v6362_v42 = vadd.f32 %v12440_v54, %v12424_v50  ;;  %v6603_v22 = vadd.f32 %v12447_v5, %v6364_v58  ;;  %v6847_v50 = vadd.f32 %v12463_v39, %v6600_v23  ;;  %v7379_v39 = vld [vmem:[%s12788_s6 + $0x60] sm:$0xff]  ;;  %v8948_v23 = vld [vmem:[%s12785_s3 + $0x30] sm:$0xff]  }
 0x3f8   :  { %v6800_v49 = vpop.f32.mrf.mxu0  ;;  %v6987_v8 = vpop.f32.mrf.mxu1  ;;  %7445 = vperm.xlu1 %8941, %v7379_v39  }
 0x3f9   :  { %v7077_v4 = vadd.f32 %v6987_v8, %v6846_v56 }
 0x3fa   :  { %v6944_v34 = vpop.f32.mrf.mxu0  ;;  %v6989_v44 = vpop.f32.mrf.mxu1 }
 0x3fb   :  { %v7074_v10 = vadd.f32 %v6944_v34, %v6843_v14  ;;  %v6601_v34 = vadd.f32 %v12451_v13, %v6362_v42  ;;  %v6850_v44 = vadd.f32 %v12461_v37, %v6603_v22  ;;  %v8946_v42 = vld [vmem:[%s12785_s3 + $0x20] sm:$0xff]   ;;  %v8947_v22 = vld [vmem:[%s12785_s3 + $0x28] sm:$0xff]  }
 0x3fc   :  { %v6946_v41 = vpop.f32.mrf.mxu0  ;;  %v6990_v48 = vpop.f32.mrf.mxu1 }
 0x3fd   :  { %v7075_v11 = vadd.f32 %v6946_v41, %v6844_v55 }
 0x3fe   :  { %v6948_v12 = vpop.f32.mrf.mxu0  ;;  %v7067_v9 = vpop.f32.mrf.mxu1 }
 0x3ff   :  { %v7080_v54 = vadd.f32 %v7067_v9, %v6849_v21  ;;  %v8949_v21 = vld [vmem:[%s12785_s3 + $0x38] sm:$0xff]  }
 0x400   :  { %v6949_v6 = vpop.f32.mrf.mxu0  ;;  %v7069_v57 = vpop.f32.mrf.mxu1 }
 0x401   :  { %v6848_v6 = vadd.f32 %v12465_v1, %v6601_v34  ;;  %v7081_v53 = vadd.f32 %v7069_v57, %v6850_v44 }
 0x402   :  { %v7026_v63 = vpop.f32.mrf.mxu0  ;;  %v7071_v45 = vpop.f32.mrf.mxu1 }
 0x403   :  { %v7078_v19 = vadd.f32 %v7026_v63, %v6847_v50  ;;  %v8950_v50 = vld [vmem:[#allocation2 + $0x10] sm:$0xff] }
 0x404   :  { %v7028_v47 = vpop.f32.mrf.mxu0  ;;  %v7072_v32 = vpop.f32.mrf.mxu1 }
 0x405   :  { %v7079_v9 = vadd.f32 %v7028_v47, %v6848_v6  ;;  %v12515_v32 = vld [vmem:[%s12785_s3] sm:$0xff]   ;;  %v7381_v47 = vld [vmem:[%s12788_s6 + $0x70] sm:$0xff] }
 0x406   :  { %v7030_v36 = vpop.f32.mrf.mxu0  ;;  %v7224_v16 = vpop.f32.mrf.mxu1  ;;  %7455 = vperm.xlu1 %8941, %v7381_v47  }
 0x407   :  { %v7315_v28 = vadd.f32 %v7224_v16, %v7076_v35 }
 0x408   :  { %v7031_v15 = vpop.f32.mrf.mxu0  ;;  %v7226_v18 = vpop.f32.mrf.mxu1 }
 0x409   :  { %v7329_v62 = vadd.f32 %v12483_v17, %v7315_v28  ;;  %v7316_v61 = vadd.f32 %v7226_v18, %v7077_v4 }
 0x40a   :  { %v7183_v3 = vpop.f32.mrf.mxu0  ;;  %v7228_v24 = vpop.f32.mrf.mxu1 }
 0x40b   :  { %v7313_v20 = vadd.f32 %v7183_v3, %v7074_v10  ;;  %v7337_v26 = vmax.f32 %v7329_v62, 0.0  ;;  %v7330_v49 = vadd.f32 %v12483_v17, %v7316_v61  ;;  %v8944_v61 = vld [vmem:[%s12785_s3 + $0x10] sm:$0xff]  }
 0x40c   :  { %v7185_v52 = vpop.f32.mrf.mxu0  ;;  %v7229_v5 = vpop.f32.mrf.mxu1 }
 0x40d   :  { %v7327_v31 = vadd.f32 %v12483_v17, %v7313_v20  ;;  %v7314_v8 = vadd.f32 %v7185_v52, %v7075_v11  ;;  %v7345_v40 = vpack.c.bf16 %v7337_v26, %v7337_v26  ;;  %v7338_v48 = vmax.f32 %v7330_v49, 0.0  ;;  %v8945_v20 = vld [vmem:[%s12785_s3 + $0x18] sm:$0xff]  }
 0x40e   :  { %v7187_v41 = vpop.f32.mrf.mxu0  ;;  %v7306_v7 = vpop.f32.mrf.mxu1 }
 0x40f   :  { %v7335_v25 = vmax.f32 %v7327_v31, 0.0  ;;  %v7328_v12 = vadd.f32 %v12483_v17, %v7314_v8  ;;  %v7346_v51 = vpack.c.bf16 %v7338_v48, %v7338_v48  ;;  %v7319_v37 = vadd.f32 %v7306_v7, %v7080_v54  ;;  %v12619_v8 = vpop.permute.xlu0 %7390  ;;  %v8951_v48 = vld [vmem:[#allocation2] sm:$0xff] }
 0x410   :  { %v7188_v59 = vpop.f32.mrf.mxu0  ;;  %v7308_v38 = vpop.f32.mrf.mxu1  ;;  %v7534_v2 = vsel %vm13888_vm3, %v7345_v40, 0  ;;  %vm13903_vm3 = vmmov %vm13887_vm0 }
 0x411   :  { %v7343_v13 = vpack.c.bf16 %v7335_v25, %v7335_v25  ;;  %v7336_v45 = vmax.f32 %v7328_v12, 0.0  ;;  %v7333_v1 = vadd.f32 %v12483_v17, %v7319_v37  ;;  %v7320_v57 = vadd.f32 %v7308_v38, %v7081_v53  ;;  %8637 = vmatprep.subr.msk.bf16.mxu1 %vm13889_vm15, %v7346_v51  ;;  %vm13904_vm15 = vmmov %vm13887_vm0  ;;  %v8952_v12 = vld [vmem:[#allocation2 + $0x18] sm:$0xff]  ;;  %v8953_v59 = vld [vmem:[#allocation2 + $0x50] sm:$0xff] }
 0x412   :  { %v7265_v33 = vpop.f32.mrf.mxu0  ;;  %v7310_v36 = vpop.f32.mrf.mxu1  ;;  %7679 = vmatpush1.bf16.msra.mxu1 %v7534_v2  ;;  %v8954_v37 = vld [vmem:[#allocation2 + $0x8] sm:$0xff] }
 0x413   :  { %v7344_v60 = vpack.c.bf16 %v7336_v45, %v7336_v45  ;;  %v7317_v63 = vadd.f32 %v7265_v33, %v7078_v19  ;;  %v7528_v56 = vsel %vm13890_vm1, %v7343_v13, 0  ;;  %v7341_v14 = vmax.f32 %v7333_v1, 0.0  ;;  %vm13905_vm1 = vmmov %vm13887_vm0 }
 0x414   :  { %v7267_v46 = vpop.f32.mrf.mxu0  ;;  %v7334_v35 = vadd.f32 %v12483_v17, %v7320_v57  ;;  %v7311_v15 = vpop.f32.mrf.mxu1  ;;  %v8955_v57 = vld [vmem:[#allocation2 + $0x58] sm:$0xff] }
 0x415   :  { %v7331_v29 = vadd.f32 %v12483_v17, %v7317_v63  ;;  %v7318_v16 = vadd.f32 %v7267_v46, %v7079_v9  ;;  %8628 = vmatprep.subr.msk.bf16.mxu0 %vm13891_vm8, %v7344_v60  ;;  %v7349_v4 = vpack.c.bf16 %v7341_v14, %v7341_v14  ;;  %8638 = vmatmul.mubr.msk.bf16.vlgmr.msra.gmra.mxu1 %vm13892_vm5, %v12515_v32  ;;  %vm13906_vm8 = vmmov %vm13887_vm0 }
 0x416   :  { %v7269_v55 = vpop.f32.mrf.mxu0  ;;  %7566 = vmatpush1.bf16.msra.mxu0 %v7528_v56  ;;  %v7342_v10 = vmax.f32 %v7334_v35, 0.0  ;;  %7706 = vmatprep.mubr.bf16.mxu1 %v13057_v0  ;;  %vm13907_vm5 = vmmov %vm13887_vm0 }
 0x417   :  { %v7339_v28 = vmax.f32 %v7331_v29, 0.0  ;;  %v7332_v27 = vadd.f32 %v12483_v17, %v7318_v16  ;;  %v7546_v11 = vsel %vm13895_vm7, %v7349_v4, 0  ;;  %v8943_v17 = vld [vmem:[%s12785_s3 + $0x8] sm:$0xff]   ;;  %vm13910_vm7 = vmmov %vm13887_vm0  ;;  %v12631_v29 = vpop.permute.xlu0 %7400  ;;  %s9142_s3 = smov [#allocation5]  }
 0x418   :  { %v7270_v58 = vpop.f32.mrf.mxu0  ;;  %v7350_v30 = vpack.c.bf16 %v7342_v10, %v7342_v10  ;;  %v8957_v10 = vld [vmem:[#allocation2 + $0x48] sm:$0xff]  ;;  %s8392_s26 = sshll.u32 %s9142_s3, 4  ;;  %s8393_s26 = int_to_ptr.vmem [resolvable:$true] %s8392_s26 }
 0x419   :  { %v7347_v43 = vpack.c.bf16 %v7339_v28, %v7339_v28  ;;  %v7340_v18 = vmax.f32 %v7332_v27, 0.0  ;;  %8629 = vmatmul.mubr.msk.bf16.vlgmr.msra.gmra.mxu0 %vm13893_vm2, %v12515_v32  ;;  %vm13908_vm2 = vmmov %vm13887_vm0  ;;  %s9098_s29 = scalar_lea.vmem %s8393_s26, 16384  ;;  %p9103_p6 = scmp.lt.s32.totalorder %s8393_s26, %s8393_s26 }
 0x41a   :  { %7593 = vmatprep.mubr.bf16.mxu0 %v13057_v0  ;;  %8655 = vmatprep.subr.msk.bf16.mxu1 %vm13894_vm12, %v7350_v30  ;;  %vm13909_vm12 = vmmov %vm13887_vm0  ;;  %v8958_v30 = vld [vmem:[#allocation2 + $0x90] sm:$0xff]  ;;  %p9099_p5 = scmp.ne.s32.totalorder %s8393_s26, %s9098_s29  ;;  %p9104_p7 = scmp.lt.s32.totalorder %s9098_s29, %s9098_s29 }
 0x41b   :  { %v7348_v3 = vpack.c.bf16 %v7340_v18, %v7340_v18  ;;  %7905 = vmatpush1.bf16.msra.mxu1 %v7546_v11  ;;  %v7540_v62 = vsel %vm13897_vm11, %v7347_v43, 0  ;;  %vm13912_vm11 = vmmov %vm13887_vm0  ;;  %v8959_v11 = vld [vmem:[#allocation2 + $0x80] sm:$0xff] }
 0x41c   :  { %p9105_p8 = por %p9104_p7, %p9103_p6 }
 0x41d   :  { %8646 = vmatprep.subr.msk.bf16.mxu0 %vm13896_vm4, %v7348_v3  ;;  %8639 = vmatmul.mubr.msk.bf16.gmra.mxu1 %vm13898_vm13, %v8943_v17  ;;  %vm13911_vm4 = vmmov %vm13887_vm0 }
 0x41e   :  { %7792 = vmatpush1.bf16.msra.mxu0 %v7540_v62  ;;  %7716 = vmatprep.mubr.bf16.mxu1 %v13057_v0  ;;  %vm13913_vm13 = vmmov %vm13887_vm0  ;;  %v8960_v62 = vld [vmem:[#allocation2 + $0x98] sm:$0xff]  ;;  %p9106_p9 = pnand %p9105_p8, %p9099_p5 }
 0x421   :  { %8630 = vmatmul.mubr.msk.bf16.gmra.mxu0 %vm13899_vm14, %v8943_v17  ;;  %vm13914_vm14 = vmmov %vm13887_vm0 }
 0x422   :  { %7603 = vmatprep.mubr.bf16.mxu0 %v13057_v0 }
 0x425   :  { %8640 = vmatmul.mubr.msk.bf16.gmra.mxu1 %vm13900_vm6, %v8944_v61  ;;  %vm13915_vm6 = vmmov %vm13887_vm0 }
 0x426   :  { %7726 = vmatprep.mubr.bf16.mxu1 %v13057_v0 }
 0x429   :  { %8631 = vmatmul.mubr.msk.bf16.gmra.mxu0 %vm13901_vm10, %v8944_v61  ;;  %vm13916_vm10 = vmmov %vm13887_vm0 }
 0x42a   :  { %7613 = vmatprep.mubr.bf16.mxu0 %v13057_v0  ;;  %v12616_v24 = vpop.permute.xlu1 %7385 }
 0x42d   :  { %8641 = vmatmul.mubr.msk.bf16.gmra.mxu1 %vm13902_vm9, %v8945_v20  ;;  %vm13917_vm9 = vmmov %vm13887_vm0 }
 0x42e   :  { %7736 = vmatprep.mubr.bf16.mxu1 %v13057_v0 }
 0x430   :  { %v12627_v9 = vpop.permute.xlu1 %7395 }
 0x431   :  { %8632 = vmatmul.mubr.msk.bf16.gmra.mxu0 %vm13887_vm0, %v8945_v20 }
 0x432   :  { %7623 = vmatprep.mubr.bf16.mxu0 %v13057_v0 }
 0x435   :  { %8642 = vmatmul.mubr.msk.bf16.gmra.mxu1 %vm13903_vm3, %v8946_v42  ;;  %vm13918_vm3 = vmmov %vm13887_vm0 }
 0x436   :  { %7746 = vmatprep.mubr.bf16.mxu1 %v13057_v0 }
 0x439   :  { %8633 = vmatmul.mubr.msk.bf16.gmra.mxu0 %vm13904_vm15, %v8946_v42  ;;  %vm13919_vm15 = vmmov %vm13887_vm0 }
 0x43a   :  { %7633 = vmatprep.mubr.bf16.mxu0 %v13057_v0 }
 0x43d   :  { %8643 = vmatmul.mubr.msk.bf16.gmra.mxu1 %vm13905_vm1, %v8947_v22  ;;  %vm13920_vm1 = vmmov %vm13887_vm0 }
 0x43e   :  { %7756 = vmatprep.mubr.bf16.mxu1 %v13057_v0 }
 0x441   :  { %8634 = vmatmul.mubr.msk.bf16.gmra.mxu0 %vm13906_vm8, %v8947_v22  ;;  %vm13921_vm8 = vmmov %vm13887_vm0 }
 0x442   :  { %7643 = vmatprep.mubr.bf16.mxu0 %v13057_v0 }
 0x445   :  { %8644 = vmatmul.mubr.msk.bf16.gmra.mxu1 %vm13907_vm5, %v8948_v23  ;;  %vm13922_vm5 = vmmov %vm13887_vm0 }
 0x446   :  { %7766 = vmatprep.mubr.bf16.mxu1 %v13057_v0 }
 0x449   :  { %8635 = vmatmul.mubr.msk.bf16.gmra.mxu0 %vm13908_vm2, %v8948_v23  ;;  %vm13923_vm2 = vmmov %vm13887_vm0 }
 0x44a   :  { %7653 = vmatprep.mubr.bf16.mxu0 %v13057_v0 }
 0x44d   :  { %8645 = vmatmul.mubr.msk.bf16.gmra.mxu1 %vm13909_vm12, %v8949_v21  ;;  %vm13924_vm12 = vmmov %vm13887_vm0 }
 0x44e   :  { %7922 = vmatprep.mubr.bf16.mxu1 %v13057_v0 }
 0x451   :  { %8636 = vmatmul.mubr.msk.bf16.gmra.mxu0 %vm13910_vm7, %v8949_v21  ;;  %vm13925_vm7 = vmmov %vm13887_vm0 }
 0x452   :  { %7809 = vmatprep.mubr.bf16.mxu0 %v13057_v0 }
 0x455   :  { %8656 = vmatmul.mubr.msk.bf16.vlgmr.msra.gmra.mxu1 %vm13911_vm4, %v12515_v32 }
 0x456   :  { %7932 = vmatprep.mubr.bf16.mxu1 %v13057_v0 }
 0x459   :  { %8647 = vmatmul.mubr.msk.bf16.vlgmr.msra.gmra.mxu0 %vm13912_vm11, %v12515_v32  ;;  %v8956_v32 = vld [vmem:[#allocation2 + $0x40] sm:$0xff] }
 0x45a   :  { %7819 = vmatprep.mubr.bf16.mxu0 %v13057_v0 }
 0x45d   :  { %8657 = vmatmul.mubr.msk.bf16.gmra.mxu1 %vm13913_vm13, %v8943_v17 }
 0x45e   :  { %7942 = vmatprep.mubr.bf16.mxu1 %v13057_v0 }
 0x461   :  { %8648 = vmatmul.mubr.msk.bf16.gmra.mxu0 %vm13914_vm14, %v8943_v17 }
 0x462   :  { %7829 = vmatprep.mubr.bf16.mxu0 %v13057_v0 }
 0x465   :  { %8658 = vmatmul.mubr.msk.bf16.gmra.mxu1 %vm13915_vm6, %v8944_v61 }
 0x466   :  { %7952 = vmatprep.mubr.bf16.mxu1 %v13057_v0 }
 0x469   :  { %8649 = vmatmul.mubr.msk.bf16.gmra.mxu0 %vm13916_vm10, %v8944_v61 }
 0x46a   :  { %7839 = vmatprep.mubr.bf16.mxu0 %v13057_v0 }
 0x46d   :  { %8659 = vmatmul.mubr.msk.bf16.gmra.mxu1 %vm13917_vm9, %v8945_v20 }
 0x46e   :  { %7962 = vmatprep.mubr.bf16.mxu1 %v13057_v0 }
 0x471   :  { %8650 = vmatmul.mubr.msk.bf16.gmra.mxu0 %vm13887_vm0, %v8945_v20 }
 0x472   :  { %7849 = vmatprep.mubr.bf16.mxu0 %v13057_v0 }
 0x475   :  { %8660 = vmatmul.mubr.msk.bf16.gmra.mxu1 %vm13918_vm3, %v8946_v42 }
 0x476   :  { %7972 = vmatprep.mubr.bf16.mxu1 %v13057_v0 }
 0x479   :  { %8651 = vmatmul.mubr.msk.bf16.gmra.mxu0 %vm13919_vm15, %v8946_v42 }
 0x47a   :  { %7859 = vmatprep.mubr.bf16.mxu0 %v13057_v0 }
 0x47d   :  { %8661 = vmatmul.mubr.msk.bf16.gmra.mxu1 %vm13920_vm1, %v8947_v22 }
 0x47e   :  { %7982 = vmatprep.mubr.bf16.mxu1 %v13057_v0 }
 0x481   :  { %8652 = vmatmul.mubr.msk.bf16.gmra.mxu0 %vm13921_vm8, %v8947_v22 }
 0x482   :  { %7869 = vmatprep.mubr.bf16.mxu0 %v13057_v0 }
 0x485   :  { %8662 = vmatmul.mubr.msk.bf16.gmra.mxu1 %vm13922_vm5, %v8948_v23 }
 0x486   :  { %7992 = vmatprep.mubr.bf16.mxu1 %v13057_v0 }
 0x489   :  { %8653 = vmatmul.mubr.msk.bf16.gmra.mxu0 %vm13923_vm2, %v8948_v23 }
 0x48a   :  { %7879 = vmatprep.mubr.bf16.mxu0 %v13057_v0 }
 0x48d   :  { %8663 = vmatmul.mubr.msk.bf16.gmra.mxu1 %vm13924_vm12, %v8949_v21 }
 0x491   :  { %8654 = vmatmul.mubr.msk.bf16.gmra.mxu0 %vm13925_vm7, %v8949_v21  ;;  %v8961_v21 = vld [vmem:[#allocation2 + $0xd0] sm:$0xff] }
 0x4d5   :  { %v7698_v52 = vpop.f32.mrf.mxu1 }
 0x4d6   :  { %v7699_v26 = vadd.f32 %v7698_v52, %v12616_v24 }
 0x4d7   :  { %v7700_v49 = vpop.f32.mrf.mxu1 }
 0x4d8   :  { %v7701_v44 = vadd.f32 %v7700_v49, %v12616_v24  ;;  %v8005_v54 = vadd.f32 %v8950_v50, %v7699_v26 }
 0x4d9   :  { %v7585_v31 = vpop.f32.mrf.mxu0  ;;  %v7702_v0 = vpop.f32.mrf.mxu1 }
 0x4da   :  { %v7586_v34 = vadd.f32 %v7585_v31, %v12616_v24  ;;  %v7703_v41 = vadd.f32 %v7702_v0, %v12619_v8  ;;  %v8006_v6 = vadd.f32 %v8952_v12, %v7701_v44  ;;  %v8133_v7 = vmax.f32 %v8005_v54, 0.0  ;;  %v8962_v31 = vld [vmem:[#allocation2 + $0x88] sm:$0xff]  ;;  %v12639_v44 = vpop.permute.xlu1 %7405 }
 0x4db   :  { %v7587_v5 = vpop.f32.mrf.mxu0  ;;  %v7704_v53 = vpop.f32.mrf.mxu1 }
 0x4dc   :  { %v7588_v40 = vadd.f32 %v7587_v5, %v12616_v24  ;;  %v8003_v25 = vadd.f32 %v8951_v48, %v7586_v34  ;;  %v8013_v51 = vadd.f32 %v8953_v59, %v7703_v41  ;;  %v7705_v13 = vadd.f32 %v7704_v53, %v12619_v8  ;;  %8261 = vst [vmem:[#allocation5 + $0x10] sm:$0xff] %v8133_v7 }
 0x4dd   :  { %v7589_v19 = vpop.f32.mrf.mxu0  ;;  %v7708_v38 = vpop.f32.mrf.mxu1  ;;  %v8134_v2 = vmax.f32 %v8006_v6, 0.0 }
 0x4de   :  { %v7590_v45 = vadd.f32 %v7589_v19, %v12619_v8  ;;  %v8004_v39 = vadd.f32 %v8954_v37, %v7588_v40  ;;  %v8131_v33 = vmax.f32 %v8003_v25, 0.0  ;;  %v8141_v1 = vmax.f32 %v8013_v51, 0.0  ;;  %v8963_v40 = vld [vmem:[#allocation2 + $0xd8] sm:$0xff]  ;;  %v8964_v25 = vld [vmem:[#allocation2 + $0xc0] sm:$0xff]  ;;  %v12643_v51 = vpop.permute.xlu0 %7410 }
 0x4df   :  { %v7591_v60 = vpop.f32.mrf.mxu0  ;;  %v8014_v63 = vadd.f32 %v8955_v57, %v7705_v13  ;;  %8262 = vst [vmem:[#allocation5 + $0x18] sm:$0xff] %v8134_v2  ;;  %v7710_v56 = vpop.f32.mrf.mxu1  ;;  %v7709_v35 = vadd.f32 %v7708_v38, %v12627_v9  ;;  %v8965_v38 = vld [vmem:[#allocation2 + $0xc8] sm:$0xff] }
 0x4e0   :  { %v8011_v47 = vadd.f32 %v8956_v32, %v7590_v45  ;;  %v8132_v36 = vmax.f32 %v8004_v39, 0.0  ;;  %8259 = vst [vmem:[#allocation5] sm:$0xff] %v8131_v33  ;;  %v7592_v46 = vadd.f32 %v7591_v60, %v12619_v8  ;;  %8269 = vst [vmem:[#allocation5 + $0x50] sm:$0xff] %v8141_v1  ;;  %v7711_v4 = vadd.f32 %v7710_v56, %v12627_v9  ;;  %v8966_v1 = vld [vmem:[#allocation2 + $0x110] sm:$0xff] }
 0x4e1   :  { %v7595_v14 = vpop.f32.mrf.mxu0  ;;  %v8142_v16 = vmax.f32 %v8014_v63, 0.0  ;;  %v7712_v27 = vpop.f32.mrf.mxu1  ;;  %v8021_v43 = vadd.f32 %v8958_v30, %v7709_v35 }
 0x4e2   :  { %v8139_v15 = vmax.f32 %v8011_v47, 0.0  ;;  %8260 = vst [vmem:[#allocation5 + $0x8] sm:$0xff] %v8132_v36  ;;  %v7596_v55 = vadd.f32 %v7595_v14, %v12627_v9  ;;  %v8012_v28 = vadd.f32 %v8957_v10, %v7592_v46  ;;  %v7713_v18 = vadd.f32 %v7712_v27, %v12631_v29  ;;  %v8967_v47 = vld [vmem:[#allocation2 + $0x100] sm:$0xff]  ;;  %v8968_v46 = vld [vmem:[#allocation2 + $0x118] sm:$0xff]  ;;  %v8970_v27 = vld [vmem:[#allocation2 + $0x108] sm:$0xff]  ;;  %v12651_v30 = vpop.permute.xlu1 %7415 }
 0x4e3   :  { %v7597_v58 = vpop.f32.mrf.mxu0  ;;  %8270 = vst [vmem:[#allocation5 + $0x58] sm:$0xff] %v8142_v16  ;;  %v8022_v61 = vadd.f32 %v8960_v62, %v7711_v4  ;;  %v7714_v42 = vpop.f32.mrf.mxu1  ;;  %v8149_v23 = vmax.f32 %v8021_v43, 0.0  ;;  %v8971_v62 = vld [vmem:[#allocation2 + $0x158] sm:$0xff] }
 0x4e4   :  { %8267 = vst [vmem:[#allocation5 + $0x40] sm:$0xff] %v8139_v15  ;;  %v7598_v3 = vadd.f32 %v7597_v58, %v12627_v9  ;;  %v8019_v17 = vadd.f32 %v8959_v11, %v7596_v55  ;;  %v8140_v20 = vmax.f32 %v8012_v28, 0.0  ;;  %v8029_v52 = vadd.f32 %v8961_v21, %v7713_v18  ;;  %v8969_v55 = vld [vmem:[#allocation2 + $0x150] sm:$0xff] }
 0x4e5   :  { %v7599_v22 = vpop.f32.mrf.mxu0  ;;  %v7715_v26 = vadd.f32 %v7714_v42, %v12631_v29  ;;  %v7718_v50 = vpop.f32.mrf.mxu1  ;;  %v8150_v0 = vmax.f32 %v8022_v61, 0.0  ;;  %8277 = vst [vmem:[#allocation5 + $0x90] sm:$0xff] %v8149_v23 }
 0x4e6   :  { %v7600_v49 = vadd.f32 %v7599_v22, %v12631_v29  ;;  %v8020_v34 = vadd.f32 %v8962_v31, %v7598_v3  ;;  %8268 = vst [vmem:[#allocation5 + $0x48] sm:$0xff] %v8140_v20  ;;  %v8147_v54 = vmax.f32 %v8019_v17, 0.0  ;;  %v8157_v41 = vmax.f32 %v8029_v52, 0.0  ;;  %v8972_v20 = vld [vmem:[#allocation2 + $0x140] sm:$0xff] }
 0x4e7   :  { %v7601_v5 = vpop.f32.mrf.mxu0  ;;  %v8030_v48 = vadd.f32 %v8963_v40, %v7715_v26  ;;  %8278 = vst [vmem:[#allocation5 + $0x98] sm:$0xff] %v8150_v0  ;;  %v7720_v19 = vpop.f32.mrf.mxu1  ;;  %v7719_v59 = vadd.f32 %v7718_v50, %v12639_v44  ;;  %v8973_v0 = vld [vmem:[#allocation2 + $0x148] sm:$0xff] }
 0x4e8   :  { %v8027_v12 = vadd.f32 %v8964_v25, %v7600_v49  ;;  %v8148_v6 = vmax.f32 %v8020_v34, 0.0  ;;  %8275 = vst [vmem:[#allocation5 + $0x80] sm:$0xff] %v8147_v54  ;;  %v7602_v53 = vadd.f32 %v7601_v5, %v12631_v29  ;;  %8285 = vst [vmem:[#allocation5 + $0xd0] sm:$0xff] %v8157_v41  ;;  %v7721_v39 = vadd.f32 %v7720_v19, %v12639_v44  ;;  %v12655_v49 = vpop.permute.xlu0 %7420 }
 0x4e9   :  { %v7605_v7 = vpop.f32.mrf.mxu0  ;;  %v8158_v13 = vmax.f32 %v8030_v48, 0.0  ;;  %v7722_v2 = vpop.f32.mrf.mxu1  ;;  %v8037_v57 = vadd.f32 %v8966_v1, %v7719_v59  ;;  %v8974_v48 = vld [vmem:[#allocation2 + $0x190] sm:$0xff]  ;;  %v8978_v1 = vld [vmem:[#allocation2 + $0x188] sm:$0xff] }
 0x4ea   :  { %v8155_v45 = vmax.f32 %v8027_v12, 0.0  ;;  %8276 = vst [vmem:[#allocation5 + $0x88] sm:$0xff] %v8148_v6  ;;  %v7606_v37 = vadd.f32 %v7605_v7, %v12639_v44  ;;  %v8028_v33 = vadd.f32 %v8965_v38, %v7602_v53  ;;  %v7723_v63 = vadd.f32 %v7722_v2, %v12643_v51  ;;  %v8975_v53 = vld [vmem:[#allocation2 + $0x180] sm:$0xff]  ;;  %v8976_v7 = vld [vmem:[#allocation2 + $0x198] sm:$0xff]  ;;  %v8977_v38 = vld [vmem:[#allocation2 + $0x1d0] sm:$0xff] }
 0x4eb   :  { %v7607_v60 = vpop.f32.mrf.mxu0  ;;  %8286 = vst [vmem:[#allocation5 + $0xd8] sm:$0xff] %v8158_v13  ;;  %v8038_v56 = vadd.f32 %v8968_v46, %v7721_v39  ;;  %v7724_v35 = vpop.f32.mrf.mxu1  ;;  %v8165_v15 = vmax.f32 %v8037_v57, 0.0 }
 0x4ec   :  { %8283 = vst [vmem:[#allocation5 + $0xc0] sm:$0xff] %v8155_v45  ;;  %v7608_v32 = vadd.f32 %v7607_v60, %v12639_v44  ;;  %v8035_v36 = vadd.f32 %v8967_v47, %v7606_v37  ;;  %v8156_v14 = vmax.f32 %v8028_v33, 0.0  ;;  %v8045_v4 = vadd.f32 %v8969_v55, %v7723_v63  ;;  %v12663_v63 = vpop.permute.xlu1 %7425 }
 0x4ed   :  { %v7609_v16 = vpop.f32.mrf.mxu0  ;;  %v7725_v10 = vadd.f32 %v7724_v35, %v12643_v51  ;;  %v7728_v43 = vpop.f32.mrf.mxu1  ;;  %v8166_v3 = vmax.f32 %v8038_v56, 0.0  ;;  %8293 = vst [vmem:[#allocation5 + $0x110] sm:$0xff] %v8165_v15 }
 0x4ee   :  { %v7610_v28 = vadd.f32 %v7609_v16, %v12643_v51  ;;  %v8036_v58 = vadd.f32 %v8970_v27, %v7608_v32  ;;  %8284 = vst [vmem:[#allocation5 + $0xc8] sm:$0xff] %v8156_v14  ;;  %v8163_v18 = vmax.f32 %v8035_v36, 0.0  ;;  %v8173_v17 = vmax.f32 %v8045_v4, 0.0  ;;  %v8979_v14 = vld [vmem:[#allocation2 + $0x1d8] sm:$0xff]  ;;  %v8980_v16 = vld [vmem:[#allocation2 + $0x1c0] sm:$0xff] }
 0x4ef   :  { %v7611_v11 = vpop.f32.mrf.mxu0  ;;  %v8046_v61 = vadd.f32 %v8971_v62, %v7725_v10  ;;  %8294 = vst [vmem:[#allocation5 + $0x118] sm:$0xff] %v8166_v3  ;;  %v7730_v21 = vpop.f32.mrf.mxu1  ;;  %v7729_v26 = vadd.f32 %v7728_v43, %v12651_v30 }
 0x4f0   :  { %v8043_v42 = vadd.f32 %v8972_v20, %v7610_v28  ;;  %v8164_v22 = vmax.f32 %v8036_v58, 0.0  ;;  %8291 = vst [vmem:[#allocation5 + $0x100] sm:$0xff] %v8163_v18  ;;  %v7612_v23 = vadd.f32 %v7611_v11, %v12643_v51  ;;  %8301 = vst [vmem:[#allocation5 + $0x150] sm:$0xff] %v8173_v17  ;;  %v7731_v54 = vadd.f32 %v7730_v21, %v12651_v30  ;;  %v12667_v58 = vpop.permute.xlu0 %7430  ;;  %v8981_v17 = vld [vmem:[#allocation2 + $0x1c8] sm:$0xff] }
 0x4f1   :  { %v7615_v52 = vpop.f32.mrf.mxu0  ;;  %v8174_v31 = vmax.f32 %v8046_v61, 0.0  ;;  %v7732_v41 = vpop.f32.mrf.mxu1  ;;  %v8053_v25 = vadd.f32 %v8974_v48, %v7729_v26 }
 0x4f2   :  { %v8171_v34 = vmax.f32 %v8043_v42, 0.0  ;;  %8292 = vst [vmem:[#allocation5 + $0x108] sm:$0xff] %v8164_v22  ;;  %v7616_v50 = vadd.f32 %v7615_v52, %v12651_v30  ;;  %v8044_v5 = vadd.f32 %v8973_v0, %v7612_v23  ;;  %v7733_v12 = vadd.f32 %v7732_v41, %v12655_v49  ;;  %v8982_v42 = vld [vmem:[#allocation2 + $0x210] sm:$0xff]  ;;  %v8983_v52 = vld [vmem:[#allocation2 + $0x200] sm:$0xff] }
 0x4f3   :  { %v7617_v40 = vpop.f32.mrf.mxu0  ;;  %8302 = vst [vmem:[#allocation5 + $0x158] sm:$0xff] %v8174_v31  ;;  %v8054_v59 = vadd.f32 %v8976_v7, %v7731_v54  ;;  %v7734_v45 = vpop.f32.mrf.mxu1  ;;  %v8181_v39 = vmax.f32 %v8053_v25, 0.0  ;;  %v8984_v31 = vld [vmem:[#allocation2 + $0x218] sm:$0xff]  ;;  %v8985_v41 = vld [vmem:[#allocation2 + $0x250] sm:$0xff] }
 0x4f4   :  { %8299 = vst [vmem:[#allocation5 + $0x140] sm:$0xff] %v8171_v34  ;;  %v7618_v6 = vadd.f32 %v7617_v40, %v12651_v30  ;;  %v8051_v19 = vadd.f32 %v8975_v53, %v7616_v50  ;;  %v8172_v13 = vmax.f32 %v8044_v5, 0.0  ;;  %v8061_v33 = vadd.f32 %v8977_v38, %v7733_v12  ;;  %v8986_v12 = vld [vmem:[#allocation2 + $0x208] sm:$0xff]  ;;  %v12675_v53 = vpop.permute.xlu1 %7435  ;;  %v8988_v38 = vld [vmem:[#allocation2 + $0x240] sm:$0xff] }
 0x4f5   :  { %v7619_v37 = vpop.f32.mrf.mxu0  ;;  %v7735_v2 = vadd.f32 %v7734_v45, %v12655_v49  ;;  %v7738_v32 = vpop.f32.mrf.mxu1  ;;  %v8182_v36 = vmax.f32 %v8054_v59, 0.0  ;;  %8309 = vst [vmem:[#allocation5 + $0x190] sm:$0xff] %v8181_v39 }
 0x4f6   :  { %v7620_v60 = vadd.f32 %v7619_v37, %v12655_v49  ;;  %v8052_v57 = vadd.f32 %v8978_v1, %v7618_v6  ;;  %8300 = vst [vmem:[#allocation5 + $0x148] sm:$0xff] %v8172_v13  ;;  %v8179_v47 = vmax.f32 %v8051_v19, 0.0  ;;  %v8189_v56 = vmax.f32 %v8061_v33, 0.0  ;;  %v8987_v37 = vld [vmem:[#allocation2 + $0x258] sm:$0xff] }
 0x4f7   :  { %v7621_v46 = vpop.f32.mrf.mxu0  ;;  %v8062_v35 = vadd.f32 %v8979_v14, %v7735_v2  ;;  %8310 = vst [vmem:[#allocation5 + $0x198] sm:$0xff] %v8182_v36  ;;  %v7740_v10 = vpop.f32.mrf.mxu1  ;;  %v7739_v27 = vadd.f32 %v7738_v32, %v12663_v63 }
 0x4f8   :  { %v8059_v15 = vadd.f32 %v8980_v16, %v7620_v60  ;;  %v8180_v55 = vmax.f32 %v8052_v57, 0.0  ;;  %8307 = vst [vmem:[#allocation5 + $0x180] sm:$0xff] %v8179_v47  ;;  %v7622_v4 = vadd.f32 %v7621_v46, %v12655_v49  ;;  %8317 = vst [vmem:[#allocation5 + $0x1d0] sm:$0xff] %v8189_v56  ;;  %v7741_v11 = vadd.f32 %v7740_v10, %v12663_v63  ;;  %v12679_v47 = vpop.permute.xlu0 %7440 }
 0x4f9   :  { %v7625_v28 = vpop.f32.mrf.mxu0  ;;  %v8190_v43 = vmax.f32 %v8062_v35, 0.0  ;;  %v7742_v61 = vpop.f32.mrf.mxu1  ;;  %v8069_v22 = vadd.f32 %v8982_v42, %v7739_v27  ;;  %v8989_v35 = vld [vmem:[#allocation2 + $0x248] sm:$0xff]  ;;  %v8993_v42 = vld [vmem:[#allocation2 + $0x2d0] sm:$0xff] }
 0x4fa   :  { %v8187_v18 = vmax.f32 %v8059_v15, 0.0  ;;  %8308 = vst [vmem:[#allocation5 + $0x188] sm:$0xff] %v8180_v55  ;;  %v7626_v3 = vadd.f32 %v7625_v28, %v12663_v63  ;;  %v8060_v62 = vadd.f32 %v8981_v17, %v7622_v4  ;;  %v7743_v23 = vadd.f32 %v7742_v61, %v12667_v58  ;;  %v8990_v4 = vld [vmem:[#allocation2 + $0x290] sm:$0xff] }
 0x4fb   :  { %v7627_v20 = vpop.f32.mrf.mxu0  ;;  %8318 = vst [vmem:[#allocation5 + $0x1d8] sm:$0xff] %v8190_v43  ;;  %v8070_v34 = vadd.f32 %v8984_v31, %v7741_v11  ;;  %v7744_v54 = vpop.f32.mrf.mxu1  ;;  %v8197_v5 = vmax.f32 %v8069_v22, 0.0  ;;  %v8991_v43 = vld [vmem:[#allocation2 + $0x280] sm:$0xff] }
 0x4fc   :  { %8315 = vst [vmem:[#allocation5 + $0x1c0] sm:$0xff] %v8187_v18  ;;  %v7628_v21 = vadd.f32 %v7627_v20, %v12663_v63  ;;  %v8067_v26 = vadd.f32 %v8983_v52, %v7626_v3  ;;  %v8188_v50 = vmax.f32 %v8060_v62, 0.0  ;;  %v8077_v40 = vadd.f32 %v8985_v41, %v7743_v23  ;;  %v8992_v3 = vld [vmem:[#allocation2 + $0x298] sm:$0xff]  ;;  %v8994_v52 = vld [vmem:[#allocation2 + $0x288] sm:$0xff]  ;;  %v12687_v31 = vpop.permute.xlu1 %7445 }
 0x4fd   :  { %v7629_v0 = vpop.f32.mrf.mxu0  ;;  %v7745_v48 = vadd.f32 %v7744_v54, %v12667_v58  ;;  %v7748_v19 = vpop.f32.mrf.mxu1  ;;  %v8198_v59 = vmax.f32 %v8070_v34, 0.0  ;;  %8325 = vst [vmem:[#allocation5 + $0x210] sm:$0xff] %v8197_v5  ;;  %v8995_v41 = vld [vmem:[#allocation2 + $0x2d8] sm:$0xff] }
 0x4fe   :  { %v7630_v25 = vadd.f32 %v7629_v0, %v12667_v58  ;;  %v8068_v6 = vadd.f32 %v8986_v12, %v7628_v21  ;;  %8316 = vst [vmem:[#allocation5 + $0x1c8] sm:$0xff] %v8188_v50  ;;  %v8195_v7 = vmax.f32 %v8067_v26, 0.0  ;;  %v8205_v45 = vmax.f32 %v8077_v40, 0.0 }
 0x4ff   :  { %v7631_v13 = vpop.f32.mrf.mxu0  ;;  %v8078_v39 = vadd.f32 %v8987_v37, %v7745_v48  ;;  %8326 = vst [vmem:[#allocation5 + $0x218] sm:$0xff] %v8198_v59  ;;  %v7750_v1 = vpop.f32.mrf.mxu1  ;;  %v7749_v32 = vadd.f32 %v7748_v19, %v12675_v53  ;;  %v8996_v48 = vld [vmem:[#allocation2 + $0x2c0] sm:$0xff] }
 0x500   :  { %v8075_v33 = vadd.f32 %v8988_v38, %v7630_v25  ;;  %v8196_v2 = vmax.f32 %v8068_v6, 0.0  ;;  %8323 = vst [vmem:[#allocation5 + $0x200] sm:$0xff] %v8195_v7  ;;  %v7632_v60 = vadd.f32 %v7631_v13, %v12667_v58  ;;  %8333 = vst [vmem:[#allocation5 + $0x250] sm:$0xff] %v8205_v45  ;;  %v7751_v14 = vadd.f32 %v7750_v1, %v12675_v53  ;;  %v12691_v13 = vpop.permute.xlu0 %7450 }
 0x501   :  { %v7635_v57 = vpop.f32.mrf.mxu0  ;;  %v8206_v36 = vmax.f32 %v8078_v39, 0.0  ;;  %v7752_v15 = vpop.f32.mrf.mxu1  ;;  %v8085_v10 = vadd.f32 %v8990_v4, %v7749_v32 }
 0x502   :  { %v8203_v46 = vmax.f32 %v8075_v33, 0.0  ;;  %8324 = vst [vmem:[#allocation5 + $0x208] sm:$0xff] %v8196_v2  ;;  %v7636_v56 = vadd.f32 %v7635_v57, %v12675_v53  ;;  %v8076_v16 = vadd.f32 %v8989_v35, %v7632_v60  ;;  %v7753_v28 = vadd.f32 %v7752_v15, %v12679_v47  ;;  %v8997_v33 = vld [vmem:[#allocation2 + $0x2c8] sm:$0xff]  ;;  %v8998_v57 = vld [vmem:[#allocation2 + $0x310] sm:$0xff]  ;;  %v9000_v35 = vld [vmem:[#allocation2 + $0x318] sm:$0xff] }
 0x503   :  { %v7637_v55 = vpop.f32.mrf.mxu0  ;;  %8334 = vst [vmem:[#allocation5 + $0x258] sm:$0xff] %v8206_v36  ;;  %v8086_v11 = vadd.f32 %v8992_v3, %v7751_v14  ;;  %v7754_v62 = vpop.f32.mrf.mxu1  ;;  %v8213_v20 = vmax.f32 %v8085_v10, 0.0  ;;  %v9002_v3 = vld [vmem:[#allocation2 + $0x308] sm:$0xff] }
 0x504   :  { %8331 = vst [vmem:[#allocation5 + $0x240] sm:$0xff] %v8203_v46  ;;  %v7638_v27 = vadd.f32 %v7637_v55, %v12675_v53  ;;  %v8083_v18 = vadd.f32 %v8991_v43, %v7636_v56  ;;  %v8204_v17 = vmax.f32 %v8076_v16, 0.0  ;;  %v8093_v22 = vadd.f32 %v8993_v42, %v7753_v28  ;;  %v8999_v56 = vld [vmem:[#allocation2 + $0x300] sm:$0xff]  ;;  %v9001_v28 = vld [vmem:[#allocation2 + $0x350] sm:$0xff] }
 0x505   :  { %v7639_v61 = vpop.f32.mrf.mxu0  ;;  %v7755_v23 = vadd.f32 %v7754_v62, %v12679_v47  ;;  %v7758_v34 = vpop.f32.mrf.mxu1  ;;  %v8214_v54 = vmax.f32 %v8086_v11, 0.0  ;;  %8341 = vst [vmem:[#allocation5 + $0x290] sm:$0xff] %v8213_v20 }
 0x506   :  { %v7640_v21 = vadd.f32 %v7639_v61, %v12679_v47  ;;  %v8084_v26 = vadd.f32 %v8994_v52, %v7638_v27  ;;  %8332 = vst [vmem:[#allocation5 + $0x248] sm:$0xff] %v8204_v17  ;;  %v8211_v50 = vmax.f32 %v8083_v18, 0.0  ;;  %v8221_v5 = vmax.f32 %v8093_v22, 0.0  ;;  %v12699_v17 = vpop.permute.xlu1 %7455  ;;  %v9004_v52 = vld [vmem:[#allocation2 + $0x340] sm:$0xff] }
 0x507   :  { %v7641_v0 = vpop.f32.mrf.mxu0  ;;  %v8094_v40 = vadd.f32 %v8995_v41, %v7755_v23  ;;  %8342 = vst [vmem:[#allocation5 + $0x298] sm:$0xff] %v8214_v54  ;;  %v7760_v19 = vpop.f32.mrf.mxu1  ;;  %v7759_v59 = vadd.f32 %v7758_v34, %v12687_v31  ;;  %v9003_v23 = vld [vmem:[#allocation2 + $0x358] sm:$0xff] }
 0x508   :  { %v8091_v25 = vadd.f32 %v8996_v48, %v7640_v21  ;;  %v8212_v12 = vmax.f32 %v8084_v26, 0.0  ;;  %8339 = vst [vmem:[#allocation5 + $0x280] sm:$0xff] %v8211_v50  ;;  %v7642_v6 = vadd.f32 %v7641_v0, %v12679_v47  ;;  %8349 = vst [vmem:[#allocation5 + $0x2d0] sm:$0xff] %v8221_v5  ;;  %v7761_v38 = vadd.f32 %v7760_v19, %v12687_v31  ;;  %v12703_v41 = vpop.permute.xlu0 %7460 }
 0x509   :  { %v7645_v7 = vpop.f32.mrf.mxu0  ;;  %v8222_v45 = vmax.f32 %v8094_v40, 0.0  ;;  %v7762_v60 = vpop.f32.mrf.mxu1  ;;  %v8101_v32 = vadd.f32 %v8998_v57, %v7759_v59 }
 0x50a   :  { %v8219_v37 = vmax.f32 %v8091_v25, 0.0  ;;  %8340 = vst [vmem:[#allocation5 + $0x288] sm:$0xff] %v8212_v12  ;;  %v7646_v39 = vadd.f32 %v7645_v7, %v12687_v31  ;;  %v8092_v2 = vadd.f32 %v8997_v33, %v7642_v6  ;;  %v7763_v36 = vadd.f32 %v7762_v60, %v12691_v13  ;;  %v9005_v6 = vld [vmem:[#allocation2 + $0x348] sm:$0xff]  ;;  %v9007_v33 = vld [vmem:[#allocation2 + $0x380] sm:$0xff]  ;;  %v9008_v60 = vld [vmem:[#allocation2 + $0x398] sm:$0xff] }
 0x50b   :  { %v7647_v1 = vpop.f32.mrf.mxu0  ;;  %8350 = vst [vmem:[#allocation5 + $0x2d8] sm:$0xff] %v8222_v45  ;;  %v8102_v16 = vadd.f32 %v9000_v35, %v7761_v38  ;;  %v7764_v55 = vpop.f32.mrf.mxu1  ;;  %v8229_v10 = vmax.f32 %v8101_v32, 0.0  ;;  %v9006_v45 = vld [vmem:[#allocation2 + $0x390] sm:$0xff] }
 0x50c   :  { %8347 = vst [vmem:[#allocation5 + $0x2c0] sm:$0xff] %v8219_v37  ;;  %v7648_v46 = vadd.f32 %v7647_v1, %v12687_v31  ;;  %v8099_v14 = vadd.f32 %v8999_v56, %v7646_v39  ;;  %v8220_v15 = vmax.f32 %v8092_v2, 0.0  ;;  %v8109_v27 = vadd.f32 %v9001_v28, %v7763_v36  ;;  %v9009_v56 = vld [vmem:[#allocation2 + $0x3d0] sm:$0xff] }
 0x50d   :  { %v7649_v4 = vpop.f32.mrf.mxu0  ;;  %v7765_v43 = vadd.f32 %v7764_v55, %v12691_v13  ;;  %v7768_v62 = vpop.f32.mrf.mxu1  ;;  %v8230_v20 = vmax.f32 %v8102_v16, 0.0  ;;  %8357 = vst [vmem:[#allocation5 + $0x310] sm:$0xff] %v8229_v10 }
 0x50e   :  { %v7650_v18 = vadd.f32 %v7649_v4, %v12691_v13  ;;  %v8100_v11 = vadd.f32 %v9002_v3, %v7648_v46  ;;  %8348 = vst [vmem:[#allocation5 + $0x2c8] sm:$0xff] %v8220_v15  ;;  %v8227_v61 = vmax.f32 %v8099_v14, 0.0  ;;  %v8237_v22 = vmax.f32 %v8109_v27, 0.0  ;;  %v9010_v15 = vld [vmem:[#allocation2 + $0x388] sm:$0xff] }
 0x50f   :  { %v7651_v42 = vpop.f32.mrf.mxu0  ;;  %v8110_v21 = vadd.f32 %v9003_v23, %v7765_v43  ;;  %8358 = vst [vmem:[#allocation5 + $0x318] sm:$0xff] %v8230_v20  ;;  %v7770_v54 = vpop.f32.mrf.mxu1  ;;  %v7769_v5 = vadd.f32 %v7768_v62, %v12699_v17 }
 0x510   :  { %v8107_v26 = vadd.f32 %v9004_v52, %v7650_v18  ;;  %v8228_v34 = vmax.f32 %v8100_v11, 0.0  ;;  %8355 = vst [vmem:[#allocation5 + $0x300] sm:$0xff] %v8227_v61  ;;  %v7652_v50 = vadd.f32 %v7651_v42, %v12691_v13  ;;  %8365 = vst [vmem:[#allocation5 + $0x350] sm:$0xff] %v8237_v22  ;;  %v7771_v12 = vadd.f32 %v7770_v54, %v12699_v17  ;;  %v9011_v18 = vld [vmem:[#allocation2 + $0x3d8] sm:$0xff]  ;;  %v9012_v11 = vld [vmem:[#allocation2 + $0x3c0] sm:$0xff] }
 0x511   :  { %v7655_v0 = vpop.f32.mrf.mxu0  ;;  %v8238_v40 = vmax.f32 %v8110_v21, 0.0  ;;  %v7772_v7 = vpop.f32.mrf.mxu1  ;;  %v8117_v37 = vadd.f32 %v9006_v45, %v7769_v5  ;;  %v9014_v54 = vld [vmem:[#allocation2 + $0x3c8] sm:$0xff]  ;;  %v9016_v45 = vld [vmem:[#allocation2 + $0x20] sm:$0xff] }
 0x512   :  { %v8235_v48 = vmax.f32 %v8107_v26, 0.0  ;;  %8356 = vst [vmem:[#allocation5 + $0x308] sm:$0xff] %v8228_v34  ;;  %v7656_v25 = vadd.f32 %v7655_v0, %v12699_v17  ;;  %v8108_v19 = vadd.f32 %v9005_v6, %v7652_v50  ;;  %v7773_v39 = vadd.f32 %v7772_v7, %v12703_v41  ;;  %v9013_v26 = vld [vmem:[#allocation2 + $0x30] sm:$0xff] }
 0x513   :  { %v7657_v59 = vpop.f32.mrf.mxu0  ;;  %8366 = vst [vmem:[#allocation5 + $0x358] sm:$0xff] %v8238_v40  ;;  %v8118_v1 = vadd.f32 %v9008_v60, %v7771_v12  ;;  %v7774_v32 = vpop.f32.mrf.mxu1  ;;  %v8245_v46 = vmax.f32 %v8117_v37, 0.0  ;;  %v9015_v12 = vld [vmem:[#allocation2 + $0x38] sm:$0xff] }
 0x514   :  { %8363 = vst [vmem:[#allocation5 + $0x340] sm:$0xff] %v8235_v48  ;;  %v7658_v38 = vadd.f32 %v7657_v59, %v12699_v17  ;;  %v8115_v2 = vadd.f32 %v9007_v33, %v7656_v25  ;;  %v8236_v57 = vmax.f32 %v8108_v19, 0.0  ;;  %v8125_v14 = vadd.f32 %v9009_v56, %v7773_v39 }
 0x515   :  { %v7659_v36 = vpop.f32.mrf.mxu0  ;;  %v7775_v35 = vadd.f32 %v7774_v32, %v12703_v41  ;;  %v7924_v4 = vpop.f32.mrf.mxu1  ;;  %v8246_v28 = vmax.f32 %v8118_v1, 0.0  ;;  %8373 = vst [vmem:[#allocation5 + $0x390] sm:$0xff] %v8245_v46  ;;  %v9018_v1 = vld [vmem:[#allocation2 + $0x28] sm:$0xff] }
 0x516   :  { %v7660_v16 = vadd.f32 %v7659_v36, %v12703_v41  ;;  %v8116_v55 = vadd.f32 %v9010_v15, %v7658_v38  ;;  %8364 = vst [vmem:[#allocation5 + $0x348] sm:$0xff] %v8236_v57  ;;  %v8243_v10 = vmax.f32 %v8115_v2, 0.0  ;;  %v8253_v43 = vmax.f32 %v8125_v14, 0.0  ;;  %v9017_v2 = vld [vmem:[#allocation2 + $0x70] sm:$0xff] }
 0x517   :  { %v7661_v27 = vpop.f32.mrf.mxu0  ;;  %v8126_v3 = vadd.f32 %v9011_v18, %v7775_v35  ;;  %v7925_v61 = vadd.f32 %v7924_v4, %v12616_v24  ;;  %8374 = vst [vmem:[#allocation5 + $0x398] sm:$0xff] %v8246_v28  ;;  %v7926_v22 = vpop.f32.mrf.mxu1  ;;  %v9020_v4 = vld [vmem:[#allocation2 + $0x60] sm:$0xff] }
 0x518   :  { %v8123_v62 = vadd.f32 %v9012_v11, %v7660_v16  ;;  %v8244_v20 = vmax.f32 %v8116_v55, 0.0  ;;  %8371 = vst [vmem:[#allocation5 + $0x380] sm:$0xff] %v8243_v10  ;;  %v7662_v42 = vadd.f32 %v7661_v27, %v12703_v41  ;;  %8381 = vst [vmem:[#allocation5 + $0x3d0] sm:$0xff] %v8253_v43  ;;  %v7927_v50 = vadd.f32 %v7926_v22, %v12616_v24  ;;  %v9019_v16 = vld [vmem:[#allocation2 + $0x78] sm:$0xff] }
 0x519   :  { %v7811_v23 = vpop.f32.mrf.mxu0  ;;  %v8254_v21 = vmax.f32 %v8126_v3, 0.0  ;;  %v8009_v34 = vadd.f32 %v9013_v26, %v7925_v61  ;;  %v7928_v40 = vpop.f32.mrf.mxu1  ;;  %v9021_v3 = vld [vmem:[#allocation2 + $0xb0] sm:$0xff]  ;;  %v9023_v26 = vld [vmem:[#allocation2 + $0xb8] sm:$0xff] }
 0x51a   :  { %v8251_v52 = vmax.f32 %v8123_v62, 0.0  ;;  %8372 = vst [vmem:[#allocation5 + $0x388] sm:$0xff] %v8244_v20  ;;  %v8124_v0 = vadd.f32 %v9014_v54, %v7662_v42  ;;  %v7812_v5 = vadd.f32 %v7811_v23, %v12616_v24  ;;  %v8010_v6 = vadd.f32 %v9015_v12, %v7927_v50  ;;  %v9022_v42 = vld [vmem:[#allocation2 + $0x68] sm:$0xff] }
 0x51b   :  { %v7813_v48 = vpop.f32.mrf.mxu0  ;;  %8382 = vst [vmem:[#allocation5 + $0x3d8] sm:$0xff] %v8254_v21  ;;  %v8137_v25 = vmax.f32 %v8009_v34, 0.0  ;;  %v7929_v19 = vadd.f32 %v7928_v40, %v12619_v8  ;;  %v7930_v39 = vpop.f32.mrf.mxu1  ;;  %v9024_v34 = vld [vmem:[#allocation2 + $0xa0] sm:$0xff] }
 0x51c   :  { %8379 = vst [vmem:[#allocation5 + $0x3c0] sm:$0xff] %v8251_v52  ;;  %v7814_v7 = vadd.f32 %v7813_v48, %v12616_v24  ;;  %v8252_v59 = vmax.f32 %v8124_v0, 0.0  ;;  %v8007_v37 = vadd.f32 %v9016_v45, %v7812_v5  ;;  %v8138_v33 = vmax.f32 %v8010_v6, 0.0  ;;  %v9025_v6 = vld [vmem:[#allocation2 + $0xf0] sm:$0xff] }
 0x51d   :  { %v7815_v38 = vpop.f32.mrf.mxu0  ;;  %8265 = vst [vmem:[#allocation5 + $0x30] sm:$0xff] %v8137_v25  ;;  %v8017_v60 = vadd.f32 %v9017_v2, %v7929_v19  ;;  %v7931_v32 = vadd.f32 %v7930_v39, %v12619_v8  ;;  %v7934_v56 = vpop.f32.mrf.mxu1 }
 0x51e   :  { %v8008_v57 = vadd.f32 %v9018_v1, %v7814_v7  ;;  %8380 = vst [vmem:[#allocation5 + $0x3c8] sm:$0xff] %v8252_v59  ;;  %v8135_v36 = vmax.f32 %v8007_v37, 0.0  ;;  %v7816_v46 = vadd.f32 %v7815_v38, %v12619_v8  ;;  %8266 = vst [vmem:[#allocation5 + $0x38] sm:$0xff] %v8138_v33  ;;  %v7935_v55 = vadd.f32 %v7934_v56, %v12627_v9  ;;  %v9026_v59 = vld [vmem:[#allocation2 + $0xa8] sm:$0xff] }
 0x51f   :  { %v7817_v14 = vpop.f32.mrf.mxu0  ;;  %v8145_v24 = vmax.f32 %v8017_v60, 0.0  ;;  %v8018_v15 = vadd.f32 %v9019_v16, %v7931_v32  ;;  %v7936_v27 = vpop.f32.mrf.mxu1  ;;  %v9028_v32 = vld [vmem:[#allocation2 + $0xe0] sm:$0xff]  ;;  %v9030_v16 = vld [vmem:[#allocation2 + $0xe8] sm:$0xff] }
 0x520   :  { %v8136_v35 = vmax.f32 %v8008_v57, 0.0  ;;  %8263 = vst [vmem:[#allocation5 + $0x20] sm:$0xff] %v8135_v36  ;;  %v8015_v10 = vadd.f32 %v9020_v4, %v7816_v46  ;;  %v7818_v28 = vadd.f32 %v7817_v14, %v12619_v8  ;;  %v8025_v11 = vadd.f32 %v9021_v3, %v7935_v55 }
 0x521   :  { %v7821_v43 = vpop.f32.mrf.mxu0  ;;  %8273 = vst [vmem:[#allocation5 + $0x70] sm:$0xff] %v8145_v24  ;;  %v8146_v18 = vmax.f32 %v8018_v15, 0.0  ;;  %v7937_v62 = vadd.f32 %v7936_v27, %v12627_v9  ;;  %v7938_v23 = vpop.f32.mrf.mxu1  ;;  %v9029_v24 = vld [vmem:[#allocation2 + $0x130] sm:$0xff] }
 0x522   :  { %8264 = vst [vmem:[#allocation5 + $0x28] sm:$0xff] %v8136_v35  ;;  %v7822_v61 = vadd.f32 %v7821_v43, %v12627_v9  ;;  %v8143_v20 = vmax.f32 %v8015_v10, 0.0  ;;  %v8016_v22 = vadd.f32 %v9022_v42, %v7818_v28  ;;  %v8153_v52 = vmax.f32 %v8025_v11, 0.0 }
 0x523   :  { %v7823_v21 = vpop.f32.mrf.mxu0  ;;  %8274 = vst [vmem:[#allocation5 + $0x78] sm:$0xff] %v8146_v18  ;;  %v8026_v8 = vadd.f32 %v9023_v26, %v7937_v62  ;;  %v7939_v54 = vadd.f32 %v7938_v23, %v12631_v29  ;;  %v7940_v40 = vpop.f32.mrf.mxu1  ;;  %v9031_v18 = vld [vmem:[#allocation2 + $0x138] sm:$0xff]  ;;  %v9032_v62 = vld [vmem:[#allocation2 + $0x120] sm:$0xff] }
 0x524   :  { %v8023_v50 = vadd.f32 %v9024_v34, %v7822_v61  ;;  %8271 = vst [vmem:[#allocation5 + $0x60] sm:$0xff] %v8143_v20  ;;  %v8144_v0 = vmax.f32 %v8016_v22, 0.0  ;;  %v7824_v5 = vadd.f32 %v7823_v21, %v12627_v9  ;;  %8281 = vst [vmem:[#allocation5 + $0xb0] sm:$0xff] %v8153_v52  ;;  %v7941_v7 = vadd.f32 %v7940_v40, %v12631_v29  ;;  %v9027_v9 = vld [vmem:[#allocation2 + $0xf8] sm:$0xff]  ;;  %v9033_v21 = vld [vmem:[#allocation2 + $0x170] sm:$0xff] }
 0x525   :  { %v7825_v48 = vpop.f32.mrf.mxu0  ;;  %v8154_v25 = vmax.f32 %v8026_v8, 0.0  ;;  %v8033_v19 = vadd.f32 %v9025_v6, %v7939_v54  ;;  %v7944_v39 = vpop.f32.mrf.mxu1 }
 0x526   :  { %v8151_v12 = vmax.f32 %v8023_v50, 0.0  ;;  %8272 = vst [vmem:[#allocation5 + $0x68] sm:$0xff] %v8144_v0  ;;  %v8024_v45 = vadd.f32 %v9026_v59, %v7824_v5  ;;  %v7826_v37 = vadd.f32 %v7825_v48, %v12631_v29  ;;  %v8034_v2 = vadd.f32 %v9027_v9, %v7941_v7  ;;  %v9034_v50 = vld [vmem:[#allocation2 + $0x128] sm:$0xff]  ;;  %v9035_v48 = vld [vmem:[#allocation2 + $0x178] sm:$0xff] }
 0x527   :  { %v7827_v38 = vpop.f32.mrf.mxu0  ;;  %8282 = vst [vmem:[#allocation5 + $0xb8] sm:$0xff] %v8154_v25  ;;  %v8161_v33 = vmax.f32 %v8033_v19, 0.0  ;;  %v7945_v60 = vadd.f32 %v7944_v39, %v12639_v44  ;;  %v7946_v46 = vpop.f32.mrf.mxu1  ;;  %v9036_v25 = vld [vmem:[#allocation2 + $0x160] sm:$0xff] }
 0x528   :  { %8279 = vst [vmem:[#allocation5 + $0xa0] sm:$0xff] %v8151_v12  ;;  %v7828_v1 = vadd.f32 %v7827_v38, %v12631_v29  ;;  %v8152_v57 = vmax.f32 %v8024_v45, 0.0  ;;  %v8031_v36 = vadd.f32 %v9028_v32, %v7826_v37  ;;  %v8162_v14 = vmax.f32 %v8034_v2, 0.0  ;;  %v9037_v38 = vld [vmem:[#allocation2 + $0x1b0] sm:$0xff]  ;;  %v9038_v2 = vld [vmem:[#allocation2 + $0x168] sm:$0xff] }
 0x529   :  { %v7831_v56 = vpop.f32.mrf.mxu0  ;;  %8289 = vst [vmem:[#allocation5 + $0xf0] sm:$0xff] %v8161_v33  ;;  %v8041_v35 = vadd.f32 %v9029_v24, %v7945_v60  ;;  %v7947_v55 = vadd.f32 %v7946_v46, %v12639_v44  ;;  %v7948_v28 = vpop.f32.mrf.mxu1 }
 0x52a   :  { %v8032_v15 = vadd.f32 %v9030_v16, %v7828_v1  ;;  %8280 = vst [vmem:[#allocation5 + $0xa8] sm:$0xff] %v8152_v57  ;;  %v8159_v4 = vmax.f32 %v8031_v36, 0.0  ;;  %v7832_v10 = vadd.f32 %v7831_v56, %v12639_v44  ;;  %8290 = vst [vmem:[#allocation5 + $0xf8] sm:$0xff] %v8162_v14  ;;  %v7949_v11 = vadd.f32 %v7948_v28, %v12643_v51 }
 0x52b   :  { %v7833_v27 = vpop.f32.mrf.mxu0  ;;  %v8169_v29 = vmax.f32 %v8041_v35, 0.0  ;;  %v8042_v3 = vadd.f32 %v9031_v18, %v7947_v55  ;;  %v7950_v42 = vpop.f32.mrf.mxu1  ;;  %v9040_v35 = vld [vmem:[#allocation2 + $0x1a0] sm:$0xff] }
 0x52c   :  { %v8160_v43 = vmax.f32 %v8032_v15, 0.0  ;;  %8287 = vst [vmem:[#allocation5 + $0xe0] sm:$0xff] %v8159_v4  ;;  %v8039_v61 = vadd.f32 %v9032_v62, %v7832_v10  ;;  %v7834_v20 = vadd.f32 %v7833_v27, %v12639_v44  ;;  %v8049_v52 = vadd.f32 %v9033_v21, %v7949_v11  ;;  %v9041_v10 = vld [vmem:[#allocation2 + $0x1f0] sm:$0xff]  ;;  %v9042_v27 = vld [vmem:[#allocation2 + $0x1a8] sm:$0xff] }
 0x52d   :  { %v7835_v22 = vpop.f32.mrf.mxu0  ;;  %8297 = vst [vmem:[#allocation5 + $0x130] sm:$0xff] %v8169_v29  ;;  %v8170_v23 = vmax.f32 %v8042_v3, 0.0  ;;  %v7951_v26 = vadd.f32 %v7950_v42, %v12643_v51  ;;  %v7954_v0 = vpop.f32.mrf.mxu1 }
 0x52e   :  { %8288 = vst [vmem:[#allocation5 + $0xe8] sm:$0xff] %v8160_v43  ;;  %v7836_v8 = vadd.f32 %v7835_v22, %v12643_v51  ;;  %v8167_v34 = vmax.f32 %v8039_v61, 0.0  ;;  %v8040_v54 = vadd.f32 %v9034_v50, %v7834_v20  ;;  %v8177_v40 = vmax.f32 %v8049_v52, 0.0  ;;  %v9043_v20 = vld [vmem:[#allocation2 + $0x1f8] sm:$0xff]  ;;  %v9045_v50 = vld [vmem:[#allocation2 + $0x230] sm:$0xff] }
 0x52f   :  { %v7837_v5 = vpop.f32.mrf.mxu0  ;;  %8298 = vst [vmem:[#allocation5 + $0x138] sm:$0xff] %v8170_v23  ;;  %v8050_v44 = vadd.f32 %v9035_v48, %v7951_v26  ;;  %v7955_v6 = vadd.f32 %v7954_v0, %v12651_v30  ;;  %v7956_v59 = vpop.f32.mrf.mxu1  ;;  %v9044_v23 = vld [vmem:[#allocation2 + $0x1e0] sm:$0xff]  ;;  %v9046_v48 = vld [vmem:[#allocation2 + $0x1e8] sm:$0xff] }
 0x530   :  { %v8047_v12 = vadd.f32 %v9036_v25, %v7836_v8  ;;  %8295 = vst [vmem:[#allocation5 + $0x120] sm:$0xff] %v8167_v34  ;;  %v8168_v19 = vmax.f32 %v8040_v54, 0.0  ;;  %v7838_v7 = vadd.f32 %v7837_v5, %v12643_v51  ;;  %8305 = vst [vmem:[#allocation5 + $0x170] sm:$0xff] %v8177_v40  ;;  %v7957_v9 = vadd.f32 %v7956_v59, %v12651_v30  ;;  %v9039_v51 = vld [vmem:[#allocation2 + $0x1b8] sm:$0xff] }
 0x531   :  { %v7841_v45 = vpop.f32.mrf.mxu0  ;;  %v8178_v37 = vmax.f32 %v8050_v44, 0.0  ;;  %v8057_v33 = vadd.f32 %v9037_v38, %v7955_v6  ;;  %v7958_v57 = vpop.f32.mrf.mxu1 }
 0x532   :  { %v8175_v39 = vmax.f32 %v8047_v12, 0.0  ;;  %8296 = vst [vmem:[#allocation5 + $0x128] sm:$0xff] %v8168_v19  ;;  %v8048_v60 = vadd.f32 %v9038_v2, %v7838_v7  ;;  %v7842_v1 = vadd.f32 %v7841_v45, %v12651_v30  ;;  %v8058_v46 = vadd.f32 %v9039_v51, %v7957_v9  ;;  %v9047_v19 = vld [vmem:[#allocation2 + $0x238] sm:$0xff]  ;;  %v9048_v7 = vld [vmem:[#allocation2 + $0x220] sm:$0xff] }
 0x533   :  { %v7843_v32 = vpop.f32.mrf.mxu0  ;;  %8306 = vst [vmem:[#allocation5 + $0x178] sm:$0xff] %v8178_v37  ;;  %v8185_v36 = vmax.f32 %v8057_v33, 0.0  ;;  %v7959_v56 = vadd.f32 %v7958_v57, %v12655_v49  ;;  %v7960_v15 = vpop.f32.mrf.mxu1 }
 0x534   :  { %8303 = vst [vmem:[#allocation5 + $0x160] sm:$0xff] %v8175_v39  ;;  %v7844_v14 = vadd.f32 %v7843_v32, %v12651_v30  ;;  %v8176_v24 = vmax.f32 %v8048_v60, 0.0  ;;  %v8055_v16 = vadd.f32 %v9040_v35, %v7842_v1  ;;  %v8186_v4 = vmax.f32 %v8058_v46, 0.0  ;;  %v9049_v60 = vld [vmem:[#allocation2 + $0x270] sm:$0xff]  ;;  %v9050_v32 = vld [vmem:[#allocation2 + $0x228] sm:$0xff] }
 0x535   :  { %v7845_v55 = vpop.f32.mrf.mxu0  ;;  %8313 = vst [vmem:[#allocation5 + $0x1b0] sm:$0xff] %v8185_v36  ;;  %v8065_v28 = vadd.f32 %v9041_v10, %v7959_v56  ;;  %v7961_v43 = vadd.f32 %v7960_v15, %v12655_v49  ;;  %v7964_v11 = vpop.f32.mrf.mxu1 }
 0x536   :  { %v8056_v29 = vadd.f32 %v9042_v27, %v7844_v14  ;;  %8304 = vst [vmem:[#allocation5 + $0x168] sm:$0xff] %v8176_v24  ;;  %v8183_v18 = vmax.f32 %v8055_v16, 0.0  ;;  %v7846_v3 = vadd.f32 %v7845_v55, %v12655_v49  ;;  %8314 = vst [vmem:[#allocation5 + $0x1b8] sm:$0xff] %v8186_v4  ;;  %v7965_v22 = vadd.f32 %v7964_v11, %v12663_v63  ;;  %v9052_v55 = vld [vmem:[#allocation2 + $0x260] sm:$0xff] }
 0x537   :  { %v7847_v62 = vpop.f32.mrf.mxu0  ;;  %v8193_v30 = vmax.f32 %v8065_v28, 0.0  ;;  %v8066_v42 = vadd.f32 %v9043_v20, %v7961_v43  ;;  %v7966_v26 = vpop.f32.mrf.mxu1 }
 0x538   :  { %v8184_v61 = vmax.f32 %v8056_v29, 0.0  ;;  %8311 = vst [vmem:[#allocation5 + $0x1a0] sm:$0xff] %v8183_v18  ;;  %v8063_v21 = vadd.f32 %v9044_v23, %v7846_v3  ;;  %v7848_v52 = vadd.f32 %v7847_v62, %v12655_v49  ;;  %v8073_v54 = vadd.f32 %v9045_v50, %v7965_v22  ;;  %v9053_v29 = vld [vmem:[#allocation2 + $0x2b0] sm:$0xff]  ;;  %v9054_v18 = vld [vmem:[#allocation2 + $0x268] sm:$0xff]  ;;  %v9055_v22 = vld [vmem:[#allocation2 + $0x2b8] sm:$0xff] }
 0x539   :  { %v7851_v8 = vpop.f32.mrf.mxu0  ;;  %8321 = vst [vmem:[#allocation5 + $0x1f0] sm:$0xff] %v8193_v30  ;;  %v8194_v34 = vmax.f32 %v8066_v42, 0.0  ;;  %v7967_v0 = vadd.f32 %v7966_v26, %v12663_v63  ;;  %v7968_v25 = vpop.f32.mrf.mxu1 }
 0x53a   :  { %8312 = vst [vmem:[#allocation5 + $0x1a8] sm:$0xff] %v8184_v61  ;;  %v7852_v5 = vadd.f32 %v7851_v8, %v12663_v63  ;;  %v8191_v40 = vmax.f32 %v8063_v21, 0.0  ;;  %v8064_v44 = vadd.f32 %v9046_v48, %v7848_v52  ;;  %v8201_v6 = vmax.f32 %v8073_v54, 0.0  ;;  %v9056_v52 = vld [vmem:[#allocation2 + $0x2a0] sm:$0xff] }
 0x53b   :  { %v7853_v12 = vpop.f32.mrf.mxu0  ;;  %8322 = vst [vmem:[#allocation5 + $0x1f8] sm:$0xff] %v8194_v34  ;;  %v8074_v49 = vadd.f32 %v9047_v19, %v7967_v0  ;;  %v7969_v45 = vadd.f32 %v7968_v25, %v12667_v58  ;;  %v7970_v38 = vpop.f32.mrf.mxu1  ;;  %v9057_v0 = vld [vmem:[#allocation2 + $0x2f0] sm:$0xff]  ;;  %v9058_v25 = vld [vmem:[#allocation2 + $0x2a8] sm:$0xff] }
 0x53c   :  { %v8071_v59 = vadd.f32 %v9048_v7, %v7852_v5  ;;  %8319 = vst [vmem:[#allocation5 + $0x1e0] sm:$0xff] %v8191_v40  ;;  %v8192_v37 = vmax.f32 %v8064_v44, 0.0  ;;  %v7854_v39 = vadd.f32 %v7853_v12, %v12663_v63  ;;  %8329 = vst [vmem:[#allocation5 + $0x230] sm:$0xff] %v8201_v6  ;;  %v7971_v57 = vadd.f32 %v7970_v38, %v12667_v58  ;;  %v9051_v63 = vld [vmem:[#allocation2 + $0x278] sm:$0xff] }
 0x53d   :  { %v7855_v33 = vpop.f32.mrf.mxu0  ;;  %v8202_v9 = vmax.f32 %v8074_v49, 0.0  ;;  %v8081_v1 = vadd.f32 %v9049_v60, %v7969_v45  ;;  %v7974_v46 = vpop.f32.mrf.mxu1  ;;  %v9059_v7 = vld [vmem:[#allocation2 + $0x2f8] sm:$0xff] }
 0x53e   :  { %v8199_v2 = vmax.f32 %v8071_v59, 0.0  ;;  %8320 = vst [vmem:[#allocation5 + $0x1e8] sm:$0xff] %v8192_v37  ;;  %v8072_v36 = vadd.f32 %v9050_v32, %v7854_v39  ;;  %v7856_v51 = vadd.f32 %v7855_v33, %v12667_v58  ;;  %v8082_v24 = vadd.f32 %v9051_v63, %v7971_v57  ;;  %v9060_v59 = vld [vmem:[#allocation2 + $0x2e0] sm:$0xff] }
 0x53f   :  { %v7857_v56 = vpop.f32.mrf.mxu0  ;;  %8330 = vst [vmem:[#allocation5 + $0x238] sm:$0xff] %v8202_v9  ;;  %v8209_v14 = vmax.f32 %v8081_v1, 0.0  ;;  %v7975_v35 = vadd.f32 %v7974_v46, %v12675_v53  ;;  %v7976_v10 = vpop.f32.mrf.mxu1  ;;  %v9061_v1 = vld [vmem:[#allocation2 + $0x330] sm:$0xff] }
 0x540   :  { %8327 = vst [vmem:[#allocation5 + $0x220] sm:$0xff] %v8199_v2  ;;  %v7858_v16 = vadd.f32 %v7857_v56, %v12667_v58  ;;  %v8200_v15 = vmax.f32 %v8072_v36, 0.0  ;;  %v8079_v4 = vadd.f32 %v9052_v55, %v7856_v51  ;;  %v8210_v27 = vmax.f32 %v8082_v24, 0.0  ;;  %v9062_v36 = vld [vmem:[#allocation2 + $0x2e8] sm:$0xff]  ;;  %v9064_v55 = vld [vmem:[#allocation2 + $0x320] sm:$0xff] }
 0x541   :  { %v7861_v28 = vpop.f32.mrf.mxu0  ;;  %8337 = vst [vmem:[#allocation5 + $0x270] sm:$0xff] %v8209_v14  ;;  %v8089_v43 = vadd.f32 %v9053_v29, %v7975_v35  ;;  %v7977_v11 = vadd.f32 %v7976_v10, %v12675_v53  ;;  %v7978_v61 = vpop.f32.mrf.mxu1  ;;  %v9065_v29 = vld [vmem:[#allocation2 + $0x370] sm:$0xff] }
 0x542   :  { %v8080_v3 = vadd.f32 %v9054_v18, %v7858_v16  ;;  %8328 = vst [vmem:[#allocation5 + $0x228] sm:$0xff] %v8200_v15  ;;  %v8207_v62 = vmax.f32 %v8079_v4, 0.0  ;;  %v7862_v30 = vadd.f32 %v7861_v28, %v12675_v53  ;;  %8338 = vst [vmem:[#allocation5 + $0x278] sm:$0xff] %v8210_v27  ;;  %v7979_v21 = vadd.f32 %v7978_v61, %v12679_v47  ;;  %v9066_v18 = vld [vmem:[#allocation2 + $0x328] sm:$0xff] }
 0x543   :  { %v7863_v20 = vpop.f32.mrf.mxu0  ;;  %v8217_v58 = vmax.f32 %v8089_v43, 0.0  ;;  %v8090_v23 = vadd.f32 %v9055_v22, %v7977_v11  ;;  %v7980_v34 = vpop.f32.mrf.mxu1 }
 0x544   :  { %v8208_v42 = vmax.f32 %v8080_v3, 0.0  ;;  %8335 = vst [vmem:[#allocation5 + $0x260] sm:$0xff] %v8207_v62  ;;  %v8087_v26 = vadd.f32 %v9056_v52, %v7862_v30  ;;  %v7864_v8 = vadd.f32 %v7863_v20, %v12675_v53  ;;  %v8097_v5 = vadd.f32 %v9057_v0, %v7979_v21  ;;  %v9068_v21 = vld [vmem:[#allocation2 + $0x360] sm:$0xff] }
 0x545   :  { %v7865_v50 = vpop.f32.mrf.mxu0  ;;  %8345 = vst [vmem:[#allocation5 + $0x2b0] sm:$0xff] %v8217_v58  ;;  %v8218_v54 = vmax.f32 %v8090_v23, 0.0  ;;  %v7981_v40 = vadd.f32 %v7980_v34, %v12679_v47  ;;  %v7984_v6 = vpop.f32.mrf.mxu1 }
 0x546   :  { %8336 = vst [vmem:[#allocation5 + $0x268] sm:$0xff] %v8208_v42  ;;  %v7866_v48 = vadd.f32 %v7865_v50, %v12679_v47  ;;  %v8215_v44 = vmax.f32 %v8087_v26, 0.0  ;;  %v8088_v12 = vadd.f32 %v9058_v25, %v7864_v8  ;;  %v8225_v49 = vmax.f32 %v8097_v5, 0.0  ;;  %v9067_v42 = vld [vmem:[#allocation2 + $0x378] sm:$0xff] }
 0x547   :  { %v7867_v19 = vpop.f32.mrf.mxu0  ;;  %8346 = vst [vmem:[#allocation5 + $0x2b8] sm:$0xff] %v8218_v54  ;;  %v8098_v53 = vadd.f32 %v9059_v7, %v7981_v40  ;;  %v7985_v37 = vadd.f32 %v7984_v6, %v12687_v31  ;;  %v7986_v33 = vpop.f32.mrf.mxu1  ;;  %v9069_v54 = vld [vmem:[#allocation2 + $0x3b0] sm:$0xff]  ;;  %v9072_v7 = vld [vmem:[#allocation2 + $0x3a0] sm:$0xff] }
 0x548   :  { %v8095_v45 = vadd.f32 %v9060_v59, %v7866_v48  ;;  %8343 = vst [vmem:[#allocation5 + $0x2a0] sm:$0xff] %v8215_v44  ;;  %v8216_v39 = vmax.f32 %v8088_v12, 0.0  ;;  %v7868_v38 = vadd.f32 %v7867_v19, %v12679_v47  ;;  %8353 = vst [vmem:[#allocation5 + $0x2f0] sm:$0xff] %v8225_v49  ;;  %v7987_v32 = vadd.f32 %v7986_v33, %v12687_v31  ;;  %v9063_v47 = vld [vmem:[#allocation2 + $0x338] sm:$0xff]  ;;  %v9070_v44 = vld [vmem:[#allocation2 + $0x368] sm:$0xff] }
 0x549   :  { %v7871_v9 = vpop.f32.mrf.mxu0  ;;  %v8226_v2 = vmax.f32 %v8098_v53, 0.0  ;;  %v8105_v57 = vadd.f32 %v9061_v1, %v7985_v37  ;;  %v7988_v56 = vpop.f32.mrf.mxu1  ;;  %v9071_v49 = vld [vmem:[#allocation2 + $0x3b8] sm:$0xff] }
 0x54a   :  { %v8223_v60 = vmax.f32 %v8095_v45, 0.0  ;;  %8344 = vst [vmem:[#allocation5 + $0x2a8] sm:$0xff] %v8216_v39  ;;  %v8096_v51 = vadd.f32 %v9062_v36, %v7868_v38  ;;  %v7872_v46 = vadd.f32 %v7871_v9, %v12687_v31  ;;  %v8106_v24 = vadd.f32 %v9063_v47, %v7987_v32  ;;  %v9076_v47 = vld [vmem:[#allocation2 + $0x3e0] sm:$0xff] }
 0x54b   :  { %v7873_v14 = vpop.f32.mrf.mxu0  ;;  %8354 = vst [vmem:[#allocation5 + $0x2f8] sm:$0xff] %v8226_v2  ;;  %v8233_v63 = vmax.f32 %v8105_v57, 0.0  ;;  %v7989_v35 = vadd.f32 %v7988_v56, %v12691_v13  ;;  %v7990_v10 = vpop.f32.mrf.mxu1  ;;  %v9073_v2 = vld [vmem:[#allocation2 + $0x3f0] sm:$0xff]  ;;  %v9074_v57 = vld [vmem:[#allocation2 + $0x3a8] sm:$0xff]  ;;  %v9075_v56 = vld [vmem:[#allocation2 + $0x3f8] sm:$0xff] }
 0x54c   :  { %8351 = vst [vmem:[#allocation5 + $0x2e0] sm:$0xff] %v8223_v60  ;;  %v7874_v16 = vadd.f32 %v7873_v14, %v12687_v31  ;;  %v8224_v15 = vmax.f32 %v8096_v51, 0.0  ;;  %v8103_v4 = vadd.f32 %v9064_v55, %v7872_v46  ;;  %v8234_v27 = vmax.f32 %v8106_v24, 0.0 }
 0x54d   :  { %v7875_v28 = vpop.f32.mrf.mxu0  ;;  %8361 = vst [vmem:[#allocation5 + $0x330] sm:$0xff] %v8233_v63  ;;  %v8113_v43 = vadd.f32 %v9065_v29, %v7989_v35  ;;  %v7991_v11 = vadd.f32 %v7990_v10, %v12691_v13  ;;  %v7994_v61 = vpop.f32.mrf.mxu1 }
 0x54e   :  { %v8104_v3 = vadd.f32 %v9066_v18, %v7874_v16  ;;  %8352 = vst [vmem:[#allocation5 + $0x2e8] sm:$0xff] %v8224_v15  ;;  %v8231_v62 = vmax.f32 %v8103_v4, 0.0  ;;  %v7876_v30 = vadd.f32 %v7875_v28, %v12691_v13  ;;  %8362 = vst [vmem:[#allocation5 + $0x338] sm:$0xff] %v8234_v27  ;;  %v7995_v23 = vadd.f32 %v7994_v61, %v12699_v17  ;;  %v9077_v16 = vld [vmem:[#allocation2 + $0x3e8] sm:$0xff] }
 0x54f   :  { %v7877_v20 = vpop.f32.mrf.mxu0  ;;  %v8241_v31 = vmax.f32 %v8113_v43, 0.0  ;;  %v8114_v22 = vadd.f32 %v9067_v42, %v7991_v11  ;;  %v7996_v8 = vpop.f32.mrf.mxu1 }
 0x550   :  { %v8232_v58 = vmax.f32 %v8104_v3, 0.0  ;;  %8359 = vst [vmem:[#allocation5 + $0x320] sm:$0xff] %v8231_v62  ;;  %v8111_v52 = vadd.f32 %v9068_v21, %v7876_v30  ;;  %v7878_v26 = vadd.f32 %v7877_v20, %v12691_v13  ;;  %v8121_v0 = vadd.f32 %v9069_v54, %v7995_v23 }
 0x551   :  { %v7881_v34 = vpop.f32.mrf.mxu0  ;;  %8369 = vst [vmem:[#allocation5 + $0x370] sm:$0xff] %v8241_v31  ;;  %v8242_v50 = vmax.f32 %v8114_v22, 0.0  ;;  %v7997_v5 = vadd.f32 %v7996_v8, %v12699_v17  ;;  %v7998_v12 = vpop.f32.mrf.mxu1 }
 0x552   :  { %8360 = vst [vmem:[#allocation5 + $0x328] sm:$0xff] %v8232_v58  ;;  %v7882_v40 = vadd.f32 %v7881_v34, %v12699_v17  ;;  %v8239_v48 = vmax.f32 %v8111_v52, 0.0  ;;  %v8112_v25 = vadd.f32 %v9070_v44, %v7878_v26  ;;  %v8249_v19 = vmax.f32 %v8121_v0, 0.0 }
 0x553   :  { %v7883_v6 = vpop.f32.mrf.mxu0  ;;  %8370 = vst [vmem:[#allocation5 + $0x378] sm:$0xff] %v8242_v50  ;;  %v8122_v13 = vadd.f32 %v9071_v49, %v7997_v5  ;;  %v7999_v59 = vadd.f32 %v7998_v12, %v12703_v41  ;;  %v8000_v39 = vpop.f32.mrf.mxu1 }
 0x554   :  { %v8119_v53 = vadd.f32 %v9072_v7, %v7882_v40  ;;  %8367 = vst [vmem:[#allocation5 + $0x360] sm:$0xff] %v8239_v48  ;;  %v8240_v45 = vmax.f32 %v8112_v25, 0.0  ;;  %v7884_v37 = vadd.f32 %v7883_v6, %v12699_v17  ;;  %8377 = vst [vmem:[#allocation5 + $0x3b0] sm:$0xff] %v8249_v19  ;;  %v8001_v1 = vadd.f32 %v8000_v39, %v12703_v41 }
 0x555   :  { %v7885_v38 = vpop.f32.mrf.mxu0  ;;  %v8250_v33 = vmax.f32 %v8122_v13, 0.0  ;;  %v8129_v60 = vadd.f32 %v9073_v2, %v7999_v59 }
 0x556   :  { %v8247_v9 = vmax.f32 %v8119_v53, 0.0  ;;  %8368 = vst [vmem:[#allocation5 + $0x368] sm:$0xff] %v8240_v45  ;;  %v8120_v32 = vadd.f32 %v9074_v57, %v7884_v37  ;;  %v7886_v36 = vadd.f32 %v7885_v38, %v12703_v41  ;;  %v8130_v17 = vadd.f32 %v9075_v56, %v8001_v1 }
 0x557   :  { %v7887_v51 = vpop.f32.mrf.mxu0  ;;  %8378 = vst [vmem:[#allocation5 + $0x3b8] sm:$0xff] %v8250_v33  ;;  %v8257_v46 = vmax.f32 %v8129_v60, 0.0 }
 0x558   :  { %8375 = vst [vmem:[#allocation5 + $0x3a0] sm:$0xff] %v8247_v9  ;;  %v7888_v14 = vadd.f32 %v7887_v51, %v12703_v41  ;;  %v8248_v63 = vmax.f32 %v8120_v32, 0.0  ;;  %v8127_v24 = vadd.f32 %v9076_v47, %v7886_v36  ;;  %v8258_v35 = vmax.f32 %v8130_v17, 0.0 }
 0x559   :  { %8385 = vst [vmem:[#allocation5 + $0x3f0] sm:$0xff] %v8257_v46 }
 0x55a   :  { %v8128_v15 = vadd.f32 %v9077_v16, %v7888_v14  ;;  %8376 = vst [vmem:[#allocation5 + $0x3a8] sm:$0xff] %v8248_v63  ;;  %v8255_v55 = vmax.f32 %v8127_v24, 0.0  ;;  %8386 = vst [vmem:[#allocation5 + $0x3f8] sm:$0xff] %v8258_v35 }
 0x55c   :  { %v8256_v4 = vmax.f32 %v8128_v15, 0.0  ;;  %8383 = vst [vmem:[#allocation5 + $0x3e0] sm:$0xff] %v8255_v55 }
 0x55e   :  { %8384 = vst [vmem:[#allocation5 + $0x3e8] sm:$0xff] %v8256_v4 }
 0x55f   :  { %9109 = shalt.err (!%p9106_p9)
}
 0x560   :  { %8398 = dma.vmem_to_hbm [thread:$0]  %s8393_s26, 16384, %s12789_s7, [#allocation4], %s9123_s27, %s9123_s27, %s9124_s28  }
 0x561   :  { %9120 = dma.done.wait [#allocation4], 16384  }
 0x562   :  { %9121 = vsyncadd [#allocation4], 4294950912 }
 0x563   :  { %8402 = vsyncpa [#allocation3], 1 }
 0x564   :  { %8403 = vsyncpa [#allocation4], 1 }

</bundles_post_ra>
